<compile_context>
chip_gen: v7x
topology: tpu7x:2x2x1
jax: 0.10.0
libtpu: 0.0.40
codegen_flags: <defaults>
</compile_context>

<pallas_src>
import functools

import jax
import jax.numpy as jnp
from jax import lax
from jax.experimental import pallas as pl
from jax.experimental.pallas import tpu as pltpu

# (c_in, c_out, ksize, conv_stride, conv_pad, pool_k, pool_s)
BLOCK_CFG = [
    (1,   8, 16, 2, 7, 8, 4),
    (8,  12, 12, 2, 5, 4, 2),
    (12, 32,  9, 1, 4, 5, 2),
    (32, 64,  7, 1, 3, 4, 2),
    (64, 64,  5, 1, 2, 2, 2),
    (64, 64,  3, 1, 1, 2, 2),
    (64, 72,  3, 1, 1, 2, 2),
]
CLASS_COUNT = 5
BN_EPS = 1e-5
LINEAR_IN = 216          # 72 channels * final spatial length 3


def _sl(start, size, stride=1):
    """(Possibly strided) sublane slice helper."""
    return pl.ds(start, size) if stride == 1 else pl.ds(start, size, stride)


def _derive_geometry(l_in):
    """Static per-stage geometry (all Python ints, PyTorch floor semantics)."""
    geom = []
    l = l_in
    for idx, (c_in, c_out, k, s, pad, pk, ps) in enumerate(BLOCK_CFG):
        l_pad = l + 2 * pad
        l_out = (l_pad - k) // s + 1
        p_out = (l_out - pk) // ps + 1
        if idx == 0:
            # Stage-1 input arrives from the host already in im2col form
            # (l_out, k*c_in): lane-dense, single MXU matmul in-kernel.
            g = dict(in_rows=l_out, in_cols=k * c_in, pad=0, taps=1,
                     tap_w=k * c_in, stride=1, fuse=True,
                     l_out=l_out, c_out=c_out,
                     pool_k=pk, pool_s=ps, p_out=p_out)
        else:
            g = dict(in_rows=l_pad, in_cols=c_in, pad=pad, taps=k,
                     tap_w=c_in, stride=s, fuse=(c_in >= 32),
                     l_out=l_out, c_out=c_out,
                     pool_k=pk, pool_s=ps, p_out=p_out)
        geom.append(g)
        l = p_out
    return geom


def _conv_bn_pool_relu(in_ref, w_ref, b_ref, conv_ref, g):
    """One fused stage: conv (BN scale pre-folded) + shift + maxpool + relu.

    in_ref   : (in_rows, in_cols) padded input slab (VMEM)
    w_ref    : (taps*tap_w, c_out) im2col-packed, BN-scale-folded weight
    b_ref    : (1, c_out) BN shift
    conv_ref : (l_out, c_out) VMEM scratch for the conv+BN result
    returns  : (p_out, c_out) pooled + ReLU'd activation (value)
    """
    taps, tap_w, stride = g["taps"], g["tap_w"], g["stride"]
    l_out, c_out = g["l_out"], g["c_out"]
    pool_k, pool_s, p_out = g["pool_k"], g["pool_s"], g["p_out"]

    if taps == 1:
        # Stage 1: input is already the im2col matrix -> single matmul.
        conv = jnp.dot(in_ref[...], w_ref[...],
                       preferred_element_type=jnp.float32)
    elif g["fuse"]:
        # im2col: lane-concat the shifted views -> one matmul, K = taps*tap_w.
        col = jnp.concatenate(
            [in_ref[_sl(t, l_out, stride), :] for t in range(taps)], axis=-1)
        conv = jnp.dot(col, w_ref[...], preferred_element_type=jnp.float32)
    else:
        # Small-K stages (c_in = 8/12): per-tap dots; accumulator fits vregs.
        conv = jnp.zeros((l_out, c_out), jnp.float32)
        for t in range(taps):
            conv = conv + jnp.dot(in_ref[_sl(t, l_out, stride), :],
                                  w_ref[t * tap_w:(t + 1) * tap_w, :],
                                  preferred_element_type=jnp.float32)

    conv_ref[...] = conv + b_ref[...]

    # MaxPool1d (floor mode, no padding) over the sublane (spatial) axis.
    m = conv_ref[_sl(0, p_out, pool_s), :]
    for j in range(1, pool_k):
        m = jnp.maximum(m, conv_ref[_sl(j, p_out, pool_s), :])
    return jnp.maximum(m, 0.0)                      # ReLU


def _fused_kernel(*refs, geom):
    """Whole-network forward for one batch element, everything VMEM-resident."""
    n = len(geom)
    x_ref = refs[0]
    w_refs = [refs[1 + 2 * i] for i in range(n)]
    b_refs = [refs[2 + 2 * i] for i in range(n)]
    wlin_ref = refs[1 + 2 * n]
    o_ref = refs[2 + 2 * n]
    scr = refs[3 + 2 * n:]
    in_scr = scr[:n - 1]            # padded input slabs for stages 2..n
    conv_scr = scr[n - 1:]          # conv+BN results for stages 1..n

    act = None
    cur = x_ref
    for i, g in enumerate(geom):
        act = _conv_bn_pool_relu(cur, w_refs[i], b_refs[i], conv_scr[i], g)
        if i + 1 < n:
            nxt = in_scr[i]
            # In-kernel padding: zero the whole slab (covers both conv-pad
            # edges), then scatter the pooled activation into the interior.
            nxt[...] = jnp.zeros(nxt.shape, nxt.dtype)
            nxt[pl.ds(geom[i + 1]["pad"], g["p_out"]), :] = act
            cur = nxt

    # TODO(synk): Dropout(p=0.1) is identity here (eval-mode semantics).
    # Fused Linear(216 -> classCount, bias=False).  PyTorch's (C, L) flatten
    # ordering is baked into the (L, C, classCount) packing of wlin_ref.
    out = jnp.dot(act[0:1, :], wlin_ref[0], preferred_element_type=jnp.float32)
    for l in range(1, geom[-1]["p_out"]):
        out = out + jnp.dot(act[l:l + 1, :], wlin_ref[l],
                            preferred_element_type=jnp.float32)
    o_ref[...] = out


@jax.jit
def baseline_net(x_ncl, conv_params, w_lin_packed):
    """BaselineNet forward (eval mode).  x_ncl: (B, 1, L) PyTorch NCL layout."""
    b, c_in0, l_in = x_ncl.shape
    assert c_in0 == 1, "BaselineNet expects a single input channel"
    geom = _derive_geometry(l_in)
    n = len(geom)
    assert geom[-1]["p_out"] * geom[-1]["c_out"] == LINEAR_IN, (
        "input length incompatible with Linear(in_features=216)")

    # Host-side im2col of the first (c_in=1, stride=2, k=16) conv: one cheap
    # XLA fusion over the raw input; the kernel then sees a lane-denser
    # (l_out1, 16) block and stage 1 is a single matmul.
    _, _, k1, s1, pad1, _, _ = BLOCK_CFG[0]
    l_out1 = geom[0]["l_out"]
    x_pad = jnp.pad(x_ncl.reshape(b, l_in).astype(jnp.float32),
                    ((0, 0), (pad1, pad1)))
    x_col = jnp.stack(
        [x_pad[:, t:t + s1 * (l_out1 - 1) + 1:s1] for t in range(k1)], axis=-1)

    inputs = [x_col]
    in_specs = [pl.BlockSpec((None, l_out1, k1), lambda i: (i, 0, 0))]
    for p in conv_params:
        inputs += [p["w"], p["b"]]
        in_specs += [pl.BlockSpec(p["w"].shape, lambda i: (0, 0)),
                     pl.BlockSpec(p["b"].shape, lambda i: (0, 0))]
    inputs.append(w_lin_packed)
    in_specs.append(pl.BlockSpec(w_lin_packed.shape, lambda i: (0, 0, 0)))

    scratch = [pltpu.VMEM((g["in_rows"], g["in_cols"]), jnp.float32)
               for g in geom[1:]]
    scratch += [pltpu.VMEM((g["l_out"], g["c_out"]), jnp.float32) for g in geom]

    out = pl.pallas_call(
        functools.partial(_fused_kernel, geom=geom),
        out_shape=jax.ShapeDtypeStruct((b, 1, CLASS_COUNT), jnp.float32),
        grid=(b,),
        in_specs=in_specs,
        out_specs=pl.BlockSpec((None, 1, CLASS_COUNT), lambda i: (i, 0, 0)),
        scratch_shapes=scratch,
        compiler_params=pltpu.CompilerParams(
            dimension_semantics=("parallel",),     # batch across TCs on v7x
            vmem_limit_bytes=32 * 1024 * 1024),
    )(*inputs)
    return out.reshape(b, CLASS_COUNT)


def init_torch_params(key):
    """Deterministic synthetic parameters in PyTorch layout."""
    params = []
    for (c_in, c_out, k, *_r) in BLOCK_CFG:
        key, k1, k2, k3, k4, k5 = jax.random.split(key, 6)
        w = jax.random.normal(k1, (c_out, c_in, k), jnp.float32) / jnp.sqrt(
            float(c_in * k))
        gamma = 1.0 + 0.1 * jax.random.normal(k2, (c_out,), jnp.float32)
        beta = 0.1 * jax.random.normal(k3, (c_out,), jnp.float32)
        mean = 0.1 * jax.random.normal(k4, (c_out,), jnp.float32)
        var = jax.nn.softplus(jax.random.normal(k5, (c_out,), jnp.float32)) + 0.5
        params.append(dict(w=w, gamma=gamma, beta=beta, mean=mean, var=var))
    key, kl = jax.random.split(key)
    w_lin = jax.random.normal(kl, (CLASS_COUNT, LINEAR_IN), jnp.float32) / jnp.sqrt(
        float(LINEAR_IN))
    return params, w_lin


def pack_params(torch_params, w_lin):
    """Repack PyTorch-layout parameters for the fused kernel.

    * Conv weight (c_out, c_in, k) -> im2col layout (k*c_in, c_out) with the
      eval-mode BN scale folded in; the BN shift becomes a (1, c_out) bias.
    * Linear weight (classCount, 216) -> (L=3, C=72, classCount) so PyTorch's
      (C, L) flatten order is honored without an in-kernel transpose.
    """
    packed = []
    for p, (c_in, c_out, k, *_r) in zip(torch_params, BLOCK_CFG):
        scale = p["gamma"] / jnp.sqrt(p["var"] + BN_EPS)        # (c_out,)
        shift = p["beta"] - p["mean"] * scale
        w_col = jnp.transpose(p["w"], (2, 1, 0)).reshape(k * c_in, c_out)
        packed.append(dict(w=w_col * scale[None, :], b=shift.reshape(1, c_out)))
    c_last = BLOCK_CFG[-1][1]
    l_last = LINEAR_IN // c_last
    w_lin_packed = jnp.transpose(
        w_lin.reshape(CLASS_COUNT, c_last, l_last), (2, 1, 0))   # (3, 72, 5)
    return packed, w_lin_packed


def reference_forward(x_ncl, torch_params, w_lin):
    """Pure-JAX (XLA) reference of the PyTorch module in eval mode."""
    x = x_ncl.astype(jnp.float32)
    for p, (c_in, c_out, k, s, pad, pk, ps) in zip(torch_params, BLOCK_CFG):
        x = lax.conv_general_dilated(
            x, p["w"], window_strides=(s,), padding=[(pad, pad)],
            dimension_numbers=("NCH", "OIH", "NCH"),
            precision=lax.Precision.HIGHEST)
        scale = p["gamma"] / jnp.sqrt(p["var"] + BN_EPS)
        shift = p["beta"] - p["mean"] * scale
        x = x * scale[None, :, None] + shift[None, :, None]
        x = lax.reduce_window(x, -jnp.inf, lax.max, (1, 1, pk), (1, 1, ps),
                              "VALID")
        x = jnp.maximum(x, 0.0)
    x = x.reshape(x.shape[0], -1)           # PyTorch (B, C*L) flatten order
    return jnp.dot(x, w_lin.T, precision=lax.Precision.HIGHEST)


if __name__ == "__main__":
    key = jax.random.PRNGKey(0)
    pkey, xkey = jax.random.split(key)
    torch_params, w_lin = init_torch_params(pkey)
    conv_params, w_lin_packed = pack_params(torch_params, w_lin)

    # Linear(in_features=216) pins the network geometry: the final spatial
    # length must be 3, which the standard ECG input length L=3600 produces.
    B, L = 2, 3600
    x = jax.random.normal(xkey, (B, 1, L), jnp.float32)

    out = baseline_net(x, conv_params, w_lin_packed)
    jax.block_until_ready(out)
    assert out.shape == (B, CLASS_COUNT), out.shape
    assert bool(jnp.all(jnp.isfinite(out)))

    # Correctness vs. a pure-JAX (XLA) reference of the PyTorch module.
    ref = reference_forward(x, torch_params, w_lin)
    max_err = float(jnp.max(jnp.abs(out - ref)))
    assert max_err < 5e-2, f"mismatch vs reference, max abs err {max_err}"
    print("KERNEL_OK")
</pallas_src>

<mosaic_0001>
module attributes {stable_mosaic.version = 11 : i64} {
  func.func @_fused_kernel(%arg0: i32, %arg1: memref<1x1800x16xf32, #tpu.memory_space<vmem>>, %arg2: memref<16x8xf32, #tpu.memory_space<vmem>>, %arg3: memref<1x8xf32, #tpu.memory_space<vmem>>, %arg4: memref<96x12xf32, #tpu.memory_space<vmem>>, %arg5: memref<1x12xf32, #tpu.memory_space<vmem>>, %arg6: memref<108x32xf32, #tpu.memory_space<vmem>>, %arg7: memref<1x32xf32, #tpu.memory_space<vmem>>, %arg8: memref<224x64xf32, #tpu.memory_space<vmem>>, %arg9: memref<1x64xf32, #tpu.memory_space<vmem>>, %arg10: memref<320x64xf32, #tpu.memory_space<vmem>>, %arg11: memref<1x64xf32, #tpu.memory_space<vmem>>, %arg12: memref<192x64xf32, #tpu.memory_space<vmem>>, %arg13: memref<1x64xf32, #tpu.memory_space<vmem>>, %arg14: memref<192x72xf32, #tpu.memory_space<vmem>>, %arg15: memref<1x72xf32, #tpu.memory_space<vmem>>, %arg16: memref<3x72x5xf32, #tpu.memory_space<vmem>>, %arg17: memref<1x1x5xf32, #tpu.memory_space<vmem>>, %arg18: memref<459x8xf32, #tpu.memory_space<vmem>>, %arg19: memref<119x12xf32, #tpu.memory_space<vmem>>, %arg20: memref<60x32xf32, #tpu.memory_space<vmem>>, %arg21: memref<30x64xf32, #tpu.memory_space<vmem>>, %arg22: memref<15x64xf32, #tpu.memory_space<vmem>>, %arg23: memref<8x64xf32, #tpu.memory_space<vmem>>, %arg24: memref<1800x8xf32, #tpu.memory_space<vmem>>, %arg25: memref<224x12xf32, #tpu.memory_space<vmem>>, %arg26: memref<111x32xf32, #tpu.memory_space<vmem>>, %arg27: memref<54x64xf32, #tpu.memory_space<vmem>>, %arg28: memref<26x64xf32, #tpu.memory_space<vmem>>, %arg29: memref<13x64xf32, #tpu.memory_space<vmem>>, %arg30: memref<6x72xf32, #tpu.memory_space<vmem>>) attributes {dimension_semantics = [#tpu.dimension_semantics<parallel>], iteration_bounds = array<i64: 2>, scalar_prefetch = 0 : i64, scratch_operands = 13 : i64, tpu.core_type = #tpu.core_type<tc>, window_params = [{transform_indices = @transform_0, window_bounds = array<i64: 1, 1800, 16>}, {pipeline_mode = #tpu.pipeline_mode<synchronous>, transform_indices = @transform_1, window_bounds = array<i64: 16, 8>}, {pipeline_mode = #tpu.pipeline_mode<synchronous>, transform_indices = @transform_2, window_bounds = array<i64: 1, 8>}, {pipeline_mode = #tpu.pipeline_mode<synchronous>, transform_indices = @transform_3, window_bounds = array<i64: 96, 12>}, {pipeline_mode = #tpu.pipeline_mode<synchronous>, transform_indices = @transform_4, window_bounds = array<i64: 1, 12>}, {pipeline_mode = #tpu.pipeline_mode<synchronous>, transform_indices = @transform_5, window_bounds = array<i64: 108, 32>}, {pipeline_mode = #tpu.pipeline_mode<synchronous>, transform_indices = @transform_6, window_bounds = array<i64: 1, 32>}, {pipeline_mode = #tpu.pipeline_mode<synchronous>, transform_indices = @transform_7, window_bounds = array<i64: 224, 64>}, {pipeline_mode = #tpu.pipeline_mode<synchronous>, transform_indices = @transform_8, window_bounds = array<i64: 1, 64>}, {pipeline_mode = #tpu.pipeline_mode<synchronous>, transform_indices = @transform_9, window_bounds = array<i64: 320, 64>}, {pipeline_mode = #tpu.pipeline_mode<synchronous>, transform_indices = @transform_10, window_bounds = array<i64: 1, 64>}, {pipeline_mode = #tpu.pipeline_mode<synchronous>, transform_indices = @transform_11, window_bounds = array<i64: 192, 64>}, {pipeline_mode = #tpu.pipeline_mode<synchronous>, transform_indices = @transform_12, window_bounds = array<i64: 1, 64>}, {pipeline_mode = #tpu.pipeline_mode<synchronous>, transform_indices = @transform_13, window_bounds = array<i64: 192, 72>}, {pipeline_mode = #tpu.pipeline_mode<synchronous>, transform_indices = @transform_14, window_bounds = array<i64: 1, 72>}, {pipeline_mode = #tpu.pipeline_mode<synchronous>, transform_indices = @transform_15, window_bounds = array<i64: 3, 72, 5>}, {transform_indices = @transform_16, window_bounds = array<i64: 1, 1, 5>}]} {
    %c0 = arith.constant 0 : index
    %c0_0 = arith.constant 0 : index
    %c0_1 = arith.constant 0 : index
    %0 = vector.load %arg1[%c0, %c0_0, %c0_1] : memref<1x1800x16xf32, #tpu.memory_space<vmem>>, vector<1x1800x16xf32>
    %1 = vector.shape_cast %0 : vector<1x1800x16xf32> to vector<1800x16xf32>
    %c0_2 = arith.constant 0 : index
    %c0_3 = arith.constant 0 : index
    %2 = vector.load %arg2[%c0_2, %c0_3] : memref<16x8xf32, #tpu.memory_space<vmem>>, vector<16x8xf32>
    %cst = arith.constant dense<0.000000e+00> : vector<1800x8xf32>
    %3 = tpu.matmul %1, %2, %cst {dimension_numbers = #tpu.dot_dimension_numbers<[1], [0], [0], [1], [0, 0, 1, 1], [], []>} : vector<1800x16xf32>, vector<16x8xf32>, vector<1800x8xf32> -> vector<1800x8xf32>
    %c0_4 = arith.constant 0 : index
    %c0_5 = arith.constant 0 : index
    %4 = vector.load %arg3[%c0_4, %c0_5] : memref<1x8xf32, #tpu.memory_space<vmem>>, vector<1x8xf32>
    %5 = vector.broadcast %4 : vector<1x8xf32> to vector<1800x8xf32>
    %6 = arith.addf %3, %5 : vector<1800x8xf32>
    %c0_6 = arith.constant 0 : index
    %c0_7 = arith.constant 0 : index
    %7 = vector.load %arg24[%c0_6, %c0_7] : memref<1800x8xf32, #tpu.memory_space<vmem>>, vector<1800x8xf32>
    tpu.vector_store %arg24[%c0_6, %c0_7], %6 {strides = array<i32>} : memref<1800x8xf32, #tpu.memory_space<vmem>>, vector<1800x8xf32>,
    %c0_8 = arith.constant 0 : index
    %c0_9 = arith.constant 0 : index
    %8 = tpu.strided_load %arg24[%c0_8, %c0_9] {strides = array<i32: 4, 1>} : memref<1800x8xf32, #tpu.memory_space<vmem>>, vector<449x8xf32>
    %c1 = arith.constant 1 : index
    %c0_10 = arith.constant 0 : index
    %9 = tpu.strided_load %arg24[%c1, %c0_10] {strides = array<i32: 4, 1>} : memref<1800x8xf32, #tpu.memory_space<vmem>>, vector<449x8xf32>
    %10 = arith.maximumf %8, %9 : vector<449x8xf32>
    %c2 = arith.constant 2 : index
    %c0_11 = arith.constant 0 : index
    %11 = tpu.strided_load %arg24[%c2, %c0_11] {strides = array<i32: 4, 1>} : memref<1800x8xf32, #tpu.memory_space<vmem>>, vector<449x8xf32>
    %12 = arith.maximumf %10, %11 : vector<449x8xf32>
    %c3 = arith.constant 3 : index
    %c0_12 = arith.constant 0 : index
    %13 = tpu.strided_load %arg24[%c3, %c0_12] {strides = array<i32: 4, 1>} : memref<1800x8xf32, #tpu.memory_space<vmem>>, vector<449x8xf32>
    %14 = arith.maximumf %12, %13 : vector<449x8xf32>
    %c4 = arith.constant 4 : index
    %c0_13 = arith.constant 0 : index
    %15 = tpu.strided_load %arg24[%c4, %c0_13] {strides = array<i32: 4, 1>} : memref<1800x8xf32, #tpu.memory_space<vmem>>, vector<449x8xf32>
    %16 = arith.maximumf %14, %15 : vector<449x8xf32>
    %c5 = arith.constant 5 : index
    %c0_14 = arith.constant 0 : index
    %17 = tpu.strided_load %arg24[%c5, %c0_14] {strides = array<i32: 4, 1>} : memref<1800x8xf32, #tpu.memory_space<vmem>>, vector<449x8xf32>
    %18 = arith.maximumf %16, %17 : vector<449x8xf32>
    %c6 = arith.constant 6 : index
    %c0_15 = arith.constant 0 : index
    %19 = tpu.strided_load %arg24[%c6, %c0_15] {strides = array<i32: 4, 1>} : memref<1800x8xf32, #tpu.memory_space<vmem>>, vector<449x8xf32>
    %20 = arith.maximumf %18, %19 : vector<449x8xf32>
    %c7 = arith.constant 7 : index
    %c0_16 = arith.constant 0 : index
    %21 = tpu.strided_load %arg24[%c7, %c0_16] {strides = array<i32: 4, 1>} : memref<1800x8xf32, #tpu.memory_space<vmem>>, vector<449x8xf32>
    %22 = arith.maximumf %20, %21 : vector<449x8xf32>
    %cst_17 = arith.constant 0.000000e+00 : f32
    %23 = vector.broadcast %cst_17 : f32 to vector<449x8xf32>
    %24 = arith.maximumf %22, %23 : vector<449x8xf32>
    %cst_18 = arith.constant 0.000000e+00 : f32
    %25 = vector.broadcast %cst_18 : f32 to vector<459x8xf32>
    %c0_19 = arith.constant 0 : index
    %c0_20 = arith.constant 0 : index
    %26 = vector.load %arg18[%c0_19, %c0_20] : memref<459x8xf32, #tpu.memory_space<vmem>>, vector<459x8xf32>
    tpu.vector_store %arg18[%c0_19, %c0_20], %25 {strides = array<i32>} : memref<459x8xf32, #tpu.memory_space<vmem>>, vector<459x8xf32>,
    %c5_21 = arith.constant 5 : index
    %c0_22 = arith.constant 0 : index
    %27 = vector.load %arg18[%c5_21, %c0_22] : memref<459x8xf32, #tpu.memory_space<vmem>>, vector<449x8xf32>
    tpu.vector_store %arg18[%c5_21, %c0_22], %24 {strides = array<i32>} : memref<459x8xf32, #tpu.memory_space<vmem>>, vector<449x8xf32>,
    %cst_23 = arith.constant 0.000000e+00 : f32
    %28 = vector.broadcast %cst_23 : f32 to vector<224x12xf32>
    %c0_24 = arith.constant 0 : index
    %c0_25 = arith.constant 0 : index
    %29 = tpu.strided_load %arg18[%c0_24, %c0_25] {strides = array<i32: 2, 1>} : memref<459x8xf32, #tpu.memory_space<vmem>>, vector<224x8xf32>
    %c0_26 = arith.constant 0 : index
    %c0_27 = arith.constant 0 : index
    %30 = vector.load %arg4[%c0_26, %c0_27] : memref<96x12xf32, #tpu.memory_space<vmem>>, vector<8x12xf32>
    %cst_28 = arith.constant dense<0.000000e+00> : vector<224x12xf32>
    %31 = tpu.matmul %29, %30, %cst_28 {dimension_numbers = #tpu.dot_dimension_numbers<[1], [0], [0], [1], [0, 0, 1, 1], [], []>} : vector<224x8xf32>, vector<8x12xf32>, vector<224x12xf32> -> vector<224x12xf32>
    %32 = arith.addf %28, %31 : vector<224x12xf32>
    %c1_29 = arith.constant 1 : index
    %c0_30 = arith.constant 0 : index
    %33 = tpu.strided_load %arg18[%c1_29, %c0_30] {strides = array<i32: 2, 1>} : memref<459x8xf32, #tpu.memory_space<vmem>>, vector<224x8xf32>
    %c8 = arith.constant 8 : index
    %c0_31 = arith.constant 0 : index
    %34 = vector.load %arg4[%c8, %c0_31] : memref<96x12xf32, #tpu.memory_space<vmem>>, vector<8x12xf32>
    %cst_32 = arith.constant dense<0.000000e+00> : vector<224x12xf32>
    %35 = tpu.matmul %33, %34, %cst_32 {dimension_numbers = #tpu.dot_dimension_numbers<[1], [0], [0], [1], [0, 0, 1, 1], [], []>} : vector<224x8xf32>, vector<8x12xf32>, vector<224x12xf32> -> vector<224x12xf32>
    %36 = arith.addf %32, %35 : vector<224x12xf32>
    %c2_33 = arith.constant 2 : index
    %c0_34 = arith.constant 0 : index
    %37 = tpu.strided_load %arg18[%c2_33, %c0_34] {strides = array<i32: 2, 1>} : memref<459x8xf32, #tpu.memory_space<vmem>>, vector<224x8xf32>
    %c16 = arith.constant 16 : index
    %c0_35 = arith.constant 0 : index
    %38 = vector.load %arg4[%c16, %c0_35] : memref<96x12xf32, #tpu.memory_space<vmem>>, vector<8x12xf32>
    %cst_36 = arith.constant dense<0.000000e+00> : vector<224x12xf32>
    %39 = tpu.matmul %37, %38, %cst_36 {dimension_numbers = #tpu.dot_dimension_numbers<[1], [0], [0], [1], [0, 0, 1, 1], [], []>} : vector<224x8xf32>, vector<8x12xf32>, vector<224x12xf32> -> vector<224x12xf32>
    %40 = arith.addf %36, %39 : vector<224x12xf32>
    %c3_37 = arith.constant 3 : index
    %c0_38 = arith.constant 0 : index
    %41 = tpu.strided_load %arg18[%c3_37, %c0_38] {strides = array<i32: 2, 1>} : memref<459x8xf32, #tpu.memory_space<vmem>>, vector<224x8xf32>
    %c24 = arith.constant 24 : index
    %c0_39 = arith.constant 0 : index
    %42 = vector.load %arg4[%c24, %c0_39] : memref<96x12xf32, #tpu.memory_space<vmem>>, vector<8x12xf32>
    %cst_40 = arith.constant dense<0.000000e+00> : vector<224x12xf32>
    %43 = tpu.matmul %41, %42, %cst_40 {dimension_numbers = #tpu.dot_dimension_numbers<[1], [0], [0], [1], [0, 0, 1, 1], [], []>} : vector<224x8xf32>, vector<8x12xf32>, vector<224x12xf32> -> vector<224x12xf32>
    %44 = arith.addf %40, %43 : vector<224x12xf32>
    %c4_41 = arith.constant 4 : index
    %c0_42 = arith.constant 0 : index
    %45 = tpu.strided_load %arg18[%c4_41, %c0_42] {strides = array<i32: 2, 1>} : memref<459x8xf32, #tpu.memory_space<vmem>>, vector<224x8xf32>
    %c32 = arith.constant 32 : index
    %c0_43 = arith.constant 0 : index
    %46 = vector.load %arg4[%c32, %c0_43] : memref<96x12xf32, #tpu.memory_space<vmem>>, vector<8x12xf32>
    %cst_44 = arith.constant dense<0.000000e+00> : vector<224x12xf32>
    %47 = tpu.matmul %45, %46, %cst_44 {dimension_numbers = #tpu.dot_dimension_numbers<[1], [0], [0], [1], [0, 0, 1, 1], [], []>} : vector<224x8xf32>, vector<8x12xf32>, vector<224x12xf32> -> vector<224x12xf32>
    %48 = arith.addf %44, %47 : vector<224x12xf32>
    %c5_45 = arith.constant 5 : index
    %c0_46 = arith.constant 0 : index
    %49 = tpu.strided_load %arg18[%c5_45, %c0_46] {strides = array<i32: 2, 1>} : memref<459x8xf32, #tpu.memory_space<vmem>>, vector<224x8xf32>
    %c40 = arith.constant 40 : index
    %c0_47 = arith.constant 0 : index
    %50 = vector.load %arg4[%c40, %c0_47] : memref<96x12xf32, #tpu.memory_space<vmem>>, vector<8x12xf32>
    %cst_48 = arith.constant dense<0.000000e+00> : vector<224x12xf32>
    %51 = tpu.matmul %49, %50, %cst_48 {dimension_numbers = #tpu.dot_dimension_numbers<[1], [0], [0], [1], [0, 0, 1, 1], [], []>} : vector<224x8xf32>, vector<8x12xf32>, vector<224x12xf32> -> vector<224x12xf32>
    %52 = arith.addf %48, %51 : vector<224x12xf32>
    %c6_49 = arith.constant 6 : index
    %c0_50 = arith.constant 0 : index
    %53 = tpu.strided_load %arg18[%c6_49, %c0_50] {strides = array<i32: 2, 1>} : memref<459x8xf32, #tpu.memory_space<vmem>>, vector<224x8xf32>
    %c48 = arith.constant 48 : index
    %c0_51 = arith.constant 0 : index
    %54 = vector.load %arg4[%c48, %c0_51] : memref<96x12xf32, #tpu.memory_space<vmem>>, vector<8x12xf32>
    %cst_52 = arith.constant dense<0.000000e+00> : vector<224x12xf32>
    %55 = tpu.matmul %53, %54, %cst_52 {dimension_numbers = #tpu.dot_dimension_numbers<[1], [0], [0], [1], [0, 0, 1, 1], [], []>} : vector<224x8xf32>, vector<8x12xf32>, vector<224x12xf32> -> vector<224x12xf32>
    %56 = arith.addf %52, %55 : vector<224x12xf32>
    %c7_53 = arith.constant 7 : index
    %c0_54 = arith.constant 0 : index
    %57 = tpu.strided_load %arg18[%c7_53, %c0_54] {strides = array<i32: 2, 1>} : memref<459x8xf32, #tpu.memory_space<vmem>>, vector<224x8xf32>
    %c56 = arith.constant 56 : index
    %c0_55 = arith.constant 0 : index
    %58 = vector.load %arg4[%c56, %c0_55] : memref<96x12xf32, #tpu.memory_space<vmem>>, vector<8x12xf32>
    %cst_56 = arith.constant dense<0.000000e+00> : vector<224x12xf32>
    %59 = tpu.matmul %57, %58, %cst_56 {dimension_numbers = #tpu.dot_dimension_numbers<[1], [0], [0], [1], [0, 0, 1, 1], [], []>} : vector<224x8xf32>, vector<8x12xf32>, vector<224x12xf32> -> vector<224x12xf32>
    %60 = arith.addf %56, %59 : vector<224x12xf32>
    %c8_57 = arith.constant 8 : index
    %c0_58 = arith.constant 0 : index
    %61 = tpu.strided_load %arg18[%c8_57, %c0_58] {strides = array<i32: 2, 1>} : memref<459x8xf32, #tpu.memory_space<vmem>>, vector<224x8xf32>
    %c64 = arith.constant 64 : index
    %c0_59 = arith.constant 0 : index
    %62 = vector.load %arg4[%c64, %c0_59] : memref<96x12xf32, #tpu.memory_space<vmem>>, vector<8x12xf32>
    %cst_60 = arith.constant dense<0.000000e+00> : vector<224x12xf32>
    %63 = tpu.matmul %61, %62, %cst_60 {dimension_numbers = #tpu.dot_dimension_numbers<[1], [0], [0], [1], [0, 0, 1, 1], [], []>} : vector<224x8xf32>, vector<8x12xf32>, vector<224x12xf32> -> vector<224x12xf32>
    %64 = arith.addf %60, %63 : vector<224x12xf32>
    %c9 = arith.constant 9 : index
    %c0_61 = arith.constant 0 : index
    %65 = tpu.strided_load %arg18[%c9, %c0_61] {strides = array<i32: 2, 1>} : memref<459x8xf32, #tpu.memory_space<vmem>>, vector<224x8xf32>
    %c72 = arith.constant 72 : index
    %c0_62 = arith.constant 0 : index
    %66 = vector.load %arg4[%c72, %c0_62] : memref<96x12xf32, #tpu.memory_space<vmem>>, vector<8x12xf32>
    %cst_63 = arith.constant dense<0.000000e+00> : vector<224x12xf32>
    %67 = tpu.matmul %65, %66, %cst_63 {dimension_numbers = #tpu.dot_dimension_numbers<[1], [0], [0], [1], [0, 0, 1, 1], [], []>} : vector<224x8xf32>, vector<8x12xf32>, vector<224x12xf32> -> vector<224x12xf32>
    %68 = arith.addf %64, %67 : vector<224x12xf32>
    %c10 = arith.constant 10 : index
    %c0_64 = arith.constant 0 : index
    %69 = tpu.strided_load %arg18[%c10, %c0_64] {strides = array<i32: 2, 1>} : memref<459x8xf32, #tpu.memory_space<vmem>>, vector<224x8xf32>
    %c80 = arith.constant 80 : index
    %c0_65 = arith.constant 0 : index
    %70 = vector.load %arg4[%c80, %c0_65] : memref<96x12xf32, #tpu.memory_space<vmem>>, vector<8x12xf32>
    %cst_66 = arith.constant dense<0.000000e+00> : vector<224x12xf32>
    %71 = tpu.matmul %69, %70, %cst_66 {dimension_numbers = #tpu.dot_dimension_numbers<[1], [0], [0], [1], [0, 0, 1, 1], [], []>} : vector<224x8xf32>, vector<8x12xf32>, vector<224x12xf32> -> vector<224x12xf32>
    %72 = arith.addf %68, %71 : vector<224x12xf32>
    %c11 = arith.constant 11 : index
    %c0_67 = arith.constant 0 : index
    %73 = tpu.strided_load %arg18[%c11, %c0_67] {strides = array<i32: 2, 1>} : memref<459x8xf32, #tpu.memory_space<vmem>>, vector<224x8xf32>
    %c88 = arith.constant 88 : index
    %c0_68 = arith.constant 0 : index
    %74 = vector.load %arg4[%c88, %c0_68] : memref<96x12xf32, #tpu.memory_space<vmem>>, vector<8x12xf32>
    %cst_69 = arith.constant dense<0.000000e+00> : vector<224x12xf32>
    %75 = tpu.matmul %73, %74, %cst_69 {dimension_numbers = #tpu.dot_dimension_numbers<[1], [0], [0], [1], [0, 0, 1, 1], [], []>} : vector<224x8xf32>, vector<8x12xf32>, vector<224x12xf32> -> vector<224x12xf32>
    %76 = arith.addf %72, %75 : vector<224x12xf32>
    %c0_70 = arith.constant 0 : index
    %c0_71 = arith.constant 0 : index
    %77 = vector.load %arg5[%c0_70, %c0_71] : memref<1x12xf32, #tpu.memory_space<vmem>>, vector<1x12xf32>
    %78 = vector.broadcast %77 : vector<1x12xf32> to vector<224x12xf32>
    %79 = arith.addf %76, %78 : vector<224x12xf32>
    %c0_72 = arith.constant 0 : index
    %c0_73 = arith.constant 0 : index
    %80 = vector.load %arg25[%c0_72, %c0_73] : memref<224x12xf32, #tpu.memory_space<vmem>>, vector<224x12xf32>
    tpu.vector_store %arg25[%c0_72, %c0_73], %79 {strides = array<i32>} : memref<224x12xf32, #tpu.memory_space<vmem>>, vector<224x12xf32>,
    %c0_74 = arith.constant 0 : index
    %c0_75 = arith.constant 0 : index
    %81 = tpu.strided_load %arg25[%c0_74, %c0_75] {strides = array<i32: 2, 1>} : memref<224x12xf32, #tpu.memory_space<vmem>>, vector<111x12xf32>
    %c1_76 = arith.constant 1 : index
    %c0_77 = arith.constant 0 : index
    %82 = tpu.strided_load %arg25[%c1_76, %c0_77] {strides = array<i32: 2, 1>} : memref<224x12xf32, #tpu.memory_space<vmem>>, vector<111x12xf32>
    %83 = arith.maximumf %81, %82 : vector<111x12xf32>
    %c2_78 = arith.constant 2 : index
    %c0_79 = arith.constant 0 : index
    %84 = tpu.strided_load %arg25[%c2_78, %c0_79] {strides = array<i32: 2, 1>} : memref<224x12xf32, #tpu.memory_space<vmem>>, vector<111x12xf32>
    %85 = arith.maximumf %83, %84 : vector<111x12xf32>
    %c3_80 = arith.constant 3 : index
    %c0_81 = arith.constant 0 : index
    %86 = tpu.strided_load %arg25[%c3_80, %c0_81] {strides = array<i32: 2, 1>} : memref<224x12xf32, #tpu.memory_space<vmem>>, vector<111x12xf32>
    %87 = arith.maximumf %85, %86 : vector<111x12xf32>
    %cst_82 = arith.constant 0.000000e+00 : f32
    %88 = vector.broadcast %cst_82 : f32 to vector<111x12xf32>
    %89 = arith.maximumf %87, %88 : vector<111x12xf32>
    %cst_83 = arith.constant 0.000000e+00 : f32
    %90 = vector.broadcast %cst_83 : f32 to vector<119x12xf32>
    %c0_84 = arith.constant 0 : index
    %c0_85 = arith.constant 0 : index
    %91 = vector.load %arg19[%c0_84, %c0_85] : memref<119x12xf32, #tpu.memory_space<vmem>>, vector<119x12xf32>
    tpu.vector_store %arg19[%c0_84, %c0_85], %90 {strides = array<i32>} : memref<119x12xf32, #tpu.memory_space<vmem>>, vector<119x12xf32>,
    %c4_86 = arith.constant 4 : index
    %c0_87 = arith.constant 0 : index
    %92 = vector.load %arg19[%c4_86, %c0_87] : memref<119x12xf32, #tpu.memory_space<vmem>>, vector<111x12xf32>
    tpu.vector_store %arg19[%c4_86, %c0_87], %89 {strides = array<i32>} : memref<119x12xf32, #tpu.memory_space<vmem>>, vector<111x12xf32>,
    %cst_88 = arith.constant 0.000000e+00 : f32
    %93 = vector.broadcast %cst_88 : f32 to vector<111x32xf32>
    %c0_89 = arith.constant 0 : index
    %c0_90 = arith.constant 0 : index
    %94 = vector.load %arg19[%c0_89, %c0_90] : memref<119x12xf32, #tpu.memory_space<vmem>>, vector<111x12xf32>
    %c0_91 = arith.constant 0 : index
    %c0_92 = arith.constant 0 : index
    %95 = vector.load %arg6[%c0_91, %c0_92] : memref<108x32xf32, #tpu.memory_space<vmem>>, vector<12x32xf32>
    %cst_93 = arith.constant dense<0.000000e+00> : vector<111x32xf32>
    %96 = tpu.matmul %94, %95, %cst_93 {dimension_numbers = #tpu.dot_dimension_numbers<[1], [0], [0], [1], [0, 0, 1, 1], [], []>} : vector<111x12xf32>, vector<12x32xf32>, vector<111x32xf32> -> vector<111x32xf32>
    %97 = arith.addf %93, %96 : vector<111x32xf32>
    %c1_94 = arith.constant 1 : index
    %c0_95 = arith.constant 0 : index
    %98 = vector.load %arg19[%c1_94, %c0_95] : memref<119x12xf32, #tpu.memory_space<vmem>>, vector<111x12xf32>
    %c12 = arith.constant 12 : index
    %c0_96 = arith.constant 0 : index
    %99 = vector.load %arg6[%c12, %c0_96] : memref<108x32xf32, #tpu.memory_space<vmem>>, vector<12x32xf32>
    %cst_97 = arith.constant dense<0.000000e+00> : vector<111x32xf32>
    %100 = tpu.matmul %98, %99, %cst_97 {dimension_numbers = #tpu.dot_dimension_numbers<[1], [0], [0], [1], [0, 0, 1, 1], [], []>} : vector<111x12xf32>, vector<12x32xf32>, vector<111x32xf32> -> vector<111x32xf32>
    %101 = arith.addf %97, %100 : vector<111x32xf32>
    %c2_98 = arith.constant 2 : index
    %c0_99 = arith.constant 0 : index
    %102 = vector.load %arg19[%c2_98, %c0_99] : memref<119x12xf32, #tpu.memory_space<vmem>>, vector<111x12xf32>
    %c24_100 = arith.constant 24 : index
    %c0_101 = arith.constant 0 : index
    %103 = vector.load %arg6[%c24_100, %c0_101] : memref<108x32xf32, #tpu.memory_space<vmem>>, vector<12x32xf32>
    %cst_102 = arith.constant dense<0.000000e+00> : vector<111x32xf32>
    %104 = tpu.matmul %102, %103, %cst_102 {dimension_numbers = #tpu.dot_dimension_numbers<[1], [0], [0], [1], [0, 0, 1, 1], [], []>} : vector<111x12xf32>, vector<12x32xf32>, vector<111x32xf32> -> vector<111x32xf32>
    %105 = arith.addf %101, %104 : vector<111x32xf32>
    %c3_103 = arith.constant 3 : index
    %c0_104 = arith.constant 0 : index
    %106 = vector.load %arg19[%c3_103, %c0_104] : memref<119x12xf32, #tpu.memory_space<vmem>>, vector<111x12xf32>
    %c36 = arith.constant 36 : index
    %c0_105 = arith.constant 0 : index
    %107 = vector.load %arg6[%c36, %c0_105] : memref<108x32xf32, #tpu.memory_space<vmem>>, vector<12x32xf32>
    %cst_106 = arith.constant dense<0.000000e+00> : vector<111x32xf32>
    %108 = tpu.matmul %106, %107, %cst_106 {dimension_numbers = #tpu.dot_dimension_numbers<[1], [0], [0], [1], [0, 0, 1, 1], [], []>} : vector<111x12xf32>, vector<12x32xf32>, vector<111x32xf32> -> vector<111x32xf32>
    %109 = arith.addf %105, %108 : vector<111x32xf32>
    %c4_107 = arith.constant 4 : index
    %c0_108 = arith.constant 0 : index
    %110 = vector.load %arg19[%c4_107, %c0_108] : memref<119x12xf32, #tpu.memory_space<vmem>>, vector<111x12xf32>
    %c48_109 = arith.constant 48 : index
    %c0_110 = arith.constant 0 : index
    %111 = vector.load %arg6[%c48_109, %c0_110] : memref<108x32xf32, #tpu.memory_space<vmem>>, vector<12x32xf32>
    %cst_111 = arith.constant dense<0.000000e+00> : vector<111x32xf32>
    %112 = tpu.matmul %110, %111, %cst_111 {dimension_numbers = #tpu.dot_dimension_numbers<[1], [0], [0], [1], [0, 0, 1, 1], [], []>} : vector<111x12xf32>, vector<12x32xf32>, vector<111x32xf32> -> vector<111x32xf32>
    %113 = arith.addf %109, %112 : vector<111x32xf32>
    %c5_112 = arith.constant 5 : index
    %c0_113 = arith.constant 0 : index
    %114 = vector.load %arg19[%c5_112, %c0_113] : memref<119x12xf32, #tpu.memory_space<vmem>>, vector<111x12xf32>
    %c60 = arith.constant 60 : index
    %c0_114 = arith.constant 0 : index
    %115 = vector.load %arg6[%c60, %c0_114] : memref<108x32xf32, #tpu.memory_space<vmem>>, vector<12x32xf32>
    %cst_115 = arith.constant dense<0.000000e+00> : vector<111x32xf32>
    %116 = tpu.matmul %114, %115, %cst_115 {dimension_numbers = #tpu.dot_dimension_numbers<[1], [0], [0], [1], [0, 0, 1, 1], [], []>} : vector<111x12xf32>, vector<12x32xf32>, vector<111x32xf32> -> vector<111x32xf32>
    %117 = arith.addf %113, %116 : vector<111x32xf32>
    %c6_116 = arith.constant 6 : index
    %c0_117 = arith.constant 0 : index
    %118 = vector.load %arg19[%c6_116, %c0_117] : memref<119x12xf32, #tpu.memory_space<vmem>>, vector<111x12xf32>
    %c72_118 = arith.constant 72 : index
    %c0_119 = arith.constant 0 : index
    %119 = vector.load %arg6[%c72_118, %c0_119] : memref<108x32xf32, #tpu.memory_space<vmem>>, vector<12x32xf32>
    %cst_120 = arith.constant dense<0.000000e+00> : vector<111x32xf32>
    %120 = tpu.matmul %118, %119, %cst_120 {dimension_numbers = #tpu.dot_dimension_numbers<[1], [0], [0], [1], [0, 0, 1, 1], [], []>} : vector<111x12xf32>, vector<12x32xf32>, vector<111x32xf32> -> vector<111x32xf32>
    %121 = arith.addf %117, %120 : vector<111x32xf32>
    %c7_121 = arith.constant 7 : index
    %c0_122 = arith.constant 0 : index
    %122 = vector.load %arg19[%c7_121, %c0_122] : memref<119x12xf32, #tpu.memory_space<vmem>>, vector<111x12xf32>
    %c84 = arith.constant 84 : index
    %c0_123 = arith.constant 0 : index
    %123 = vector.load %arg6[%c84, %c0_123] : memref<108x32xf32, #tpu.memory_space<vmem>>, vector<12x32xf32>
    %cst_124 = arith.constant dense<0.000000e+00> : vector<111x32xf32>
    %124 = tpu.matmul %122, %123, %cst_124 {dimension_numbers = #tpu.dot_dimension_numbers<[1], [0], [0], [1], [0, 0, 1, 1], [], []>} : vector<111x12xf32>, vector<12x32xf32>, vector<111x32xf32> -> vector<111x32xf32>
    %125 = arith.addf %121, %124 : vector<111x32xf32>
    %c8_125 = arith.constant 8 : index
    %c0_126 = arith.constant 0 : index
    %126 = vector.load %arg19[%c8_125, %c0_126] : memref<119x12xf32, #tpu.memory_space<vmem>>, vector<111x12xf32>
    %c96 = arith.constant 96 : index
    %c0_127 = arith.constant 0 : index
    %127 = vector.load %arg6[%c96, %c0_127] : memref<108x32xf32, #tpu.memory_space<vmem>>, vector<12x32xf32>
    %cst_128 = arith.constant dense<0.000000e+00> : vector<111x32xf32>
    %128 = tpu.matmul %126, %127, %cst_128 {dimension_numbers = #tpu.dot_dimension_numbers<[1], [0], [0], [1], [0, 0, 1, 1], [], []>} : vector<111x12xf32>, vector<12x32xf32>, vector<111x32xf32> -> vector<111x32xf32>
    %129 = arith.addf %125, %128 : vector<111x32xf32>
    %c0_129 = arith.constant 0 : index
    %c0_130 = arith.constant 0 : index
    %130 = vector.load %arg7[%c0_129, %c0_130] : memref<1x32xf32, #tpu.memory_space<vmem>>, vector<1x32xf32>
    %131 = vector.broadcast %130 : vector<1x32xf32> to vector<111x32xf32>
    %132 = arith.addf %129, %131 : vector<111x32xf32>
    %c0_131 = arith.constant 0 : index
    %c0_132 = arith.constant 0 : index
    %133 = vector.load %arg26[%c0_131, %c0_132] : memref<111x32xf32, #tpu.memory_space<vmem>>, vector<111x32xf32>
    tpu.vector_store %arg26[%c0_131, %c0_132], %132 {strides = array<i32>} : memref<111x32xf32, #tpu.memory_space<vmem>>, vector<111x32xf32>,
    %c0_133 = arith.constant 0 : index
    %c0_134 = arith.constant 0 : index
    %134 = tpu.strided_load %arg26[%c0_133, %c0_134] {strides = array<i32: 2, 1>} : memref<111x32xf32, #tpu.memory_space<vmem>>, vector<54x32xf32>
    %c1_135 = arith.constant 1 : index
    %c0_136 = arith.constant 0 : index
    %135 = tpu.strided_load %arg26[%c1_135, %c0_136] {strides = array<i32: 2, 1>} : memref<111x32xf32, #tpu.memory_space<vmem>>, vector<54x32xf32>
    %136 = arith.maximumf %134, %135 : vector<54x32xf32>
    %c2_137 = arith.constant 2 : index
    %c0_138 = arith.constant 0 : index
    %137 = tpu.strided_load %arg26[%c2_137, %c0_138] {strides = array<i32: 2, 1>} : memref<111x32xf32, #tpu.memory_space<vmem>>, vector<54x32xf32>
    %138 = arith.maximumf %136, %137 : vector<54x32xf32>
    %c3_139 = arith.constant 3 : index
    %c0_140 = arith.constant 0 : index
    %139 = tpu.strided_load %arg26[%c3_139, %c0_140] {strides = array<i32: 2, 1>} : memref<111x32xf32, #tpu.memory_space<vmem>>, vector<54x32xf32>
    %140 = arith.maximumf %138, %139 : vector<54x32xf32>
    %c4_141 = arith.constant 4 : index
    %c0_142 = arith.constant 0 : index
    %141 = tpu.strided_load %arg26[%c4_141, %c0_142] {strides = array<i32: 2, 1>} : memref<111x32xf32, #tpu.memory_space<vmem>>, vector<54x32xf32>
    %142 = arith.maximumf %140, %141 : vector<54x32xf32>
    %cst_143 = arith.constant 0.000000e+00 : f32
    %143 = vector.broadcast %cst_143 : f32 to vector<54x32xf32>
    %144 = arith.maximumf %142, %143 : vector<54x32xf32>
    %cst_144 = arith.constant 0.000000e+00 : f32
    %145 = vector.broadcast %cst_144 : f32 to vector<60x32xf32>
    %c0_145 = arith.constant 0 : index
    %c0_146 = arith.constant 0 : index
    %146 = vector.load %arg20[%c0_145, %c0_146] : memref<60x32xf32, #tpu.memory_space<vmem>>, vector<60x32xf32>
    tpu.vector_store %arg20[%c0_145, %c0_146], %145 {strides = array<i32>} : memref<60x32xf32, #tpu.memory_space<vmem>>, vector<60x32xf32>,
    %c3_147 = arith.constant 3 : index
    %c0_148 = arith.constant 0 : index
    %147 = vector.load %arg20[%c3_147, %c0_148] : memref<60x32xf32, #tpu.memory_space<vmem>>, vector<54x32xf32>
    tpu.vector_store %arg20[%c3_147, %c0_148], %144 {strides = array<i32>} : memref<60x32xf32, #tpu.memory_space<vmem>>, vector<54x32xf32>,
    %c0_149 = arith.constant 0 : index
    %c0_150 = arith.constant 0 : index
    %148 = vector.load %arg20[%c0_149, %c0_150] : memref<60x32xf32, #tpu.memory_space<vmem>>, vector<54x32xf32>
    %c1_151 = arith.constant 1 : index
    %c0_152 = arith.constant 0 : index
    %149 = vector.load %arg20[%c1_151, %c0_152] : memref<60x32xf32, #tpu.memory_space<vmem>>, vector<54x32xf32>
    %c2_153 = arith.constant 2 : index
    %c0_154 = arith.constant 0 : index
    %150 = vector.load %arg20[%c2_153, %c0_154] : memref<60x32xf32, #tpu.memory_space<vmem>>, vector<54x32xf32>
    %c3_155 = arith.constant 3 : index
    %c0_156 = arith.constant 0 : index
    %151 = vector.load %arg20[%c3_155, %c0_156] : memref<60x32xf32, #tpu.memory_space<vmem>>, vector<54x32xf32>
    %c4_157 = arith.constant 4 : index
    %c0_158 = arith.constant 0 : index
    %152 = vector.load %arg20[%c4_157, %c0_158] : memref<60x32xf32, #tpu.memory_space<vmem>>, vector<54x32xf32>
    %c5_159 = arith.constant 5 : index
    %c0_160 = arith.constant 0 : index
    %153 = vector.load %arg20[%c5_159, %c0_160] : memref<60x32xf32, #tpu.memory_space<vmem>>, vector<54x32xf32>
    %c6_161 = arith.constant 6 : index
    %c0_162 = arith.constant 0 : index
    %154 = vector.load %arg20[%c6_161, %c0_162] : memref<60x32xf32, #tpu.memory_space<vmem>>, vector<54x32xf32>
    %155 = tpu.concatenate %148, %149, %150, %151, %152, %153, %154 in 1 : vector<54x32xf32>, vector<54x32xf32>, vector<54x32xf32>, vector<54x32xf32>, vector<54x32xf32>, vector<54x32xf32>, vector<54x32xf32> -> vector<54x224xf32>
    %c0_163 = arith.constant 0 : index
    %c0_164 = arith.constant 0 : index
    %156 = vector.load %arg8[%c0_163, %c0_164] : memref<224x64xf32, #tpu.memory_space<vmem>>, vector<224x64xf32>
    %cst_165 = arith.constant dense<0.000000e+00> : vector<54x64xf32>
    %157 = tpu.matmul %155, %156, %cst_165 {dimension_numbers = #tpu.dot_dimension_numbers<[1], [0], [0], [1], [0, 0, 1, 1], [], []>} : vector<54x224xf32>, vector<224x64xf32>, vector<54x64xf32> -> vector<54x64xf32>
    %c0_166 = arith.constant 0 : index
    %c0_167 = arith.constant 0 : index
    %158 = vector.load %arg9[%c0_166, %c0_167] : memref<1x64xf32, #tpu.memory_space<vmem>>, vector<1x64xf32>
    %159 = vector.broadcast %158 : vector<1x64xf32> to vector<54x64xf32>
    %160 = arith.addf %157, %159 : vector<54x64xf32>
    %c0_168 = arith.constant 0 : index
    %c0_169 = arith.constant 0 : index
    %161 = vector.load %arg27[%c0_168, %c0_169] : memref<54x64xf32, #tpu.memory_space<vmem>>, vector<54x64xf32>
    tpu.vector_store %arg27[%c0_168, %c0_169], %160 {strides = array<i32>} : memref<54x64xf32, #tpu.memory_space<vmem>>, vector<54x64xf32>,
    %c0_170 = arith.constant 0 : index
    %c0_171 = arith.constant 0 : index
    %162 = tpu.strided_load %arg27[%c0_170, %c0_171] {strides = array<i32: 2, 1>} : memref<54x64xf32, #tpu.memory_space<vmem>>, vector<26x64xf32>
    %c1_172 = arith.constant 1 : index
    %c0_173 = arith.constant 0 : index
    %163 = tpu.strided_load %arg27[%c1_172, %c0_173] {strides = array<i32: 2, 1>} : memref<54x64xf32, #tpu.memory_space<vmem>>, vector<26x64xf32>
    %164 = arith.maximumf %162, %163 : vector<26x64xf32>
    %c2_174 = arith.constant 2 : index
    %c0_175 = arith.constant 0 : index
    %165 = tpu.strided_load %arg27[%c2_174, %c0_175] {strides = array<i32: 2, 1>} : memref<54x64xf32, #tpu.memory_space<vmem>>, vector<26x64xf32>
    %166 = arith.maximumf %164, %165 : vector<26x64xf32>
    %c3_176 = arith.constant 3 : index
    %c0_177 = arith.constant 0 : index
    %167 = tpu.strided_load %arg27[%c3_176, %c0_177] {strides = array<i32: 2, 1>} : memref<54x64xf32, #tpu.memory_space<vmem>>, vector<26x64xf32>
    %168 = arith.maximumf %166, %167 : vector<26x64xf32>
    %cst_178 = arith.constant 0.000000e+00 : f32
    %169 = vector.broadcast %cst_178 : f32 to vector<26x64xf32>
    %170 = arith.maximumf %168, %169 : vector<26x64xf32>
    %cst_179 = arith.constant 0.000000e+00 : f32
    %171 = vector.broadcast %cst_179 : f32 to vector<30x64xf32>
    %c0_180 = arith.constant 0 : index
    %c0_181 = arith.constant 0 : index
    %172 = vector.load %arg21[%c0_180, %c0_181] : memref<30x64xf32, #tpu.memory_space<vmem>>, vector<30x64xf32>
    tpu.vector_store %arg21[%c0_180, %c0_181], %171 {strides = array<i32>} : memref<30x64xf32, #tpu.memory_space<vmem>>, vector<30x64xf32>,
    %c2_182 = arith.constant 2 : index
    %c0_183 = arith.constant 0 : index
    %173 = vector.load %arg21[%c2_182, %c0_183] : memref<30x64xf32, #tpu.memory_space<vmem>>, vector<26x64xf32>
    tpu.vector_store %arg21[%c2_182, %c0_183], %170 {strides = array<i32>} : memref<30x64xf32, #tpu.memory_space<vmem>>, vector<26x64xf32>,
    %c0_184 = arith.constant 0 : index
    %c0_185 = arith.constant 0 : index
    %174 = vector.load %arg21[%c0_184, %c0_185] : memref<30x64xf32, #tpu.memory_space<vmem>>, vector<26x64xf32>
    %c1_186 = arith.constant 1 : index
    %c0_187 = arith.constant 0 : index
    %175 = vector.load %arg21[%c1_186, %c0_187] : memref<30x64xf32, #tpu.memory_space<vmem>>, vector<26x64xf32>
    %c2_188 = arith.constant 2 : index
    %c0_189 = arith.constant 0 : index
    %176 = vector.load %arg21[%c2_188, %c0_189] : memref<30x64xf32, #tpu.memory_space<vmem>>, vector<26x64xf32>
    %c3_190 = arith.constant 3 : index
    %c0_191 = arith.constant 0 : index
    %177 = vector.load %arg21[%c3_190, %c0_191] : memref<30x64xf32, #tpu.memory_space<vmem>>, vector<26x64xf32>
    %c4_192 = arith.constant 4 : index
    %c0_193 = arith.constant 0 : index
    %178 = vector.load %arg21[%c4_192, %c0_193] : memref<30x64xf32, #tpu.memory_space<vmem>>, vector<26x64xf32>
    %179 = tpu.concatenate %174, %175, %176, %177, %178 in 1 : vector<26x64xf32>, vector<26x64xf32>, vector<26x64xf32>, vector<26x64xf32>, vector<26x64xf32> -> vector<26x320xf32>
    %c0_194 = arith.constant 0 : index
    %c0_195 = arith.constant 0 : index
    %180 = vector.load %arg10[%c0_194, %c0_195] : memref<320x64xf32, #tpu.memory_space<vmem>>, vector<320x64xf32>
    %cst_196 = arith.constant dense<0.000000e+00> : vector<26x64xf32>
    %181 = tpu.matmul %179, %180, %cst_196 {dimension_numbers = #tpu.dot_dimension_numbers<[1], [0], [0], [1], [0, 0, 1, 1], [], []>} : vector<26x320xf32>, vector<320x64xf32>, vector<26x64xf32> -> vector<26x64xf32>
    %c0_197 = arith.constant 0 : index
    %c0_198 = arith.constant 0 : index
    %182 = vector.load %arg11[%c0_197, %c0_198] : memref<1x64xf32, #tpu.memory_space<vmem>>, vector<1x64xf32>
    %183 = vector.broadcast %182 : vector<1x64xf32> to vector<26x64xf32>
    %184 = arith.addf %181, %183 : vector<26x64xf32>
    %c0_199 = arith.constant 0 : index
    %c0_200 = arith.constant 0 : index
    %185 = vector.load %arg28[%c0_199, %c0_200] : memref<26x64xf32, #tpu.memory_space<vmem>>, vector<26x64xf32>
    tpu.vector_store %arg28[%c0_199, %c0_200], %184 {strides = array<i32>} : memref<26x64xf32, #tpu.memory_space<vmem>>, vector<26x64xf32>,
    %c0_201 = arith.constant 0 : index
    %c0_202 = arith.constant 0 : index
    %186 = tpu.strided_load %arg28[%c0_201, %c0_202] {strides = array<i32: 2, 1>} : memref<26x64xf32, #tpu.memory_space<vmem>>, vector<13x64xf32>
    %c1_203 = arith.constant 1 : index
    %c0_204 = arith.constant 0 : index
    %187 = tpu.strided_load %arg28[%c1_203, %c0_204] {strides = array<i32: 2, 1>} : memref<26x64xf32, #tpu.memory_space<vmem>>, vector<13x64xf32>
    %188 = arith.maximumf %186, %187 : vector<13x64xf32>
    %cst_205 = arith.constant 0.000000e+00 : f32
    %189 = vector.broadcast %cst_205 : f32 to vector<13x64xf32>
    %190 = arith.maximumf %188, %189 : vector<13x64xf32>
    %cst_206 = arith.constant 0.000000e+00 : f32
    %191 = vector.broadcast %cst_206 : f32 to vector<15x64xf32>
    %c0_207 = arith.constant 0 : index
    %c0_208 = arith.constant 0 : index
    %192 = vector.load %arg22[%c0_207, %c0_208] : memref<15x64xf32, #tpu.memory_space<vmem>>, vector<15x64xf32>
    tpu.vector_store %arg22[%c0_207, %c0_208], %191 {strides = array<i32>} : memref<15x64xf32, #tpu.memory_space<vmem>>, vector<15x64xf32>,
    %c1_209 = arith.constant 1 : index
    %c0_210 = arith.constant 0 : index
    %193 = vector.load %arg22[%c1_209, %c0_210] : memref<15x64xf32, #tpu.memory_space<vmem>>, vector<13x64xf32>
    tpu.vector_store %arg22[%c1_209, %c0_210], %190 {strides = array<i32>} : memref<15x64xf32, #tpu.memory_space<vmem>>, vector<13x64xf32>,
    %c0_211 = arith.constant 0 : index
    %c0_212 = arith.constant 0 : index
    %194 = vector.load %arg22[%c0_211, %c0_212] : memref<15x64xf32, #tpu.memory_space<vmem>>, vector<13x64xf32>
    %c1_213 = arith.constant 1 : index
    %c0_214 = arith.constant 0 : index
    %195 = vector.load %arg22[%c1_213, %c0_214] : memref<15x64xf32, #tpu.memory_space<vmem>>, vector<13x64xf32>
    %c2_215 = arith.constant 2 : index
    %c0_216 = arith.constant 0 : index
    %196 = vector.load %arg22[%c2_215, %c0_216] : memref<15x64xf32, #tpu.memory_space<vmem>>, vector<13x64xf32>
    %197 = tpu.concatenate %194, %195, %196 in 1 : vector<13x64xf32>, vector<13x64xf32>, vector<13x64xf32> -> vector<13x192xf32>
    %c0_217 = arith.constant 0 : index
    %c0_218 = arith.constant 0 : index
    %198 = vector.load %arg12[%c0_217, %c0_218] : memref<192x64xf32, #tpu.memory_space<vmem>>, vector<192x64xf32>
    %cst_219 = arith.constant dense<0.000000e+00> : vector<13x64xf32>
    %199 = tpu.matmul %197, %198, %cst_219 {dimension_numbers = #tpu.dot_dimension_numbers<[1], [0], [0], [1], [0, 0, 1, 1], [], []>} : vector<13x192xf32>, vector<192x64xf32>, vector<13x64xf32> -> vector<13x64xf32>
    %c0_220 = arith.constant 0 : index
    %c0_221 = arith.constant 0 : index
    %200 = vector.load %arg13[%c0_220, %c0_221] : memref<1x64xf32, #tpu.memory_space<vmem>>, vector<1x64xf32>
    %201 = vector.broadcast %200 : vector<1x64xf32> to vector<13x64xf32>
    %202 = arith.addf %199, %201 : vector<13x64xf32>
    %c0_222 = arith.constant 0 : index
    %c0_223 = arith.constant 0 : index
    %203 = vector.load %arg29[%c0_222, %c0_223] : memref<13x64xf32, #tpu.memory_space<vmem>>, vector<13x64xf32>
    tpu.vector_store %arg29[%c0_222, %c0_223], %202 {strides = array<i32>} : memref<13x64xf32, #tpu.memory_space<vmem>>, vector<13x64xf32>,
    %c0_224 = arith.constant 0 : index
    %c0_225 = arith.constant 0 : index
    %204 = tpu.strided_load %arg29[%c0_224, %c0_225] {strides = array<i32: 2, 1>} : memref<13x64xf32, #tpu.memory_space<vmem>>, vector<6x64xf32>
    %c1_226 = arith.constant 1 : index
    %c0_227 = arith.constant 0 : index
    %205 = tpu.strided_load %arg29[%c1_226, %c0_227] {strides = array<i32: 2, 1>} : memref<13x64xf32, #tpu.memory_space<vmem>>, vector<6x64xf32>
    %206 = arith.maximumf %204, %205 : vector<6x64xf32>
    %cst_228 = arith.constant 0.000000e+00 : f32
    %207 = vector.broadcast %cst_228 : f32 to vector<6x64xf32>
    %208 = arith.maximumf %206, %207 : vector<6x64xf32>
    %cst_229 = arith.constant 0.000000e+00 : f32
    %209 = vector.broadcast %cst_229 : f32 to vector<8x64xf32>
    %c0_230 = arith.constant 0 : index
    %c0_231 = arith.constant 0 : index
    %210 = vector.load %arg23[%c0_230, %c0_231] : memref<8x64xf32, #tpu.memory_space<vmem>>, vector<8x64xf32>
    tpu.vector_store %arg23[%c0_230, %c0_231], %209 {strides = array<i32>} : memref<8x64xf32, #tpu.memory_space<vmem>>, vector<8x64xf32>,
    %c1_232 = arith.constant 1 : index
    %c0_233 = arith.constant 0 : index
    %211 = vector.load %arg23[%c1_232, %c0_233] : memref<8x64xf32, #tpu.memory_space<vmem>>, vector<6x64xf32>
    tpu.vector_store %arg23[%c1_232, %c0_233], %208 {strides = array<i32>} : memref<8x64xf32, #tpu.memory_space<vmem>>, vector<6x64xf32>,
    %c0_234 = arith.constant 0 : index
    %c0_235 = arith.constant 0 : index
    %212 = vector.load %arg23[%c0_234, %c0_235] : memref<8x64xf32, #tpu.memory_space<vmem>>, vector<6x64xf32>
    %c1_236 = arith.constant 1 : index
    %c0_237 = arith.constant 0 : index
    %213 = vector.load %arg23[%c1_236, %c0_237] : memref<8x64xf32, #tpu.memory_space<vmem>>, vector<6x64xf32>
    %c2_238 = arith.constant 2 : index
    %c0_239 = arith.constant 0 : index
    %214 = vector.load %arg23[%c2_238, %c0_239] : memref<8x64xf32, #tpu.memory_space<vmem>>, vector<6x64xf32>
    %215 = tpu.concatenate %212, %213, %214 in 1 : vector<6x64xf32>, vector<6x64xf32>, vector<6x64xf32> -> vector<6x192xf32>
    %c0_240 = arith.constant 0 : index
    %c0_241 = arith.constant 0 : index
    %216 = vector.load %arg14[%c0_240, %c0_241] : memref<192x72xf32, #tpu.memory_space<vmem>>, vector<192x72xf32>
    %cst_242 = arith.constant dense<0.000000e+00> : vector<6x72xf32>
    %217 = tpu.matmul %215, %216, %cst_242 {dimension_numbers = #tpu.dot_dimension_numbers<[1], [0], [0], [1], [0, 0, 1, 1], [], []>} : vector<6x192xf32>, vector<192x72xf32>, vector<6x72xf32> -> vector<6x72xf32>
    %c0_243 = arith.constant 0 : index
    %c0_244 = arith.constant 0 : index
    %218 = vector.load %arg15[%c0_243, %c0_244] : memref<1x72xf32, #tpu.memory_space<vmem>>, vector<1x72xf32>
    %219 = vector.broadcast %218 : vector<1x72xf32> to vector<6x72xf32>
    %220 = arith.addf %217, %219 : vector<6x72xf32>
    %c0_245 = arith.constant 0 : index
    %c0_246 = arith.constant 0 : index
    %221 = vector.load %arg30[%c0_245, %c0_246] : memref<6x72xf32, #tpu.memory_space<vmem>>, vector<6x72xf32>
    tpu.vector_store %arg30[%c0_245, %c0_246], %220 {strides = array<i32>} : memref<6x72xf32, #tpu.memory_space<vmem>>, vector<6x72xf32>,
    %c0_247 = arith.constant 0 : index
    %c0_248 = arith.constant 0 : index
    %222 = tpu.strided_load %arg30[%c0_247, %c0_248] {strides = array<i32: 2, 1>} : memref<6x72xf32, #tpu.memory_space<vmem>>, vector<3x72xf32>
    %c1_249 = arith.constant 1 : index
    %c0_250 = arith.constant 0 : index
    %223 = tpu.strided_load %arg30[%c1_249, %c0_250] {strides = array<i32: 2, 1>} : memref<6x72xf32, #tpu.memory_space<vmem>>, vector<3x72xf32>
    %224 = arith.maximumf %222, %223 : vector<3x72xf32>
    %cst_251 = arith.constant 0.000000e+00 : f32
    %225 = vector.broadcast %cst_251 : f32 to vector<3x72xf32>
    %226 = arith.maximumf %224, %225 : vector<3x72xf32>
    %227 = vector.extract_strided_slice %226 {offsets = [0, 0], sizes = [1, 72], strides = [1, 1]} : vector<3x72xf32> to vector<1x72xf32>
    %c0_252 = arith.constant 0 : index
    %c0_253 = arith.constant 0 : index
    %c0_254 = arith.constant 0 : index
    %228 = vector.load %arg16[%c0_252, %c0_253, %c0_254] : memref<3x72x5xf32, #tpu.memory_space<vmem>>, vector<1x72x5xf32>
    %229 = vector.shape_cast %228 : vector<1x72x5xf32> to vector<72x5xf32>
    %cst_255 = arith.constant dense<0.000000e+00> : vector<1x5xf32>
    %230 = tpu.matmul %227, %229, %cst_255 {dimension_numbers = #tpu.dot_dimension_numbers<[1], [0], [0], [1], [0, 0, 1, 1], [], []>} : vector<1x72xf32>, vector<72x5xf32>, vector<1x5xf32> -> vector<1x5xf32>
    %231 = vector.extract_strided_slice %226 {offsets = [1, 0], sizes = [1, 72], strides = [1, 1]} : vector<3x72xf32> to vector<1x72xf32>
    %c1_256 = arith.constant 1 : index
    %c0_257 = arith.constant 0 : index
    %c0_258 = arith.constant 0 : index
    %232 = vector.load %arg16[%c1_256, %c0_257, %c0_258] : memref<3x72x5xf32, #tpu.memory_space<vmem>>, vector<1x72x5xf32>
    %233 = vector.shape_cast %232 : vector<1x72x5xf32> to vector<72x5xf32>
    %cst_259 = arith.constant dense<0.000000e+00> : vector<1x5xf32>
    %234 = tpu.matmul %231, %233, %cst_259 {dimension_numbers = #tpu.dot_dimension_numbers<[1], [0], [0], [1], [0, 0, 1, 1], [], []>} : vector<1x72xf32>, vector<72x5xf32>, vector<1x5xf32> -> vector<1x5xf32>
    %235 = arith.addf %230, %234 : vector<1x5xf32>
    %236 = vector.extract_strided_slice %226 {offsets = [2, 0], sizes = [1, 72], strides = [1, 1]} : vector<3x72xf32> to vector<1x72xf32>
    %c2_260 = arith.constant 2 : index
    %c0_261 = arith.constant 0 : index
    %c0_262 = arith.constant 0 : index
    %237 = vector.load %arg16[%c2_260, %c0_261, %c0_262] : memref<3x72x5xf32, #tpu.memory_space<vmem>>, vector<1x72x5xf32>
    %238 = vector.shape_cast %237 : vector<1x72x5xf32> to vector<72x5xf32>
    %cst_263 = arith.constant dense<0.000000e+00> : vector<1x5xf32>
    %239 = tpu.matmul %236, %238, %cst_263 {dimension_numbers = #tpu.dot_dimension_numbers<[1], [0], [0], [1], [0, 0, 1, 1], [], []>} : vector<1x72xf32>, vector<72x5xf32>, vector<1x5xf32> -> vector<1x5xf32>
    %240 = arith.addf %235, %239 : vector<1x5xf32>
    %c0_264 = arith.constant 0 : index
    %c0_265 = arith.constant 0 : index
    %c0_266 = arith.constant 0 : index
    %241 = vector.load %arg17[%c0_264, %c0_265, %c0_266] : memref<1x1x5xf32, #tpu.memory_space<vmem>>, vector<1x1x5xf32>
    %242 = vector.shape_cast %241 : vector<1x1x5xf32> to vector<1x5xf32>
    %243 = vector.shape_cast %240 : vector<1x5xf32> to vector<1x1x5xf32>
    tpu.vector_store %arg17[%c0_264, %c0_265, %c0_266], %243 {strides = array<i32>} : memref<1x1x5xf32, #tpu.memory_space<vmem>>, vector<1x1x5xf32>,
    return
  }
  func.func @transform_0(%arg0: i32) -> (i32, i32, i32) {
    %c0_i32 = arith.constant 0 : i32
    %c0_i32_0 = arith.constant 0 : i32
    %c0_i32_1 = arith.constant 0 : i32
    return %arg0, %c0_i32, %c0_i32_0 : i32, i32, i32
  }
  func.func @transform_1(%arg0: i32) -> (i32, i32) {
    %c0_i32 = arith.constant 0 : i32
    %c0_i32_0 = arith.constant 0 : i32
    %c0_i32_1 = arith.constant 0 : i32
    return %c0_i32, %c0_i32_0 : i32, i32
  }
  func.func @transform_2(%arg0: i32) -> (i32, i32) {
    %c0_i32 = arith.constant 0 : i32
    %c0_i32_0 = arith.constant 0 : i32
    %c0_i32_1 = arith.constant 0 : i32
    return %c0_i32, %c0_i32_0 : i32, i32
  }
  func.func @transform_3(%arg0: i32) -> (i32, i32) {
    %c0_i32 = arith.constant 0 : i32
    %c0_i32_0 = arith.constant 0 : i32
    %c0_i32_1 = arith.constant 0 : i32
    return %c0_i32, %c0_i32_0 : i32, i32
  }
  func.func @transform_4(%arg0: i32) -> (i32, i32) {
    %c0_i32 = arith.constant 0 : i32
    %c0_i32_0 = arith.constant 0 : i32
    %c0_i32_1 = arith.constant 0 : i32
    return %c0_i32, %c0_i32_0 : i32, i32
  }
  func.func @transform_5(%arg0: i32) -> (i32, i32) {
    %c0_i32 = arith.constant 0 : i32
    %c0_i32_0 = arith.constant 0 : i32
    %c0_i32_1 = arith.constant 0 : i32
    return %c0_i32, %c0_i32_0 : i32, i32
  }
  func.func @transform_6(%arg0: i32) -> (i32, i32) {
    %c0_i32 = arith.constant 0 : i32
    %c0_i32_0 = arith.constant 0 : i32
    %c0_i32_1 = arith.constant 0 : i32
    return %c0_i32, %c0_i32_0 : i32, i32
  }
  func.func @transform_7(%arg0: i32) -> (i32, i32) {
    %c0_i32 = arith.constant 0 : i32
    %c0_i32_0 = arith.constant 0 : i32
    %c0_i32_1 = arith.constant 0 : i32
    return %c0_i32, %c0_i32_0 : i32, i32
  }
  func.func @transform_8(%arg0: i32) -> (i32, i32) {
    %c0_i32 = arith.constant 0 : i32
    %c0_i32_0 = arith.constant 0 : i32
    %c0_i32_1 = arith.constant 0 : i32
    return %c0_i32, %c0_i32_0 : i32, i32
  }
  func.func @transform_9(%arg0: i32) -> (i32, i32) {
    %c0_i32 = arith.constant 0 : i32
    %c0_i32_0 = arith.constant 0 : i32
    %c0_i32_1 = arith.constant 0 : i32
    return %c0_i32, %c0_i32_0 : i32, i32
  }
  func.func @transform_10(%arg0: i32) -> (i32, i32) {
    %c0_i32 = arith.constant 0 : i32
    %c0_i32_0 = arith.constant 0 : i32
    %c0_i32_1 = arith.constant 0 : i32
    return %c0_i32, %c0_i32_0 : i32, i32
  }
  func.func @transform_11(%arg0: i32) -> (i32, i32) {
    %c0_i32 = arith.constant 0 : i32
    %c0_i32_0 = arith.constant 0 : i32
    %c0_i32_1 = arith.constant 0 : i32
    return %c0_i32, %c0_i32_0 : i32, i32
  }
  func.func @transform_12(%arg0: i32) -> (i32, i32) {
    %c0_i32 = arith.constant 0 : i32
    %c0_i32_0 = arith.constant 0 : i32
    %c0_i32_1 = arith.constant 0 : i32
    return %c0_i32, %c0_i32_0 : i32, i32
  }
  func.func @transform_13(%arg0: i32) -> (i32, i32) {
    %c0_i32 = arith.constant 0 : i32
    %c0_i32_0 = arith.constant 0 : i32
    %c0_i32_1 = arith.constant 0 : i32
    return %c0_i32, %c0_i32_0 : i32, i32
  }
  func.func @transform_14(%arg0: i32) -> (i32, i32) {
    %c0_i32 = arith.constant 0 : i32
    %c0_i32_0 = arith.constant 0 : i32
    %c0_i32_1 = arith.constant 0 : i32
    return %c0_i32, %c0_i32_0 : i32, i32
  }
  func.func @transform_15(%arg0: i32) -> (i32, i32, i32) {
    %c0_i32 = arith.constant 0 : i32
    %c0_i32_0 = arith.constant 0 : i32
    %c0_i32_1 = arith.constant 0 : i32
    %c0_i32_2 = arith.constant 0 : i32
    return %c0_i32, %c0_i32_0, %c0_i32_1 : i32, i32, i32
  }
  func.func @transform_16(%arg0: i32) -> (i32, i32, i32) {
    %c0_i32 = arith.constant 0 : i32
    %c0_i32_0 = arith.constant 0 : i32
    %c0_i32_1 = arith.constant 0 : i32
    return %arg0, %c0_i32, %c0_i32_0 : i32, i32, i32
  }
}

</mosaic_0001>

<bundles_post_ra>
// kernel: baseline_net.1
= control target key start
LH: loop header
LB: loop body
LE: loop exit
PB: predicated region body
PF: predicated region fallthrough
CT: control target
= control target key end

     0   :  { %s19500_s0 = inlined_call_operand.vmem [shape: f32[2,1800,16], index: 0, kind: input, shape index: {}]   ;;  %s19501_s1 = inlined_call_operand.vmem [shape: f32[16,8], index: 1, kind: input, shape index: {}]   ;;  %s19502_s2 = inlined_call_operand.vmem [shape: f32[1,8], index: 2, kind: input, shape index: {}]   ;;  %s19503_s3 = inlined_call_operand.vmem [shape: f32[96,12], index: 3, kind: input, shape index: {}]   ;;  %s19504_s4 = inlined_call_operand.vmem [shape: f32[1,12], index: 4, kind: input, shape index: {}]   ;;  %s19505_s5 = inlined_call_operand.vmem [shape: f32[108,32], index: 5, kind: input, shape index: {}]   ;;  %s19506_s6 = inlined_call_operand.vmem [shape: f32[1,32], index: 6, kind: input, shape index: {}]   ;;  %s19507_s7 = inlined_call_operand.vmem [shape: f32[224,64], index: 7, kind: input, shape index: {}]   ;;  %s19508_s8 = inlined_call_operand.vmem [shape: f32[1,64], index: 8, kind: input, shape index: {}]   ;;  %s19509_s9 = inlined_call_operand.vmem [shape: f32[320,64], index: 9, kind: input, shape index: {}]   ;;  %s19510_s10 = inlined_call_operand.vmem [shape: f32[1,64], index: 10, kind: input, shape index: {}]   ;;  %s19511_s11 = inlined_call_operand.vmem [shape: f32[192,64], index: 11, kind: input, shape index: {}]   ;;  %s19512_s12 = inlined_call_operand.vmem [shape: f32[1,64], index: 12, kind: input, shape index: {}]   ;;  %s19513_s13 = inlined_call_operand.vmem [shape: f32[192,72], index: 13, kind: input, shape index: {}]   ;;  %s19514_s14 = inlined_call_operand.vmem [shape: f32[1,72], index: 14, kind: input, shape index: {}]   ;;  %s19515_s15 = inlined_call_operand.vmem [shape: f32[3,72,5], index: 15, kind: input, shape index: {}]   ;;  %s19516_s16 = inlined_call_operand.hbm [shape: f32[2,1,5], index: 16, kind: output, shape index: {}]  }
   0x1   :  { %19519 = sst [smem:[#allocation18_spill]] %s19500_s0 }
   0x2   :  { %19520 = sst [smem:[#allocation19_spill]] %s19501_s1 }
   0x3   :  { %19521 = sst [smem:[#allocation20_spill]] %s19502_s2 }
   0x4   :  { %19522 = sst [smem:[#allocation21_spill]] %s19503_s3 }
   0x5   :  { %19523 = sst [smem:[#allocation22_spill]] %s19504_s4 }
   0x6   :  { %19524 = sst [smem:[#allocation23_spill]] %s19505_s5 }
   0x7   :  { %21 = vsyncpa [#allocation16], 0 }
   0x8   :  { %23 = vsyncpa [#allocation16 + $0x1], 0  ;;  %s16394_s21 = smov 0   ;;  %s16396_s22 = smov 0  }
   0x9   :  { %s16398_s23 = smov 0   ;;  %s16400_s24 = smov 0  }
   0xa LB: > { %s16415_s25 = sadd.s32 4294967295, %s16299_s24   ;;  %s12374_s26 = sadd.s32 4294967294, %s16299_s24   ;;  %s16299_s24 = sphi %s16400_s24, %s19539_s24   ;;  %s16295_s23 = sphi %s16398_s23, %s19538_s23   ;;  %s16291_s22 = sphi %s16396_s22, %s19537_s22   ;;  %s16287_s21 = sphi %s16394_s21, %s19536_s21  }
   0xb   : > { %s16419_s27 = sadd.s32 1, %s16299_s24   ;;  %s377_s28 = sadd.s32 1, %s16295_s23 }
   0xc   : > { %s374_s29 = ssub.s32 %s16299_s24, %s16419_s27  ;;  %p387_p0 = scmp.ne.s32.totalorder %s16295_s23, %s16291_s22 }
   0xd   : > { %p375_p1 = scmp.eq.s32.totalorder %s374_s29, 0  ;;  %p388_p2 = scmp.eq.s32.totalorder %s16415_s25, 1 }
   0xe   : > { %p393_p3 = scmp.ne.s32.totalorder %s16291_s22, %s16287_s21  ;;  %p394_p4 = scmp.eq.s32.totalorder %s12374_s26, 1 }
   0xf   : > { %s16430_s30 = scalar_select %p375_p1, %s16295_s23, %s377_s28  }
  0x10   : > { %p16432_p5 = por %p388_p2, %p387_p0  ;;  %p16436_p6 = por %p394_p4, %p393_p3 }
  0x11   : > { %p12377_p7 = scmp.ge.s32.totalorder %s16299_s24, 1  ;;  %p465_p8 = scmp.lt.s32.totalorder %s16299_s24, 3 }
  0x13   : > { %p466_p9 = pnand %p12377_p7, %p465_p8 }
  0x14   : > { %s19527_s1 = sld [smem:[#allocation19_spill]] (!%p466_p9)  ;;  %p514_p10 = scmp.lt.s32.totalorder (!%p466_p9), %s16415_s25, 1  ;;  %v16301_v2 = vmov (!%p466_p9), 0.0|0.0   ;;  %vm16302_vm0 = vmmov (!%p466_p9), 0   ;;  %v16303_v4 = vmov (!%p466_p9), 0.0   ;;  %vm753_vm1 = vcmask (!%p466_p9), 130048  }
  0x15   : > { %469 = sbr.rel (%p466_p9) target bundleno = 4212 (0x1074), region = 84  ;;  %15442 = vmatprep.subr.bf16.mxu0 (!%p466_p9), %v16301_v2  ;;  %13929 = vmatprep.mubr.msk.f32.mxu0 (!%p466_p9), %vm16302_vm0, %v16303_v4  ;;  %s19528_s20 = sld [smem:[#allocation18_spill]] (!%p466_p9)  ;;  %vm2619_vm2 = vcmask (!%p466_p9), 64512   ;;  %vm4269_vm3 = vcmask (!%p466_p9), 59392   ;;  %vm4327_vm4 = vcmask (!%p466_p9), 57344   ;;  %vm9095_vm5 = vcmask (!%p466_p9), 1043456  }
  0x16   : > { %4212 = vst.msk [vmem:[#allocation2] sm:$0xff] (!%p466_p9), %vm2619_vm2, %v16303_v4  ;;  %4213 = vst.msk [vmem:[#allocation2 + $0x8] sm:$0xff] (!%p466_p9), %vm2619_vm2, %v16303_v4  ;;  %s19529_s3 = sld [smem:[#allocation21_spill]] (!%p466_p9)  ;;  %s19530_s2 = sld [smem:[#allocation20_spill]] (!%p466_p9)  ;;  %vm16304_vm6 = vmmov (!%p466_p9), 1   ;;  %vm8795_vm8 = vcmask (!%p466_p9), 97280  }
  0x17   : > { %4214 = vst.msk [vmem:[#allocation2 + $0x10] sm:$0xff] (!%p466_p9), %vm2619_vm2, %v16303_v4  ;;  %4215 = vst.msk [vmem:[#allocation2 + $0x18] sm:$0xff] (!%p466_p9), %vm2619_vm2, %v16303_v4  ;;  %s19531_s5 = sld [smem:[#allocation23_spill]] (!%p466_p9)  ;;  %vm9005_vm9 = vcmask (!%p466_p9), 96256   ;;  %s19534_s4 = sld [smem:[#allocation22_spill]] (!%p466_p9)  ;;  %vm10905_vm10 = vcmask (!%p466_p9), 261120  }
  0x18   : > { %4216 = vst.msk [vmem:[#allocation2 + $0x20] sm:$0xff] (!%p466_p9), %vm2619_vm2, %v16303_v4  ;;  %4217 = vst.msk [vmem:[#allocation2 + $0x28] sm:$0xff] (!%p466_p9), %vm2619_vm2, %v16303_v4  ;;  %vm11032_vm11 = vcmask (!%p466_p9), 257024   ;;  %vm10919_vm12 = vcmask (!%p466_p9), 260096   ;;  %vm11238_vm13 = vcmask (!%p466_p9), 523264   ;;  %vm11040_vm14 = vcmask (!%p466_p9), 259072  }
  0x19   : > { %4218 = vst.msk [vmem:[#allocation2 + $0x30] sm:$0xff] (!%p466_p9), %vm2619_vm2, %v16303_v4  ;;  %4219 = vst.msk [vmem:[#allocation2 + $0x38] sm:$0xff] (!%p466_p9), %vm2619_vm2, %v16303_v4  ;;  %vm11246_vm15 = vcmask (!%p466_p9), 785408  }
  0x1a   : > { %v744_v0 = vld [vmem:[%s19527_s1] sm:$0xff] (!%p466_p9)  ;;  %v745_v1 = vld [vmem:[%s19527_s1 + $0x8] sm:$0xff] (!%p466_p9)  ;;  %4220 = vst.msk [vmem:[#allocation2 + $0x40] sm:$0xff] (!%p466_p9), %vm2619_vm2, %v16303_v4  ;;  %4221 = vst.msk [vmem:[#allocation2 + $0x48] sm:$0xff] (!%p466_p9), %vm2619_vm2, %v16303_v4  ;;  %s19517_s1 = smov (!%p466_p9), 64  }
  0x1b   : > { %v15443_v3 = vpack.c.bf16 (!%p466_p9), %v745_v1, %v744_v0  ;;  %4222 = vst.msk [vmem:[#allocation2 + $0x50] sm:$0xff] (!%p466_p9), %vm2619_vm2, %v16303_v4  ;;  %4223 = vst.msk [vmem:[#allocation2 + $0x58] sm:$0xff] (!%p466_p9), %vm2619_vm2, %v16303_v4 }
  0x1c   : > { %s515_s28 = scalar_select %p514_p10, %s16415_s25, 1  ;;  %4224 = vst.msk [vmem:[#allocation2 + $0x60] sm:$0xff] %vm2619_vm2, %v16303_v4  ;;  %4225 = vst.msk [vmem:[#allocation2 + $0x68] sm:$0xff] %vm2619_vm2, %v16303_v4  ;;  %v4441_v50 = vld [vmem:[%s19529_s3 + $0x8] sm:$0xff]  ;;  %v16789_v59 = vld [vmem:[%s19530_s2] ss:$0 sm:$0xff] }
  0x1d   : > { %15444 = vmatpush3.bf16.msra.mxu0 %v15443_v3  ;;  %4226 = vst.msk [vmem:[#allocation2 + $0x70] sm:$0xff] %vm2619_vm2, %v16303_v4  ;;  %4227 = vst.msk [vmem:[#allocation2 + $0x78] sm:$0xff] %vm2619_vm2, %v16303_v4  ;;  %14604 = vmatprep.subr.mxu1 %v4441_v50 }
  0x1e   : > { %s16121_s29 = smul.u32 1800, %s515_s28  ;;  %15499 = vmatprep.subr.bf16.mxu0 %v16301_v2  ;;  %4228 = vst.msk [vmem:[#allocation2 + $0x80] sm:$0xff] %vm2619_vm2, %v16303_v4  ;;  %4229 = vst.msk [vmem:[#allocation2 + $0x88] sm:$0xff] %vm2619_vm2, %v16303_v4  ;;  %14605 = vmatpush3.msra.mxu1 %v4441_v50  ;;  %s19535_s28 = smov 64  }
  0x1f   : > { %4230 = vst.msk [vmem:[#allocation2 + $0x90] sm:$0xff] %vm2619_vm2, %v16303_v4  ;;  %4231 = vst.msk [vmem:[#allocation2 + $0x98] sm:$0xff] %vm2619_vm2, %v16303_v4 }
  0x20   : > { %s16457_s26 = scalar_lea.vmem %s19528_s20, %s16121_s29  ;;  %4232 = vst.msk [vmem:[#allocation2 + $0xa0] sm:$0xff] %vm2619_vm2, %v16303_v4  ;;  %4233 = vst.msk [vmem:[#allocation2 + $0xa8] sm:$0xff] %vm2619_vm2, %v16303_v4  ;;  %s16307_s29 = smov 96  }
  0x21   : > { %v519_v5 = vld [vmem:[%s16457_s26] sm:$0xff]  ;;  %v520_v6 = vld [vmem:[%s16457_s26 + $0x8] sm:$0xff]  ;;  %v521_v7 = vld [vmem:[%s16457_s26 + $0x10] sm:$0xff]  ;;  %4234 = vst.msk [vmem:[#allocation2 + $0xb0] sm:$0xff] %vm2619_vm2, %v16303_v4 }
  0x22   : > { %13930 = vmatmul.mubr.msk.f32.vlgmr.msra.gmra.mrb[0].mxu0 %vm753_vm1, %v519_v5  ;;  %v522_v8 = vld [vmem:[%s16457_s26 + $0x18] sm:$0xff]  ;;  %v523_v9 = vld [vmem:[%s16457_s26 + $0x20] sm:$0xff]  ;;  %v524_v10 = vld [vmem:[%s16457_s26 + $0x28] sm:$0xff]  ;;  %4235 = vst.msk [vmem:[#allocation2 + $0xb8] sm:$0xff] %vm2619_vm2, %v16303_v4 }
  0x23   : > { %13932 = vmatprep.mubr.msk.f32.mxu0 %vm16302_vm0, %v16303_v4  ;;  %v525_v11 = vld [vmem:[%s16457_s26 + $0x30] sm:$0xff]  ;;  %v526_v12 = vld [vmem:[%s16457_s26 + $0x38] sm:$0xff]  ;;  %v527_v13 = vld [vmem:[%s16457_s26 + $0x40] sm:$0xff]  ;;  %4236 = vst.msk [vmem:[#allocation2 + $0xc0] sm:$0xff] %vm2619_vm2, %v16303_v4 }
  0x24   : > { %v528_v14 = vld [vmem:[%s16457_s26 + $0x48] sm:$0xff]  ;;  %v529_v15 = vld [vmem:[%s16457_s26 + $0x50] sm:$0xff]  ;;  %v530_v16 = vld [vmem:[%s16457_s26 + $0x58] sm:$0xff]  ;;  %4237 = vst.msk [vmem:[#allocation2 + $0xc8] sm:$0xff] %vm2619_vm2, %v16303_v4 }
  0x25   : > { %v531_v17 = vld [vmem:[%s16457_s26 + $0x60] sm:$0xff]  ;;  %v532_v18 = vld [vmem:[%s16457_s26 + $0x68] sm:$0xff]  ;;  %v533_v19 = vld [vmem:[%s16457_s26 + $0x70] sm:$0xff]  ;;  %4238 = vst.msk [vmem:[#allocation2 + $0xd0] sm:$0xff] %vm2619_vm2, %v16303_v4 }
  0x26   : > { %13933 = vmatmul.mubr.msk.f32.gmra.mrb[2].mxu0 %vm753_vm1, %v520_v6  ;;  %v534_v20 = vld [vmem:[%s16457_s26 + $0x78] sm:$0xff]  ;;  %v535_v21 = vld [vmem:[%s16457_s26 + $0x80] sm:$0xff]  ;;  %v536_v22 = vld [vmem:[%s16457_s26 + $0x88] sm:$0xff]  ;;  %4239 = vst.msk [vmem:[#allocation2 + $0xd8] sm:$0xff] %vm2619_vm2, %v16303_v4 }
  0x27   : > { %13935 = vmatprep.mubr.msk.f32.mxu0 %vm16302_vm0, %v16303_v4  ;;  %v537_v23 = vld [vmem:[%s16457_s26 + $0x90] sm:$0xff]  ;;  %v538_v24 = vld [vmem:[%s16457_s26 + $0x98] sm:$0xff]  ;;  %v539_v25 = vld [vmem:[%s16457_s26 + $0xa0] sm:$0xff]  ;;  %4240 = vst.msk [vmem:[#allocation2 + $0xe0] sm:$0xff] %vm2619_vm2, %v16303_v4 }
  0x28   : > { %v540_v26 = vld [vmem:[%s16457_s26 + $0xa8] sm:$0xff]  ;;  %v541_v27 = vld [vmem:[%s16457_s26 + $0xb0] sm:$0xff]  ;;  %4241 = vst.msk [vmem:[#allocation2 + $0xe8] sm:$0xff] %vm2619_vm2, %v16303_v4  ;;  %4242 = vst.msk [vmem:[#allocation2 + $0xf0] sm:$0xff] %vm2619_vm2, %v16303_v4 }
  0x29   : > { %4243 = vst.msk [vmem:[#allocation2 + $0xf8] sm:$0xff] %vm2619_vm2, %v16303_v4  ;;  %4244 = vst.msk [vmem:[#allocation2 + $0x100] sm:$0xff] %vm2619_vm2, %v16303_v4  ;;  %v542_v28 = vld [vmem:[%s16457_s26 + $0xb8] sm:$0xff]  ;;  %v543_v29 = vld [vmem:[%s16457_s26 + $0xc0] sm:$0xff] }
  0x2a   : > { %13936 = vmatmul.mubr.msk.f32.gmra.mrb[4].mxu0 %vm753_vm1, %v521_v7  ;;  %4245 = vst.msk [vmem:[#allocation2 + $0x108] sm:$0xff] %vm2619_vm2, %v16303_v4  ;;  %4246 = vst.msk [vmem:[#allocation2 + $0x110] sm:$0xff] %vm2619_vm2, %v16303_v4  ;;  %v544_v30 = vld [vmem:[%s16457_s26 + $0xc8] sm:$0xff]  ;;  %v545_v31 = vld [vmem:[%s16457_s26 + $0xd0] sm:$0xff] }
  0x2b   : > { %13938 = vmatprep.mubr.msk.f32.mxu0 %vm16302_vm0, %v16303_v4  ;;  %4247 = vst.msk [vmem:[#allocation2 + $0x118] sm:$0xff] %vm2619_vm2, %v16303_v4  ;;  %4248 = vst.msk [vmem:[#allocation2 + $0x120] sm:$0xff] %vm2619_vm2, %v16303_v4  ;;  %v546_v32 = vld [vmem:[%s16457_s26 + $0xd8] sm:$0xff]  ;;  %v547_v33 = vld [vmem:[%s16457_s26 + $0xe0] sm:$0xff] }
  0x2c   : > { %4249 = vst.msk [vmem:[#allocation2 + $0x128] sm:$0xff] %vm2619_vm2, %v16303_v4  ;;  %4250 = vst.msk [vmem:[#allocation2 + $0x130] sm:$0xff] %vm2619_vm2, %v16303_v4  ;;  %v548_v34 = vld [vmem:[%s16457_s26 + $0xe8] sm:$0xff]  ;;  %v549_v35 = vld [vmem:[%s16457_s26 + $0xf0] sm:$0xff] }
  0x2d   : > { %4251 = vst.msk [vmem:[#allocation2 + $0x138] sm:$0xff] %vm2619_vm2, %v16303_v4  ;;  %4252 = vst.msk [vmem:[#allocation2 + $0x140] sm:$0xff] %vm2619_vm2, %v16303_v4  ;;  %v550_v36 = vld [vmem:[%s16457_s26 + $0xf8] sm:$0xff]  ;;  %v551_v37 = vld [vmem:[%s16457_s26 + $0x100] sm:$0xff] }
  0x2e   : > { %13939 = vmatmul.mubr.msk.f32.gmra.mrb[6].mxu0 %vm753_vm1, %v522_v8  ;;  %4253 = vst.msk [vmem:[#allocation2 + $0x148] sm:$0xff] %vm2619_vm2, %v16303_v4  ;;  %4254 = vst.msk [vmem:[#allocation2 + $0x150] sm:$0xff] %vm2619_vm2, %v16303_v4  ;;  %v552_v38 = vld [vmem:[%s16457_s26 + $0x108] sm:$0xff]  ;;  %v553_v39 = vld [vmem:[%s16457_s26 + $0x110] sm:$0xff] }
  0x2f   : > { %13941 = vmatprep.mubr.msk.f32.mxu0 %vm16302_vm0, %v16303_v4  ;;  %4255 = vst.msk [vmem:[#allocation2 + $0x158] sm:$0xff] %vm2619_vm2, %v16303_v4  ;;  %4256 = vst.msk [vmem:[#allocation2 + $0x160] sm:$0xff] %vm2619_vm2, %v16303_v4  ;;  %v554_v40 = vld [vmem:[%s16457_s26 + $0x118] sm:$0xff]  ;;  %v555_v41 = vld [vmem:[%s16457_s26 + $0x120] sm:$0xff] }
  0x30   : > { %4257 = vst.msk [vmem:[#allocation2 + $0x168] sm:$0xff] %vm2619_vm2, %v16303_v4  ;;  %4258 = vst.msk [vmem:[#allocation2 + $0x170] sm:$0xff] %vm2619_vm2, %v16303_v4  ;;  %v556_v42 = vld [vmem:[%s16457_s26 + $0x128] sm:$0xff]  ;;  %v557_v43 = vld [vmem:[%s16457_s26 + $0x130] sm:$0xff] }
  0x31   : > { %4259 = vst.msk [vmem:[#allocation2 + $0x178] sm:$0xff] %vm2619_vm2, %v16303_v4  ;;  %4260 = vst.msk [vmem:[#allocation2 + $0x180] sm:$0xff] %vm2619_vm2, %v16303_v4  ;;  %v558_v44 = vld [vmem:[%s16457_s26 + $0x138] sm:$0xff]  ;;  %v559_v45 = vld [vmem:[%s16457_s26 + $0x140] sm:$0xff] }
  0x32   : > { %13942 = vmatmul.mubr.msk.f32.gmra.mrb[8].mxu0 %vm753_vm1, %v523_v9  ;;  %4261 = vst.msk [vmem:[#allocation2 + $0x188] sm:$0xff] %vm2619_vm2, %v16303_v4  ;;  %4262 = vst.msk [vmem:[#allocation2 + $0x190] sm:$0xff] %vm2619_vm2, %v16303_v4  ;;  %v560_v46 = vld [vmem:[%s16457_s26 + $0x148] sm:$0xff]  ;;  %v561_v47 = vld [vmem:[%s16457_s26 + $0x150] sm:$0xff] }
  0x33   : > { %13944 = vmatprep.mubr.msk.f32.mxu0 %vm16302_vm0, %v16303_v4  ;;  %4263 = vst.msk [vmem:[#allocation2 + $0x198] sm:$0xff] %vm2619_vm2, %v16303_v4  ;;  %4264 = vst.msk [vmem:[#allocation2 + $0x1a0] sm:$0xff] %vm2619_vm2, %v16303_v4  ;;  %v562_v48 = vld [vmem:[%s16457_s26 + $0x158] sm:$0xff]  ;;  %v563_v49 = vld [vmem:[%s16457_s26 + $0x160] sm:$0xff] }
  0x34   : > { %4265 = vst.msk [vmem:[#allocation2 + $0x1a8] sm:$0xff] %vm2619_vm2, %v16303_v4  ;;  %4266 = vst.msk [vmem:[#allocation2 + $0x1b0] sm:$0xff] %vm2619_vm2, %v16303_v4  ;;  %v564_v51 = vld [vmem:[%s16457_s26 + $0x168] sm:$0xff]  ;;  %v565_v52 = vld [vmem:[%s16457_s26 + $0x170] sm:$0xff] }
  0x35   : > { %4267 = vst.msk [vmem:[#allocation2 + $0x1b8] sm:$0xff] %vm2619_vm2, %v16303_v4  ;;  %4268 = vst.msk [vmem:[#allocation2 + $0x1c0] sm:$0xff] %vm2619_vm2, %v16303_v4  ;;  %v566_v53 = vld [vmem:[%s16457_s26 + $0x178] sm:$0xff]  ;;  %v567_v54 = vld [vmem:[%s16457_s26 + $0x180] sm:$0xff] }
  0x36   : > { %13945 = vmatmul.mubr.msk.f32.gmra.mrb[10].mxu0 %vm753_vm1, %v524_v10  ;;  %v568_v55 = vld [vmem:[%s16457_s26 + $0x188] sm:$0xff]  ;;  %v569_v56 = vld [vmem:[%s16457_s26 + $0x190] sm:$0xff]  ;;  %v570_v57 = vld [vmem:[%s16457_s26 + $0x198] sm:$0xff]  ;;  %4270 = vst.msk [vmem:[#allocation2 + $0x1c8] sm:$0x7] %vm4269_vm3, %v16303_v4  ;;  %vm11793_vm3 = vcmask 522240  }
  0x37   : > { %13947 = vmatprep.mubr.msk.f32.mxu0 %vm16302_vm0, %v16303_v4  ;;  %v571_v58 = vld [vmem:[%s16457_s26 + $0x1a0] sm:$0xff]  ;;  %v572_v60 = vld [vmem:[%s16457_s26 + $0x1a8] sm:$0xff]  ;;  %v573_v0 = vld [vmem:[%s16457_s26 + $0x1b0] sm:$0xff]  ;;  %8991 = vst.msk [vmem:[#allocation3] sm:$0xff] %vm8795_vm8, %v16303_v4 }
  0x38   : > { %v574_v6 = vld [vmem:[%s16457_s26 + $0x1b8] sm:$0xff]  ;;  %v575_v10 = vld [vmem:[%s16457_s26 + $0x1c0] sm:$0xff]  ;;  %vm18367_vm7 = vmpackc.low %vm9095_vm5, %vm16304_vm6  ;;  %8992 = vst.msk [vmem:[#allocation3 + $0x8] sm:$0xff] %vm8795_vm8, %v16303_v4  ;;  %vm12047_vm5 = vcmask 586752   ;;  %vm12075_vm6 = vcmask 588800  }
  0x39   : > { %8993 = vst.msk [vmem:[#allocation3 + $0x10] sm:$0xff] %vm8795_vm8, %v16303_v4  ;;  %8994 = vst.msk [vmem:[#allocation3 + $0x18] sm:$0xff] %vm8795_vm8, %v16303_v4 }
  0x3a   : > { %13948 = vmatmul.mubr.msk.f32.gmra.mrb[12].mxu0 %vm753_vm1, %v525_v11  ;;  %8995 = vst.msk [vmem:[#allocation3 + $0x20] sm:$0xff] %vm8795_vm8, %v16303_v4  ;;  %8996 = vst.msk [vmem:[#allocation3 + $0x28] sm:$0xff] %vm8795_vm8, %v16303_v4 }
  0x3b   : > { %13950 = vmatprep.mubr.msk.f32.mxu0 %vm16302_vm0, %v16303_v4  ;;  %8997 = vst.msk [vmem:[#allocation3 + $0x30] sm:$0xff] %vm8795_vm8, %v16303_v4  ;;  %8998 = vst.msk [vmem:[#allocation3 + $0x38] sm:$0xff] %vm8795_vm8, %v16303_v4 }
  0x3c   : > { %8999 = vst.msk [vmem:[#allocation3 + $0x40] sm:$0xff] %vm8795_vm8, %v16303_v4  ;;  %9000 = vst.msk [vmem:[#allocation3 + $0x48] sm:$0xff] %vm8795_vm8, %v16303_v4 }
  0x3d   : > { %9001 = vst.msk [vmem:[#allocation3 + $0x50] sm:$0xff] %vm8795_vm8, %v16303_v4  ;;  %9002 = vst.msk [vmem:[#allocation3 + $0x58] sm:$0xff] %vm8795_vm8, %v16303_v4 }
  0x3e   : > { %13951 = vmatmul.mubr.msk.f32.gmra.mrb[14].mxu0 %vm753_vm1, %v526_v12  ;;  %9003 = vst.msk [vmem:[#allocation3 + $0x60] sm:$0xff] %vm8795_vm8, %v16303_v4  ;;  %9004 = vst.msk [vmem:[#allocation3 + $0x68] sm:$0xff] %vm8795_vm8, %v16303_v4 }
  0x3f   : > { %13953 = vmatprep.mubr.msk.f32.mxu0 %vm16302_vm0, %v16303_v4  ;;  %9006 = vst.msk [vmem:[#allocation3 + $0x70] sm:$0x7f] %vm9005_vm9, %v16303_v4 }
  0x40   : > { %11025 = vst.msk [vmem:[#allocation4] sm:$0xff] %vm10905_vm10, %v16303_v4  ;;  %11026 = vst.msk [vmem:[#allocation4 + $0x8] sm:$0xff] %vm10905_vm10, %v16303_v4 }
  0x41   : > { %11027 = vst.msk [vmem:[#allocation4 + $0x10] sm:$0xff] %vm10905_vm10, %v16303_v4  ;;  %11028 = vst.msk [vmem:[#allocation4 + $0x18] sm:$0xff] %vm10905_vm10, %v16303_v4 }
  0x42   : > { %13954 = vmatmul.mubr.msk.f32.gmra.mrb[16].mxu0 %vm753_vm1, %v527_v13  ;;  %11029 = vst.msk [vmem:[#allocation4 + $0x20] sm:$0xff] %vm10905_vm10, %v16303_v4  ;;  %11030 = vst.msk [vmem:[#allocation4 + $0x28] sm:$0xff] %vm10905_vm10, %v16303_v4 }
  0x43   : > { %13956 = vmatprep.mubr.msk.f32.mxu0 %vm16302_vm0, %v16303_v4  ;;  %11031 = vst.msk [vmem:[#allocation4 + $0x30] sm:$0xff] %vm10905_vm10, %v16303_v4 }
  0x44   : > { %11033 = vst.msk [vmem:[#allocation4 + $0x38] sm:$0xf] %vm11032_vm11, %v16303_v4 }
  0x45   : > { %11479 = vst.msk [vmem:[#allocation5] sm:$0xff] %vm11238_vm13, %v16303_v4  ;;  %11480 = vst.msk [vmem:[#allocation5 + $0x8] sm:$0xff] %vm11238_vm13, %v16303_v4 }
  0x46   : > { %13957 = vmatmul.mubr.msk.f32.gmra.mrb[18].mxu0 %vm753_vm1, %v528_v14  ;;  %v576_v14 = vld [vmem:[%s16457_s26 + $0x1c8] sm:$0xff]  ;;  %11481 = vst.msk [vmem:[#allocation5 + $0x10] sm:$0xff] %vm11238_vm13, %v16303_v4  ;;  %11792 = vst.msk [vmem:[#allocation6] sm:$0xff] %vm11238_vm13, %v16303_v4 }
  0x47   : > { %13959 = vmatprep.mubr.msk.f32.mxu0 %vm16302_vm0, %v16303_v4  ;;  %11933 = vst.msk [vmem:[#allocation7] sm:$0xff] %vm11238_vm13, %v16303_v4 }
  0x48   : > { %11794 = vst.msk [vmem:[#allocation6 + $0x8] sm:$0x7f] %vm11793_vm3, %v16303_v4 }
  0x4a   : > { %13960 = vmatmul.mubr.msk.f32.gmra.mrb[20].mxu0 %vm753_vm1, %v529_v15 }
  0x4b   : > { %13962 = vmatprep.mubr.msk.f32.mxu0 %vm16302_vm0, %v16303_v4 }
  0x4e   : > { %13963 = vmatmul.mubr.msk.f32.gmra.mrb[22].mxu0 %vm753_vm1, %v530_v16 }
  0x4f   : > { %13965 = vmatprep.mubr.msk.f32.mxu0 %vm16302_vm0, %v16303_v4 }
  0x52   : > { %13966 = vmatmul.mubr.msk.f32.gmra.mrb[24].mxu0 %vm753_vm1, %v531_v17 }
  0x53   : > { %13968 = vmatprep.mubr.msk.f32.mxu0 %vm16302_vm0, %v16303_v4 }
  0x56   : > { %13969 = vmatmul.mubr.msk.f32.gmra.mrb[26].mxu0 %vm753_vm1, %v532_v18  ;;  %v577_v18 = vld [vmem:[%s16457_s26 + $0x1d0] sm:$0xff] }
  0x57   : > { %13971 = vmatprep.mubr.msk.f32.mxu0 %vm16302_vm0, %v16303_v4 }
  0x5a   : > { %13972 = vmatmul.mubr.msk.f32.gmra.mrb[28].mxu0 %vm753_vm1, %v533_v19 }
  0x5b   : > { %13974 = vmatprep.mubr.msk.f32.mxu0 %vm16302_vm0, %v16303_v4 }
  0x5e   : > { %13975 = vmatmul.mubr.msk.f32.gmra.mrb[30].mxu0 %vm753_vm1, %v534_v20 }
  0x5f   : > { %13977 = vmatprep.mubr.msk.f32.mxu0 %vm16302_vm0, %v16303_v4 }
  0x62   : > { %13978 = vmatmul.mubr.msk.f32.gmra.mrb[32].mxu0 %vm753_vm1, %v535_v21 }
  0x63   : > { %13980 = vmatprep.mubr.msk.f32.mxu0 %vm16302_vm0, %v16303_v4 }
  0x66   : > { %13981 = vmatmul.mubr.msk.f32.gmra.mrb[34].mxu0 %vm753_vm1, %v536_v22 }
  0x67   : > { %13983 = vmatprep.mubr.msk.f32.mxu0 %vm16302_vm0, %v16303_v4 }
  0x6a   : > { %13984 = vmatmul.mubr.msk.f32.gmra.mrb[36].mxu0 %vm753_vm1, %v537_v23 }
  0x6b   : > { %13986 = vmatprep.mubr.msk.f32.mxu0 %vm16302_vm0, %v16303_v4 }
  0x6e   : > { %13987 = vmatmul.mubr.msk.f32.gmra.mrb[38].mxu0 %vm753_vm1, %v538_v24  ;;  %v578_v24 = vld [vmem:[%s16457_s26 + $0x1d8] sm:$0xff] }
  0x6f   : > { %13989 = vmatprep.mubr.msk.f32.mxu0 %vm16302_vm0, %v16303_v4 }
  0x72   : > { %13990 = vmatmul.mubr.msk.f32.gmra.mrb[40].mxu0 %vm753_vm1, %v539_v25 }
  0x73   : > { %13992 = vmatprep.mubr.msk.f32.mxu0 %vm16302_vm0, %v16303_v4 }
  0x76   : > { %13993 = vmatmul.mubr.msk.f32.gmra.mrb[42].mxu0 %vm753_vm1, %v540_v26 }
  0x77   : > { %13995 = vmatprep.mubr.msk.f32.mxu0 %vm16302_vm0, %v16303_v4 }
  0x7a   : > { %13996 = vmatmul.mubr.msk.f32.gmra.mrb[44].mxu0 %vm753_vm1, %v541_v27 }
  0x7b   : > { %13998 = vmatprep.mubr.msk.f32.mxu0 %vm16302_vm0, %v16303_v4 }
  0x7e   : > { %13999 = vmatmul.mubr.msk.f32.gmra.mrb[46].mxu0 %vm753_vm1, %v542_v28 }
  0x7f   : > { %14001 = vmatprep.mubr.msk.f32.mxu0 %vm16302_vm0, %v16303_v4 }
  0x82   : > { %14002 = vmatmul.mubr.msk.f32.gmra.mrb[48].mxu0 %vm753_vm1, %v543_v29 }
  0x83   : > { %14004 = vmatprep.mubr.msk.f32.mxu0 %vm16302_vm0, %v16303_v4 }
  0x86   : > { %14005 = vmatmul.mubr.msk.f32.gmra.mrb[50].mxu0 %vm753_vm1, %v544_v30 }
  0x87   : > { %14007 = vmatprep.mubr.msk.f32.mxu0 %vm16302_vm0, %v16303_v4 }
  0x8a   : > { %14008 = vmatmul.mubr.msk.f32.gmra.mrb[52].mxu0 %vm753_vm1, %v545_v31 }
  0x8b   : > { %14010 = vmatprep.mubr.msk.f32.mxu0 %vm16302_vm0, %v16303_v4 }
  0x8e   : > { %14011 = vmatmul.mubr.msk.f32.gmra.mrb[54].mxu0 %vm753_vm1, %v546_v32  ;;  %v579_v32 = vld [vmem:[%s16457_s26 + $0x1e0] sm:$0xff] }
  0x8f   : > { %14013 = vmatprep.mubr.msk.f32.mxu0 %vm16302_vm0, %v16303_v4 }
  0x92   : > { %14014 = vmatmul.mubr.msk.f32.gmra.mrb[56].mxu0 %vm753_vm1, %v547_v33 }
  0x93   : > { %14016 = vmatprep.mubr.msk.f32.mxu0 %vm16302_vm0, %v16303_v4 }
  0x96   : > { %14017 = vmatmul.mubr.msk.f32.gmra.mrb[58].mxu0 %vm753_vm1, %v548_v34 }
  0x97   : > { %14019 = vmatprep.mubr.msk.f32.mxu0 %vm16302_vm0, %v16303_v4 }
  0x9a   : > { %14020 = vmatmul.mubr.msk.f32.gmra.mrb[60].mxu0 %vm753_vm1, %v549_v35 }
  0x9b   : > { %14022 = vmatprep.mubr.msk.f32.mxu0 %vm16302_vm0, %v16303_v4 }
  0x9e   : > { %14023 = vmatmul.mubr.msk.f32.gmra.mrb[62].mxu0 %vm753_vm1, %v550_v36 }
  0x9f   : > { %14025 = vmatprep.mubr.msk.f32.mxu0 %vm16302_vm0, %v16303_v4 }
  0xa2   : > { %14026 = vmatmul.mubr.msk.f32.gmra.mrb[64].mxu0 %vm753_vm1, %v551_v37 }
  0xa3   : > { %14028 = vmatprep.mubr.msk.f32.mxu0 %vm16302_vm0, %v16303_v4 }
  0xa6   : > { %14029 = vmatmul.mubr.msk.f32.gmra.mrb[66].mxu0 %vm753_vm1, %v552_v38 }
  0xa7   : > { %14031 = vmatprep.mubr.msk.f32.mxu0 %vm16302_vm0, %v16303_v4 }
  0xaa   : > { %14032 = vmatmul.mubr.msk.f32.gmra.mrb[68].mxu0 %vm753_vm1, %v553_v39 }
  0xab   : > { %14034 = vmatprep.mubr.msk.f32.mxu0 %vm16302_vm0, %v16303_v4 }
  0xae   : > { %14035 = vmatmul.mubr.msk.f32.gmra.mrb[70].mxu0 %vm753_vm1, %v554_v40  ;;  %v580_v40 = vld [vmem:[%s16457_s26 + $0x1e8] sm:$0xff] }
  0xaf   : > { %14037 = vmatprep.mubr.msk.f32.mxu0 %vm16302_vm0, %v16303_v4 }
  0xb2   : > { %14038 = vmatmul.mubr.msk.f32.gmra.mrb[72].mxu0 %vm753_vm1, %v555_v41 }
  0xb3   : > { %14040 = vmatprep.mubr.msk.f32.mxu0 %vm16302_vm0, %v16303_v4 }
  0xb6   : > { %14041 = vmatmul.mubr.msk.f32.gmra.mrb[74].mxu0 %vm753_vm1, %v556_v42 }
  0xb7   : > { %14043 = vmatprep.mubr.msk.f32.mxu0 %vm16302_vm0, %v16303_v4 }
  0xba   : > { %14044 = vmatmul.mubr.msk.f32.gmra.mrb[76].mxu0 %vm753_vm1, %v557_v43 }
  0xbb   : > { %14046 = vmatprep.mubr.msk.f32.mxu0 %vm16302_vm0, %v16303_v4 }
  0xbe   : > { %14047 = vmatmul.mubr.msk.f32.gmra.mrb[78].mxu0 %vm753_vm1, %v558_v44 }
  0xbf   : > { %14049 = vmatprep.mubr.msk.f32.mxu0 %vm16302_vm0, %v16303_v4 }
  0xc2   : > { %14050 = vmatmul.mubr.msk.f32.gmra.mrb[80].mxu0 %vm753_vm1, %v559_v45 }
  0xc3   : > { %14052 = vmatprep.mubr.msk.f32.mxu0 %vm16302_vm0, %v16303_v4 }
  0xc6   : > { %14053 = vmatmul.mubr.msk.f32.gmra.mrb[82].mxu0 %vm753_vm1, %v560_v46 }
  0xc7   : > { %14055 = vmatprep.mubr.msk.f32.mxu0 %vm16302_vm0, %v16303_v4 }
  0xca   : > { %14056 = vmatmul.mubr.msk.f32.gmra.mrb[84].mxu0 %vm753_vm1, %v561_v47 }
  0xcb   : > { %14058 = vmatprep.mubr.msk.f32.mxu0 %vm16302_vm0, %v16303_v4 }
  0xce   : > { %14059 = vmatmul.mubr.msk.f32.gmra.mrb[86].mxu0 %vm753_vm1, %v562_v48  ;;  %v581_v48 = vld [vmem:[%s16457_s26 + $0x1f0] sm:$0xff] }
  0xcf   : > { %14061 = vmatprep.mubr.msk.f32.mxu0 %vm16302_vm0, %v16303_v4 }
  0xd2   : > { %14062 = vmatmul.mubr.msk.f32.gmra.mrb[88].mxu0 %vm753_vm1, %v563_v49 }
  0xd3   : > { %14064 = vmatprep.mubr.msk.f32.mxu0 %vm16302_vm0, %v16303_v4 }
  0xd6   : > { %14065 = vmatmul.mubr.msk.f32.gmra.mrb[90].mxu0 %vm753_vm1, %v564_v51 }
  0xd7   : > { %14067 = vmatprep.mubr.msk.f32.mxu0 %vm16302_vm0, %v16303_v4 }
  0xda   : > { %14068 = vmatmul.mubr.msk.f32.gmra.mrb[92].mxu0 %vm753_vm1, %v565_v52 }
  0xdb   : > { %14070 = vmatprep.mubr.msk.f32.mxu0 %vm16302_vm0, %v16303_v4 }
  0xde   : > { %14071 = vmatmul.mubr.msk.f32.gmra.mrb[94].mxu0 %vm753_vm1, %v566_v53 }
  0xdf   : > { %14073 = vmatprep.mubr.msk.f32.mxu0 %vm16302_vm0, %v16303_v4 }
  0xe2   : > { %14074 = vmatmul.mubr.msk.f32.gmra.mrb[96].mxu0 %vm753_vm1, %v567_v54 }
  0xe3   : > { %14076 = vmatprep.mubr.msk.f32.mxu0 %vm16302_vm0, %v16303_v4 }
  0xe6   : > { %14077 = vmatmul.mubr.msk.f32.gmra.mrb[98].mxu0 %vm753_vm1, %v568_v55 }
  0xe7   : > { %14079 = vmatprep.mubr.msk.f32.mxu0 %vm16302_vm0, %v16303_v4 }
  0xea   : > { %14080 = vmatmul.mubr.msk.f32.gmra.mrb[100].mxu0 %vm753_vm1, %v569_v56  ;;  %v582_v56 = vld [vmem:[%s16457_s26 + $0x1f8] sm:$0xff] }
  0xeb   : > { %14082 = vmatprep.mubr.msk.f32.mxu0 %vm16302_vm0, %v16303_v4 }
  0xee   : > { %14083 = vmatmul.mubr.msk.f32.gmra.mrb[102].mxu0 %vm753_vm1, %v570_v57 }
  0xef   : > { %14085 = vmatprep.mubr.msk.f32.mxu0 %vm16302_vm0, %v16303_v4 }
  0xf2   : > { %14086 = vmatmul.mubr.msk.f32.gmra.mrb[104].mxu0 %vm753_vm1, %v571_v58 }
  0xf3   : > { %14088 = vmatprep.mubr.msk.f32.mxu0 %vm16302_vm0, %v16303_v4 }
  0xf5   : > { %v1495_v61 = vpop.f32.mrb[0].mxu0 }
  0xf6   : > { %v1496_v62 = vadd.f32 %v16789_v59, %v1495_v61  ;;  %v13931_v63 = vpop.f32.mrb[1].mxu0  ;;  %14089 = vmatmul.mubr.msk.f32.gmra.mrb[106].mxu0 %vm753_vm1, %v572_v60 }
  0xf7   : > { %14091 = vmatprep.mubr.msk.f32.mxu0 %vm16302_vm0, %v16303_v4 }
  0xf8   : > { %2620 = vst.msk [vmem:[#allocation8] sm:$0xff] %vm2619_vm2, %v1496_v62 }
  0xf9   : > { %v1500_v1 = vpop.f32.mrb[2].mxu0 }
  0xfa   : > { %v1501_v3 = vadd.f32 %v16789_v59, %v1500_v1  ;;  %v13934_v5 = vpop.f32.mrb[3].mxu0  ;;  %14092 = vmatmul.mubr.msk.f32.gmra.mrb[108].mxu0 %vm753_vm1, %v573_v0  ;;  %v583_v1 = vld [vmem:[%s16457_s26 + $0x200] sm:$0xff] }
  0xfb   : > { %14094 = vmatprep.mubr.msk.f32.mxu0 %vm16302_vm0, %v16303_v4 }
  0xfc   : > { %2621 = vst.msk [vmem:[#allocation8 + $0x8] sm:$0xff] %vm2619_vm2, %v1501_v3 }
  0xfd   : > { %v1505_v7 = vpop.f32.mrb[4].mxu0 }
  0xfe   : > { %v1506_v8 = vadd.f32 %v16789_v59, %v1505_v7  ;;  %v13937_v9 = vpop.f32.mrb[5].mxu0  ;;  %14095 = vmatmul.mubr.msk.f32.gmra.mrb[110].mxu0 %vm753_vm1, %v574_v6 }
  0xff   : > { %14097 = vmatprep.mubr.msk.f32.mxu0 %vm16302_vm0, %v16303_v4 }
 0x100   : > { %2622 = vst.msk [vmem:[#allocation8 + $0x10] sm:$0xff] %vm2619_vm2, %v1506_v8 }
 0x101   : > { %v1510_v11 = vpop.f32.mrb[6].mxu0 }
 0x102   : > { %v1511_v12 = vadd.f32 %v16789_v59, %v1510_v11  ;;  %v13940_v13 = vpop.f32.mrb[7].mxu0  ;;  %14098 = vmatmul.mubr.msk.f32.gmra.mrb[112].mxu0 %vm753_vm1, %v575_v10  ;;  %v584_v11 = vld [vmem:[%s16457_s26 + $0x208] sm:$0xff] }
 0x103   : > { %14100 = vmatprep.mubr.msk.f32.mxu0 %vm16302_vm0, %v16303_v4 }
 0x104   : > { %2623 = vst.msk [vmem:[#allocation8 + $0x18] sm:$0xff] %vm2619_vm2, %v1511_v12 }
 0x105   : > { %v1515_v15 = vpop.f32.mrb[8].mxu0 }
 0x106   : > { %v1516_v16 = vadd.f32 %v16789_v59, %v1515_v15  ;;  %v13943_v17 = vpop.f32.mrb[9].mxu0  ;;  %14101 = vmatmul.mubr.msk.f32.gmra.mrb[114].mxu0 %vm753_vm1, %v576_v14 }
 0x107   : > { %14103 = vmatprep.mubr.msk.f32.mxu0 %vm16302_vm0, %v16303_v4 }
 0x108   : > { %2624 = vst.msk [vmem:[#allocation8 + $0x20] sm:$0xff] %vm2619_vm2, %v1516_v16 }
 0x109   : > { %v1520_v19 = vpop.f32.mrb[10].mxu0 }
 0x10a   : > { %v1521_v20 = vadd.f32 %v16789_v59, %v1520_v19  ;;  %v13946_v21 = vpop.f32.mrb[11].mxu0  ;;  %14104 = vmatmul.mubr.msk.f32.gmra.mrb[116].mxu0 %vm753_vm1, %v577_v18  ;;  %v585_v19 = vld [vmem:[%s16457_s26 + $0x210] sm:$0xff] }
 0x10b   : > { %v2845_v22 = vld [vmem:[#allocation8] ss:$4 sm:$0xff]  ;;  %v2959_v23 = vld [vmem:[#allocation8 + $0x1] ss:$4 sm:$0xff]  ;;  %14106 = vmatprep.mubr.msk.f32.mxu0 %vm16302_vm0, %v16303_v4  ;;  %v3130_v26 = vld [vmem:[#allocation8 + $0x2] ss:$4 sm:$0xff] }
 0x10c   : > { %v3072_v25 = vmax.f32 %v2845_v22, %v2959_v23  ;;  %2625 = vst.msk [vmem:[#allocation8 + $0x28] sm:$0xff] %vm2619_vm2, %v1521_v20  ;;  %v3301_v31 = vld [vmem:[#allocation8 + $0x3] ss:$4 sm:$0xff] }
 0x10d   : > { %v1525_v27 = vpop.f32.mrb[12].mxu0 }
 0x10e   : > { %v3243_v28 = vmax.f32 %v3072_v25, %v3130_v26  ;;  %v1526_v29 = vadd.f32 %v16789_v59, %v1525_v27  ;;  %v13949_v30 = vpop.f32.mrb[13].mxu0  ;;  %14107 = vmatmul.mubr.msk.f32.gmra.mrb[118].mxu0 %vm753_vm1, %v578_v24  ;;  %v586_v27 = vld [vmem:[%s16457_s26 + $0x218] sm:$0xff] }
 0x10f   : > { %14109 = vmatprep.mubr.msk.f32.mxu0 %vm16302_vm0, %v16303_v4  ;;  %v3472_v34 = vld [vmem:[#allocation8 + $0x4] ss:$4 sm:$0xff]  ;;  %v3643_v39 = vld [vmem:[#allocation8 + $0x5] ss:$4 sm:$0xff]  ;;  %v3814_v42 = vld [vmem:[#allocation8 + $0x6] ss:$4 sm:$0xff] }
 0x110   : > { %v3414_v33 = vmax.f32 %v3243_v28, %v3301_v31  ;;  %2626 = vst.msk [vmem:[#allocation8 + $0x30] sm:$0xff] %vm2619_vm2, %v1526_v29  ;;  %v3985_v47 = vld [vmem:[#allocation8 + $0x7] ss:$4 sm:$0xff] }
 0x111   : > { %v1530_v35 = vpop.f32.mrb[14].mxu0 }
 0x112   : > { %v3585_v36 = vmax.f32 %v3414_v33, %v3472_v34  ;;  %v1531_v37 = vadd.f32 %v16789_v59, %v1530_v35  ;;  %v13952_v38 = vpop.f32.mrb[15].mxu0  ;;  %14110 = vmatmul.mubr.msk.f32.gmra.mrb[120].mxu0 %vm753_vm1, %v579_v32  ;;  %v587_v35 = vld [vmem:[%s16457_s26 + $0x220] sm:$0xff] }
 0x113   : > { %14112 = vmatprep.mubr.msk.f32.mxu0 %vm16302_vm0, %v16303_v4 }
 0x114   : > { %v3756_v41 = vmax.f32 %v3585_v36, %v3643_v39  ;;  %2627 = vst.msk [vmem:[#allocation8 + $0x38] sm:$0xff] %vm2619_vm2, %v1531_v37 }
 0x115   : > { %v1535_v43 = vpop.f32.mrb[16].mxu0 }
 0x116   : > { %v3927_v44 = vmax.f32 %v3756_v41, %v3814_v42  ;;  %v1536_v45 = vadd.f32 %v16789_v59, %v1535_v43  ;;  %v13955_v46 = vpop.f32.mrb[17].mxu0  ;;  %14113 = vmatmul.mubr.msk.f32.gmra.mrb[122].mxu0 %vm753_vm1, %v580_v40 }
 0x117   : > { %14115 = vmatprep.mubr.msk.f32.mxu0 %vm16302_vm0, %v16303_v4 }
 0x118   : > { %v4098_v49 = vmax.f32 %v3927_v44, %v3985_v47  ;;  %2628 = vst.msk [vmem:[#allocation8 + $0x40] sm:$0xff] %vm2619_vm2, %v1536_v45  ;;  %v588_v44 = vld [vmem:[%s16457_s26 + $0x228] sm:$0xff] }
 0x119   : > { %v1540_v50 = vpop.f32.mrb[18].mxu0 }
 0x11a   : > { %v4155_v51 = vmax.f32 %v4098_v49, 0.0  ;;  %v1541_v52 = vadd.f32 %v16789_v59, %v1540_v50  ;;  %v13958_v53 = vpop.f32.mrb[19].mxu0  ;;  %14116 = vmatmul.mubr.msk.f32.gmra.mrb[124].mxu0 %vm753_vm1, %v581_v48 }
 0x11b   : > { %v2847_v54 = vld [vmem:[#allocation8 + $0x20] ss:$4 sm:$0xff]  ;;  %v2961_v55 = vld [vmem:[#allocation8 + $0x21] ss:$4 sm:$0xff]  ;;  %14118 = vmatprep.mubr.msk.f32.mxu0 %vm16302_vm0, %v16303_v4  ;;  %v3132_v58 = vld [vmem:[#allocation8 + $0x22] ss:$4 sm:$0xff] }
 0x11c   : > { %4271 = vst.msk [vmem:[#allocation2 + $0x5] sm:$0xff] %vm2619_vm2, %v4155_v51  ;;  %v3073_v57 = vmax.f32 %v2847_v54, %v2961_v55  ;;  %2629 = vst.msk [vmem:[#allocation8 + $0x48] sm:$0xff] %vm2619_vm2, %v1541_v52  ;;  %v3303_v0 = vld [vmem:[#allocation8 + $0x23] ss:$4 sm:$0xff] }
 0x11d   : > { %v1545_v60 = vpop.f32.mrb[20].mxu0  ;;  %v589_v52 = vld [vmem:[%s16457_s26 + $0x230] sm:$0xff] }
 0x11e   : > { %v3244_v61 = vmax.f32 %v3073_v57, %v3132_v58  ;;  %v1546_v62 = vadd.f32 %v16789_v59, %v1545_v60  ;;  %v13961_v63 = vpop.f32.mrb[21].mxu0  ;;  %14119 = vmatmul.mubr.msk.f32.gmra.mrb[126].mxu0 %vm753_vm1, %v582_v56 }
 0x11f   : > { %14121 = vmatprep.mubr.msk.f32.mxu0 %vm16302_vm0, %v16303_v4  ;;  %v3474_v5 = vld [vmem:[#allocation8 + $0x24] ss:$4 sm:$0xff]  ;;  %v3645_v10 = vld [vmem:[#allocation8 + $0x25] ss:$4 sm:$0xff]  ;;  %v3816_v13 = vld [vmem:[#allocation8 + $0x26] ss:$4 sm:$0xff] }
 0x120   : > { %v3415_v3 = vmax.f32 %v3244_v61, %v3303_v0  ;;  %2630 = vst.msk [vmem:[#allocation8 + $0x50] sm:$0xff] %vm2619_vm2, %v1546_v62  ;;  %v3987_v18 = vld [vmem:[#allocation8 + $0x27] ss:$4 sm:$0xff] }
 0x121   : > { %v1550_v6 = vpop.f32.mrb[22].mxu0  ;;  %v590_v61 = vld [vmem:[%s16457_s26 + $0x238] sm:$0xff] }
 0x122   : > { %v3586_v7 = vmax.f32 %v3415_v3, %v3474_v5  ;;  %v1551_v8 = vadd.f32 %v16789_v59, %v1550_v6  ;;  %v13964_v9 = vpop.f32.mrb[23].mxu0  ;;  %14122 = vmatmul.mubr.msk.f32.gmra.mrb[128].mxu0 %vm753_vm1, %v583_v1 }
 0x123   : > { %14124 = vmatprep.mubr.msk.f32.mxu0 %vm16302_vm0, %v16303_v4 }
 0x124   : > { %v3757_v12 = vmax.f32 %v3586_v7, %v3645_v10  ;;  %2631 = vst.msk [vmem:[#allocation8 + $0x58] sm:$0xff] %vm2619_vm2, %v1551_v8  ;;  %v591_v7 = vld [vmem:[%s16457_s26 + $0x240] sm:$0xff] }
 0x125   : > { %v1555_v14 = vpop.f32.mrb[24].mxu0 }
 0x126   : > { %v3928_v15 = vmax.f32 %v3757_v12, %v3816_v13  ;;  %v1556_v16 = vadd.f32 %v16789_v59, %v1555_v14  ;;  %v13967_v17 = vpop.f32.mrb[25].mxu0  ;;  %14125 = vmatmul.mubr.msk.f32.gmra.mrb[130].mxu0 %vm753_vm1, %v584_v11 }
 0x127   : > { %14127 = vmatprep.mubr.msk.f32.mxu0 %vm16302_vm0, %v16303_v4 }
 0x128   : > { %v4099_v20 = vmax.f32 %v3928_v15, %v3987_v18  ;;  %2632 = vst.msk [vmem:[#allocation8 + $0x60] sm:$0xff] %vm2619_vm2, %v1556_v16  ;;  %v592_v15 = vld [vmem:[%s16457_s26 + $0x248] sm:$0xff] }
 0x129   : > { %v1560_v21 = vpop.f32.mrb[26].mxu0 }
 0x12a   : > { %v4156_v22 = vmax.f32 %v4099_v20, 0.0  ;;  %v1561_v23 = vadd.f32 %v16789_v59, %v1560_v21  ;;  %v13970_v24 = vpop.f32.mrb[27].mxu0  ;;  %14128 = vmatmul.mubr.msk.f32.gmra.mrb[132].mxu0 %vm753_vm1, %v585_v19 }
 0x12b   : > { %v2849_v25 = vld [vmem:[#allocation8 + $0x40] ss:$4 sm:$0xff]  ;;  %v2963_v26 = vld [vmem:[#allocation8 + $0x41] ss:$4 sm:$0xff]  ;;  %14130 = vmatprep.mubr.msk.f32.mxu0 %vm16302_vm0, %v16303_v4  ;;  %v3134_v29 = vld [vmem:[#allocation8 + $0x42] ss:$4 sm:$0xff] }
 0x12c   : > { %4272 = vst.msk [vmem:[#allocation2 + $0xd] sm:$0xff] %vm2619_vm2, %v4156_v22  ;;  %v3074_v28 = vmax.f32 %v2849_v25, %v2963_v26  ;;  %2633 = vst.msk [vmem:[#allocation8 + $0x68] sm:$0xff] %vm2619_vm2, %v1561_v23  ;;  %v3305_v34 = vld [vmem:[#allocation8 + $0x43] ss:$4 sm:$0xff] }
 0x12d   : > { %v1565_v30 = vpop.f32.mrb[28].mxu0  ;;  %v593_v23 = vld [vmem:[%s16457_s26 + $0x250] sm:$0xff] }
 0x12e   : > { %v3245_v31 = vmax.f32 %v3074_v28, %v3134_v29  ;;  %v1566_v32 = vadd.f32 %v16789_v59, %v1565_v30  ;;  %v13973_v33 = vpop.f32.mrb[29].mxu0  ;;  %14131 = vmatmul.mubr.msk.f32.gmra.mrb[134].mxu0 %vm753_vm1, %v586_v27 }
 0x12f   : > { %14133 = vmatprep.mubr.msk.f32.mxu0 %vm16302_vm0, %v16303_v4  ;;  %v3476_v37 = vld [vmem:[#allocation8 + $0x44] ss:$4 sm:$0xff]  ;;  %v3647_v42 = vld [vmem:[#allocation8 + $0x45] ss:$4 sm:$0xff]  ;;  %v3818_v46 = vld [vmem:[#allocation8 + $0x46] ss:$4 sm:$0xff] }
 0x130   : > { %v3416_v36 = vmax.f32 %v3245_v31, %v3305_v34  ;;  %2634 = vst.msk [vmem:[#allocation8 + $0x70] sm:$0xff] %vm2619_vm2, %v1566_v32  ;;  %v3989_v51 = vld [vmem:[#allocation8 + $0x47] ss:$4 sm:$0xff] }
 0x131   : > { %v1570_v38 = vpop.f32.mrb[30].mxu0  ;;  %v594_v31 = vld [vmem:[%s16457_s26 + $0x258] sm:$0xff] }
 0x132   : > { %v3587_v39 = vmax.f32 %v3416_v36, %v3476_v37  ;;  %v1571_v40 = vadd.f32 %v16789_v59, %v1570_v38  ;;  %v13976_v41 = vpop.f32.mrb[31].mxu0  ;;  %14134 = vmatmul.mubr.msk.f32.gmra.mrb[136].mxu0 %vm753_vm1, %v587_v35 }
 0x133   : > { %v4386_v43 = vld [vmem:[#allocation2 + $0x1] ss:$2 sm:$0xff]  ;;  %14136 = vmatprep.mubr.msk.f32.mxu0 %vm16302_vm0, %v16303_v4 }
 0x134   : > { %v3758_v45 = vmax.f32 %v3587_v39, %v3647_v42  ;;  %2635 = vst.msk [vmem:[#allocation8 + $0x78] sm:$0xff] %vm2619_vm2, %v1571_v40  ;;  %14606 = vmatprep.mubr.msk.f32.mxu1 %vm2619_vm2, %v4386_v43  ;;  %v595_v39 = vld [vmem:[%s16457_s26 + $0x260] sm:$0xff] }
 0x135   : > { %v1575_v47 = vpop.f32.mrb[32].mxu0 }
 0x136   : > { %v3929_v48 = vmax.f32 %v3758_v45, %v3818_v46  ;;  %v1576_v49 = vadd.f32 %v16789_v59, %v1575_v47  ;;  %v13979_v50 = vpop.f32.mrb[33].mxu0  ;;  %14137 = vmatmul.mubr.msk.f32.gmra.mrb[138].mxu0 %vm753_vm1, %v588_v44 }
 0x137   : > { %14139 = vmatprep.mubr.msk.f32.mxu0 %vm16302_vm0, %v16303_v4 }
 0x138   : > { %v4100_v53 = vmax.f32 %v3929_v48, %v3989_v51  ;;  %2636 = vst.msk [vmem:[#allocation8 + $0x80] sm:$0xff] %vm2619_vm2, %v1576_v49  ;;  %v596_v48 = vld [vmem:[%s16457_s26 + $0x268] sm:$0xff] }
 0x139   : > { %v1580_v54 = vpop.f32.mrb[34].mxu0 }
 0x13a   : > { %v4157_v55 = vmax.f32 %v4100_v53, 0.0  ;;  %v1581_v56 = vadd.f32 %v16789_v59, %v1580_v54  ;;  %v13982_v57 = vpop.f32.mrb[35].mxu0  ;;  %14140 = vmatmul.mubr.msk.f32.gmra.mrb[140].mxu0 %vm753_vm1, %v589_v52 }
 0x13b   : > { %v2851_v58 = vld [vmem:[#allocation8 + $0x60] ss:$4 sm:$0xff]  ;;  %v2965_v60 = vld [vmem:[#allocation8 + $0x61] ss:$4 sm:$0xff]  ;;  %14142 = vmatprep.mubr.msk.f32.mxu0 %vm16302_vm0, %v16303_v4  ;;  %v3136_v63 = vld [vmem:[#allocation8 + $0x62] ss:$4 sm:$0xff] }
 0x13c   : > { %4273 = vst.msk [vmem:[#allocation2 + $0x15] sm:$0xff] %vm2619_vm2, %v4157_v55  ;;  %v3075_v62 = vmax.f32 %v2851_v58, %v2965_v60  ;;  %2637 = vst.msk [vmem:[#allocation8 + $0x88] sm:$0xff] %vm2619_vm2, %v1581_v56  ;;  %v3307_v6 = vld [vmem:[#allocation8 + $0x63] ss:$4 sm:$0xff] }
 0x13d   : > { %v1585_v0 = vpop.f32.mrb[36].mxu0  ;;  %v597_v56 = vld [vmem:[%s16457_s26 + $0x270] sm:$0xff] }
 0x13e   : > { %v3246_v1 = vmax.f32 %v3075_v62, %v3136_v63  ;;  %v1586_v3 = vadd.f32 %v16789_v59, %v1585_v0  ;;  %v13985_v5 = vpop.f32.mrb[37].mxu0  ;;  %14143 = vmatmul.mubr.msk.f32.gmra.mrb[142].mxu0 %vm753_vm1, %v590_v61 }
 0x13f   : > { %14145 = vmatprep.mubr.msk.f32.mxu0 %vm16302_vm0, %v16303_v4  ;;  %v3478_v9 = vld [vmem:[#allocation8 + $0x64] ss:$4 sm:$0xff]  ;;  %v3649_v14 = vld [vmem:[#allocation8 + $0x65] ss:$4 sm:$0xff]  ;;  %v3820_v17 = vld [vmem:[#allocation8 + $0x66] ss:$4 sm:$0xff] }
 0x140   : > { %v3417_v8 = vmax.f32 %v3246_v1, %v3307_v6  ;;  %2638 = vst.msk [vmem:[#allocation8 + $0x90] sm:$0xff] %vm2619_vm2, %v1586_v3  ;;  %v3991_v22 = vld [vmem:[#allocation8 + $0x67] ss:$4 sm:$0xff] }
 0x141   : > { %v1590_v10 = vpop.f32.mrb[38].mxu0  ;;  %v598_v1 = vld [vmem:[%s16457_s26 + $0x278] sm:$0xff] }
 0x142   : > { %v3588_v11 = vmax.f32 %v3417_v8, %v3478_v9  ;;  %v1591_v12 = vadd.f32 %v16789_v59, %v1590_v10  ;;  %v13988_v13 = vpop.f32.mrb[39].mxu0  ;;  %14146 = vmatmul.mubr.msk.f32.gmra.mrb[144].mxu0 %vm753_vm1, %v591_v7 }
 0x143   : > { %14148 = vmatprep.mubr.msk.f32.mxu0 %vm16302_vm0, %v16303_v4 }
 0x144   : > { %v3759_v16 = vmax.f32 %v3588_v11, %v3649_v14  ;;  %2639 = vst.msk [vmem:[#allocation8 + $0x98] sm:$0xff] %vm2619_vm2, %v1591_v12  ;;  %v599_v11 = vld [vmem:[%s16457_s26 + $0x280] sm:$0xff] }
 0x145   : > { %v1595_v18 = vpop.f32.mrb[40].mxu0 }
 0x146   : > { %v3930_v19 = vmax.f32 %v3759_v16, %v3820_v17  ;;  %v1596_v20 = vadd.f32 %v16789_v59, %v1595_v18  ;;  %v13991_v21 = vpop.f32.mrb[41].mxu0  ;;  %14149 = vmatmul.mubr.msk.f32.gmra.mrb[146].mxu0 %vm753_vm1, %v592_v15 }
 0x147   : > { %14151 = vmatprep.mubr.msk.f32.mxu0 %vm16302_vm0, %v16303_v4 }
 0x148   : > { %v4101_v24 = vmax.f32 %v3930_v19, %v3991_v22  ;;  %2640 = vst.msk [vmem:[#allocation8 + $0xa0] sm:$0xff] %vm2619_vm2, %v1596_v20  ;;  %v600_v19 = vld [vmem:[%s16457_s26 + $0x288] sm:$0xff] }
 0x149   : > { %v1600_v25 = vpop.f32.mrb[42].mxu0 }
 0x14a   : > { %v4158_v26 = vmax.f32 %v4101_v24, 0.0  ;;  %v1601_v27 = vadd.f32 %v16789_v59, %v1600_v25  ;;  %v13994_v28 = vpop.f32.mrb[43].mxu0  ;;  %14152 = vmatmul.mubr.msk.f32.gmra.mrb[148].mxu0 %vm753_vm1, %v593_v23 }
 0x14b   : > { %v2853_v29 = vld [vmem:[#allocation8 + $0x80] ss:$4 sm:$0xff]  ;;  %v2967_v30 = vld [vmem:[#allocation8 + $0x81] ss:$4 sm:$0xff]  ;;  %14154 = vmatprep.mubr.msk.f32.mxu0 %vm16302_vm0, %v16303_v4  ;;  %v3138_v33 = vld [vmem:[#allocation8 + $0x82] ss:$4 sm:$0xff] }
 0x14c   : > { %4274 = vst.msk [vmem:[#allocation2 + $0x1d] sm:$0xff] %vm2619_vm2, %v4158_v26  ;;  %v3076_v32 = vmax.f32 %v2853_v29, %v2967_v30  ;;  %2641 = vst.msk [vmem:[#allocation8 + $0xa8] sm:$0xff] %vm2619_vm2, %v1601_v27  ;;  %v3309_v38 = vld [vmem:[#allocation8 + $0x83] ss:$4 sm:$0xff] }
 0x14d   : > { %v1605_v34 = vpop.f32.mrb[44].mxu0  ;;  %v601_v27 = vld [vmem:[%s16457_s26 + $0x290] sm:$0xff] }
 0x14e   : > { %v3247_v35 = vmax.f32 %v3076_v32, %v3138_v33  ;;  %v1606_v36 = vadd.f32 %v16789_v59, %v1605_v34  ;;  %v13997_v37 = vpop.f32.mrb[45].mxu0  ;;  %14155 = vmatmul.mubr.msk.f32.gmra.mrb[150].mxu0 %vm753_vm1, %v594_v31 }
 0x14f   : > { %14157 = vmatprep.mubr.msk.f32.mxu0 %vm16302_vm0, %v16303_v4  ;;  %v3480_v41 = vld [vmem:[#allocation8 + $0x84] ss:$4 sm:$0xff]  ;;  %v3651_v46 = vld [vmem:[#allocation8 + $0x85] ss:$4 sm:$0xff]  ;;  %v3822_v50 = vld [vmem:[#allocation8 + $0x86] ss:$4 sm:$0xff] }
 0x150   : > { %v3418_v40 = vmax.f32 %v3247_v35, %v3309_v38  ;;  %2642 = vst.msk [vmem:[#allocation8 + $0xb0] sm:$0xff] %vm2619_vm2, %v1606_v36  ;;  %v3993_v55 = vld [vmem:[#allocation8 + $0x87] ss:$4 sm:$0xff] }
 0x151   : > { %v1610_v42 = vpop.f32.mrb[46].mxu0  ;;  %v602_v35 = vld [vmem:[%s16457_s26 + $0x298] sm:$0xff] }
 0x152   : > { %v3589_v43 = vmax.f32 %v3418_v40, %v3480_v41  ;;  %v1611_v44 = vadd.f32 %v16789_v59, %v1610_v42  ;;  %v14000_v45 = vpop.f32.mrb[47].mxu0  ;;  %14158 = vmatmul.mubr.msk.f32.gmra.mrb[152].mxu0 %vm753_vm1, %v595_v39 }
 0x153   : > { %v4388_v47 = vld [vmem:[#allocation2 + $0x11] ss:$2 sm:$0xff]  ;;  %14160 = vmatprep.mubr.msk.f32.mxu0 %vm16302_vm0, %v16303_v4 }
 0x154   : > { %v3760_v49 = vmax.f32 %v3589_v43, %v3651_v46  ;;  %2643 = vst.msk [vmem:[#allocation8 + $0xb8] sm:$0xff] %vm2619_vm2, %v1611_v44  ;;  %14607 = vmatmul.mubr.msk.f32.vlgmr.msra.gmra.mrb[0].mxu1 %vm2619_vm2, %v4388_v47  ;;  %v603_v43 = vld [vmem:[%s16457_s26 + $0x2a0] sm:$0xff] }
 0x155   : > { %v1615_v51 = vpop.f32.mrb[48].mxu0 }
 0x156   : > { %v3931_v52 = vmax.f32 %v3760_v49, %v3822_v50  ;;  %v1616_v53 = vadd.f32 %v16789_v59, %v1615_v51  ;;  %v14003_v54 = vpop.f32.mrb[49].mxu0  ;;  %14161 = vmatmul.mubr.msk.f32.gmra.mrb[154].mxu0 %vm753_vm1, %v596_v48 }
 0x157   : > { %14163 = vmatprep.mubr.msk.f32.mxu0 %vm16302_vm0, %v16303_v4 }
 0x158   : > { %v4102_v57 = vmax.f32 %v3931_v52, %v3993_v55  ;;  %2644 = vst.msk [vmem:[#allocation8 + $0xc0] sm:$0xff] %vm2619_vm2, %v1616_v53  ;;  %v604_v52 = vld [vmem:[%s16457_s26 + $0x2a8] sm:$0xff] }
 0x159   : > { %v1620_v58 = vpop.f32.mrb[50].mxu0 }
 0x15a   : > { %v4159_v60 = vmax.f32 %v4102_v57, 0.0  ;;  %v1621_v61 = vadd.f32 %v16789_v59, %v1620_v58  ;;  %v14006_v62 = vpop.f32.mrb[51].mxu0  ;;  %14164 = vmatmul.mubr.msk.f32.gmra.mrb[156].mxu0 %vm753_vm1, %v597_v56 }
 0x15b   : > { %v2855_v63 = vld [vmem:[#allocation8 + $0xa0] ss:$4 sm:$0xff]  ;;  %v2969_v0 = vld [vmem:[#allocation8 + $0xa1] ss:$4 sm:$0xff]  ;;  %14166 = vmatprep.mubr.msk.f32.mxu0 %vm16302_vm0, %v16303_v4  ;;  %v3140_v5 = vld [vmem:[#allocation8 + $0xa2] ss:$4 sm:$0xff] }
 0x15c   : > { %4275 = vst.msk [vmem:[#allocation2 + $0x25] sm:$0xff] %vm2619_vm2, %v4159_v60  ;;  %v3077_v3 = vmax.f32 %v2855_v63, %v2969_v0  ;;  %2645 = vst.msk [vmem:[#allocation8 + $0xc8] sm:$0xff] %vm2619_vm2, %v1621_v61  ;;  %v3311_v10 = vld [vmem:[#allocation8 + $0xa3] ss:$4 sm:$0xff] }
 0x15d   : > { %v1625_v6 = vpop.f32.mrb[52].mxu0  ;;  %v605_v61 = vld [vmem:[%s16457_s26 + $0x2b0] sm:$0xff] }
 0x15e   : > { %v3248_v7 = vmax.f32 %v3077_v3, %v3140_v5  ;;  %v1626_v8 = vadd.f32 %v16789_v59, %v1625_v6  ;;  %v14009_v9 = vpop.f32.mrb[53].mxu0  ;;  %14167 = vmatmul.mubr.msk.f32.gmra.mrb[158].mxu0 %vm753_vm1, %v598_v1 }
 0x15f   : > { %14169 = vmatprep.mubr.msk.f32.mxu0 %vm16302_vm0, %v16303_v4  ;;  %v3482_v13 = vld [vmem:[#allocation8 + $0xa4] ss:$4 sm:$0xff]  ;;  %v3653_v18 = vld [vmem:[#allocation8 + $0xa5] ss:$4 sm:$0xff]  ;;  %v3824_v21 = vld [vmem:[#allocation8 + $0xa6] ss:$4 sm:$0xff] }
 0x160   : > { %v3419_v12 = vmax.f32 %v3248_v7, %v3311_v10  ;;  %2646 = vst.msk [vmem:[#allocation8 + $0xd0] sm:$0xff] %vm2619_vm2, %v1626_v8  ;;  %v3995_v26 = vld [vmem:[#allocation8 + $0xa7] ss:$4 sm:$0xff] }
 0x161   : > { %v1630_v14 = vpop.f32.mrb[54].mxu0  ;;  %v606_v7 = vld [vmem:[%s16457_s26 + $0x2b8] sm:$0xff] }
 0x162   : > { %v3590_v15 = vmax.f32 %v3419_v12, %v3482_v13  ;;  %v1631_v16 = vadd.f32 %v16789_v59, %v1630_v14  ;;  %v14012_v17 = vpop.f32.mrb[55].mxu0  ;;  %14170 = vmatmul.mubr.msk.f32.gmra.mrb[160].mxu0 %vm753_vm1, %v599_v11 }
 0x163   : > { %14172 = vmatprep.mubr.msk.f32.mxu0 %vm16302_vm0, %v16303_v4 }
 0x164   : > { %v3761_v20 = vmax.f32 %v3590_v15, %v3653_v18  ;;  %2647 = vst.msk [vmem:[#allocation8 + $0xd8] sm:$0xff] %vm2619_vm2, %v1631_v16  ;;  %v607_v15 = vld [vmem:[%s16457_s26 + $0x2c0] sm:$0xff] }
 0x165   : > { %v1635_v22 = vpop.f32.mrb[56].mxu0 }
 0x166   : > { %v3932_v23 = vmax.f32 %v3761_v20, %v3824_v21  ;;  %v1636_v24 = vadd.f32 %v16789_v59, %v1635_v22  ;;  %v14015_v25 = vpop.f32.mrb[57].mxu0  ;;  %14173 = vmatmul.mubr.msk.f32.gmra.mrb[162].mxu0 %vm753_vm1, %v600_v19 }
 0x167   : > { %14175 = vmatprep.mubr.msk.f32.mxu0 %vm16302_vm0, %v16303_v4 }
 0x168   : > { %v4103_v28 = vmax.f32 %v3932_v23, %v3995_v26  ;;  %2648 = vst.msk [vmem:[#allocation8 + $0xe0] sm:$0xff] %vm2619_vm2, %v1636_v24  ;;  %v608_v23 = vld [vmem:[%s16457_s26 + $0x2c8] sm:$0xff] }
 0x169   : > { %v1640_v29 = vpop.f32.mrb[58].mxu0 }
 0x16a   : > { %v4160_v30 = vmax.f32 %v4103_v28, 0.0  ;;  %v1641_v31 = vadd.f32 %v16789_v59, %v1640_v29  ;;  %v14018_v32 = vpop.f32.mrb[59].mxu0  ;;  %14176 = vmatmul.mubr.msk.f32.gmra.mrb[164].mxu0 %vm753_vm1, %v601_v27 }
 0x16b   : > { %v2857_v33 = vld [vmem:[#allocation8 + $0xc0] ss:$4 sm:$0xff]  ;;  %v2971_v34 = vld [vmem:[#allocation8 + $0xc1] ss:$4 sm:$0xff]  ;;  %14178 = vmatprep.mubr.msk.f32.mxu0 %vm16302_vm0, %v16303_v4  ;;  %v3142_v37 = vld [vmem:[#allocation8 + $0xc2] ss:$4 sm:$0xff] }
 0x16c   : > { %4276 = vst.msk [vmem:[#allocation2 + $0x2d] sm:$0xff] %vm2619_vm2, %v4160_v30  ;;  %v3078_v36 = vmax.f32 %v2857_v33, %v2971_v34  ;;  %2649 = vst.msk [vmem:[#allocation8 + $0xe8] sm:$0xff] %vm2619_vm2, %v1641_v31  ;;  %v3313_v42 = vld [vmem:[#allocation8 + $0xc3] ss:$4 sm:$0xff] }
 0x16d   : > { %v1645_v38 = vpop.f32.mrb[60].mxu0  ;;  %v609_v31 = vld [vmem:[%s16457_s26 + $0x2d0] sm:$0xff] }
 0x16e   : > { %v3249_v39 = vmax.f32 %v3078_v36, %v3142_v37  ;;  %v1646_v40 = vadd.f32 %v16789_v59, %v1645_v38  ;;  %v14021_v41 = vpop.f32.mrb[61].mxu0  ;;  %14179 = vmatmul.mubr.msk.f32.gmra.mrb[166].mxu0 %vm753_vm1, %v602_v35 }
 0x16f   : > { %14181 = vmatprep.mubr.msk.f32.mxu0 %vm16302_vm0, %v16303_v4  ;;  %v3484_v45 = vld [vmem:[#allocation8 + $0xc4] ss:$4 sm:$0xff]  ;;  %v3655_v50 = vld [vmem:[#allocation8 + $0xc5] ss:$4 sm:$0xff]  ;;  %v3826_v54 = vld [vmem:[#allocation8 + $0xc6] ss:$4 sm:$0xff] }
 0x170   : > { %v3420_v44 = vmax.f32 %v3249_v39, %v3313_v42  ;;  %2650 = vst.msk [vmem:[#allocation8 + $0xf0] sm:$0xff] %vm2619_vm2, %v1646_v40  ;;  %v3997_v60 = vld [vmem:[#allocation8 + $0xc7] ss:$4 sm:$0xff] }
 0x171   : > { %v1650_v46 = vpop.f32.mrb[62].mxu0  ;;  %v610_v39 = vld [vmem:[%s16457_s26 + $0x2d8] sm:$0xff] }
 0x172   : > { %v3591_v47 = vmax.f32 %v3420_v44, %v3484_v45  ;;  %v1651_v48 = vadd.f32 %v16789_v59, %v1650_v46  ;;  %v14024_v49 = vpop.f32.mrb[63].mxu0  ;;  %14182 = vmatmul.mubr.msk.f32.gmra.mrb[168].mxu0 %vm753_vm1, %v603_v43 }
 0x173   : > { %v4390_v51 = vld [vmem:[#allocation2 + $0x21] ss:$2 sm:$0xff]  ;;  %14184 = vmatprep.mubr.msk.f32.mxu0 %vm16302_vm0, %v16303_v4 }
 0x174   : > { %v3762_v53 = vmax.f32 %v3591_v47, %v3655_v50  ;;  %2651 = vst.msk [vmem:[#allocation8 + $0xf8] sm:$0xff] %vm2619_vm2, %v1651_v48  ;;  %14609 = vmatprep.mubr.msk.f32.mxu1 %vm2619_vm2, %v4390_v51  ;;  %v611_v47 = vld [vmem:[%s16457_s26 + $0x2e0] sm:$0xff] }
 0x175   : > { %v1655_v55 = vpop.f32.mrb[64].mxu0 }
 0x176   : > { %v3933_v56 = vmax.f32 %v3762_v53, %v3826_v54  ;;  %v1656_v57 = vadd.f32 %v16789_v59, %v1655_v55  ;;  %v14027_v58 = vpop.f32.mrb[65].mxu0  ;;  %14185 = vmatmul.mubr.msk.f32.gmra.mrb[170].mxu0 %vm753_vm1, %v604_v52 }
 0x177   : > { %14187 = vmatprep.mubr.msk.f32.mxu0 %vm16302_vm0, %v16303_v4 }
 0x178   : > { %v4104_v62 = vmax.f32 %v3933_v56, %v3997_v60  ;;  %2652 = vst.msk [vmem:[#allocation8 + $0x100] sm:$0xff] %vm2619_vm2, %v1656_v57  ;;  %v612_v56 = vld [vmem:[%s16457_s26 + $0x2e8] sm:$0xff] }
 0x179   : > { %v1660_v63 = vpop.f32.mrb[66].mxu0 }
 0x17a   : > { %v4161_v0 = vmax.f32 %v4104_v62, 0.0  ;;  %v1661_v1 = vadd.f32 %v16789_v59, %v1660_v63  ;;  %v14030_v3 = vpop.f32.mrb[67].mxu0  ;;  %14188 = vmatmul.mubr.msk.f32.gmra.mrb[172].mxu0 %vm753_vm1, %v605_v61 }
 0x17b   : > { %v2859_v5 = vld [vmem:[#allocation8 + $0xe0] ss:$4 sm:$0xff]  ;;  %v2973_v6 = vld [vmem:[#allocation8 + $0xe1] ss:$4 sm:$0xff]  ;;  %14190 = vmatprep.mubr.msk.f32.mxu0 %vm16302_vm0, %v16303_v4  ;;  %v3144_v9 = vld [vmem:[#allocation8 + $0xe2] ss:$4 sm:$0xff] }
 0x17c   : > { %4277 = vst.msk [vmem:[#allocation2 + $0x35] sm:$0xff] %vm2619_vm2, %v4161_v0  ;;  %v3079_v8 = vmax.f32 %v2859_v5, %v2973_v6  ;;  %2653 = vst.msk [vmem:[#allocation8 + $0x108] sm:$0xff] %vm2619_vm2, %v1661_v1  ;;  %v3315_v14 = vld [vmem:[#allocation8 + $0xe3] ss:$4 sm:$0xff] }
 0x17d   : > { %v1665_v10 = vpop.f32.mrb[68].mxu0  ;;  %v613_v1 = vld [vmem:[%s16457_s26 + $0x2f0] sm:$0xff] }
 0x17e   : > { %v3250_v11 = vmax.f32 %v3079_v8, %v3144_v9  ;;  %v1666_v12 = vadd.f32 %v16789_v59, %v1665_v10  ;;  %v14033_v13 = vpop.f32.mrb[69].mxu0  ;;  %14191 = vmatmul.mubr.msk.f32.gmra.mrb[174].mxu0 %vm753_vm1, %v606_v7 }
 0x17f   : > { %14193 = vmatprep.mubr.msk.f32.mxu0 %vm16302_vm0, %v16303_v4  ;;  %v3486_v17 = vld [vmem:[#allocation8 + $0xe4] ss:$4 sm:$0xff]  ;;  %v3657_v22 = vld [vmem:[#allocation8 + $0xe5] ss:$4 sm:$0xff]  ;;  %v3828_v25 = vld [vmem:[#allocation8 + $0xe6] ss:$4 sm:$0xff] }
 0x180   : > { %v3421_v16 = vmax.f32 %v3250_v11, %v3315_v14  ;;  %2654 = vst.msk [vmem:[#allocation8 + $0x110] sm:$0xff] %vm2619_vm2, %v1666_v12  ;;  %v3999_v30 = vld [vmem:[#allocation8 + $0xe7] ss:$4 sm:$0xff] }
 0x181   : > { %v1670_v18 = vpop.f32.mrb[70].mxu0  ;;  %v614_v11 = vld [vmem:[%s16457_s26 + $0x2f8] sm:$0xff] }
 0x182   : > { %v3592_v19 = vmax.f32 %v3421_v16, %v3486_v17  ;;  %v1671_v20 = vadd.f32 %v16789_v59, %v1670_v18  ;;  %v14036_v21 = vpop.f32.mrb[71].mxu0  ;;  %14194 = vmatmul.mubr.msk.f32.gmra.mrb[176].mxu0 %vm753_vm1, %v607_v15 }
 0x183   : > { %14196 = vmatprep.mubr.msk.f32.mxu0 %vm16302_vm0, %v16303_v4 }
 0x184   : > { %v3763_v24 = vmax.f32 %v3592_v19, %v3657_v22  ;;  %2655 = vst.msk [vmem:[#allocation8 + $0x118] sm:$0xff] %vm2619_vm2, %v1671_v20  ;;  %v615_v19 = vld [vmem:[%s16457_s26 + $0x300] sm:$0xff] }
 0x185   : > { %v1675_v26 = vpop.f32.mrb[72].mxu0 }
 0x186   : > { %v3934_v27 = vmax.f32 %v3763_v24, %v3828_v25  ;;  %v1676_v28 = vadd.f32 %v16789_v59, %v1675_v26  ;;  %v14039_v29 = vpop.f32.mrb[73].mxu0  ;;  %14197 = vmatmul.mubr.msk.f32.gmra.mrb[178].mxu0 %vm753_vm1, %v608_v23 }
 0x187   : > { %14199 = vmatprep.mubr.msk.f32.mxu0 %vm16302_vm0, %v16303_v4 }
 0x188   : > { %v4105_v32 = vmax.f32 %v3934_v27, %v3999_v30  ;;  %2656 = vst.msk [vmem:[#allocation8 + $0x120] sm:$0xff] %vm2619_vm2, %v1676_v28  ;;  %v616_v27 = vld [vmem:[%s16457_s26 + $0x308] sm:$0xff] }
 0x189   : > { %v1680_v33 = vpop.f32.mrb[74].mxu0 }
 0x18a   : > { %v4162_v34 = vmax.f32 %v4105_v32, 0.0  ;;  %v1681_v35 = vadd.f32 %v16789_v59, %v1680_v33  ;;  %v14042_v36 = vpop.f32.mrb[75].mxu0  ;;  %14200 = vmatmul.mubr.msk.f32.gmra.mrb[180].mxu0 %vm753_vm1, %v609_v31 }
 0x18b   : > { %v2861_v37 = vld [vmem:[#allocation8 + $0x100] ss:$4 sm:$0xff]  ;;  %v2975_v38 = vld [vmem:[#allocation8 + $0x101] ss:$4 sm:$0xff]  ;;  %14202 = vmatprep.mubr.msk.f32.mxu0 %vm16302_vm0, %v16303_v4  ;;  %v3146_v41 = vld [vmem:[#allocation8 + $0x102] ss:$4 sm:$0xff] }
 0x18c   : > { %4278 = vst.msk [vmem:[#allocation2 + $0x3d] sm:$0xff] %vm2619_vm2, %v4162_v34  ;;  %v3080_v40 = vmax.f32 %v2861_v37, %v2975_v38  ;;  %2657 = vst.msk [vmem:[#allocation8 + $0x128] sm:$0xff] %vm2619_vm2, %v1681_v35  ;;  %v3317_v46 = vld [vmem:[#allocation8 + $0x103] ss:$4 sm:$0xff] }
 0x18d   : > { %v1685_v42 = vpop.f32.mrb[76].mxu0  ;;  %v617_v35 = vld [vmem:[%s16457_s26 + $0x310] sm:$0xff] }
 0x18e   : > { %v3251_v43 = vmax.f32 %v3080_v40, %v3146_v41  ;;  %v1686_v44 = vadd.f32 %v16789_v59, %v1685_v42  ;;  %v14045_v45 = vpop.f32.mrb[77].mxu0  ;;  %14203 = vmatmul.mubr.msk.f32.gmra.mrb[182].mxu0 %vm753_vm1, %v610_v39 }
 0x18f   : > { %14205 = vmatprep.mubr.msk.f32.mxu0 %vm16302_vm0, %v16303_v4  ;;  %v3488_v49 = vld [vmem:[#allocation8 + $0x104] ss:$4 sm:$0xff]  ;;  %v3659_v54 = vld [vmem:[#allocation8 + $0x105] ss:$4 sm:$0xff]  ;;  %v3830_v58 = vld [vmem:[#allocation8 + $0x106] ss:$4 sm:$0xff] }
 0x190   : > { %v3422_v48 = vmax.f32 %v3251_v43, %v3317_v46  ;;  %2658 = vst.msk [vmem:[#allocation8 + $0x130] sm:$0xff] %vm2619_vm2, %v1686_v44  ;;  %v4001_v0 = vld [vmem:[#allocation8 + $0x107] ss:$4 sm:$0xff] }
 0x191   : > { %v1690_v50 = vpop.f32.mrb[78].mxu0  ;;  %v618_v43 = vld [vmem:[%s16457_s26 + $0x318] sm:$0xff] }
 0x192   : > { %v3593_v51 = vmax.f32 %v3422_v48, %v3488_v49  ;;  %v1691_v52 = vadd.f32 %v16789_v59, %v1690_v50  ;;  %v14048_v53 = vpop.f32.mrb[79].mxu0  ;;  %14206 = vmatmul.mubr.msk.f32.gmra.mrb[184].mxu0 %vm753_vm1, %v611_v47 }
 0x193   : > { %v4392_v55 = vld [vmem:[#allocation2 + $0x31] ss:$2 sm:$0xff]  ;;  %14208 = vmatprep.mubr.msk.f32.mxu0 %vm16302_vm0, %v16303_v4 }
 0x194   : > { %v3764_v57 = vmax.f32 %v3593_v51, %v3659_v54  ;;  %2659 = vst.msk [vmem:[#allocation8 + $0x138] sm:$0xff] %vm2619_vm2, %v1691_v52  ;;  %14610 = vmatmul.mubr.msk.f32.gmra.mrb[2].mxu1 %vm2619_vm2, %v4392_v55  ;;  %v619_v51 = vld [vmem:[%s16457_s26 + $0x320] sm:$0xff] }
 0x195   : > { %v1695_v60 = vpop.f32.mrb[80].mxu0 }
 0x196   : > { %v3935_v61 = vmax.f32 %v3764_v57, %v3830_v58  ;;  %v1696_v62 = vadd.f32 %v16789_v59, %v1695_v60  ;;  %v14051_v63 = vpop.f32.mrb[81].mxu0  ;;  %14209 = vmatmul.mubr.msk.f32.gmra.mrb[186].mxu0 %vm753_vm1, %v612_v56  ;;  %v17093_v56 = vld [vmem:[%s19530_s2] ss:$0 sm:$0xff] }
 0x197   : > { %14211 = vmatprep.mubr.msk.f32.mxu0 %vm16302_vm0, %v16303_v4 }
 0x198   : > { %v4106_v3 = vmax.f32 %v3935_v61, %v4001_v0  ;;  %2660 = vst.msk [vmem:[#allocation8 + $0x140] sm:$0xff] %vm2619_vm2, %v1696_v62  ;;  %v620_v61 = vld [vmem:[%s16457_s26 + $0x328] sm:$0xff] }
 0x199   : > { %v1700_v5 = vpop.f32.mrb[82].mxu0 }
 0x19a   : > { %v4163_v6 = vmax.f32 %v4106_v3, 0.0  ;;  %v1701_v7 = vadd.f32 %v16789_v59, %v1700_v5  ;;  %v14054_v8 = vpop.f32.mrb[83].mxu0  ;;  %14212 = vmatmul.mubr.msk.f32.gmra.mrb[188].mxu0 %vm753_vm1, %v613_v1 }
 0x19b   : > { %v2863_v9 = vld [vmem:[#allocation8 + $0x120] ss:$4 sm:$0xff]  ;;  %v2977_v10 = vld [vmem:[#allocation8 + $0x121] ss:$4 sm:$0xff]  ;;  %14214 = vmatprep.mubr.msk.f32.mxu0 %vm16302_vm0, %v16303_v4  ;;  %v3148_v13 = vld [vmem:[#allocation8 + $0x122] ss:$4 sm:$0xff] }
 0x19c   : > { %4279 = vst.msk [vmem:[#allocation2 + $0x45] sm:$0xff] %vm2619_vm2, %v4163_v6  ;;  %v3081_v12 = vmax.f32 %v2863_v9, %v2977_v10  ;;  %2661 = vst.msk [vmem:[#allocation8 + $0x148] sm:$0xff] %vm2619_vm2, %v1701_v7  ;;  %v3319_v18 = vld [vmem:[#allocation8 + $0x123] ss:$4 sm:$0xff] }
 0x19d   : > { %v1705_v14 = vpop.f32.mrb[84].mxu0  ;;  %v621_v7 = vld [vmem:[%s16457_s26 + $0x330] sm:$0xff] }
 0x19e   : > { %v3252_v15 = vmax.f32 %v3081_v12, %v3148_v13  ;;  %v1706_v16 = vadd.f32 %v16789_v59, %v1705_v14  ;;  %v14057_v17 = vpop.f32.mrb[85].mxu0  ;;  %14215 = vmatmul.mubr.msk.f32.gmra.mrb[190].mxu0 %vm753_vm1, %v614_v11 }
 0x19f   : > { %14217 = vmatprep.mubr.msk.f32.mxu0 %vm16302_vm0, %v16303_v4  ;;  %v3490_v21 = vld [vmem:[#allocation8 + $0x124] ss:$4 sm:$0xff]  ;;  %v3661_v26 = vld [vmem:[#allocation8 + $0x125] ss:$4 sm:$0xff]  ;;  %v3832_v29 = vld [vmem:[#allocation8 + $0x126] ss:$4 sm:$0xff] }
 0x1a0   : > { %v3423_v20 = vmax.f32 %v3252_v15, %v3319_v18  ;;  %2662 = vst.msk [vmem:[#allocation8 + $0x150] sm:$0xff] %vm2619_vm2, %v1706_v16  ;;  %v4003_v34 = vld [vmem:[#allocation8 + $0x127] ss:$4 sm:$0xff] }
 0x1a1   : > { %v1710_v22 = vpop.f32.mrb[86].mxu0  ;;  %v622_v15 = vld [vmem:[%s16457_s26 + $0x338] sm:$0xff] }
 0x1a2   : > { %v3594_v23 = vmax.f32 %v3423_v20, %v3490_v21  ;;  %v1711_v24 = vadd.f32 %v16789_v59, %v1710_v22  ;;  %v14060_v25 = vpop.f32.mrb[87].mxu0  ;;  %14218 = vmatmul.mubr.msk.f32.gmra.mrb[192].mxu0 %vm753_vm1, %v615_v19 }
 0x1a3   : > { %14220 = vmatprep.mubr.msk.f32.mxu0 %vm16302_vm0, %v16303_v4 }
 0x1a4   : > { %v3765_v28 = vmax.f32 %v3594_v23, %v3661_v26  ;;  %2663 = vst.msk [vmem:[#allocation8 + $0x158] sm:$0xff] %vm2619_vm2, %v1711_v24  ;;  %v623_v23 = vld [vmem:[%s16457_s26 + $0x340] sm:$0xff] }
 0x1a5   : > { %v1715_v30 = vpop.f32.mrb[88].mxu0 }
 0x1a6   : > { %v3936_v31 = vmax.f32 %v3765_v28, %v3832_v29  ;;  %v1716_v32 = vadd.f32 %v16789_v59, %v1715_v30  ;;  %v14063_v33 = vpop.f32.mrb[89].mxu0  ;;  %14221 = vmatmul.mubr.msk.f32.gmra.mrb[194].mxu0 %vm753_vm1, %v616_v27 }
 0x1a7   : > { %14223 = vmatprep.mubr.msk.f32.mxu0 %vm16302_vm0, %v16303_v4 }
 0x1a8   : > { %v4107_v36 = vmax.f32 %v3936_v31, %v4003_v34  ;;  %2664 = vst.msk [vmem:[#allocation8 + $0x160] sm:$0xff] %vm2619_vm2, %v1716_v32  ;;  %v624_v31 = vld [vmem:[%s16457_s26 + $0x348] sm:$0xff] }
 0x1a9   : > { %v1720_v37 = vpop.f32.mrb[90].mxu0 }
 0x1aa   : > { %v4164_v38 = vmax.f32 %v4107_v36, 0.0  ;;  %v1721_v39 = vadd.f32 %v16789_v59, %v1720_v37  ;;  %v14066_v40 = vpop.f32.mrb[91].mxu0  ;;  %14224 = vmatmul.mubr.msk.f32.gmra.mrb[196].mxu0 %vm753_vm1, %v617_v35 }
 0x1ab   : > { %v2865_v41 = vld [vmem:[#allocation8 + $0x140] ss:$4 sm:$0xff]  ;;  %v2979_v42 = vld [vmem:[#allocation8 + $0x141] ss:$4 sm:$0xff]  ;;  %14226 = vmatprep.mubr.msk.f32.mxu0 %vm16302_vm0, %v16303_v4  ;;  %v3150_v45 = vld [vmem:[#allocation8 + $0x142] ss:$4 sm:$0xff] }
 0x1ac   : > { %4280 = vst.msk [vmem:[#allocation2 + $0x4d] sm:$0xff] %vm2619_vm2, %v4164_v38  ;;  %v3082_v44 = vmax.f32 %v2865_v41, %v2979_v42  ;;  %2665 = vst.msk [vmem:[#allocation8 + $0x168] sm:$0xff] %vm2619_vm2, %v1721_v39  ;;  %v3321_v50 = vld [vmem:[#allocation8 + $0x143] ss:$4 sm:$0xff] }
 0x1ad   : > { %v1725_v46 = vpop.f32.mrb[92].mxu0  ;;  %v625_v39 = vld [vmem:[%s16457_s26 + $0x350] sm:$0xff] }
 0x1ae   : > { %v3253_v47 = vmax.f32 %v3082_v44, %v3150_v45  ;;  %v1726_v48 = vadd.f32 %v16789_v59, %v1725_v46  ;;  %v14069_v49 = vpop.f32.mrb[93].mxu0  ;;  %14227 = vmatmul.mubr.msk.f32.gmra.mrb[198].mxu0 %vm753_vm1, %v618_v43 }
 0x1af   : > { %14229 = vmatprep.mubr.msk.f32.mxu0 %vm16302_vm0, %v16303_v4  ;;  %v3492_v53 = vld [vmem:[#allocation8 + $0x144] ss:$4 sm:$0xff]  ;;  %v3663_v58 = vld [vmem:[#allocation8 + $0x145] ss:$4 sm:$0xff]  ;;  %v3834_v63 = vld [vmem:[#allocation8 + $0x146] ss:$4 sm:$0xff] }
 0x1b0   : > { %v3424_v52 = vmax.f32 %v3253_v47, %v3321_v50  ;;  %2666 = vst.msk [vmem:[#allocation8 + $0x170] sm:$0xff] %vm2619_vm2, %v1726_v48  ;;  %v4005_v6 = vld [vmem:[#allocation8 + $0x147] ss:$4 sm:$0xff] }
 0x1b1   : > { %v1730_v54 = vpop.f32.mrb[94].mxu0  ;;  %v626_v47 = vld [vmem:[%s16457_s26 + $0x358] sm:$0xff] }
 0x1b2   : > { %v3595_v55 = vmax.f32 %v3424_v52, %v3492_v53  ;;  %v1731_v59 = vadd.f32 %v17093_v56, %v1730_v54  ;;  %v14072_v57 = vpop.f32.mrb[95].mxu0  ;;  %14230 = vmatmul.mubr.msk.f32.gmra.mrb[200].mxu0 %vm753_vm1, %v619_v51 }
 0x1b3   : > { %v4394_v60 = vld [vmem:[#allocation2 + $0x41] ss:$2 sm:$0xff]  ;;  %14232 = vmatprep.mubr.msk.f32.mxu0 %vm16302_vm0, %v16303_v4 }
 0x1b4   : > { %v3766_v62 = vmax.f32 %v3595_v55, %v3663_v58  ;;  %2667 = vst.msk [vmem:[#allocation8 + $0x178] sm:$0xff] %vm2619_vm2, %v1731_v59  ;;  %14612 = vmatprep.mubr.msk.f32.mxu1 %vm2619_vm2, %v4394_v60  ;;  %v627_v55 = vld [vmem:[%s16457_s26 + $0x360] sm:$0xff] }
 0x1b5   : > { %v1735_v0 = vpop.f32.mrb[96].mxu0 }
 0x1b6   : > { %v3937_v1 = vmax.f32 %v3766_v62, %v3834_v63  ;;  %v1736_v3 = vadd.f32 %v17093_v56, %v1735_v0  ;;  %v14075_v5 = vpop.f32.mrb[97].mxu0  ;;  %14233 = vmatmul.mubr.msk.f32.gmra.mrb[202].mxu0 %vm753_vm1, %v620_v61 }
 0x1b7   : > { %14235 = vmatprep.mubr.msk.f32.mxu0 %vm16302_vm0, %v16303_v4 }
 0x1b8   : > { %v4108_v8 = vmax.f32 %v3937_v1, %v4005_v6  ;;  %2668 = vst.msk [vmem:[#allocation8 + $0x180] sm:$0xff] %vm2619_vm2, %v1736_v3  ;;  %v628_v1 = vld [vmem:[%s16457_s26 + $0x368] sm:$0xff] }
 0x1b9   : > { %v1740_v9 = vpop.f32.mrb[98].mxu0 }
 0x1ba   : > { %v4165_v10 = vmax.f32 %v4108_v8, 0.0  ;;  %v1741_v11 = vadd.f32 %v17093_v56, %v1740_v9  ;;  %v14078_v12 = vpop.f32.mrb[99].mxu0  ;;  %14236 = vmatmul.mubr.msk.f32.gmra.mrb[204].mxu0 %vm753_vm1, %v621_v7 }
 0x1bb   : > { %v2867_v13 = vld [vmem:[#allocation8 + $0x160] ss:$4 sm:$0xff]  ;;  %v2981_v14 = vld [vmem:[#allocation8 + $0x161] ss:$4 sm:$0xff]  ;;  %14238 = vmatprep.mubr.msk.f32.mxu0 %vm16302_vm0, %v16303_v4  ;;  %v3152_v17 = vld [vmem:[#allocation8 + $0x162] ss:$4 sm:$0xff] }
 0x1bc   : > { %4281 = vst.msk [vmem:[#allocation2 + $0x55] sm:$0xff] %vm2619_vm2, %v4165_v10  ;;  %v3083_v16 = vmax.f32 %v2867_v13, %v2981_v14  ;;  %2669 = vst.msk [vmem:[#allocation8 + $0x188] sm:$0xff] %vm2619_vm2, %v1741_v11  ;;  %v3323_v22 = vld [vmem:[#allocation8 + $0x163] ss:$4 sm:$0xff] }
 0x1bd   : > { %v1745_v18 = vpop.f32.mrb[100].mxu0  ;;  %v629_v11 = vld [vmem:[%s16457_s26 + $0x370] sm:$0xff] }
 0x1be   : > { %v3254_v19 = vmax.f32 %v3083_v16, %v3152_v17  ;;  %v1746_v20 = vadd.f32 %v17093_v56, %v1745_v18  ;;  %v14081_v21 = vpop.f32.mrb[101].mxu0  ;;  %14239 = vmatmul.mubr.msk.f32.gmra.mrb[206].mxu0 %vm753_vm1, %v622_v15 }
 0x1bf   : > { %14241 = vmatprep.mubr.msk.f32.mxu0 %vm16302_vm0, %v16303_v4  ;;  %v3494_v25 = vld [vmem:[#allocation8 + $0x164] ss:$4 sm:$0xff]  ;;  %v3665_v30 = vld [vmem:[#allocation8 + $0x165] ss:$4 sm:$0xff]  ;;  %v3836_v33 = vld [vmem:[#allocation8 + $0x166] ss:$4 sm:$0xff] }
 0x1c0   : > { %v3425_v24 = vmax.f32 %v3254_v19, %v3323_v22  ;;  %2670 = vst.msk [vmem:[#allocation8 + $0x190] sm:$0xff] %vm2619_vm2, %v1746_v20  ;;  %v4007_v38 = vld [vmem:[#allocation8 + $0x167] ss:$4 sm:$0xff] }
 0x1c1   : > { %v1750_v26 = vpop.f32.mrb[102].mxu0  ;;  %v630_v19 = vld [vmem:[%s16457_s26 + $0x378] sm:$0xff] }
 0x1c2   : > { %v3596_v27 = vmax.f32 %v3425_v24, %v3494_v25  ;;  %v1751_v28 = vadd.f32 %v17093_v56, %v1750_v26  ;;  %v14084_v29 = vpop.f32.mrb[103].mxu0  ;;  %14242 = vmatmul.mubr.msk.f32.gmra.mrb[208].mxu0 %vm753_vm1, %v623_v23 }
 0x1c3   : > { %14244 = vmatprep.mubr.msk.f32.mxu0 %vm16302_vm0, %v16303_v4 }
 0x1c4   : > { %v3767_v32 = vmax.f32 %v3596_v27, %v3665_v30  ;;  %2671 = vst.msk [vmem:[#allocation8 + $0x198] sm:$0xff] %vm2619_vm2, %v1751_v28  ;;  %v631_v27 = vld [vmem:[%s16457_s26 + $0x380] sm:$0xff] }
 0x1c5   : > { %v1755_v34 = vpop.f32.mrb[104].mxu0 }
 0x1c6   : > { %v3938_v35 = vmax.f32 %v3767_v32, %v3836_v33  ;;  %v1756_v36 = vadd.f32 %v17093_v56, %v1755_v34  ;;  %v14087_v37 = vpop.f32.mrb[105].mxu0  ;;  %14245 = vmatmul.mubr.msk.f32.gmra.mrb[210].mxu0 %vm753_vm1, %v624_v31 }
 0x1c7   : > { %14247 = vmatprep.mubr.msk.f32.mxu0 %vm16302_vm0, %v16303_v4 }
 0x1c8   : > { %v4109_v40 = vmax.f32 %v3938_v35, %v4007_v38  ;;  %2672 = vst.msk [vmem:[#allocation8 + $0x1a0] sm:$0xff] %vm2619_vm2, %v1756_v36  ;;  %v632_v35 = vld [vmem:[%s16457_s26 + $0x388] sm:$0xff] }
 0x1c9   : > { %v1760_v41 = vpop.f32.mrb[106].mxu0 }
 0x1ca   : > { %v4166_v42 = vmax.f32 %v4109_v40, 0.0  ;;  %v1761_v43 = vadd.f32 %v17093_v56, %v1760_v41  ;;  %v14090_v44 = vpop.f32.mrb[107].mxu0  ;;  %14248 = vmatmul.mubr.msk.f32.gmra.mrb[212].mxu0 %vm753_vm1, %v625_v39 }
 0x1cb   : > { %v2869_v45 = vld [vmem:[#allocation8 + $0x180] ss:$4 sm:$0xff]  ;;  %v2983_v46 = vld [vmem:[#allocation8 + $0x181] ss:$4 sm:$0xff]  ;;  %14250 = vmatprep.mubr.msk.f32.mxu0 %vm16302_vm0, %v16303_v4  ;;  %v3154_v49 = vld [vmem:[#allocation8 + $0x182] ss:$4 sm:$0xff] }
 0x1cc   : > { %4282 = vst.msk [vmem:[#allocation2 + $0x5d] sm:$0xff] %vm2619_vm2, %v4166_v42  ;;  %v3084_v48 = vmax.f32 %v2869_v45, %v2983_v46  ;;  %2673 = vst.msk [vmem:[#allocation8 + $0x1a8] sm:$0xff] %vm2619_vm2, %v1761_v43  ;;  %v3325_v54 = vld [vmem:[#allocation8 + $0x183] ss:$4 sm:$0xff] }
 0x1cd   : > { %v1765_v50 = vpop.f32.mrb[108].mxu0  ;;  %v633_v43 = vld [vmem:[%s16457_s26 + $0x390] sm:$0xff] }
 0x1ce   : > { %v3255_v51 = vmax.f32 %v3084_v48, %v3154_v49  ;;  %v1766_v52 = vadd.f32 %v17093_v56, %v1765_v50  ;;  %v14093_v53 = vpop.f32.mrb[109].mxu0  ;;  %14251 = vmatmul.mubr.msk.f32.gmra.mrb[214].mxu0 %vm753_vm1, %v626_v47 }
 0x1cf   : > { %14253 = vmatprep.mubr.msk.f32.mxu0 %vm16302_vm0, %v16303_v4  ;;  %v3496_v57 = vld [vmem:[#allocation8 + $0x184] ss:$4 sm:$0xff]  ;;  %v3667_v63 = vld [vmem:[#allocation8 + $0x185] ss:$4 sm:$0xff]  ;;  %v3838_v5 = vld [vmem:[#allocation8 + $0x186] ss:$4 sm:$0xff] }
 0x1d0   : > { %v3426_v59 = vmax.f32 %v3255_v51, %v3325_v54  ;;  %2674 = vst.msk [vmem:[#allocation8 + $0x1b0] sm:$0xff] %vm2619_vm2, %v1766_v52  ;;  %v4009_v10 = vld [vmem:[#allocation8 + $0x187] ss:$4 sm:$0xff] }
 0x1d1   : > { %v1770_v58 = vpop.f32.mrb[110].mxu0  ;;  %v634_v51 = vld [vmem:[%s16457_s26 + $0x398] sm:$0xff] }
 0x1d2   : > { %v3597_v60 = vmax.f32 %v3426_v59, %v3496_v57  ;;  %v1771_v61 = vadd.f32 %v17093_v56, %v1770_v58  ;;  %v14096_v62 = vpop.f32.mrb[111].mxu0  ;;  %14254 = vmatmul.mubr.msk.f32.gmra.mrb[216].mxu0 %vm753_vm1, %v627_v55 }
 0x1d3   : > { %v4396_v0 = vld [vmem:[#allocation2 + $0x51] ss:$2 sm:$0xff]  ;;  %14256 = vmatprep.mubr.msk.f32.mxu0 %vm16302_vm0, %v16303_v4 }
 0x1d4   : > { %v3768_v3 = vmax.f32 %v3597_v60, %v3667_v63  ;;  %2675 = vst.msk [vmem:[#allocation8 + $0x1b8] sm:$0xff] %vm2619_vm2, %v1771_v61  ;;  %14613 = vmatmul.mubr.msk.f32.gmra.mrb[4].mxu1 %vm2619_vm2, %v4396_v0  ;;  %v635_v60 = vld [vmem:[%s16457_s26 + $0x3a0] sm:$0xff] }
 0x1d5   : > { %v1775_v6 = vpop.f32.mrb[112].mxu0 }
 0x1d6   : > { %v3939_v7 = vmax.f32 %v3768_v3, %v3838_v5  ;;  %v1776_v8 = vadd.f32 %v17093_v56, %v1775_v6  ;;  %v14099_v9 = vpop.f32.mrb[113].mxu0  ;;  %14257 = vmatmul.mubr.msk.f32.gmra.mrb[218].mxu0 %vm753_vm1, %v628_v1 }
 0x1d7   : > { %14259 = vmatprep.mubr.msk.f32.mxu0 %vm16302_vm0, %v16303_v4 }
 0x1d8   : > { %v4110_v12 = vmax.f32 %v3939_v7, %v4009_v10  ;;  %2676 = vst.msk [vmem:[#allocation8 + $0x1c0] sm:$0xff] %vm2619_vm2, %v1776_v8  ;;  %v636_v7 = vld [vmem:[%s16457_s26 + $0x3a8] sm:$0xff] }
 0x1d9   : > { %v1780_v13 = vpop.f32.mrb[114].mxu0 }
 0x1da   : > { %v4167_v14 = vmax.f32 %v4110_v12, 0.0  ;;  %v1781_v15 = vadd.f32 %v17093_v56, %v1780_v13  ;;  %v14102_v16 = vpop.f32.mrb[115].mxu0  ;;  %14260 = vmatmul.mubr.msk.f32.gmra.mrb[220].mxu0 %vm753_vm1, %v629_v11 }
 0x1db   : > { %v2871_v17 = vld [vmem:[#allocation8 + $0x1a0] ss:$4 sm:$0xff]  ;;  %v2985_v18 = vld [vmem:[#allocation8 + $0x1a1] ss:$4 sm:$0xff]  ;;  %14262 = vmatprep.mubr.msk.f32.mxu0 %vm16302_vm0, %v16303_v4  ;;  %v3156_v21 = vld [vmem:[#allocation8 + $0x1a2] ss:$4 sm:$0xff] }
 0x1dc   : > { %4283 = vst.msk [vmem:[#allocation2 + $0x65] sm:$0xff] %vm2619_vm2, %v4167_v14  ;;  %v3085_v20 = vmax.f32 %v2871_v17, %v2985_v18  ;;  %2677 = vst.msk [vmem:[#allocation8 + $0x1c8] sm:$0xff] %vm2619_vm2, %v1781_v15  ;;  %v3327_v26 = vld [vmem:[#allocation8 + $0x1a3] ss:$4 sm:$0xff] }
 0x1dd   : > { %v1785_v22 = vpop.f32.mrb[116].mxu0  ;;  %v637_v15 = vld [vmem:[%s16457_s26 + $0x3b0] sm:$0xff] }
 0x1de   : > { %v3256_v23 = vmax.f32 %v3085_v20, %v3156_v21  ;;  %v1786_v24 = vadd.f32 %v17093_v56, %v1785_v22  ;;  %v14105_v25 = vpop.f32.mrb[117].mxu0  ;;  %14263 = vmatmul.mubr.msk.f32.gmra.mrb[222].mxu0 %vm753_vm1, %v630_v19 }
 0x1df   : > { %14265 = vmatprep.mubr.msk.f32.mxu0 %vm16302_vm0, %v16303_v4  ;;  %v3498_v29 = vld [vmem:[#allocation8 + $0x1a4] ss:$4 sm:$0xff]  ;;  %v3669_v34 = vld [vmem:[#allocation8 + $0x1a5] ss:$4 sm:$0xff]  ;;  %v3840_v37 = vld [vmem:[#allocation8 + $0x1a6] ss:$4 sm:$0xff] }
 0x1e0   : > { %v3427_v28 = vmax.f32 %v3256_v23, %v3327_v26  ;;  %2678 = vst.msk [vmem:[#allocation8 + $0x1d0] sm:$0xff] %vm2619_vm2, %v1786_v24  ;;  %v4011_v42 = vld [vmem:[#allocation8 + $0x1a7] ss:$4 sm:$0xff] }
 0x1e1   : > { %v1790_v30 = vpop.f32.mrb[118].mxu0  ;;  %v638_v23 = vld [vmem:[%s16457_s26 + $0x3b8] sm:$0xff] }
 0x1e2   : > { %v3598_v31 = vmax.f32 %v3427_v28, %v3498_v29  ;;  %v1791_v32 = vadd.f32 %v17093_v56, %v1790_v30  ;;  %v14108_v33 = vpop.f32.mrb[119].mxu0  ;;  %14266 = vmatmul.mubr.msk.f32.gmra.mrb[224].mxu0 %vm753_vm1, %v631_v27 }
 0x1e3   : > { %14268 = vmatprep.mubr.msk.f32.mxu0 %vm16302_vm0, %v16303_v4 }
 0x1e4   : > { %v3769_v36 = vmax.f32 %v3598_v31, %v3669_v34  ;;  %2679 = vst.msk [vmem:[#allocation8 + $0x1d8] sm:$0xff] %vm2619_vm2, %v1791_v32  ;;  %v639_v31 = vld [vmem:[%s16457_s26 + $0x3c0] sm:$0xff] }
 0x1e5   : > { %v1795_v38 = vpop.f32.mrb[120].mxu0 }
 0x1e6   : > { %v3940_v39 = vmax.f32 %v3769_v36, %v3840_v37  ;;  %v1796_v40 = vadd.f32 %v17093_v56, %v1795_v38  ;;  %v14111_v41 = vpop.f32.mrb[121].mxu0  ;;  %14269 = vmatmul.mubr.msk.f32.gmra.mrb[226].mxu0 %vm753_vm1, %v632_v35 }
 0x1e7   : > { %14271 = vmatprep.mubr.msk.f32.mxu0 %vm16302_vm0, %v16303_v4 }
 0x1e8   : > { %v4111_v44 = vmax.f32 %v3940_v39, %v4011_v42  ;;  %2680 = vst.msk [vmem:[#allocation8 + $0x1e0] sm:$0xff] %vm2619_vm2, %v1796_v40  ;;  %v640_v39 = vld [vmem:[%s16457_s26 + $0x3c8] sm:$0xff] }
 0x1e9   : > { %v1800_v45 = vpop.f32.mrb[122].mxu0 }
 0x1ea   : > { %v4168_v46 = vmax.f32 %v4111_v44, 0.0  ;;  %v1801_v47 = vadd.f32 %v17093_v56, %v1800_v45  ;;  %v14114_v48 = vpop.f32.mrb[123].mxu0  ;;  %14272 = vmatmul.mubr.msk.f32.gmra.mrb[228].mxu0 %vm753_vm1, %v633_v43 }
 0x1eb   : > { %v2873_v49 = vld [vmem:[#allocation8 + $0x1c0] ss:$4 sm:$0xff]  ;;  %v2987_v50 = vld [vmem:[#allocation8 + $0x1c1] ss:$4 sm:$0xff]  ;;  %14274 = vmatprep.mubr.msk.f32.mxu0 %vm16302_vm0, %v16303_v4  ;;  %v3158_v53 = vld [vmem:[#allocation8 + $0x1c2] ss:$4 sm:$0xff] }
 0x1ec   : > { %4284 = vst.msk [vmem:[#allocation2 + $0x6d] sm:$0xff] %vm2619_vm2, %v4168_v46  ;;  %v3086_v52 = vmax.f32 %v2873_v49, %v2987_v50  ;;  %2681 = vst.msk [vmem:[#allocation8 + $0x1e8] sm:$0xff] %vm2619_vm2, %v1801_v47  ;;  %v3329_v58 = vld [vmem:[#allocation8 + $0x1c3] ss:$4 sm:$0xff] }
 0x1ed   : > { %v1805_v54 = vpop.f32.mrb[124].mxu0  ;;  %v641_v47 = vld [vmem:[%s16457_s26 + $0x3d0] sm:$0xff] }
 0x1ee   : > { %v3257_v55 = vmax.f32 %v3086_v52, %v3158_v53  ;;  %v1806_v59 = vadd.f32 %v17093_v56, %v1805_v54  ;;  %v14117_v57 = vpop.f32.mrb[125].mxu0  ;;  %14275 = vmatmul.mubr.msk.f32.gmra.mrb[230].mxu0 %vm753_vm1, %v634_v51 }
 0x1ef   : > { %14277 = vmatprep.mubr.msk.f32.mxu0 %vm16302_vm0, %v16303_v4  ;;  %v3500_v62 = vld [vmem:[#allocation8 + $0x1c4] ss:$4 sm:$0xff]  ;;  %v3671_v5 = vld [vmem:[#allocation8 + $0x1c5] ss:$4 sm:$0xff]  ;;  %v3842_v9 = vld [vmem:[#allocation8 + $0x1c6] ss:$4 sm:$0xff] }
 0x1f0   : > { %v3428_v61 = vmax.f32 %v3257_v55, %v3329_v58  ;;  %2682 = vst.msk [vmem:[#allocation8 + $0x1f0] sm:$0xff] %vm2619_vm2, %v1806_v59  ;;  %v4013_v14 = vld [vmem:[#allocation8 + $0x1c7] ss:$4 sm:$0xff] }
 0x1f1   : > { %v1810_v63 = vpop.f32.mrb[126].mxu0  ;;  %v642_v55 = vld [vmem:[%s16457_s26 + $0x3d8] sm:$0xff] }
 0x1f2   : > { %v3599_v0 = vmax.f32 %v3428_v61, %v3500_v62  ;;  %v1811_v1 = vadd.f32 %v17093_v56, %v1810_v63  ;;  %v14120_v3 = vpop.f32.mrb[127].mxu0  ;;  %14278 = vmatmul.mubr.msk.f32.gmra.mrb[232].mxu0 %vm753_vm1, %v635_v60 }
 0x1f3   : > { %v4398_v6 = vld [vmem:[#allocation2 + $0x61] ss:$2 sm:$0xff]  ;;  %14280 = vmatprep.mubr.msk.f32.mxu0 %vm16302_vm0, %v16303_v4 }
 0x1f4   : > { %v3770_v8 = vmax.f32 %v3599_v0, %v3671_v5  ;;  %2683 = vst.msk [vmem:[#allocation8 + $0x1f8] sm:$0xff] %vm2619_vm2, %v1811_v1  ;;  %14615 = vmatprep.mubr.msk.f32.mxu1 %vm2619_vm2, %v4398_v6  ;;  %v643_v0 = vld [vmem:[%s16457_s26 + $0x3e0] sm:$0xff] }
 0x1f5   : > { %v1815_v10 = vpop.f32.mrb[128].mxu0 }
 0x1f6   : > { %v3941_v11 = vmax.f32 %v3770_v8, %v3842_v9  ;;  %v1816_v12 = vadd.f32 %v17093_v56, %v1815_v10  ;;  %v14123_v13 = vpop.f32.mrb[129].mxu0  ;;  %14281 = vmatmul.mubr.msk.f32.gmra.mrb[234].mxu0 %vm753_vm1, %v636_v7 }
 0x1f7   : > { %14283 = vmatprep.mubr.msk.f32.mxu0 %vm16302_vm0, %v16303_v4 }
 0x1f8   : > { %v4112_v16 = vmax.f32 %v3941_v11, %v4013_v14  ;;  %2684 = vst.msk [vmem:[#allocation8 + $0x200] sm:$0xff] %vm2619_vm2, %v1816_v12  ;;  %v644_v11 = vld [vmem:[%s16457_s26 + $0x3e8] sm:$0xff] }
 0x1f9   : > { %v1820_v17 = vpop.f32.mrb[130].mxu0 }
 0x1fa   : > { %v4169_v18 = vmax.f32 %v4112_v16, 0.0  ;;  %v1821_v19 = vadd.f32 %v17093_v56, %v1820_v17  ;;  %v14126_v20 = vpop.f32.mrb[131].mxu0  ;;  %14284 = vmatmul.mubr.msk.f32.gmra.mrb[236].mxu0 %vm753_vm1, %v637_v15 }
 0x1fb   : > { %v2875_v21 = vld [vmem:[#allocation8 + $0x1e0] ss:$4 sm:$0xff]  ;;  %v2989_v22 = vld [vmem:[#allocation8 + $0x1e1] ss:$4 sm:$0xff]  ;;  %14286 = vmatprep.mubr.msk.f32.mxu0 %vm16302_vm0, %v16303_v4  ;;  %v3160_v25 = vld [vmem:[#allocation8 + $0x1e2] ss:$4 sm:$0xff] }
 0x1fc   : > { %4285 = vst.msk [vmem:[#allocation2 + $0x75] sm:$0xff] %vm2619_vm2, %v4169_v18  ;;  %v3087_v24 = vmax.f32 %v2875_v21, %v2989_v22  ;;  %2685 = vst.msk [vmem:[#allocation8 + $0x208] sm:$0xff] %vm2619_vm2, %v1821_v19  ;;  %v3331_v30 = vld [vmem:[#allocation8 + $0x1e3] ss:$4 sm:$0xff] }
 0x1fd   : > { %v1825_v26 = vpop.f32.mrb[132].mxu0  ;;  %v645_v19 = vld [vmem:[%s16457_s26 + $0x3f0] sm:$0xff] }
 0x1fe   : > { %v3258_v27 = vmax.f32 %v3087_v24, %v3160_v25  ;;  %v1826_v28 = vadd.f32 %v17093_v56, %v1825_v26  ;;  %v14129_v29 = vpop.f32.mrb[133].mxu0  ;;  %14287 = vmatmul.mubr.msk.f32.gmra.mrb[238].mxu0 %vm753_vm1, %v638_v23 }
 0x1ff   : > { %14289 = vmatprep.mubr.msk.f32.mxu0 %vm16302_vm0, %v16303_v4  ;;  %v3502_v33 = vld [vmem:[#allocation8 + $0x1e4] ss:$4 sm:$0xff]  ;;  %v3673_v38 = vld [vmem:[#allocation8 + $0x1e5] ss:$4 sm:$0xff]  ;;  %v3844_v41 = vld [vmem:[#allocation8 + $0x1e6] ss:$4 sm:$0xff] }
 0x200   : > { %v3429_v32 = vmax.f32 %v3258_v27, %v3331_v30  ;;  %2686 = vst.msk [vmem:[#allocation8 + $0x210] sm:$0xff] %vm2619_vm2, %v1826_v28  ;;  %v4015_v46 = vld [vmem:[#allocation8 + $0x1e7] ss:$4 sm:$0xff] }
 0x201   : > { %v1830_v34 = vpop.f32.mrb[134].mxu0  ;;  %v646_v27 = vld [vmem:[%s16457_s26 + $0x3f8] sm:$0xff] }
 0x202   : > { %v3600_v35 = vmax.f32 %v3429_v32, %v3502_v33  ;;  %v1831_v36 = vadd.f32 %v17093_v56, %v1830_v34  ;;  %v14132_v37 = vpop.f32.mrb[135].mxu0  ;;  %14290 = vmatmul.mubr.msk.f32.gmra.mrb[240].mxu0 %vm753_vm1, %v639_v31 }
 0x203   : > { %14292 = vmatprep.mubr.msk.f32.mxu0 %vm16302_vm0, %v16303_v4 }
 0x204   : > { %v3771_v40 = vmax.f32 %v3600_v35, %v3673_v38  ;;  %2687 = vst.msk [vmem:[#allocation8 + $0x218] sm:$0xff] %vm2619_vm2, %v1831_v36  ;;  %v647_v35 = vld [vmem:[%s16457_s26 + $0x400] sm:$0xff] }
 0x205   : > { %v1835_v42 = vpop.f32.mrb[136].mxu0 }
 0x206   : > { %v3942_v43 = vmax.f32 %v3771_v40, %v3844_v41  ;;  %v1836_v44 = vadd.f32 %v17093_v56, %v1835_v42  ;;  %v14135_v45 = vpop.f32.mrb[137].mxu0  ;;  %14293 = vmatmul.mubr.msk.f32.gmra.mrb[242].mxu0 %vm753_vm1, %v640_v39 }
 0x207   : > { %14295 = vmatprep.mubr.msk.f32.mxu0 %vm16302_vm0, %v16303_v4 }
 0x208   : > { %v4113_v48 = vmax.f32 %v3942_v43, %v4015_v46  ;;  %2688 = vst.msk [vmem:[#allocation8 + $0x220] sm:$0xff] %vm2619_vm2, %v1836_v44  ;;  %v648_v43 = vld [vmem:[%s16457_s26 + $0x408] sm:$0xff] }
 0x209   : > { %v1840_v49 = vpop.f32.mrb[138].mxu0 }
 0x20a   : > { %v4170_v50 = vmax.f32 %v4113_v48, 0.0  ;;  %v1841_v51 = vadd.f32 %v17093_v56, %v1840_v49  ;;  %v14138_v52 = vpop.f32.mrb[139].mxu0  ;;  %14296 = vmatmul.mubr.msk.f32.gmra.mrb[244].mxu0 %vm753_vm1, %v641_v47 }
 0x20b   : > { %v2877_v53 = vld [vmem:[#allocation8 + $0x200] ss:$4 sm:$0xff]  ;;  %v2991_v54 = vld [vmem:[#allocation8 + $0x201] ss:$4 sm:$0xff]  ;;  %14298 = vmatprep.mubr.msk.f32.mxu0 %vm16302_vm0, %v16303_v4  ;;  %v3162_v57 = vld [vmem:[#allocation8 + $0x202] ss:$4 sm:$0xff] }
 0x20c   : > { %4286 = vst.msk [vmem:[#allocation2 + $0x7d] sm:$0xff] %vm2619_vm2, %v4170_v50  ;;  %v3088_v59 = vmax.f32 %v2877_v53, %v2991_v54  ;;  %2689 = vst.msk [vmem:[#allocation8 + $0x228] sm:$0xff] %vm2619_vm2, %v1841_v51  ;;  %v3333_v63 = vld [vmem:[#allocation8 + $0x203] ss:$4 sm:$0xff] }
 0x20d   : > { %v1845_v58 = vpop.f32.mrb[140].mxu0  ;;  %v649_v51 = vld [vmem:[%s16457_s26 + $0x410] sm:$0xff] }
 0x20e   : > { %v3259_v60 = vmax.f32 %v3088_v59, %v3162_v57  ;;  %v1846_v61 = vadd.f32 %v17093_v56, %v1845_v58  ;;  %v14141_v62 = vpop.f32.mrb[141].mxu0  ;;  %14299 = vmatmul.mubr.msk.f32.gmra.mrb[246].mxu0 %vm753_vm1, %v642_v55 }
 0x20f   : > { %14301 = vmatprep.mubr.msk.f32.mxu0 %vm16302_vm0, %v16303_v4  ;;  %v3504_v3 = vld [vmem:[#allocation8 + $0x204] ss:$4 sm:$0xff]  ;;  %v3675_v9 = vld [vmem:[#allocation8 + $0x205] ss:$4 sm:$0xff]  ;;  %v3846_v13 = vld [vmem:[#allocation8 + $0x206] ss:$4 sm:$0xff] }
 0x210   : > { %v3430_v1 = vmax.f32 %v3259_v60, %v3333_v63  ;;  %2690 = vst.msk [vmem:[#allocation8 + $0x230] sm:$0xff] %vm2619_vm2, %v1846_v61  ;;  %v4017_v18 = vld [vmem:[#allocation8 + $0x207] ss:$4 sm:$0xff] }
 0x211   : > { %v1850_v5 = vpop.f32.mrb[142].mxu0  ;;  %v650_v60 = vld [vmem:[%s16457_s26 + $0x418] sm:$0xff] }
 0x212   : > { %v3601_v6 = vmax.f32 %v3430_v1, %v3504_v3  ;;  %v1851_v7 = vadd.f32 %v17093_v56, %v1850_v5  ;;  %v14144_v8 = vpop.f32.mrb[143].mxu0  ;;  %14302 = vmatmul.mubr.msk.f32.gmra.mrb[248].mxu0 %vm753_vm1, %v643_v0 }
 0x213   : > { %v4400_v10 = vld [vmem:[#allocation2 + $0x71] ss:$2 sm:$0xff]  ;;  %14304 = vmatprep.mubr.msk.f32.mxu0 %vm16302_vm0, %v16303_v4 }
 0x214   : > { %v3772_v12 = vmax.f32 %v3601_v6, %v3675_v9  ;;  %2691 = vst.msk [vmem:[#allocation8 + $0x238] sm:$0xff] %vm2619_vm2, %v1851_v7  ;;  %14616 = vmatmul.mubr.msk.f32.gmra.mrb[6].mxu1 %vm2619_vm2, %v4400_v10  ;;  %v651_v6 = vld [vmem:[%s16457_s26 + $0x420] sm:$0xff] }
 0x215   : > { %v1855_v14 = vpop.f32.mrb[144].mxu0 }
 0x216   : > { %v3943_v15 = vmax.f32 %v3772_v12, %v3846_v13  ;;  %v1856_v16 = vadd.f32 %v17093_v56, %v1855_v14  ;;  %v14147_v17 = vpop.f32.mrb[145].mxu0  ;;  %14305 = vmatmul.mubr.msk.f32.gmra.mrb[250].mxu0 %vm753_vm1, %v644_v11 }
 0x217   : > { %14307 = vmatprep.mubr.msk.f32.mxu0 %vm16302_vm0, %v16303_v4 }
 0x218   : > { %v4114_v20 = vmax.f32 %v3943_v15, %v4017_v18  ;;  %2692 = vst.msk [vmem:[#allocation8 + $0x240] sm:$0xff] %vm2619_vm2, %v1856_v16  ;;  %v652_v15 = vld [vmem:[%s16457_s26 + $0x428] sm:$0xff] }
 0x219   : > { %v1860_v21 = vpop.f32.mrb[146].mxu0 }
 0x21a   : > { %v4171_v22 = vmax.f32 %v4114_v20, 0.0  ;;  %v1861_v23 = vadd.f32 %v17093_v56, %v1860_v21  ;;  %v14150_v24 = vpop.f32.mrb[147].mxu0  ;;  %14308 = vmatmul.mubr.msk.f32.gmra.mrb[252].mxu0 %vm753_vm1, %v645_v19 }
 0x21b   : > { %v2879_v25 = vld [vmem:[#allocation8 + $0x220] ss:$4 sm:$0xff]  ;;  %v2993_v26 = vld [vmem:[#allocation8 + $0x221] ss:$4 sm:$0xff]  ;;  %14310 = vmatprep.mubr.msk.f32.mxu0 %vm16302_vm0, %v16303_v4  ;;  %v3164_v29 = vld [vmem:[#allocation8 + $0x222] ss:$4 sm:$0xff] }
 0x21c   : > { %4287 = vst.msk [vmem:[#allocation2 + $0x85] sm:$0xff] %vm2619_vm2, %v4171_v22  ;;  %v3089_v28 = vmax.f32 %v2879_v25, %v2993_v26  ;;  %2693 = vst.msk [vmem:[#allocation8 + $0x248] sm:$0xff] %vm2619_vm2, %v1861_v23  ;;  %v3335_v34 = vld [vmem:[#allocation8 + $0x223] ss:$4 sm:$0xff] }
 0x21d   : > { %v1865_v30 = vpop.f32.mrb[148].mxu0  ;;  %v653_v23 = vld [vmem:[%s16457_s26 + $0x430] sm:$0xff] }
 0x21e   : > { %v3260_v31 = vmax.f32 %v3089_v28, %v3164_v29  ;;  %v1866_v32 = vadd.f32 %v17093_v56, %v1865_v30  ;;  %v14153_v33 = vpop.f32.mrb[149].mxu0  ;;  %14311 = vmatmul.mubr.msk.f32.gmra.mrb[254].mxu0 %vm753_vm1, %v646_v27 }
 0x21f   : > { %14313 = vmatprep.mubr.msk.f32.mxu0 %vm16302_vm0, %v16303_v4  ;;  %v3506_v37 = vld [vmem:[#allocation8 + $0x224] ss:$4 sm:$0xff]  ;;  %v3677_v42 = vld [vmem:[#allocation8 + $0x225] ss:$4 sm:$0xff]  ;;  %v3848_v45 = vld [vmem:[#allocation8 + $0x226] ss:$4 sm:$0xff] }
 0x220   : > { %v3431_v36 = vmax.f32 %v3260_v31, %v3335_v34  ;;  %2694 = vst.msk [vmem:[#allocation8 + $0x250] sm:$0xff] %vm2619_vm2, %v1866_v32  ;;  %v4019_v50 = vld [vmem:[#allocation8 + $0x227] ss:$4 sm:$0xff] }
 0x221   : > { %v1870_v38 = vpop.f32.mrb[150].mxu0  ;;  %v654_v31 = vld [vmem:[%s16457_s26 + $0x438] sm:$0xff] }
 0x222   : > { %v3602_v39 = vmax.f32 %v3431_v36, %v3506_v37  ;;  %v1871_v40 = vadd.f32 %v17093_v56, %v1870_v38  ;;  %v14156_v41 = vpop.f32.mrb[151].mxu0  ;;  %14314 = vmatmul.mubr.msk.f32.gmra.mrb[0].mxu0 %vm753_vm1, %v647_v35 }
 0x223   : > { %14316 = vmatprep.mubr.msk.f32.mxu0 %vm16302_vm0, %v16303_v4 }
 0x224   : > { %v3773_v44 = vmax.f32 %v3602_v39, %v3677_v42  ;;  %2695 = vst.msk [vmem:[#allocation8 + $0x258] sm:$0xff] %vm2619_vm2, %v1871_v40  ;;  %v655_v39 = vld [vmem:[%s16457_s26 + $0x440] sm:$0xff] }
 0x225   : > { %v1875_v46 = vpop.f32.mrb[152].mxu0 }
 0x226   : > { %v3944_v47 = vmax.f32 %v3773_v44, %v3848_v45  ;;  %v1876_v48 = vadd.f32 %v17093_v56, %v1875_v46  ;;  %v14159_v49 = vpop.f32.mrb[153].mxu0  ;;  %14317 = vmatmul.mubr.msk.f32.gmra.mrb[2].mxu0 %vm753_vm1, %v648_v43 }
 0x227   : > { %14319 = vmatprep.mubr.msk.f32.mxu0 %vm16302_vm0, %v16303_v4 }
 0x228   : > { %v4115_v52 = vmax.f32 %v3944_v47, %v4019_v50  ;;  %2696 = vst.msk [vmem:[#allocation8 + $0x260] sm:$0xff] %vm2619_vm2, %v1876_v48  ;;  %v656_v47 = vld [vmem:[%s16457_s26 + $0x448] sm:$0xff] }
 0x229   : > { %v1880_v53 = vpop.f32.mrb[154].mxu0 }
 0x22a   : > { %v4172_v54 = vmax.f32 %v4115_v52, 0.0  ;;  %v1881_v55 = vadd.f32 %v17093_v56, %v1880_v53  ;;  %v14162_v59 = vpop.f32.mrb[155].mxu0  ;;  %14320 = vmatmul.mubr.msk.f32.gmra.mrb[4].mxu0 %vm753_vm1, %v649_v51 }
 0x22b   : > { %v2881_v57 = vld [vmem:[#allocation8 + $0x240] ss:$4 sm:$0xff]  ;;  %v2995_v58 = vld [vmem:[#allocation8 + $0x241] ss:$4 sm:$0xff]  ;;  %14322 = vmatprep.mubr.msk.f32.mxu0 %vm16302_vm0, %v16303_v4  ;;  %v3166_v62 = vld [vmem:[#allocation8 + $0x242] ss:$4 sm:$0xff] }
 0x22c   : > { %4288 = vst.msk [vmem:[#allocation2 + $0x8d] sm:$0xff] %vm2619_vm2, %v4172_v54  ;;  %v3090_v61 = vmax.f32 %v2881_v57, %v2995_v58  ;;  %2697 = vst.msk [vmem:[#allocation8 + $0x268] sm:$0xff] %vm2619_vm2, %v1881_v55  ;;  %v3337_v5 = vld [vmem:[#allocation8 + $0x243] ss:$4 sm:$0xff] }
 0x22d   : > { %v1885_v63 = vpop.f32.mrb[156].mxu0  ;;  %v657_v55 = vld [vmem:[%s16457_s26 + $0x450] sm:$0xff] }
 0x22e   : > { %v3261_v0 = vmax.f32 %v3090_v61, %v3166_v62  ;;  %v1886_v1 = vadd.f32 %v17093_v56, %v1885_v63  ;;  %v14165_v3 = vpop.f32.mrb[157].mxu0  ;;  %14323 = vmatmul.mubr.msk.f32.gmra.mrb[6].mxu0 %vm753_vm1, %v650_v60 }
 0x22f   : > { %14325 = vmatprep.mubr.msk.f32.mxu0 %vm16302_vm0, %v16303_v4  ;;  %v3508_v8 = vld [vmem:[#allocation8 + $0x244] ss:$4 sm:$0xff]  ;;  %v3679_v13 = vld [vmem:[#allocation8 + $0x245] ss:$4 sm:$0xff]  ;;  %v3850_v17 = vld [vmem:[#allocation8 + $0x246] ss:$4 sm:$0xff] }
 0x230   : > { %v3432_v7 = vmax.f32 %v3261_v0, %v3337_v5  ;;  %2698 = vst.msk [vmem:[#allocation8 + $0x270] sm:$0xff] %vm2619_vm2, %v1886_v1  ;;  %v4021_v22 = vld [vmem:[#allocation8 + $0x247] ss:$4 sm:$0xff] }
 0x231   : > { %v1890_v9 = vpop.f32.mrb[158].mxu0  ;;  %v658_v0 = vld [vmem:[%s16457_s26 + $0x458] sm:$0xff] }
 0x232   : > { %v3603_v10 = vmax.f32 %v3432_v7, %v3508_v8  ;;  %v1891_v11 = vadd.f32 %v17093_v56, %v1890_v9  ;;  %v14168_v12 = vpop.f32.mrb[159].mxu0  ;;  %14326 = vmatmul.mubr.msk.f32.gmra.mrb[8].mxu0 %vm753_vm1, %v651_v6 }
 0x233   : > { %v4402_v14 = vld [vmem:[#allocation2 + $0x81] ss:$2 sm:$0xff]  ;;  %14328 = vmatprep.mubr.msk.f32.mxu0 %vm16302_vm0, %v16303_v4 }
 0x234   : > { %v3774_v16 = vmax.f32 %v3603_v10, %v3679_v13  ;;  %2699 = vst.msk [vmem:[#allocation8 + $0x278] sm:$0xff] %vm2619_vm2, %v1891_v11  ;;  %14618 = vmatprep.mubr.msk.f32.mxu1 %vm2619_vm2, %v4402_v14  ;;  %v659_v10 = vld [vmem:[%s16457_s26 + $0x460] sm:$0xff] }
 0x235   : > { %v1895_v18 = vpop.f32.mrb[160].mxu0 }
 0x236   : > { %v3945_v19 = vmax.f32 %v3774_v16, %v3850_v17  ;;  %v1896_v20 = vadd.f32 %v17093_v56, %v1895_v18  ;;  %v14171_v21 = vpop.f32.mrb[161].mxu0  ;;  %14329 = vmatmul.mubr.msk.f32.gmra.mrb[10].mxu0 %vm753_vm1, %v652_v15 }
 0x237   : > { %14331 = vmatprep.mubr.msk.f32.mxu0 %vm16302_vm0, %v16303_v4 }
 0x238   : > { %v4116_v24 = vmax.f32 %v3945_v19, %v4021_v22  ;;  %2700 = vst.msk [vmem:[#allocation8 + $0x280] sm:$0xff] %vm2619_vm2, %v1896_v20  ;;  %v660_v19 = vld [vmem:[%s16457_s26 + $0x468] sm:$0xff] }
 0x239   : > { %v1900_v25 = vpop.f32.mrb[162].mxu0 }
 0x23a   : > { %v4173_v26 = vmax.f32 %v4116_v24, 0.0  ;;  %v1901_v27 = vadd.f32 %v17093_v56, %v1900_v25  ;;  %v14174_v28 = vpop.f32.mrb[163].mxu0  ;;  %14332 = vmatmul.mubr.msk.f32.gmra.mrb[12].mxu0 %vm753_vm1, %v653_v23 }
 0x23b   : > { %v2883_v29 = vld [vmem:[#allocation8 + $0x260] ss:$4 sm:$0xff]  ;;  %v2997_v30 = vld [vmem:[#allocation8 + $0x261] ss:$4 sm:$0xff]  ;;  %14334 = vmatprep.mubr.msk.f32.mxu0 %vm16302_vm0, %v16303_v4  ;;  %v3168_v33 = vld [vmem:[#allocation8 + $0x262] ss:$4 sm:$0xff] }
 0x23c   : > { %4289 = vst.msk [vmem:[#allocation2 + $0x95] sm:$0xff] %vm2619_vm2, %v4173_v26  ;;  %v3091_v32 = vmax.f32 %v2883_v29, %v2997_v30  ;;  %2701 = vst.msk [vmem:[#allocation8 + $0x288] sm:$0xff] %vm2619_vm2, %v1901_v27  ;;  %v3339_v38 = vld [vmem:[#allocation8 + $0x263] ss:$4 sm:$0xff] }
 0x23d   : > { %v1905_v34 = vpop.f32.mrb[164].mxu0  ;;  %v661_v27 = vld [vmem:[%s16457_s26 + $0x470] sm:$0xff] }
 0x23e   : > { %v3262_v35 = vmax.f32 %v3091_v32, %v3168_v33  ;;  %v1906_v36 = vadd.f32 %v17093_v56, %v1905_v34  ;;  %v14177_v37 = vpop.f32.mrb[165].mxu0  ;;  %14335 = vmatmul.mubr.msk.f32.gmra.mrb[14].mxu0 %vm753_vm1, %v654_v31 }
 0x23f   : > { %14337 = vmatprep.mubr.msk.f32.mxu0 %vm16302_vm0, %v16303_v4  ;;  %v3510_v41 = vld [vmem:[#allocation8 + $0x264] ss:$4 sm:$0xff]  ;;  %v3681_v46 = vld [vmem:[#allocation8 + $0x265] ss:$4 sm:$0xff]  ;;  %v3852_v49 = vld [vmem:[#allocation8 + $0x266] ss:$4 sm:$0xff] }
 0x240   : > { %v3433_v40 = vmax.f32 %v3262_v35, %v3339_v38  ;;  %2702 = vst.msk [vmem:[#allocation8 + $0x290] sm:$0xff] %vm2619_vm2, %v1906_v36  ;;  %v4023_v54 = vld [vmem:[#allocation8 + $0x267] ss:$4 sm:$0xff] }
 0x241   : > { %v1910_v42 = vpop.f32.mrb[166].mxu0  ;;  %v662_v35 = vld [vmem:[%s16457_s26 + $0x478] sm:$0xff] }
 0x242   : > { %v3604_v43 = vmax.f32 %v3433_v40, %v3510_v41  ;;  %v1911_v44 = vadd.f32 %v17093_v56, %v1910_v42  ;;  %v14180_v45 = vpop.f32.mrb[167].mxu0  ;;  %14338 = vmatmul.mubr.msk.f32.gmra.mrb[16].mxu0 %vm753_vm1, %v655_v39 }
 0x243   : > { %14340 = vmatprep.mubr.msk.f32.mxu0 %vm16302_vm0, %v16303_v4 }
 0x244   : > { %v3775_v48 = vmax.f32 %v3604_v43, %v3681_v46  ;;  %2703 = vst.msk [vmem:[#allocation8 + $0x298] sm:$0xff] %vm2619_vm2, %v1911_v44  ;;  %v663_v43 = vld [vmem:[%s16457_s26 + $0x480] sm:$0xff] }
 0x245   : > { %v1915_v50 = vpop.f32.mrb[168].mxu0 }
 0x246   : > { %v3946_v51 = vmax.f32 %v3775_v48, %v3852_v49  ;;  %v1916_v52 = vadd.f32 %v17093_v56, %v1915_v50  ;;  %v14183_v53 = vpop.f32.mrb[169].mxu0  ;;  %14341 = vmatmul.mubr.msk.f32.gmra.mrb[18].mxu0 %vm753_vm1, %v656_v47 }
 0x247   : > { %14343 = vmatprep.mubr.msk.f32.mxu0 %vm16302_vm0, %v16303_v4 }
 0x248   : > { %v4117_v59 = vmax.f32 %v3946_v51, %v4023_v54  ;;  %2704 = vst.msk [vmem:[#allocation8 + $0x2a0] sm:$0xff] %vm2619_vm2, %v1916_v52  ;;  %v664_v51 = vld [vmem:[%s16457_s26 + $0x488] sm:$0xff] }
 0x249   : > { %v1920_v57 = vpop.f32.mrb[170].mxu0 }
 0x24a   : > { %v4174_v58 = vmax.f32 %v4117_v59, 0.0  ;;  %v1921_v60 = vadd.f32 %v17093_v56, %v1920_v57  ;;  %v14186_v61 = vpop.f32.mrb[171].mxu0  ;;  %14344 = vmatmul.mubr.msk.f32.gmra.mrb[20].mxu0 %vm753_vm1, %v657_v55  ;;  %v17385_v59 = vld [vmem:[%s19530_s2] ss:$0 sm:$0xff] }
 0x24b   : > { %v2885_v62 = vld [vmem:[#allocation8 + $0x280] ss:$4 sm:$0xff]  ;;  %v2999_v63 = vld [vmem:[#allocation8 + $0x281] ss:$4 sm:$0xff]  ;;  %14346 = vmatprep.mubr.msk.f32.mxu0 %vm16302_vm0, %v16303_v4  ;;  %v3170_v3 = vld [vmem:[#allocation8 + $0x282] ss:$4 sm:$0xff] }
 0x24c   : > { %4290 = vst.msk [vmem:[#allocation2 + $0x9d] sm:$0xff] %vm2619_vm2, %v4174_v58  ;;  %v3092_v1 = vmax.f32 %v2885_v62, %v2999_v63  ;;  %2705 = vst.msk [vmem:[#allocation8 + $0x2a8] sm:$0xff] %vm2619_vm2, %v1921_v60  ;;  %v3341_v9 = vld [vmem:[#allocation8 + $0x283] ss:$4 sm:$0xff] }
 0x24d   : > { %v1925_v5 = vpop.f32.mrb[172].mxu0  ;;  %v665_v60 = vld [vmem:[%s16457_s26 + $0x490] sm:$0xff] }
 0x24e   : > { %v3263_v6 = vmax.f32 %v3092_v1, %v3170_v3  ;;  %v1926_v7 = vadd.f32 %v17093_v56, %v1925_v5  ;;  %v14189_v8 = vpop.f32.mrb[173].mxu0  ;;  %14347 = vmatmul.mubr.msk.f32.gmra.mrb[22].mxu0 %vm753_vm1, %v658_v0 }
 0x24f   : > { %14349 = vmatprep.mubr.msk.f32.mxu0 %vm16302_vm0, %v16303_v4  ;;  %v3512_v12 = vld [vmem:[#allocation8 + $0x284] ss:$4 sm:$0xff]  ;;  %v3683_v17 = vld [vmem:[#allocation8 + $0x285] ss:$4 sm:$0xff]  ;;  %v3854_v21 = vld [vmem:[#allocation8 + $0x286] ss:$4 sm:$0xff] }
 0x250   : > { %v3434_v11 = vmax.f32 %v3263_v6, %v3341_v9  ;;  %2706 = vst.msk [vmem:[#allocation8 + $0x2b0] sm:$0xff] %vm2619_vm2, %v1926_v7  ;;  %v4025_v26 = vld [vmem:[#allocation8 + $0x287] ss:$4 sm:$0xff] }
 0x251   : > { %v1930_v13 = vpop.f32.mrb[174].mxu0  ;;  %v666_v6 = vld [vmem:[%s16457_s26 + $0x498] sm:$0xff] }
 0x252   : > { %v3605_v14 = vmax.f32 %v3434_v11, %v3512_v12  ;;  %v1931_v15 = vadd.f32 %v17093_v56, %v1930_v13  ;;  %v14192_v16 = vpop.f32.mrb[175].mxu0  ;;  %14350 = vmatmul.mubr.msk.f32.gmra.mrb[24].mxu0 %vm753_vm1, %v659_v10 }
 0x253   : > { %v4404_v18 = vld [vmem:[#allocation2 + $0x91] ss:$2 sm:$0xff]  ;;  %14352 = vmatprep.mubr.msk.f32.mxu0 %vm16302_vm0, %v16303_v4 }
 0x254   : > { %v3776_v20 = vmax.f32 %v3605_v14, %v3683_v17  ;;  %2707 = vst.msk [vmem:[#allocation8 + $0x2b8] sm:$0xff] %vm2619_vm2, %v1931_v15  ;;  %14619 = vmatmul.mubr.msk.f32.gmra.mrb[8].mxu1 %vm2619_vm2, %v4404_v18  ;;  %v667_v14 = vld [vmem:[%s16457_s26 + $0x4a0] sm:$0xff] }
 0x255   : > { %v1935_v22 = vpop.f32.mrb[176].mxu0 }
 0x256   : > { %v3947_v23 = vmax.f32 %v3776_v20, %v3854_v21  ;;  %v1936_v24 = vadd.f32 %v17093_v56, %v1935_v22  ;;  %v14195_v25 = vpop.f32.mrb[177].mxu0  ;;  %14353 = vmatmul.mubr.msk.f32.gmra.mrb[26].mxu0 %vm753_vm1, %v660_v19 }
 0x257   : > { %14355 = vmatprep.mubr.msk.f32.mxu0 %vm16302_vm0, %v16303_v4 }
 0x258   : > { %v4118_v28 = vmax.f32 %v3947_v23, %v4025_v26  ;;  %2708 = vst.msk [vmem:[#allocation8 + $0x2c0] sm:$0xff] %vm2619_vm2, %v1936_v24  ;;  %v668_v23 = vld [vmem:[%s16457_s26 + $0x4a8] sm:$0xff] }
 0x259   : > { %v1940_v29 = vpop.f32.mrb[178].mxu0 }
 0x25a   : > { %v4175_v30 = vmax.f32 %v4118_v28, 0.0  ;;  %v1941_v31 = vadd.f32 %v17093_v56, %v1940_v29  ;;  %v14198_v32 = vpop.f32.mrb[179].mxu0  ;;  %14356 = vmatmul.mubr.msk.f32.gmra.mrb[28].mxu0 %vm753_vm1, %v661_v27 }
 0x25b   : > { %v2887_v33 = vld [vmem:[#allocation8 + $0x2a0] ss:$4 sm:$0xff]  ;;  %v3001_v34 = vld [vmem:[#allocation8 + $0x2a1] ss:$4 sm:$0xff]  ;;  %14358 = vmatprep.mubr.msk.f32.mxu0 %vm16302_vm0, %v16303_v4  ;;  %v3172_v37 = vld [vmem:[#allocation8 + $0x2a2] ss:$4 sm:$0xff] }
 0x25c   : > { %4291 = vst.msk [vmem:[#allocation2 + $0xa5] sm:$0xff] %vm2619_vm2, %v4175_v30  ;;  %v3093_v36 = vmax.f32 %v2887_v33, %v3001_v34  ;;  %2709 = vst.msk [vmem:[#allocation8 + $0x2c8] sm:$0xff] %vm2619_vm2, %v1941_v31  ;;  %v3343_v42 = vld [vmem:[#allocation8 + $0x2a3] ss:$4 sm:$0xff] }
 0x25d   : > { %v1945_v38 = vpop.f32.mrb[180].mxu0  ;;  %v669_v31 = vld [vmem:[%s16457_s26 + $0x4b0] sm:$0xff] }
 0x25e   : > { %v3264_v39 = vmax.f32 %v3093_v36, %v3172_v37  ;;  %v1946_v40 = vadd.f32 %v17093_v56, %v1945_v38  ;;  %v14201_v41 = vpop.f32.mrb[181].mxu0  ;;  %14359 = vmatmul.mubr.msk.f32.gmra.mrb[30].mxu0 %vm753_vm1, %v662_v35 }
 0x25f   : > { %14361 = vmatprep.mubr.msk.f32.mxu0 %vm16302_vm0, %v16303_v4  ;;  %v3514_v45 = vld [vmem:[#allocation8 + $0x2a4] ss:$4 sm:$0xff]  ;;  %v3685_v50 = vld [vmem:[#allocation8 + $0x2a5] ss:$4 sm:$0xff]  ;;  %v3856_v53 = vld [vmem:[#allocation8 + $0x2a6] ss:$4 sm:$0xff] }
 0x260   : > { %v3435_v44 = vmax.f32 %v3264_v39, %v3343_v42  ;;  %2710 = vst.msk [vmem:[#allocation8 + $0x2d0] sm:$0xff] %vm2619_vm2, %v1946_v40  ;;  %v4027_v58 = vld [vmem:[#allocation8 + $0x2a7] ss:$4 sm:$0xff] }
 0x261   : > { %v1950_v46 = vpop.f32.mrb[182].mxu0  ;;  %v670_v39 = vld [vmem:[%s16457_s26 + $0x4b8] sm:$0xff] }
 0x262   : > { %v3606_v47 = vmax.f32 %v3435_v44, %v3514_v45  ;;  %v1951_v48 = vadd.f32 %v17093_v56, %v1950_v46  ;;  %v14204_v49 = vpop.f32.mrb[183].mxu0  ;;  %14362 = vmatmul.mubr.msk.f32.gmra.mrb[32].mxu0 %vm753_vm1, %v663_v43 }
 0x263   : > { %14364 = vmatprep.mubr.msk.f32.mxu0 %vm16302_vm0, %v16303_v4 }
 0x264   : > { %v3777_v52 = vmax.f32 %v3606_v47, %v3685_v50  ;;  %2711 = vst.msk [vmem:[#allocation8 + $0x2d8] sm:$0xff] %vm2619_vm2, %v1951_v48  ;;  %v671_v47 = vld [vmem:[%s16457_s26 + $0x4c0] sm:$0xff] }
 0x265   : > { %v1955_v54 = vpop.f32.mrb[184].mxu0 }
 0x266   : > { %v3948_v55 = vmax.f32 %v3777_v52, %v3856_v53  ;;  %v1956_v56 = vadd.f32 %v17385_v59, %v1955_v54  ;;  %v14207_v57 = vpop.f32.mrb[185].mxu0  ;;  %14365 = vmatmul.mubr.msk.f32.gmra.mrb[34].mxu0 %vm753_vm1, %v664_v51 }
 0x267   : > { %14367 = vmatprep.mubr.msk.f32.mxu0 %vm16302_vm0, %v16303_v4 }
 0x268   : > { %v4119_v61 = vmax.f32 %v3948_v55, %v4027_v58  ;;  %2712 = vst.msk [vmem:[#allocation8 + $0x2e0] sm:$0xff] %vm2619_vm2, %v1956_v56  ;;  %v672_v55 = vld [vmem:[%s16457_s26 + $0x4c8] sm:$0xff] }
 0x269   : > { %v1960_v62 = vpop.f32.mrb[186].mxu0 }
 0x26a   : > { %v4176_v63 = vmax.f32 %v4119_v61, 0.0  ;;  %v1961_v0 = vadd.f32 %v17385_v59, %v1960_v62  ;;  %v14210_v1 = vpop.f32.mrb[187].mxu0  ;;  %14368 = vmatmul.mubr.msk.f32.gmra.mrb[36].mxu0 %vm753_vm1, %v665_v60 }
 0x26b   : > { %v2889_v3 = vld [vmem:[#allocation8 + $0x2c0] ss:$4 sm:$0xff]  ;;  %v3003_v5 = vld [vmem:[#allocation8 + $0x2c1] ss:$4 sm:$0xff]  ;;  %14370 = vmatprep.mubr.msk.f32.mxu0 %vm16302_vm0, %v16303_v4  ;;  %v3174_v8 = vld [vmem:[#allocation8 + $0x2c2] ss:$4 sm:$0xff] }
 0x26c   : > { %4292 = vst.msk [vmem:[#allocation2 + $0xad] sm:$0xff] %vm2619_vm2, %v4176_v63  ;;  %v3094_v7 = vmax.f32 %v2889_v3, %v3003_v5  ;;  %2713 = vst.msk [vmem:[#allocation8 + $0x2e8] sm:$0xff] %vm2619_vm2, %v1961_v0  ;;  %v3345_v13 = vld [vmem:[#allocation8 + $0x2c3] ss:$4 sm:$0xff] }
 0x26d   : > { %v1965_v9 = vpop.f32.mrb[188].mxu0  ;;  %v673_v0 = vld [vmem:[%s16457_s26 + $0x4d0] sm:$0xff] }
 0x26e   : > { %v3265_v10 = vmax.f32 %v3094_v7, %v3174_v8  ;;  %v1966_v11 = vadd.f32 %v17385_v59, %v1965_v9  ;;  %v14213_v12 = vpop.f32.mrb[189].mxu0  ;;  %14371 = vmatmul.mubr.msk.f32.gmra.mrb[38].mxu0 %vm753_vm1, %v666_v6 }
 0x26f   : > { %14373 = vmatprep.mubr.msk.f32.mxu0 %vm16302_vm0, %v16303_v4  ;;  %v3516_v16 = vld [vmem:[#allocation8 + $0x2c4] ss:$4 sm:$0xff]  ;;  %v3687_v21 = vld [vmem:[#allocation8 + $0x2c5] ss:$4 sm:$0xff]  ;;  %v3858_v25 = vld [vmem:[#allocation8 + $0x2c6] ss:$4 sm:$0xff] }
 0x270   : > { %v3436_v15 = vmax.f32 %v3265_v10, %v3345_v13  ;;  %2714 = vst.msk [vmem:[#allocation8 + $0x2f0] sm:$0xff] %vm2619_vm2, %v1966_v11  ;;  %v4029_v30 = vld [vmem:[#allocation8 + $0x2c7] ss:$4 sm:$0xff] }
 0x271   : > { %v1970_v17 = vpop.f32.mrb[190].mxu0  ;;  %v674_v10 = vld [vmem:[%s16457_s26 + $0x4d8] sm:$0xff] }
 0x272   : > { %v3607_v18 = vmax.f32 %v3436_v15, %v3516_v16  ;;  %v1971_v19 = vadd.f32 %v17385_v59, %v1970_v17  ;;  %v14216_v20 = vpop.f32.mrb[191].mxu0  ;;  %14374 = vmatmul.mubr.msk.f32.gmra.mrb[40].mxu0 %vm753_vm1, %v667_v14 }
 0x273   : > { %v4406_v22 = vld [vmem:[#allocation2 + $0xa1] ss:$2 sm:$0xff]  ;;  %14376 = vmatprep.mubr.msk.f32.mxu0 %vm16302_vm0, %v16303_v4 }
 0x274   : > { %v3778_v24 = vmax.f32 %v3607_v18, %v3687_v21  ;;  %2715 = vst.msk [vmem:[#allocation8 + $0x2f8] sm:$0xff] %vm2619_vm2, %v1971_v19  ;;  %14621 = vmatprep.mubr.msk.f32.mxu1 %vm2619_vm2, %v4406_v22  ;;  %v675_v18 = vld [vmem:[%s16457_s26 + $0x4e0] sm:$0xff] }
 0x275   : > { %v1975_v26 = vpop.f32.mrb[192].mxu0 }
 0x276   : > { %v3949_v27 = vmax.f32 %v3778_v24, %v3858_v25  ;;  %v1976_v28 = vadd.f32 %v17385_v59, %v1975_v26  ;;  %v14219_v29 = vpop.f32.mrb[193].mxu0  ;;  %14377 = vmatmul.mubr.msk.f32.gmra.mrb[42].mxu0 %vm753_vm1, %v668_v23 }
 0x277   : > { %14379 = vmatprep.mubr.msk.f32.mxu0 %vm16302_vm0, %v16303_v4 }
 0x278   : > { %v4120_v32 = vmax.f32 %v3949_v27, %v4029_v30  ;;  %2716 = vst.msk [vmem:[#allocation8 + $0x300] sm:$0xff] %vm2619_vm2, %v1976_v28  ;;  %v676_v27 = vld [vmem:[%s16457_s26 + $0x4e8] sm:$0xff] }
 0x279   : > { %v1980_v33 = vpop.f32.mrb[194].mxu0 }
 0x27a   : > { %v4177_v34 = vmax.f32 %v4120_v32, 0.0  ;;  %v1981_v35 = vadd.f32 %v17385_v59, %v1980_v33  ;;  %v14222_v36 = vpop.f32.mrb[195].mxu0  ;;  %14380 = vmatmul.mubr.msk.f32.gmra.mrb[44].mxu0 %vm753_vm1, %v669_v31 }
 0x27b   : > { %v2891_v37 = vld [vmem:[#allocation8 + $0x2e0] ss:$4 sm:$0xff]  ;;  %v3005_v38 = vld [vmem:[#allocation8 + $0x2e1] ss:$4 sm:$0xff]  ;;  %14382 = vmatprep.mubr.msk.f32.mxu0 %vm16302_vm0, %v16303_v4  ;;  %v3176_v41 = vld [vmem:[#allocation8 + $0x2e2] ss:$4 sm:$0xff] }
 0x27c   : > { %4293 = vst.msk [vmem:[#allocation2 + $0xb5] sm:$0xff] %vm2619_vm2, %v4177_v34  ;;  %v3095_v40 = vmax.f32 %v2891_v37, %v3005_v38  ;;  %2717 = vst.msk [vmem:[#allocation8 + $0x308] sm:$0xff] %vm2619_vm2, %v1981_v35  ;;  %v3347_v46 = vld [vmem:[#allocation8 + $0x2e3] ss:$4 sm:$0xff] }
 0x27d   : > { %v1985_v42 = vpop.f32.mrb[196].mxu0  ;;  %v677_v35 = vld [vmem:[%s16457_s26 + $0x4f0] sm:$0xff] }
 0x27e   : > { %v3266_v43 = vmax.f32 %v3095_v40, %v3176_v41  ;;  %v1986_v44 = vadd.f32 %v17385_v59, %v1985_v42  ;;  %v14225_v45 = vpop.f32.mrb[197].mxu0  ;;  %14383 = vmatmul.mubr.msk.f32.gmra.mrb[46].mxu0 %vm753_vm1, %v670_v39 }
 0x27f   : > { %14385 = vmatprep.mubr.msk.f32.mxu0 %vm16302_vm0, %v16303_v4  ;;  %v3518_v49 = vld [vmem:[#allocation8 + $0x2e4] ss:$4 sm:$0xff]  ;;  %v3689_v54 = vld [vmem:[#allocation8 + $0x2e5] ss:$4 sm:$0xff]  ;;  %v3860_v57 = vld [vmem:[#allocation8 + $0x2e6] ss:$4 sm:$0xff] }
 0x280   : > { %v3437_v48 = vmax.f32 %v3266_v43, %v3347_v46  ;;  %2718 = vst.msk [vmem:[#allocation8 + $0x310] sm:$0xff] %vm2619_vm2, %v1986_v44  ;;  %v4031_v63 = vld [vmem:[#allocation8 + $0x2e7] ss:$4 sm:$0xff] }
 0x281   : > { %v1990_v50 = vpop.f32.mrb[198].mxu0  ;;  %v678_v43 = vld [vmem:[%s16457_s26 + $0x4f8] sm:$0xff] }
 0x282   : > { %v3608_v51 = vmax.f32 %v3437_v48, %v3518_v49  ;;  %v1991_v52 = vadd.f32 %v17385_v59, %v1990_v50  ;;  %v14228_v53 = vpop.f32.mrb[199].mxu0  ;;  %14386 = vmatmul.mubr.msk.f32.gmra.mrb[48].mxu0 %vm753_vm1, %v671_v47 }
 0x283   : > { %14388 = vmatprep.mubr.msk.f32.mxu0 %vm16302_vm0, %v16303_v4 }
 0x284   : > { %v3779_v56 = vmax.f32 %v3608_v51, %v3689_v54  ;;  %2719 = vst.msk [vmem:[#allocation8 + $0x318] sm:$0xff] %vm2619_vm2, %v1991_v52  ;;  %v679_v51 = vld [vmem:[%s16457_s26 + $0x500] sm:$0xff] }
 0x285   : > { %v1995_v58 = vpop.f32.mrb[200].mxu0 }
 0x286   : > { %v3950_v60 = vmax.f32 %v3779_v56, %v3860_v57  ;;  %v1996_v61 = vadd.f32 %v17385_v59, %v1995_v58  ;;  %v14231_v62 = vpop.f32.mrb[201].mxu0  ;;  %14389 = vmatmul.mubr.msk.f32.gmra.mrb[50].mxu0 %vm753_vm1, %v672_v55 }
 0x287   : > { %14391 = vmatprep.mubr.msk.f32.mxu0 %vm16302_vm0, %v16303_v4 }
 0x288   : > { %v4121_v1 = vmax.f32 %v3950_v60, %v4031_v63  ;;  %2720 = vst.msk [vmem:[#allocation8 + $0x320] sm:$0xff] %vm2619_vm2, %v1996_v61  ;;  %v680_v60 = vld [vmem:[%s16457_s26 + $0x508] sm:$0xff] }
 0x289   : > { %v2000_v3 = vpop.f32.mrb[202].mxu0 }
 0x28a   : > { %v4178_v5 = vmax.f32 %v4121_v1, 0.0  ;;  %v2001_v6 = vadd.f32 %v17385_v59, %v2000_v3  ;;  %v14234_v7 = vpop.f32.mrb[203].mxu0  ;;  %14392 = vmatmul.mubr.msk.f32.gmra.mrb[52].mxu0 %vm753_vm1, %v673_v0 }
 0x28b   : > { %v2893_v8 = vld [vmem:[#allocation8 + $0x300] ss:$4 sm:$0xff]  ;;  %v3007_v9 = vld [vmem:[#allocation8 + $0x301] ss:$4 sm:$0xff]  ;;  %14394 = vmatprep.mubr.msk.f32.mxu0 %vm16302_vm0, %v16303_v4  ;;  %v3178_v12 = vld [vmem:[#allocation8 + $0x302] ss:$4 sm:$0xff] }
 0x28c   : > { %4294 = vst.msk [vmem:[#allocation2 + $0xbd] sm:$0xff] %vm2619_vm2, %v4178_v5  ;;  %v3096_v11 = vmax.f32 %v2893_v8, %v3007_v9  ;;  %2721 = vst.msk [vmem:[#allocation8 + $0x328] sm:$0xff] %vm2619_vm2, %v2001_v6  ;;  %v3349_v17 = vld [vmem:[#allocation8 + $0x303] ss:$4 sm:$0xff] }
 0x28d   : > { %v2005_v13 = vpop.f32.mrb[204].mxu0  ;;  %v681_v6 = vld [vmem:[%s16457_s26 + $0x510] sm:$0xff] }
 0x28e   : > { %v3267_v14 = vmax.f32 %v3096_v11, %v3178_v12  ;;  %v2006_v15 = vadd.f32 %v17385_v59, %v2005_v13  ;;  %v14237_v16 = vpop.f32.mrb[205].mxu0  ;;  %14395 = vmatmul.mubr.msk.f32.gmra.mrb[54].mxu0 %vm753_vm1, %v674_v10 }
 0x28f   : > { %14397 = vmatprep.mubr.msk.f32.mxu0 %vm16302_vm0, %v16303_v4  ;;  %v3520_v20 = vld [vmem:[#allocation8 + $0x304] ss:$4 sm:$0xff]  ;;  %v3691_v25 = vld [vmem:[#allocation8 + $0x305] ss:$4 sm:$0xff]  ;;  %v3862_v29 = vld [vmem:[#allocation8 + $0x306] ss:$4 sm:$0xff] }
 0x290   : > { %v3438_v19 = vmax.f32 %v3267_v14, %v3349_v17  ;;  %2722 = vst.msk [vmem:[#allocation8 + $0x330] sm:$0xff] %vm2619_vm2, %v2006_v15  ;;  %v4033_v34 = vld [vmem:[#allocation8 + $0x307] ss:$4 sm:$0xff] }
 0x291   : > { %v2010_v21 = vpop.f32.mrb[206].mxu0  ;;  %v682_v14 = vld [vmem:[%s16457_s26 + $0x518] sm:$0xff] }
 0x292   : > { %v3609_v22 = vmax.f32 %v3438_v19, %v3520_v20  ;;  %v2011_v23 = vadd.f32 %v17385_v59, %v2010_v21  ;;  %v14240_v24 = vpop.f32.mrb[207].mxu0  ;;  %14398 = vmatmul.mubr.msk.f32.gmra.mrb[56].mxu0 %vm753_vm1, %v675_v18 }
 0x293   : > { %v4408_v26 = vld [vmem:[#allocation2 + $0xb1] ss:$2 sm:$0xff]  ;;  %14400 = vmatprep.mubr.msk.f32.mxu0 %vm16302_vm0, %v16303_v4 }
 0x294   : > { %v3780_v28 = vmax.f32 %v3609_v22, %v3691_v25  ;;  %2723 = vst.msk [vmem:[#allocation8 + $0x338] sm:$0xff] %vm2619_vm2, %v2011_v23  ;;  %14622 = vmatmul.mubr.msk.f32.gmra.mrb[10].mxu1 %vm2619_vm2, %v4408_v26  ;;  %v683_v22 = vld [vmem:[%s16457_s26 + $0x520] sm:$0xff] }
 0x295   : > { %v2015_v30 = vpop.f32.mrb[208].mxu0 }
 0x296   : > { %v3951_v31 = vmax.f32 %v3780_v28, %v3862_v29  ;;  %v2016_v32 = vadd.f32 %v17385_v59, %v2015_v30  ;;  %v14243_v33 = vpop.f32.mrb[209].mxu0  ;;  %14401 = vmatmul.mubr.msk.f32.gmra.mrb[58].mxu0 %vm753_vm1, %v676_v27 }
 0x297   : > { %14403 = vmatprep.mubr.msk.f32.mxu0 %vm16302_vm0, %v16303_v4 }
 0x298   : > { %v4122_v36 = vmax.f32 %v3951_v31, %v4033_v34  ;;  %2724 = vst.msk [vmem:[#allocation8 + $0x340] sm:$0xff] %vm2619_vm2, %v2016_v32  ;;  %v684_v31 = vld [vmem:[%s16457_s26 + $0x528] sm:$0xff] }
 0x299   : > { %v2020_v37 = vpop.f32.mrb[210].mxu0 }
 0x29a   : > { %v4179_v38 = vmax.f32 %v4122_v36, 0.0  ;;  %v2021_v39 = vadd.f32 %v17385_v59, %v2020_v37  ;;  %v14246_v40 = vpop.f32.mrb[211].mxu0  ;;  %14404 = vmatmul.mubr.msk.f32.gmra.mrb[60].mxu0 %vm753_vm1, %v677_v35 }
 0x29b   : > { %v2895_v41 = vld [vmem:[#allocation8 + $0x320] ss:$4 sm:$0xff]  ;;  %v3009_v42 = vld [vmem:[#allocation8 + $0x321] ss:$4 sm:$0xff]  ;;  %14406 = vmatprep.mubr.msk.f32.mxu0 %vm16302_vm0, %v16303_v4  ;;  %v3180_v45 = vld [vmem:[#allocation8 + $0x322] ss:$4 sm:$0xff] }
 0x29c   : > { %4295 = vst.msk [vmem:[#allocation2 + $0xc5] sm:$0xff] %vm2619_vm2, %v4179_v38  ;;  %v3097_v44 = vmax.f32 %v2895_v41, %v3009_v42  ;;  %2725 = vst.msk [vmem:[#allocation8 + $0x348] sm:$0xff] %vm2619_vm2, %v2021_v39  ;;  %v3351_v50 = vld [vmem:[#allocation8 + $0x323] ss:$4 sm:$0xff] }
 0x29d   : > { %v2025_v46 = vpop.f32.mrb[212].mxu0  ;;  %v685_v39 = vld [vmem:[%s16457_s26 + $0x530] sm:$0xff] }
 0x29e   : > { %v3268_v47 = vmax.f32 %v3097_v44, %v3180_v45  ;;  %v2026_v48 = vadd.f32 %v17385_v59, %v2025_v46  ;;  %v14249_v49 = vpop.f32.mrb[213].mxu0  ;;  %14407 = vmatmul.mubr.msk.f32.gmra.mrb[62].mxu0 %vm753_vm1, %v678_v43 }
 0x29f   : > { %14409 = vmatprep.mubr.msk.f32.mxu0 %vm16302_vm0, %v16303_v4  ;;  %v3522_v53 = vld [vmem:[#allocation8 + $0x324] ss:$4 sm:$0xff]  ;;  %v3693_v58 = vld [vmem:[#allocation8 + $0x325] ss:$4 sm:$0xff]  ;;  %v3864_v62 = vld [vmem:[#allocation8 + $0x326] ss:$4 sm:$0xff] }
 0x2a0   : > { %v3439_v52 = vmax.f32 %v3268_v47, %v3351_v50  ;;  %2726 = vst.msk [vmem:[#allocation8 + $0x350] sm:$0xff] %vm2619_vm2, %v2026_v48  ;;  %v4035_v5 = vld [vmem:[#allocation8 + $0x327] ss:$4 sm:$0xff] }
 0x2a1   : > { %v2030_v54 = vpop.f32.mrb[214].mxu0  ;;  %v686_v47 = vld [vmem:[%s16457_s26 + $0x538] sm:$0xff] }
 0x2a2   : > { %v3610_v55 = vmax.f32 %v3439_v52, %v3522_v53  ;;  %v2031_v56 = vadd.f32 %v17385_v59, %v2030_v54  ;;  %v14252_v57 = vpop.f32.mrb[215].mxu0  ;;  %14410 = vmatmul.mubr.msk.f32.gmra.mrb[64].mxu0 %vm753_vm1, %v679_v51 }
 0x2a3   : > { %14412 = vmatprep.mubr.msk.f32.mxu0 %vm16302_vm0, %v16303_v4 }
 0x2a4   : > { %v3781_v61 = vmax.f32 %v3610_v55, %v3693_v58  ;;  %2727 = vst.msk [vmem:[#allocation8 + $0x358] sm:$0xff] %vm2619_vm2, %v2031_v56  ;;  %v687_v55 = vld [vmem:[%s16457_s26 + $0x540] sm:$0xff] }
 0x2a5   : > { %v2035_v63 = vpop.f32.mrb[216].mxu0 }
 0x2a6   : > { %v3952_v0 = vmax.f32 %v3781_v61, %v3864_v62  ;;  %v2036_v1 = vadd.f32 %v17385_v59, %v2035_v63  ;;  %v14255_v3 = vpop.f32.mrb[217].mxu0  ;;  %14413 = vmatmul.mubr.msk.f32.gmra.mrb[66].mxu0 %vm753_vm1, %v680_v60 }
 0x2a7   : > { %14415 = vmatprep.mubr.msk.f32.mxu0 %vm16302_vm0, %v16303_v4 }
 0x2a8   : > { %v4123_v7 = vmax.f32 %v3952_v0, %v4035_v5  ;;  %2728 = vst.msk [vmem:[#allocation8 + $0x360] sm:$0xff] %vm2619_vm2, %v2036_v1  ;;  %v688_v0 = vld [vmem:[%s16457_s26 + $0x548] sm:$0xff] }
 0x2a9   : > { %v2040_v8 = vpop.f32.mrb[218].mxu0 }
 0x2aa   : > { %v4180_v9 = vmax.f32 %v4123_v7, 0.0  ;;  %v2041_v10 = vadd.f32 %v17385_v59, %v2040_v8  ;;  %v14258_v11 = vpop.f32.mrb[219].mxu0  ;;  %14416 = vmatmul.mubr.msk.f32.gmra.mrb[68].mxu0 %vm753_vm1, %v681_v6 }
 0x2ab   : > { %v2897_v12 = vld [vmem:[#allocation8 + $0x340] ss:$4 sm:$0xff]  ;;  %v3011_v13 = vld [vmem:[#allocation8 + $0x341] ss:$4 sm:$0xff]  ;;  %14418 = vmatprep.mubr.msk.f32.mxu0 %vm16302_vm0, %v16303_v4  ;;  %v3182_v16 = vld [vmem:[#allocation8 + $0x342] ss:$4 sm:$0xff] }
 0x2ac   : > { %4296 = vst.msk [vmem:[#allocation2 + $0xcd] sm:$0xff] %vm2619_vm2, %v4180_v9  ;;  %v3098_v15 = vmax.f32 %v2897_v12, %v3011_v13  ;;  %2729 = vst.msk [vmem:[#allocation8 + $0x368] sm:$0xff] %vm2619_vm2, %v2041_v10  ;;  %v3353_v21 = vld [vmem:[#allocation8 + $0x343] ss:$4 sm:$0xff] }
 0x2ad   : > { %v2045_v17 = vpop.f32.mrb[220].mxu0  ;;  %v689_v10 = vld [vmem:[%s16457_s26 + $0x550] sm:$0xff] }
 0x2ae   : > { %v3269_v18 = vmax.f32 %v3098_v15, %v3182_v16  ;;  %v2046_v19 = vadd.f32 %v17385_v59, %v2045_v17  ;;  %v14261_v20 = vpop.f32.mrb[221].mxu0  ;;  %14419 = vmatmul.mubr.msk.f32.gmra.mrb[70].mxu0 %vm753_vm1, %v682_v14 }
 0x2af   : > { %14421 = vmatprep.mubr.msk.f32.mxu0 %vm16302_vm0, %v16303_v4  ;;  %v3524_v24 = vld [vmem:[#allocation8 + $0x344] ss:$4 sm:$0xff]  ;;  %v3695_v29 = vld [vmem:[#allocation8 + $0x345] ss:$4 sm:$0xff]  ;;  %v3866_v33 = vld [vmem:[#allocation8 + $0x346] ss:$4 sm:$0xff] }
 0x2b0   : > { %v3440_v23 = vmax.f32 %v3269_v18, %v3353_v21  ;;  %2730 = vst.msk [vmem:[#allocation8 + $0x370] sm:$0xff] %vm2619_vm2, %v2046_v19  ;;  %v4037_v38 = vld [vmem:[#allocation8 + $0x347] ss:$4 sm:$0xff] }
 0x2b1   : > { %v2050_v25 = vpop.f32.mrb[222].mxu0  ;;  %v690_v18 = vld [vmem:[%s16457_s26 + $0x558] sm:$0xff] }
 0x2b2   : > { %v3611_v26 = vmax.f32 %v3440_v23, %v3524_v24  ;;  %v2051_v27 = vadd.f32 %v17385_v59, %v2050_v25  ;;  %v14264_v28 = vpop.f32.mrb[223].mxu0  ;;  %14422 = vmatmul.mubr.msk.f32.gmra.mrb[72].mxu0 %vm753_vm1, %v683_v22 }
 0x2b3   : > { %v4410_v30 = vld [vmem:[#allocation2 + $0xc1] ss:$2 sm:$0xff]  ;;  %14424 = vmatprep.mubr.msk.f32.mxu0 %vm16302_vm0, %v16303_v4 }
 0x2b4   : > { %v3782_v32 = vmax.f32 %v3611_v26, %v3695_v29  ;;  %2731 = vst.msk [vmem:[#allocation8 + $0x378] sm:$0xff] %vm2619_vm2, %v2051_v27  ;;  %14624 = vmatprep.mubr.msk.f32.mxu1 %vm2619_vm2, %v4410_v30  ;;  %v691_v26 = vld [vmem:[%s16457_s26 + $0x560] sm:$0xff] }
 0x2b5   : > { %v2055_v34 = vpop.f32.mrb[224].mxu0 }
 0x2b6   : > { %v3953_v35 = vmax.f32 %v3782_v32, %v3866_v33  ;;  %v2056_v36 = vadd.f32 %v17385_v59, %v2055_v34  ;;  %v14267_v37 = vpop.f32.mrb[225].mxu0  ;;  %14425 = vmatmul.mubr.msk.f32.gmra.mrb[74].mxu0 %vm753_vm1, %v684_v31 }
 0x2b7   : > { %14427 = vmatprep.mubr.msk.f32.mxu0 %vm16302_vm0, %v16303_v4 }
 0x2b8   : > { %v4124_v40 = vmax.f32 %v3953_v35, %v4037_v38  ;;  %2732 = vst.msk [vmem:[#allocation8 + $0x380] sm:$0xff] %vm2619_vm2, %v2056_v36  ;;  %v692_v35 = vld [vmem:[%s16457_s26 + $0x568] sm:$0xff] }
 0x2b9   : > { %v2060_v41 = vpop.f32.mrb[226].mxu0 }
 0x2ba   : > { %v4181_v42 = vmax.f32 %v4124_v40, 0.0  ;;  %v2061_v43 = vadd.f32 %v17385_v59, %v2060_v41  ;;  %v14270_v44 = vpop.f32.mrb[227].mxu0  ;;  %14428 = vmatmul.mubr.msk.f32.gmra.mrb[76].mxu0 %vm753_vm1, %v685_v39 }
 0x2bb   : > { %v2899_v45 = vld [vmem:[#allocation8 + $0x360] ss:$4 sm:$0xff]  ;;  %v3013_v46 = vld [vmem:[#allocation8 + $0x361] ss:$4 sm:$0xff]  ;;  %14430 = vmatprep.mubr.msk.f32.mxu0 %vm16302_vm0, %v16303_v4  ;;  %v3184_v49 = vld [vmem:[#allocation8 + $0x362] ss:$4 sm:$0xff] }
 0x2bc   : > { %4297 = vst.msk [vmem:[#allocation2 + $0xd5] sm:$0xff] %vm2619_vm2, %v4181_v42  ;;  %v3099_v48 = vmax.f32 %v2899_v45, %v3013_v46  ;;  %2733 = vst.msk [vmem:[#allocation8 + $0x388] sm:$0xff] %vm2619_vm2, %v2061_v43  ;;  %v3355_v54 = vld [vmem:[#allocation8 + $0x363] ss:$4 sm:$0xff] }
 0x2bd   : > { %v2065_v50 = vpop.f32.mrb[228].mxu0  ;;  %v693_v43 = vld [vmem:[%s16457_s26 + $0x570] sm:$0xff] }
 0x2be   : > { %v3270_v51 = vmax.f32 %v3099_v48, %v3184_v49  ;;  %v2066_v52 = vadd.f32 %v17385_v59, %v2065_v50  ;;  %v14273_v53 = vpop.f32.mrb[229].mxu0  ;;  %14431 = vmatmul.mubr.msk.f32.gmra.mrb[78].mxu0 %vm753_vm1, %v686_v47 }
 0x2bf   : > { %14433 = vmatprep.mubr.msk.f32.mxu0 %vm16302_vm0, %v16303_v4  ;;  %v3526_v57 = vld [vmem:[#allocation8 + $0x364] ss:$4 sm:$0xff]  ;;  %v3697_v63 = vld [vmem:[#allocation8 + $0x365] ss:$4 sm:$0xff]  ;;  %v3868_v3 = vld [vmem:[#allocation8 + $0x366] ss:$4 sm:$0xff] }
 0x2c0   : > { %v3441_v56 = vmax.f32 %v3270_v51, %v3355_v54  ;;  %2734 = vst.msk [vmem:[#allocation8 + $0x390] sm:$0xff] %vm2619_vm2, %v2066_v52  ;;  %v4039_v9 = vld [vmem:[#allocation8 + $0x367] ss:$4 sm:$0xff] }
 0x2c1   : > { %v2070_v58 = vpop.f32.mrb[230].mxu0  ;;  %v694_v51 = vld [vmem:[%s16457_s26 + $0x578] sm:$0xff] }
 0x2c2   : > { %v3612_v60 = vmax.f32 %v3441_v56, %v3526_v57  ;;  %v2071_v61 = vadd.f32 %v17385_v59, %v2070_v58  ;;  %v14276_v62 = vpop.f32.mrb[231].mxu0  ;;  %14434 = vmatmul.mubr.msk.f32.gmra.mrb[80].mxu0 %vm753_vm1, %v687_v55 }
 0x2c3   : > { %14436 = vmatprep.mubr.msk.f32.mxu0 %vm16302_vm0, %v16303_v4 }
 0x2c4   : > { %v3783_v1 = vmax.f32 %v3612_v60, %v3697_v63  ;;  %2735 = vst.msk [vmem:[#allocation8 + $0x398] sm:$0xff] %vm2619_vm2, %v2071_v61  ;;  %v695_v60 = vld [vmem:[%s16457_s26 + $0x580] sm:$0xff] }
 0x2c5   : > { %v2075_v5 = vpop.f32.mrb[232].mxu0 }
 0x2c6   : > { %v3954_v6 = vmax.f32 %v3783_v1, %v3868_v3  ;;  %v2076_v7 = vadd.f32 %v17385_v59, %v2075_v5  ;;  %v14279_v8 = vpop.f32.mrb[233].mxu0  ;;  %14437 = vmatmul.mubr.msk.f32.gmra.mrb[82].mxu0 %vm753_vm1, %v688_v0 }
 0x2c7   : > { %14439 = vmatprep.mubr.msk.f32.mxu0 %vm16302_vm0, %v16303_v4 }
 0x2c8   : > { %v4125_v11 = vmax.f32 %v3954_v6, %v4039_v9  ;;  %2736 = vst.msk [vmem:[#allocation8 + $0x3a0] sm:$0xff] %vm2619_vm2, %v2076_v7  ;;  %v696_v6 = vld [vmem:[%s16457_s26 + $0x588] sm:$0xff] }
 0x2c9   : > { %v2080_v12 = vpop.f32.mrb[234].mxu0 }
 0x2ca   : > { %v4182_v13 = vmax.f32 %v4125_v11, 0.0  ;;  %v2081_v14 = vadd.f32 %v17385_v59, %v2080_v12  ;;  %v14282_v15 = vpop.f32.mrb[235].mxu0  ;;  %14440 = vmatmul.mubr.msk.f32.gmra.mrb[84].mxu0 %vm753_vm1, %v689_v10 }
 0x2cb   : > { %v2901_v16 = vld [vmem:[#allocation8 + $0x380] ss:$4 sm:$0xff]  ;;  %v3015_v17 = vld [vmem:[#allocation8 + $0x381] ss:$4 sm:$0xff]  ;;  %14442 = vmatprep.mubr.msk.f32.mxu0 %vm16302_vm0, %v16303_v4  ;;  %v3186_v20 = vld [vmem:[#allocation8 + $0x382] ss:$4 sm:$0xff] }
 0x2cc   : > { %4298 = vst.msk [vmem:[#allocation2 + $0xdd] sm:$0xff] %vm2619_vm2, %v4182_v13  ;;  %v3100_v19 = vmax.f32 %v2901_v16, %v3015_v17  ;;  %2737 = vst.msk [vmem:[#allocation8 + $0x3a8] sm:$0xff] %vm2619_vm2, %v2081_v14  ;;  %v3357_v25 = vld [vmem:[#allocation8 + $0x383] ss:$4 sm:$0xff] }
 0x2cd   : > { %v2085_v21 = vpop.f32.mrb[236].mxu0  ;;  %v697_v14 = vld [vmem:[%s16457_s26 + $0x590] sm:$0xff] }
 0x2ce   : > { %v3271_v22 = vmax.f32 %v3100_v19, %v3186_v20  ;;  %v2086_v23 = vadd.f32 %v17385_v59, %v2085_v21  ;;  %v14285_v24 = vpop.f32.mrb[237].mxu0  ;;  %14443 = vmatmul.mubr.msk.f32.gmra.mrb[86].mxu0 %vm753_vm1, %v690_v18 }
 0x2cf   : > { %14445 = vmatprep.mubr.msk.f32.mxu0 %vm16302_vm0, %v16303_v4  ;;  %v3528_v28 = vld [vmem:[#allocation8 + $0x384] ss:$4 sm:$0xff]  ;;  %v3699_v33 = vld [vmem:[#allocation8 + $0x385] ss:$4 sm:$0xff]  ;;  %v3870_v37 = vld [vmem:[#allocation8 + $0x386] ss:$4 sm:$0xff] }
 0x2d0   : > { %v3442_v27 = vmax.f32 %v3271_v22, %v3357_v25  ;;  %2738 = vst.msk [vmem:[#allocation8 + $0x3b0] sm:$0xff] %vm2619_vm2, %v2086_v23  ;;  %v4041_v42 = vld [vmem:[#allocation8 + $0x387] ss:$4 sm:$0xff] }
 0x2d1   : > { %v2090_v29 = vpop.f32.mrb[238].mxu0  ;;  %v698_v22 = vld [vmem:[%s16457_s26 + $0x598] sm:$0xff] }
 0x2d2   : > { %v3613_v30 = vmax.f32 %v3442_v27, %v3528_v28  ;;  %v2091_v31 = vadd.f32 %v17385_v59, %v2090_v29  ;;  %v14288_v32 = vpop.f32.mrb[239].mxu0  ;;  %14446 = vmatmul.mubr.msk.f32.gmra.mrb[88].mxu0 %vm753_vm1, %v691_v26 }
 0x2d3   : > { %v4412_v34 = vld [vmem:[#allocation2 + $0xd1] ss:$2 sm:$0xff]  ;;  %14448 = vmatprep.mubr.msk.f32.mxu0 %vm16302_vm0, %v16303_v4 }
 0x2d4   : > { %v3784_v36 = vmax.f32 %v3613_v30, %v3699_v33  ;;  %2739 = vst.msk [vmem:[#allocation8 + $0x3b8] sm:$0xff] %vm2619_vm2, %v2091_v31  ;;  %14625 = vmatmul.mubr.msk.f32.gmra.mrb[12].mxu1 %vm2619_vm2, %v4412_v34  ;;  %v699_v30 = vld [vmem:[%s16457_s26 + $0x5a0] sm:$0xff] }
 0x2d5   : > { %v2095_v38 = vpop.f32.mrb[240].mxu0 }
 0x2d6   : > { %v3955_v39 = vmax.f32 %v3784_v36, %v3870_v37  ;;  %v2096_v40 = vadd.f32 %v17385_v59, %v2095_v38  ;;  %v14291_v41 = vpop.f32.mrb[241].mxu0  ;;  %14449 = vmatmul.mubr.msk.f32.gmra.mrb[90].mxu0 %vm753_vm1, %v692_v35 }
 0x2d7   : > { %14451 = vmatprep.mubr.msk.f32.mxu0 %vm16302_vm0, %v16303_v4 }
 0x2d8   : > { %v4126_v44 = vmax.f32 %v3955_v39, %v4041_v42  ;;  %2740 = vst.msk [vmem:[#allocation8 + $0x3c0] sm:$0xff] %vm2619_vm2, %v2096_v40  ;;  %v700_v39 = vld [vmem:[%s16457_s26 + $0x5a8] sm:$0xff] }
 0x2d9   : > { %v2100_v45 = vpop.f32.mrb[242].mxu0 }
 0x2da   : > { %v4183_v46 = vmax.f32 %v4126_v44, 0.0  ;;  %v2101_v47 = vadd.f32 %v17385_v59, %v2100_v45  ;;  %v14294_v48 = vpop.f32.mrb[243].mxu0  ;;  %14452 = vmatmul.mubr.msk.f32.gmra.mrb[92].mxu0 %vm753_vm1, %v693_v43 }
 0x2db   : > { %v2903_v49 = vld [vmem:[#allocation8 + $0x3a0] ss:$4 sm:$0xff]  ;;  %v3017_v50 = vld [vmem:[#allocation8 + $0x3a1] ss:$4 sm:$0xff]  ;;  %14454 = vmatprep.mubr.msk.f32.mxu0 %vm16302_vm0, %v16303_v4  ;;  %v3188_v53 = vld [vmem:[#allocation8 + $0x3a2] ss:$4 sm:$0xff] }
 0x2dc   : > { %4299 = vst.msk [vmem:[#allocation2 + $0xe5] sm:$0xff] %vm2619_vm2, %v4183_v46  ;;  %v3101_v52 = vmax.f32 %v2903_v49, %v3017_v50  ;;  %2741 = vst.msk [vmem:[#allocation8 + $0x3c8] sm:$0xff] %vm2619_vm2, %v2101_v47  ;;  %v3359_v58 = vld [vmem:[#allocation8 + $0x3a3] ss:$4 sm:$0xff] }
 0x2dd   : > { %v2105_v54 = vpop.f32.mrb[244].mxu0  ;;  %v701_v47 = vld [vmem:[%s16457_s26 + $0x5b0] sm:$0xff] }
 0x2de   : > { %v3272_v55 = vmax.f32 %v3101_v52, %v3188_v53  ;;  %v2106_v56 = vadd.f32 %v17385_v59, %v2105_v54  ;;  %v14297_v57 = vpop.f32.mrb[245].mxu0  ;;  %14455 = vmatmul.mubr.msk.f32.gmra.mrb[94].mxu0 %vm753_vm1, %v694_v51 }
 0x2df   : > { %14457 = vmatprep.mubr.msk.f32.mxu0 %vm16302_vm0, %v16303_v4  ;;  %v3530_v62 = vld [vmem:[#allocation8 + $0x3a4] ss:$4 sm:$0xff]  ;;  %v3701_v5 = vld [vmem:[#allocation8 + $0x3a5] ss:$4 sm:$0xff]  ;;  %v3872_v8 = vld [vmem:[#allocation8 + $0x3a6] ss:$4 sm:$0xff] }
 0x2e0   : > { %v3443_v61 = vmax.f32 %v3272_v55, %v3359_v58  ;;  %2742 = vst.msk [vmem:[#allocation8 + $0x3d0] sm:$0xff] %vm2619_vm2, %v2106_v56  ;;  %v4043_v13 = vld [vmem:[#allocation8 + $0x3a7] ss:$4 sm:$0xff] }
 0x2e1   : > { %v2110_v63 = vpop.f32.mrb[246].mxu0  ;;  %v702_v55 = vld [vmem:[%s16457_s26 + $0x5b8] sm:$0xff] }
 0x2e2   : > { %v3614_v0 = vmax.f32 %v3443_v61, %v3530_v62  ;;  %v2111_v1 = vadd.f32 %v17385_v59, %v2110_v63  ;;  %v14300_v3 = vpop.f32.mrb[247].mxu0  ;;  %14458 = vmatmul.mubr.msk.f32.gmra.mrb[96].mxu0 %vm753_vm1, %v695_v60 }
 0x2e3   : > { %14460 = vmatprep.mubr.msk.f32.mxu0 %vm16302_vm0, %v16303_v4 }
 0x2e4   : > { %v3785_v7 = vmax.f32 %v3614_v0, %v3701_v5  ;;  %2743 = vst.msk [vmem:[#allocation8 + $0x3d8] sm:$0xff] %vm2619_vm2, %v2111_v1  ;;  %v703_v0 = vld [vmem:[%s16457_s26 + $0x5c0] sm:$0xff] }
 0x2e5   : > { %v2115_v9 = vpop.f32.mrb[248].mxu0 }
 0x2e6   : > { %v3956_v10 = vmax.f32 %v3785_v7, %v3872_v8  ;;  %v2116_v11 = vadd.f32 %v17385_v59, %v2115_v9  ;;  %v14303_v12 = vpop.f32.mrb[249].mxu0  ;;  %14461 = vmatmul.mubr.msk.f32.gmra.mrb[98].mxu0 %vm753_vm1, %v696_v6 }
 0x2e7   : > { %14463 = vmatprep.mubr.msk.f32.mxu0 %vm16302_vm0, %v16303_v4 }
 0x2e8   : > { %v4127_v15 = vmax.f32 %v3956_v10, %v4043_v13  ;;  %2744 = vst.msk [vmem:[#allocation8 + $0x3e0] sm:$0xff] %vm2619_vm2, %v2116_v11  ;;  %v704_v10 = vld [vmem:[%s16457_s26 + $0x5c8] sm:$0xff] }
 0x2e9   : > { %v2120_v16 = vpop.f32.mrb[250].mxu0 }
 0x2ea   : > { %v4184_v17 = vmax.f32 %v4127_v15, 0.0  ;;  %v2121_v18 = vadd.f32 %v17385_v59, %v2120_v16  ;;  %v14306_v19 = vpop.f32.mrb[251].mxu0  ;;  %14464 = vmatmul.mubr.msk.f32.gmra.mrb[100].mxu0 %vm753_vm1, %v697_v14 }
 0x2eb   : > { %v2905_v20 = vld [vmem:[#allocation8 + $0x3c0] ss:$4 sm:$0xff]  ;;  %v3019_v21 = vld [vmem:[#allocation8 + $0x3c1] ss:$4 sm:$0xff]  ;;  %14466 = vmatprep.mubr.msk.f32.mxu0 %vm16302_vm0, %v16303_v4  ;;  %v3190_v24 = vld [vmem:[#allocation8 + $0x3c2] ss:$4 sm:$0xff] }
 0x2ec   : > { %4300 = vst.msk [vmem:[#allocation2 + $0xed] sm:$0xff] %vm2619_vm2, %v4184_v17  ;;  %v3102_v23 = vmax.f32 %v2905_v20, %v3019_v21  ;;  %2745 = vst.msk [vmem:[#allocation8 + $0x3e8] sm:$0xff] %vm2619_vm2, %v2121_v18  ;;  %v3361_v29 = vld [vmem:[#allocation8 + $0x3c3] ss:$4 sm:$0xff] }
 0x2ed   : > { %v2125_v25 = vpop.f32.mrb[252].mxu0  ;;  %v705_v18 = vld [vmem:[%s16457_s26 + $0x5d0] sm:$0xff] }
 0x2ee   : > { %v3273_v26 = vmax.f32 %v3102_v23, %v3190_v24  ;;  %v2126_v27 = vadd.f32 %v17385_v59, %v2125_v25  ;;  %v14309_v28 = vpop.f32.mrb[253].mxu0  ;;  %14467 = vmatmul.mubr.msk.f32.gmra.mrb[102].mxu0 %vm753_vm1, %v698_v22 }
 0x2ef   : > { %14469 = vmatprep.mubr.msk.f32.mxu0 %vm16302_vm0, %v16303_v4  ;;  %v3532_v32 = vld [vmem:[#allocation8 + $0x3c4] ss:$4 sm:$0xff]  ;;  %v3703_v37 = vld [vmem:[#allocation8 + $0x3c5] ss:$4 sm:$0xff]  ;;  %v3874_v41 = vld [vmem:[#allocation8 + $0x3c6] ss:$4 sm:$0xff] }
 0x2f0   : > { %v3444_v31 = vmax.f32 %v3273_v26, %v3361_v29  ;;  %2746 = vst.msk [vmem:[#allocation8 + $0x3f0] sm:$0xff] %vm2619_vm2, %v2126_v27  ;;  %v4045_v46 = vld [vmem:[#allocation8 + $0x3c7] ss:$4 sm:$0xff] }
 0x2f1   : > { %v2130_v33 = vpop.f32.mrb[254].mxu0  ;;  %v706_v26 = vld [vmem:[%s16457_s26 + $0x5d8] sm:$0xff] }
 0x2f2   : > { %v3615_v34 = vmax.f32 %v3444_v31, %v3532_v32  ;;  %v2131_v35 = vadd.f32 %v17385_v59, %v2130_v33  ;;  %v14312_v36 = vpop.f32.mrb[255].mxu0  ;;  %14470 = vmatmul.mubr.msk.f32.gmra.mrb[104].mxu0 %vm753_vm1, %v699_v30 }
 0x2f3   : > { %v4414_v38 = vld [vmem:[#allocation2 + $0xe1] ss:$2 sm:$0xff]  ;;  %14472 = vmatprep.mubr.msk.f32.mxu0 %vm16302_vm0, %v16303_v4 }
 0x2f4   : > { %v3786_v40 = vmax.f32 %v3615_v34, %v3703_v37  ;;  %2747 = vst.msk [vmem:[#allocation8 + $0x3f8] sm:$0xff] %vm2619_vm2, %v2131_v35  ;;  %14627 = vmatprep.mubr.msk.f32.mxu1 %vm2619_vm2, %v4414_v38  ;;  %v707_v34 = vld [vmem:[%s16457_s26 + $0x5e0] sm:$0xff] }
 0x2f5   : > { %v2135_v42 = vpop.f32.mrb[0].mxu0 }
 0x2f6   : > { %v3957_v43 = vmax.f32 %v3786_v40, %v3874_v41  ;;  %v2136_v44 = vadd.f32 %v17385_v59, %v2135_v42  ;;  %v14315_v45 = vpop.f32.mrb[1].mxu0  ;;  %14473 = vmatmul.mubr.msk.f32.gmra.mrb[106].mxu0 %vm753_vm1, %v700_v39 }
 0x2f7   : > { %14475 = vmatprep.mubr.msk.f32.mxu0 %vm16302_vm0, %v16303_v4 }
 0x2f8   : > { %v4128_v48 = vmax.f32 %v3957_v43, %v4045_v46  ;;  %2748 = vst.msk [vmem:[#allocation8 + $0x400] sm:$0xff] %vm2619_vm2, %v2136_v44  ;;  %v708_v43 = vld [vmem:[%s16457_s26 + $0x5e8] sm:$0xff] }
 0x2f9   : > { %v2140_v49 = vpop.f32.mrb[2].mxu0 }
 0x2fa   : > { %v4185_v50 = vmax.f32 %v4128_v48, 0.0  ;;  %v2141_v51 = vadd.f32 %v17385_v59, %v2140_v49  ;;  %v14318_v52 = vpop.f32.mrb[3].mxu0  ;;  %14476 = vmatmul.mubr.msk.f32.gmra.mrb[108].mxu0 %vm753_vm1, %v701_v47 }
 0x2fb   : > { %v2907_v53 = vld [vmem:[#allocation8 + $0x3e0] ss:$4 sm:$0xff]  ;;  %v3021_v54 = vld [vmem:[#allocation8 + $0x3e1] ss:$4 sm:$0xff]  ;;  %14478 = vmatprep.mubr.msk.f32.mxu0 %vm16302_vm0, %v16303_v4  ;;  %v3192_v57 = vld [vmem:[#allocation8 + $0x3e2] ss:$4 sm:$0xff] }
 0x2fc   : > { %4301 = vst.msk [vmem:[#allocation2 + $0xf5] sm:$0xff] %vm2619_vm2, %v4185_v50  ;;  %v3103_v56 = vmax.f32 %v2907_v53, %v3021_v54  ;;  %2749 = vst.msk [vmem:[#allocation8 + $0x408] sm:$0xff] %vm2619_vm2, %v2141_v51  ;;  %v3363_v63 = vld [vmem:[#allocation8 + $0x3e3] ss:$4 sm:$0xff] }
 0x2fd   : > { %v2145_v58 = vpop.f32.mrb[4].mxu0  ;;  %v709_v51 = vld [vmem:[%s16457_s26 + $0x5f0] sm:$0xff] }
 0x2fe   : > { %v3274_v60 = vmax.f32 %v3103_v56, %v3192_v57  ;;  %v2146_v61 = vadd.f32 %v17385_v59, %v2145_v58  ;;  %v14321_v62 = vpop.f32.mrb[5].mxu0  ;;  %14479 = vmatmul.mubr.msk.f32.gmra.mrb[110].mxu0 %vm753_vm1, %v702_v55  ;;  %v17677_v55 = vld [vmem:[%s19530_s2] ss:$0 sm:$0xff] }
 0x2ff   : > { %14481 = vmatprep.mubr.msk.f32.mxu0 %vm16302_vm0, %v16303_v4  ;;  %v3534_v3 = vld [vmem:[#allocation8 + $0x3e4] ss:$4 sm:$0xff]  ;;  %v3705_v9 = vld [vmem:[#allocation8 + $0x3e5] ss:$4 sm:$0xff]  ;;  %v3876_v12 = vld [vmem:[#allocation8 + $0x3e6] ss:$4 sm:$0xff] }
 0x300   : > { %v3445_v1 = vmax.f32 %v3274_v60, %v3363_v63  ;;  %2750 = vst.msk [vmem:[#allocation8 + $0x410] sm:$0xff] %vm2619_vm2, %v2146_v61  ;;  %v4047_v17 = vld [vmem:[#allocation8 + $0x3e7] ss:$4 sm:$0xff] }
 0x301   : > { %v2150_v5 = vpop.f32.mrb[6].mxu0  ;;  %v710_v60 = vld [vmem:[%s16457_s26 + $0x5f8] sm:$0xff] }
 0x302   : > { %v3616_v6 = vmax.f32 %v3445_v1, %v3534_v3  ;;  %v2151_v7 = vadd.f32 %v17385_v59, %v2150_v5  ;;  %v14324_v8 = vpop.f32.mrb[7].mxu0  ;;  %14482 = vmatmul.mubr.msk.f32.gmra.mrb[112].mxu0 %vm753_vm1, %v703_v0 }
 0x303   : > { %14484 = vmatprep.mubr.msk.f32.mxu0 %vm16302_vm0, %v16303_v4 }
 0x304   : > { %v3787_v11 = vmax.f32 %v3616_v6, %v3705_v9  ;;  %2751 = vst.msk [vmem:[#allocation8 + $0x418] sm:$0xff] %vm2619_vm2, %v2151_v7  ;;  %v711_v6 = vld [vmem:[%s16457_s26 + $0x600] sm:$0xff] }
 0x305   : > { %v2155_v13 = vpop.f32.mrb[8].mxu0 }
 0x306   : > { %v3958_v14 = vmax.f32 %v3787_v11, %v3876_v12  ;;  %v2156_v15 = vadd.f32 %v17385_v59, %v2155_v13  ;;  %v14327_v16 = vpop.f32.mrb[9].mxu0  ;;  %14485 = vmatmul.mubr.msk.f32.gmra.mrb[114].mxu0 %vm753_vm1, %v704_v10 }
 0x307   : > { %14487 = vmatprep.mubr.msk.f32.mxu0 %vm16302_vm0, %v16303_v4 }
 0x308   : > { %v4129_v19 = vmax.f32 %v3958_v14, %v4047_v17  ;;  %2752 = vst.msk [vmem:[#allocation8 + $0x420] sm:$0xff] %vm2619_vm2, %v2156_v15  ;;  %v712_v14 = vld [vmem:[%s16457_s26 + $0x608] sm:$0xff] }
 0x309   : > { %v2160_v20 = vpop.f32.mrb[10].mxu0 }
 0x30a   : > { %v4186_v21 = vmax.f32 %v4129_v19, 0.0  ;;  %v2161_v22 = vadd.f32 %v17385_v59, %v2160_v20  ;;  %v14330_v23 = vpop.f32.mrb[11].mxu0  ;;  %14488 = vmatmul.mubr.msk.f32.gmra.mrb[116].mxu0 %vm753_vm1, %v705_v18 }
 0x30b   : > { %v2909_v24 = vld [vmem:[#allocation8 + $0x400] ss:$4 sm:$0xff]  ;;  %v3023_v25 = vld [vmem:[#allocation8 + $0x401] ss:$4 sm:$0xff]  ;;  %14490 = vmatprep.mubr.msk.f32.mxu0 %vm16302_vm0, %v16303_v4  ;;  %v3194_v28 = vld [vmem:[#allocation8 + $0x402] ss:$4 sm:$0xff] }
 0x30c   : > { %4302 = vst.msk [vmem:[#allocation2 + $0xfd] sm:$0xff] %vm2619_vm2, %v4186_v21  ;;  %v3104_v27 = vmax.f32 %v2909_v24, %v3023_v25  ;;  %2753 = vst.msk [vmem:[#allocation8 + $0x428] sm:$0xff] %vm2619_vm2, %v2161_v22  ;;  %v3365_v33 = vld [vmem:[#allocation8 + $0x403] ss:$4 sm:$0xff] }
 0x30d   : > { %v2165_v29 = vpop.f32.mrb[12].mxu0  ;;  %v713_v22 = vld [vmem:[%s16457_s26 + $0x610] sm:$0xff] }
 0x30e   : > { %v3275_v30 = vmax.f32 %v3104_v27, %v3194_v28  ;;  %v2166_v31 = vadd.f32 %v17385_v59, %v2165_v29  ;;  %v14333_v32 = vpop.f32.mrb[13].mxu0  ;;  %14491 = vmatmul.mubr.msk.f32.gmra.mrb[118].mxu0 %vm753_vm1, %v706_v26 }
 0x30f   : > { %14493 = vmatprep.mubr.msk.f32.mxu0 %vm16302_vm0, %v16303_v4  ;;  %v3536_v36 = vld [vmem:[#allocation8 + $0x404] ss:$4 sm:$0xff]  ;;  %v3707_v41 = vld [vmem:[#allocation8 + $0x405] ss:$4 sm:$0xff]  ;;  %v3878_v45 = vld [vmem:[#allocation8 + $0x406] ss:$4 sm:$0xff] }
 0x310   : > { %v3446_v35 = vmax.f32 %v3275_v30, %v3365_v33  ;;  %2754 = vst.msk [vmem:[#allocation8 + $0x430] sm:$0xff] %vm2619_vm2, %v2166_v31  ;;  %v4049_v50 = vld [vmem:[#allocation8 + $0x407] ss:$4 sm:$0xff] }
 0x311   : > { %v2170_v37 = vpop.f32.mrb[14].mxu0  ;;  %v714_v30 = vld [vmem:[%s16457_s26 + $0x618] sm:$0xff] }
 0x312   : > { %v3617_v38 = vmax.f32 %v3446_v35, %v3536_v36  ;;  %v2171_v39 = vadd.f32 %v17385_v59, %v2170_v37  ;;  %v14336_v40 = vpop.f32.mrb[15].mxu0  ;;  %14494 = vmatmul.mubr.msk.f32.gmra.mrb[120].mxu0 %vm753_vm1, %v707_v34 }
 0x313   : > { %v4416_v42 = vld [vmem:[#allocation2 + $0xf1] ss:$2 sm:$0xff]  ;;  %14496 = vmatprep.mubr.msk.f32.mxu0 %vm16302_vm0, %v16303_v4 }
 0x314   : > { %v3788_v44 = vmax.f32 %v3617_v38, %v3707_v41  ;;  %2755 = vst.msk [vmem:[#allocation8 + $0x438] sm:$0xff] %vm2619_vm2, %v2171_v39  ;;  %14628 = vmatmul.mubr.msk.f32.gmra.mrb[14].mxu1 %vm2619_vm2, %v4416_v42  ;;  %v715_v38 = vld [vmem:[%s16457_s26 + $0x620] sm:$0xff] }
 0x315   : > { %v2175_v46 = vpop.f32.mrb[16].mxu0 }
 0x316   : > { %v3959_v47 = vmax.f32 %v3788_v44, %v3878_v45  ;;  %v2176_v48 = vadd.f32 %v17385_v59, %v2175_v46  ;;  %v14339_v49 = vpop.f32.mrb[17].mxu0  ;;  %14497 = vmatmul.mubr.msk.f32.gmra.mrb[122].mxu0 %vm753_vm1, %v708_v43 }
 0x317   : > { %14499 = vmatprep.mubr.msk.f32.mxu0 %vm16302_vm0, %v16303_v4 }
 0x318   : > { %v4130_v52 = vmax.f32 %v3959_v47, %v4049_v50  ;;  %2756 = vst.msk [vmem:[#allocation8 + $0x440] sm:$0xff] %vm2619_vm2, %v2176_v48  ;;  %v716_v47 = vld [vmem:[%s16457_s26 + $0x628] sm:$0xff] }
 0x319   : > { %v2180_v53 = vpop.f32.mrb[18].mxu0 }
 0x31a   : > { %v4187_v54 = vmax.f32 %v4130_v52, 0.0  ;;  %v2181_v59 = vadd.f32 %v17677_v55, %v2180_v53  ;;  %v14342_v56 = vpop.f32.mrb[19].mxu0  ;;  %14500 = vmatmul.mubr.msk.f32.gmra.mrb[124].mxu0 %vm753_vm1, %v709_v51 }
 0x31b   : > { %v2911_v57 = vld [vmem:[#allocation8 + $0x420] ss:$4 sm:$0xff]  ;;  %v3025_v58 = vld [vmem:[#allocation8 + $0x421] ss:$4 sm:$0xff]  ;;  %14502 = vmatprep.mubr.msk.f32.mxu0 %vm16302_vm0, %v16303_v4  ;;  %v3196_v62 = vld [vmem:[#allocation8 + $0x422] ss:$4 sm:$0xff] }
 0x31c   : > { %4303 = vst.msk [vmem:[#allocation2 + $0x105] sm:$0xff] %vm2619_vm2, %v4187_v54  ;;  %v3105_v61 = vmax.f32 %v2911_v57, %v3025_v58  ;;  %2757 = vst.msk [vmem:[#allocation8 + $0x448] sm:$0xff] %vm2619_vm2, %v2181_v59  ;;  %v3367_v5 = vld [vmem:[#allocation8 + $0x423] ss:$4 sm:$0xff] }
 0x31d   : > { %v2185_v63 = vpop.f32.mrb[20].mxu0  ;;  %v717_v59 = vld [vmem:[%s16457_s26 + $0x630] sm:$0xff] }
 0x31e   : > { %v3276_v0 = vmax.f32 %v3105_v61, %v3196_v62  ;;  %v2186_v1 = vadd.f32 %v17677_v55, %v2185_v63  ;;  %v14345_v3 = vpop.f32.mrb[21].mxu0  ;;  %14503 = vmatmul.mubr.msk.f32.gmra.mrb[126].mxu0 %vm753_vm1, %v710_v60 }
 0x31f   : > { %14505 = vmatprep.mubr.msk.f32.mxu0 %vm16302_vm0, %v16303_v4  ;;  %v3538_v8 = vld [vmem:[#allocation8 + $0x424] ss:$4 sm:$0xff]  ;;  %v3709_v13 = vld [vmem:[#allocation8 + $0x425] ss:$4 sm:$0xff]  ;;  %v3880_v16 = vld [vmem:[#allocation8 + $0x426] ss:$4 sm:$0xff] }
 0x320   : > { %v3447_v7 = vmax.f32 %v3276_v0, %v3367_v5  ;;  %2758 = vst.msk [vmem:[#allocation8 + $0x450] sm:$0xff] %vm2619_vm2, %v2186_v1  ;;  %v4051_v21 = vld [vmem:[#allocation8 + $0x427] ss:$4 sm:$0xff] }
 0x321   : > { %v2190_v9 = vpop.f32.mrb[22].mxu0  ;;  %v718_v0 = vld [vmem:[%s16457_s26 + $0x638] sm:$0xff] }
 0x322   : > { %v3618_v10 = vmax.f32 %v3447_v7, %v3538_v8  ;;  %v2191_v11 = vadd.f32 %v17677_v55, %v2190_v9  ;;  %v14348_v12 = vpop.f32.mrb[23].mxu0  ;;  %14506 = vmatmul.mubr.msk.f32.gmra.mrb[128].mxu0 %vm753_vm1, %v711_v6 }
 0x323   : > { %14508 = vmatprep.mubr.msk.f32.mxu0 %vm16302_vm0, %v16303_v4 }
 0x324   : > { %v3789_v15 = vmax.f32 %v3618_v10, %v3709_v13  ;;  %2759 = vst.msk [vmem:[#allocation8 + $0x458] sm:$0xff] %vm2619_vm2, %v2191_v11  ;;  %v719_v10 = vld [vmem:[%s16457_s26 + $0x640] sm:$0xff] }
 0x325   : > { %v2195_v17 = vpop.f32.mrb[24].mxu0 }
 0x326   : > { %v3960_v18 = vmax.f32 %v3789_v15, %v3880_v16  ;;  %v2196_v19 = vadd.f32 %v17677_v55, %v2195_v17  ;;  %v14351_v20 = vpop.f32.mrb[25].mxu0  ;;  %14509 = vmatmul.mubr.msk.f32.gmra.mrb[130].mxu0 %vm753_vm1, %v712_v14 }
 0x327   : > { %14511 = vmatprep.mubr.msk.f32.mxu0 %vm16302_vm0, %v16303_v4 }
 0x328   : > { %v4131_v23 = vmax.f32 %v3960_v18, %v4051_v21  ;;  %2760 = vst.msk [vmem:[#allocation8 + $0x460] sm:$0xff] %vm2619_vm2, %v2196_v19  ;;  %v720_v18 = vld [vmem:[%s16457_s26 + $0x648] sm:$0xff] }
 0x329   : > { %v2200_v24 = vpop.f32.mrb[26].mxu0 }
 0x32a   : > { %v4188_v25 = vmax.f32 %v4131_v23, 0.0  ;;  %v2201_v26 = vadd.f32 %v17677_v55, %v2200_v24  ;;  %v14354_v27 = vpop.f32.mrb[27].mxu0  ;;  %14512 = vmatmul.mubr.msk.f32.gmra.mrb[132].mxu0 %vm753_vm1, %v713_v22 }
 0x32b   : > { %v2913_v28 = vld [vmem:[#allocation8 + $0x440] ss:$4 sm:$0xff]  ;;  %v3027_v29 = vld [vmem:[#allocation8 + $0x441] ss:$4 sm:$0xff]  ;;  %14514 = vmatprep.mubr.msk.f32.mxu0 %vm16302_vm0, %v16303_v4  ;;  %v3198_v32 = vld [vmem:[#allocation8 + $0x442] ss:$4 sm:$0xff] }
 0x32c   : > { %4304 = vst.msk [vmem:[#allocation2 + $0x10d] sm:$0xff] %vm2619_vm2, %v4188_v25  ;;  %v3106_v31 = vmax.f32 %v2913_v28, %v3027_v29  ;;  %2761 = vst.msk [vmem:[#allocation8 + $0x468] sm:$0xff] %vm2619_vm2, %v2201_v26  ;;  %v3369_v37 = vld [vmem:[#allocation8 + $0x443] ss:$4 sm:$0xff] }
 0x32d   : > { %v2205_v33 = vpop.f32.mrb[28].mxu0  ;;  %v721_v26 = vld [vmem:[%s16457_s26 + $0x650] sm:$0xff] }
 0x32e   : > { %v3277_v34 = vmax.f32 %v3106_v31, %v3198_v32  ;;  %v2206_v35 = vadd.f32 %v17677_v55, %v2205_v33  ;;  %v14357_v36 = vpop.f32.mrb[29].mxu0  ;;  %14515 = vmatmul.mubr.msk.f32.gmra.mrb[134].mxu0 %vm753_vm1, %v714_v30 }
 0x32f   : > { %14517 = vmatprep.mubr.msk.f32.mxu0 %vm16302_vm0, %v16303_v4  ;;  %v3540_v40 = vld [vmem:[#allocation8 + $0x444] ss:$4 sm:$0xff]  ;;  %v3711_v45 = vld [vmem:[#allocation8 + $0x445] ss:$4 sm:$0xff]  ;;  %v3882_v49 = vld [vmem:[#allocation8 + $0x446] ss:$4 sm:$0xff] }
 0x330   : > { %v3448_v39 = vmax.f32 %v3277_v34, %v3369_v37  ;;  %2762 = vst.msk [vmem:[#allocation8 + $0x470] sm:$0xff] %vm2619_vm2, %v2206_v35  ;;  %v4053_v54 = vld [vmem:[#allocation8 + $0x447] ss:$4 sm:$0xff] }
 0x331   : > { %v2210_v41 = vpop.f32.mrb[30].mxu0  ;;  %v722_v34 = vld [vmem:[%s16457_s26 + $0x658] sm:$0xff] }
 0x332   : > { %v3619_v42 = vmax.f32 %v3448_v39, %v3540_v40  ;;  %v2211_v43 = vadd.f32 %v17677_v55, %v2210_v41  ;;  %v14360_v44 = vpop.f32.mrb[31].mxu0  ;;  %14518 = vmatmul.mubr.msk.f32.gmra.mrb[136].mxu0 %vm753_vm1, %v715_v38 }
 0x333   : > { %v4418_v46 = vld [vmem:[#allocation2 + $0x101] ss:$2 sm:$0xff]  ;;  %14520 = vmatprep.mubr.msk.f32.mxu0 %vm16302_vm0, %v16303_v4 }
 0x334   : > { %v3790_v48 = vmax.f32 %v3619_v42, %v3711_v45  ;;  %2763 = vst.msk [vmem:[#allocation8 + $0x478] sm:$0xff] %vm2619_vm2, %v2211_v43  ;;  %14630 = vmatprep.mubr.msk.f32.mxu1 %vm2619_vm2, %v4418_v46  ;;  %v723_v42 = vld [vmem:[%s16457_s26 + $0x660] sm:$0xff] }
 0x335   : > { %v2215_v50 = vpop.f32.mrb[32].mxu0 }
 0x336   : > { %v3961_v51 = vmax.f32 %v3790_v48, %v3882_v49  ;;  %v2216_v52 = vadd.f32 %v17677_v55, %v2215_v50  ;;  %v14363_v53 = vpop.f32.mrb[33].mxu0  ;;  %14521 = vmatmul.mubr.msk.f32.gmra.mrb[138].mxu0 %vm753_vm1, %v716_v47 }
 0x337   : > { %14523 = vmatprep.mubr.msk.f32.mxu0 %vm16302_vm0, %v16303_v4 }
 0x338   : > { %v4132_v56 = vmax.f32 %v3961_v51, %v4053_v54  ;;  %2764 = vst.msk [vmem:[#allocation8 + $0x480] sm:$0xff] %vm2619_vm2, %v2216_v52  ;;  %v724_v51 = vld [vmem:[%s16457_s26 + $0x668] sm:$0xff] }
 0x339   : > { %v2220_v57 = vpop.f32.mrb[34].mxu0 }
 0x33a   : > { %v4189_v58 = vmax.f32 %v4132_v56, 0.0  ;;  %v2221_v60 = vadd.f32 %v17677_v55, %v2220_v57  ;;  %v14366_v61 = vpop.f32.mrb[35].mxu0  ;;  %14524 = vmatmul.mubr.msk.f32.gmra.mrb[140].mxu0 %vm753_vm1, %v717_v59 }
 0x33b   : > { %v2915_v62 = vld [vmem:[#allocation8 + $0x460] ss:$4 sm:$0xff]  ;;  %v3029_v63 = vld [vmem:[#allocation8 + $0x461] ss:$4 sm:$0xff]  ;;  %14526 = vmatprep.mubr.msk.f32.mxu0 %vm16302_vm0, %v16303_v4  ;;  %v3200_v3 = vld [vmem:[#allocation8 + $0x462] ss:$4 sm:$0xff] }
 0x33c   : > { %4305 = vst.msk [vmem:[#allocation2 + $0x115] sm:$0xff] %vm2619_vm2, %v4189_v58  ;;  %v3107_v1 = vmax.f32 %v2915_v62, %v3029_v63  ;;  %2765 = vst.msk [vmem:[#allocation8 + $0x488] sm:$0xff] %vm2619_vm2, %v2221_v60  ;;  %v3371_v9 = vld [vmem:[#allocation8 + $0x463] ss:$4 sm:$0xff] }
 0x33d   : > { %v2225_v5 = vpop.f32.mrb[36].mxu0  ;;  %v725_v60 = vld [vmem:[%s16457_s26 + $0x670] sm:$0xff] }
 0x33e   : > { %v3278_v6 = vmax.f32 %v3107_v1, %v3200_v3  ;;  %v2226_v7 = vadd.f32 %v17677_v55, %v2225_v5  ;;  %v14369_v8 = vpop.f32.mrb[37].mxu0  ;;  %14527 = vmatmul.mubr.msk.f32.gmra.mrb[142].mxu0 %vm753_vm1, %v718_v0 }
 0x33f   : > { %14529 = vmatprep.mubr.msk.f32.mxu0 %vm16302_vm0, %v16303_v4  ;;  %v3542_v12 = vld [vmem:[#allocation8 + $0x464] ss:$4 sm:$0xff]  ;;  %v3713_v17 = vld [vmem:[#allocation8 + $0x465] ss:$4 sm:$0xff]  ;;  %v3884_v20 = vld [vmem:[#allocation8 + $0x466] ss:$4 sm:$0xff] }
 0x340   : > { %v3449_v11 = vmax.f32 %v3278_v6, %v3371_v9  ;;  %2766 = vst.msk [vmem:[#allocation8 + $0x490] sm:$0xff] %vm2619_vm2, %v2226_v7  ;;  %v4055_v25 = vld [vmem:[#allocation8 + $0x467] ss:$4 sm:$0xff] }
 0x341   : > { %v2230_v13 = vpop.f32.mrb[38].mxu0  ;;  %v726_v6 = vld [vmem:[%s16457_s26 + $0x678] sm:$0xff] }
 0x342   : > { %v3620_v14 = vmax.f32 %v3449_v11, %v3542_v12  ;;  %v2231_v15 = vadd.f32 %v17677_v55, %v2230_v13  ;;  %v14372_v16 = vpop.f32.mrb[39].mxu0  ;;  %14530 = vmatmul.mubr.msk.f32.gmra.mrb[144].mxu0 %vm753_vm1, %v719_v10 }
 0x343   : > { %14532 = vmatprep.mubr.msk.f32.mxu0 %vm16302_vm0, %v16303_v4 }
 0x344   : > { %v3791_v19 = vmax.f32 %v3620_v14, %v3713_v17  ;;  %2767 = vst.msk [vmem:[#allocation8 + $0x498] sm:$0xff] %vm2619_vm2, %v2231_v15  ;;  %v727_v14 = vld [vmem:[%s16457_s26 + $0x680] sm:$0xff] }
 0x345   : > { %v2235_v21 = vpop.f32.mrb[40].mxu0 }
 0x346   : > { %v3962_v22 = vmax.f32 %v3791_v19, %v3884_v20  ;;  %v2236_v23 = vadd.f32 %v17677_v55, %v2235_v21  ;;  %v14375_v24 = vpop.f32.mrb[41].mxu0  ;;  %14533 = vmatmul.mubr.msk.f32.gmra.mrb[146].mxu0 %vm753_vm1, %v720_v18 }
 0x347   : > { %14535 = vmatprep.mubr.msk.f32.mxu0 %vm16302_vm0, %v16303_v4 }
 0x348   : > { %v4133_v27 = vmax.f32 %v3962_v22, %v4055_v25  ;;  %2768 = vst.msk [vmem:[#allocation8 + $0x4a0] sm:$0xff] %vm2619_vm2, %v2236_v23  ;;  %v728_v22 = vld [vmem:[%s16457_s26 + $0x688] sm:$0xff] }
 0x349   : > { %v2240_v28 = vpop.f32.mrb[42].mxu0 }
 0x34a   : > { %v4190_v29 = vmax.f32 %v4133_v27, 0.0  ;;  %v2241_v30 = vadd.f32 %v17677_v55, %v2240_v28  ;;  %v14378_v31 = vpop.f32.mrb[43].mxu0  ;;  %14536 = vmatmul.mubr.msk.f32.gmra.mrb[148].mxu0 %vm753_vm1, %v721_v26 }
 0x34b   : > { %v2917_v32 = vld [vmem:[#allocation8 + $0x480] ss:$4 sm:$0xff]  ;;  %v3031_v33 = vld [vmem:[#allocation8 + $0x481] ss:$4 sm:$0xff]  ;;  %14538 = vmatprep.mubr.msk.f32.mxu0 %vm16302_vm0, %v16303_v4  ;;  %v3202_v36 = vld [vmem:[#allocation8 + $0x482] ss:$4 sm:$0xff] }
 0x34c   : > { %4306 = vst.msk [vmem:[#allocation2 + $0x11d] sm:$0xff] %vm2619_vm2, %v4190_v29  ;;  %v3108_v35 = vmax.f32 %v2917_v32, %v3031_v33  ;;  %2769 = vst.msk [vmem:[#allocation8 + $0x4a8] sm:$0xff] %vm2619_vm2, %v2241_v30  ;;  %v3373_v41 = vld [vmem:[#allocation8 + $0x483] ss:$4 sm:$0xff] }
 0x34d   : > { %v2245_v37 = vpop.f32.mrb[44].mxu0  ;;  %v729_v30 = vld [vmem:[%s16457_s26 + $0x690] sm:$0xff] }
 0x34e   : > { %v3279_v38 = vmax.f32 %v3108_v35, %v3202_v36  ;;  %v2246_v39 = vadd.f32 %v17677_v55, %v2245_v37  ;;  %v14381_v40 = vpop.f32.mrb[45].mxu0  ;;  %14539 = vmatmul.mubr.msk.f32.gmra.mrb[150].mxu0 %vm753_vm1, %v722_v34 }
 0x34f   : > { %14541 = vmatprep.mubr.msk.f32.mxu0 %vm16302_vm0, %v16303_v4  ;;  %v3544_v44 = vld [vmem:[#allocation8 + $0x484] ss:$4 sm:$0xff]  ;;  %v3715_v49 = vld [vmem:[#allocation8 + $0x485] ss:$4 sm:$0xff]  ;;  %v3886_v53 = vld [vmem:[#allocation8 + $0x486] ss:$4 sm:$0xff] }
 0x350   : > { %v3450_v43 = vmax.f32 %v3279_v38, %v3373_v41  ;;  %2770 = vst.msk [vmem:[#allocation8 + $0x4b0] sm:$0xff] %vm2619_vm2, %v2246_v39  ;;  %v4057_v58 = vld [vmem:[#allocation8 + $0x487] ss:$4 sm:$0xff] }
 0x351   : > { %v2250_v45 = vpop.f32.mrb[46].mxu0  ;;  %v730_v38 = vld [vmem:[%s16457_s26 + $0x698] sm:$0xff] }
 0x352   : > { %v3621_v46 = vmax.f32 %v3450_v43, %v3544_v44  ;;  %v2251_v47 = vadd.f32 %v17677_v55, %v2250_v45  ;;  %v14384_v48 = vpop.f32.mrb[47].mxu0  ;;  %14542 = vmatmul.mubr.msk.f32.gmra.mrb[152].mxu0 %vm753_vm1, %v723_v42 }
 0x353   : > { %v4420_v50 = vld [vmem:[#allocation2 + $0x111] ss:$2 sm:$0xff]  ;;  %14544 = vmatprep.mubr.msk.f32.mxu0 %vm16302_vm0, %v16303_v4 }
 0x354   : > { %v3792_v52 = vmax.f32 %v3621_v46, %v3715_v49  ;;  %2771 = vst.msk [vmem:[#allocation8 + $0x4b8] sm:$0xff] %vm2619_vm2, %v2251_v47  ;;  %14631 = vmatmul.mubr.msk.f32.gmra.mrb[16].mxu1 %vm2619_vm2, %v4420_v50  ;;  %v731_v46 = vld [vmem:[%s16457_s26 + $0x6a0] sm:$0xff] }
 0x355   : > { %v2255_v54 = vpop.f32.mrb[48].mxu0 }
 0x356   : > { %v3963_v59 = vmax.f32 %v3792_v52, %v3886_v53  ;;  %v2256_v56 = vadd.f32 %v17677_v55, %v2255_v54  ;;  %v14387_v57 = vpop.f32.mrb[49].mxu0  ;;  %14545 = vmatmul.mubr.msk.f32.gmra.mrb[154].mxu0 %vm753_vm1, %v724_v51 }
 0x357   : > { %14547 = vmatprep.mubr.msk.f32.mxu0 %vm16302_vm0, %v16303_v4 }
 0x358   : > { %v4134_v61 = vmax.f32 %v3963_v59, %v4057_v58  ;;  %2772 = vst.msk [vmem:[#allocation8 + $0x4c0] sm:$0xff] %vm2619_vm2, %v2256_v56  ;;  %v732_v59 = vld [vmem:[%s16457_s26 + $0x6a8] sm:$0xff] }
 0x359   : > { %v2260_v62 = vpop.f32.mrb[50].mxu0 }
 0x35a   : > { %v4191_v63 = vmax.f32 %v4134_v61, 0.0  ;;  %v2261_v0 = vadd.f32 %v17677_v55, %v2260_v62  ;;  %v14390_v1 = vpop.f32.mrb[51].mxu0  ;;  %14548 = vmatmul.mubr.msk.f32.gmra.mrb[156].mxu0 %vm753_vm1, %v725_v60 }
 0x35b   : > { %v2919_v3 = vld [vmem:[#allocation8 + $0x4a0] ss:$4 sm:$0xff]  ;;  %v3033_v5 = vld [vmem:[#allocation8 + $0x4a1] ss:$4 sm:$0xff]  ;;  %14550 = vmatprep.mubr.msk.f32.mxu0 %vm16302_vm0, %v16303_v4  ;;  %v3204_v8 = vld [vmem:[#allocation8 + $0x4a2] ss:$4 sm:$0xff] }
 0x35c   : > { %4307 = vst.msk [vmem:[#allocation2 + $0x125] sm:$0xff] %vm2619_vm2, %v4191_v63  ;;  %v3109_v7 = vmax.f32 %v2919_v3, %v3033_v5  ;;  %2773 = vst.msk [vmem:[#allocation8 + $0x4c8] sm:$0xff] %vm2619_vm2, %v2261_v0  ;;  %v3375_v13 = vld [vmem:[#allocation8 + $0x4a3] ss:$4 sm:$0xff] }
 0x35d   : > { %v2265_v9 = vpop.f32.mrb[52].mxu0  ;;  %v733_v0 = vld [vmem:[%s16457_s26 + $0x6b0] sm:$0xff] }
 0x35e   : > { %v3280_v10 = vmax.f32 %v3109_v7, %v3204_v8  ;;  %v2266_v11 = vadd.f32 %v17677_v55, %v2265_v9  ;;  %v14393_v12 = vpop.f32.mrb[53].mxu0  ;;  %14551 = vmatmul.mubr.msk.f32.gmra.mrb[158].mxu0 %vm753_vm1, %v726_v6 }
 0x35f   : > { %14553 = vmatprep.mubr.msk.f32.mxu0 %vm16302_vm0, %v16303_v4  ;;  %v3546_v16 = vld [vmem:[#allocation8 + $0x4a4] ss:$4 sm:$0xff]  ;;  %v3717_v21 = vld [vmem:[#allocation8 + $0x4a5] ss:$4 sm:$0xff]  ;;  %v3888_v24 = vld [vmem:[#allocation8 + $0x4a6] ss:$4 sm:$0xff] }
 0x360   : > { %v3451_v15 = vmax.f32 %v3280_v10, %v3375_v13  ;;  %2774 = vst.msk [vmem:[#allocation8 + $0x4d0] sm:$0xff] %vm2619_vm2, %v2266_v11  ;;  %v4059_v29 = vld [vmem:[#allocation8 + $0x4a7] ss:$4 sm:$0xff] }
 0x361   : > { %v2270_v17 = vpop.f32.mrb[54].mxu0  ;;  %v734_v10 = vld [vmem:[%s16457_s26 + $0x6b8] sm:$0xff] }
 0x362   : > { %v3622_v18 = vmax.f32 %v3451_v15, %v3546_v16  ;;  %v2271_v19 = vadd.f32 %v17677_v55, %v2270_v17  ;;  %v14396_v20 = vpop.f32.mrb[55].mxu0  ;;  %14554 = vmatmul.mubr.msk.f32.gmra.mrb[160].mxu0 %vm753_vm1, %v727_v14 }
 0x363   : > { %14556 = vmatprep.mubr.msk.f32.mxu0 %vm16302_vm0, %v16303_v4 }
 0x364   : > { %v3793_v23 = vmax.f32 %v3622_v18, %v3717_v21  ;;  %2775 = vst.msk [vmem:[#allocation8 + $0x4d8] sm:$0xff] %vm2619_vm2, %v2271_v19  ;;  %v735_v18 = vld [vmem:[%s16457_s26 + $0x6c0] sm:$0xff] }
 0x365   : > { %v2275_v25 = vpop.f32.mrb[56].mxu0 }
 0x366   : > { %v3964_v26 = vmax.f32 %v3793_v23, %v3888_v24  ;;  %v2276_v27 = vadd.f32 %v17677_v55, %v2275_v25  ;;  %v14399_v28 = vpop.f32.mrb[57].mxu0  ;;  %14557 = vmatmul.mubr.msk.f32.gmra.mrb[162].mxu0 %vm753_vm1, %v728_v22 }
 0x367   : > { %14559 = vmatprep.mubr.msk.f32.mxu0 %vm16302_vm0, %v16303_v4 }
 0x368   : > { %v4135_v31 = vmax.f32 %v3964_v26, %v4059_v29  ;;  %2776 = vst.msk [vmem:[#allocation8 + $0x4e0] sm:$0xff] %vm2619_vm2, %v2276_v27  ;;  %v736_v26 = vld [vmem:[%s16457_s26 + $0x6c8] sm:$0xff] }
 0x369   : > { %v2280_v32 = vpop.f32.mrb[58].mxu0 }
 0x36a   : > { %v4192_v33 = vmax.f32 %v4135_v31, 0.0  ;;  %v2281_v34 = vadd.f32 %v17677_v55, %v2280_v32  ;;  %v14402_v35 = vpop.f32.mrb[59].mxu0  ;;  %14560 = vmatmul.mubr.msk.f32.gmra.mrb[164].mxu0 %vm753_vm1, %v729_v30 }
 0x36b   : > { %v2921_v36 = vld [vmem:[#allocation8 + $0x4c0] ss:$4 sm:$0xff]  ;;  %v3035_v37 = vld [vmem:[#allocation8 + $0x4c1] ss:$4 sm:$0xff]  ;;  %14562 = vmatprep.mubr.msk.f32.mxu0 %vm16302_vm0, %v16303_v4  ;;  %v3206_v40 = vld [vmem:[#allocation8 + $0x4c2] ss:$4 sm:$0xff] }
 0x36c   : > { %4308 = vst.msk [vmem:[#allocation2 + $0x12d] sm:$0xff] %vm2619_vm2, %v4192_v33  ;;  %v3110_v39 = vmax.f32 %v2921_v36, %v3035_v37  ;;  %2777 = vst.msk [vmem:[#allocation8 + $0x4e8] sm:$0xff] %vm2619_vm2, %v2281_v34  ;;  %v3377_v45 = vld [vmem:[#allocation8 + $0x4c3] ss:$4 sm:$0xff] }
 0x36d   : > { %v2285_v41 = vpop.f32.mrb[60].mxu0  ;;  %v737_v34 = vld [vmem:[%s16457_s26 + $0x6d0] sm:$0xff] }
 0x36e   : > { %v3281_v42 = vmax.f32 %v3110_v39, %v3206_v40  ;;  %v2286_v43 = vadd.f32 %v17677_v55, %v2285_v41  ;;  %v14405_v44 = vpop.f32.mrb[61].mxu0  ;;  %14563 = vmatmul.mubr.msk.f32.gmra.mrb[166].mxu0 %vm753_vm1, %v730_v38 }
 0x36f   : > { %14565 = vmatprep.mubr.msk.f32.mxu0 %vm16302_vm0, %v16303_v4  ;;  %v3548_v48 = vld [vmem:[#allocation8 + $0x4c4] ss:$4 sm:$0xff]  ;;  %v3719_v53 = vld [vmem:[#allocation8 + $0x4c5] ss:$4 sm:$0xff]  ;;  %v3890_v57 = vld [vmem:[#allocation8 + $0x4c6] ss:$4 sm:$0xff] }
 0x370   : > { %v3452_v47 = vmax.f32 %v3281_v42, %v3377_v45  ;;  %2778 = vst.msk [vmem:[#allocation8 + $0x4f0] sm:$0xff] %vm2619_vm2, %v2286_v43  ;;  %v4061_v63 = vld [vmem:[#allocation8 + $0x4c7] ss:$4 sm:$0xff] }
 0x371   : > { %v2290_v49 = vpop.f32.mrb[62].mxu0  ;;  %v738_v42 = vld [vmem:[%s16457_s26 + $0x6d8] sm:$0xff] }
 0x372   : > { %v3623_v50 = vmax.f32 %v3452_v47, %v3548_v48  ;;  %v2291_v51 = vadd.f32 %v17677_v55, %v2290_v49  ;;  %v14408_v52 = vpop.f32.mrb[63].mxu0  ;;  %14566 = vmatmul.mubr.msk.f32.gmra.mrb[168].mxu0 %vm753_vm1, %v731_v46 }
 0x373   : > { %v4422_v54 = vld [vmem:[#allocation2 + $0x121] ss:$2 sm:$0xff]  ;;  %14568 = vmatprep.mubr.msk.f32.mxu0 %vm16302_vm0, %v16303_v4 }
 0x374   : > { %v3794_v56 = vmax.f32 %v3623_v50, %v3719_v53  ;;  %2779 = vst.msk [vmem:[#allocation8 + $0x4f8] sm:$0xff] %vm2619_vm2, %v2291_v51  ;;  %14633 = vmatprep.mubr.msk.f32.mxu1 %vm2619_vm2, %v4422_v54  ;;  %v739_v50 = vld [vmem:[%s16457_s26 + $0x6e0] sm:$0xff] }
 0x375   : > { %v2295_v58 = vpop.f32.mrb[64].mxu0 }
 0x376   : > { %v3965_v60 = vmax.f32 %v3794_v56, %v3890_v57  ;;  %v2296_v61 = vadd.f32 %v17677_v55, %v2295_v58  ;;  %v14411_v62 = vpop.f32.mrb[65].mxu0  ;;  %14569 = vmatmul.mubr.msk.f32.gmra.mrb[170].mxu0 %vm753_vm1, %v732_v59 }
 0x377   : > { %14571 = vmatprep.mubr.msk.f32.mxu0 %vm16302_vm0, %v16303_v4 }
 0x378   : > { %v4136_v1 = vmax.f32 %v3965_v60, %v4061_v63  ;;  %2780 = vst.msk [vmem:[#allocation8 + $0x500] sm:$0xff] %vm2619_vm2, %v2296_v61  ;;  %v740_v60 = vld [vmem:[%s16457_s26 + $0x6e8] sm:$0xff] }
 0x379   : > { %v2300_v3 = vpop.f32.mrb[66].mxu0 }
 0x37a   : > { %v4193_v5 = vmax.f32 %v4136_v1, 0.0  ;;  %v2301_v6 = vadd.f32 %v17677_v55, %v2300_v3  ;;  %v14414_v7 = vpop.f32.mrb[67].mxu0  ;;  %14572 = vmatmul.mubr.msk.f32.gmra.mrb[172].mxu0 %vm753_vm1, %v733_v0 }
 0x37b   : > { %v2923_v8 = vld [vmem:[#allocation8 + $0x4e0] ss:$4 sm:$0xff]  ;;  %v3037_v9 = vld [vmem:[#allocation8 + $0x4e1] ss:$4 sm:$0xff]  ;;  %14574 = vmatprep.mubr.msk.f32.mxu0 %vm16302_vm0, %v16303_v4  ;;  %v3208_v12 = vld [vmem:[#allocation8 + $0x4e2] ss:$4 sm:$0xff] }
 0x37c   : > { %4309 = vst.msk [vmem:[#allocation2 + $0x135] sm:$0xff] %vm2619_vm2, %v4193_v5  ;;  %v3111_v11 = vmax.f32 %v2923_v8, %v3037_v9  ;;  %2781 = vst.msk [vmem:[#allocation8 + $0x508] sm:$0xff] %vm2619_vm2, %v2301_v6  ;;  %v3379_v17 = vld [vmem:[#allocation8 + $0x4e3] ss:$4 sm:$0xff] }
 0x37d   : > { %v2305_v13 = vpop.f32.mrb[68].mxu0  ;;  %v741_v6 = vld [vmem:[%s16457_s26 + $0x6f0] sm:$0xff] }
 0x37e   : > { %v3282_v14 = vmax.f32 %v3111_v11, %v3208_v12  ;;  %v2306_v15 = vadd.f32 %v17677_v55, %v2305_v13  ;;  %v14417_v16 = vpop.f32.mrb[69].mxu0  ;;  %14575 = vmatmul.mubr.msk.f32.gmra.mrb[174].mxu0 %vm753_vm1, %v734_v10 }
 0x37f   : > { %14577 = vmatprep.mubr.msk.f32.mxu0 %vm16302_vm0, %v16303_v4  ;;  %v3550_v20 = vld [vmem:[#allocation8 + $0x4e4] ss:$4 sm:$0xff]  ;;  %v3721_v25 = vld [vmem:[#allocation8 + $0x4e5] ss:$4 sm:$0xff]  ;;  %v3892_v28 = vld [vmem:[#allocation8 + $0x4e6] ss:$4 sm:$0xff] }
 0x380   : > { %v3453_v19 = vmax.f32 %v3282_v14, %v3379_v17  ;;  %2782 = vst.msk [vmem:[#allocation8 + $0x510] sm:$0xff] %vm2619_vm2, %v2306_v15  ;;  %v4063_v33 = vld [vmem:[#allocation8 + $0x4e7] ss:$4 sm:$0xff] }
 0x381   : > { %v2310_v21 = vpop.f32.mrb[70].mxu0  ;;  %v742_v14 = vld [vmem:[%s16457_s26 + $0x6f8] sm:$0xff] }
 0x382   : > { %v3624_v22 = vmax.f32 %v3453_v19, %v3550_v20  ;;  %v2311_v23 = vadd.f32 %v17677_v55, %v2310_v21  ;;  %v14420_v24 = vpop.f32.mrb[71].mxu0  ;;  %14578 = vmatmul.mubr.msk.f32.gmra.mrb[176].mxu0 %vm753_vm1, %v735_v18 }
 0x383   : > { %14580 = vmatprep.mubr.msk.f32.mxu0 %vm16302_vm0, %v16303_v4 }
 0x384   : > { %v3795_v27 = vmax.f32 %v3624_v22, %v3721_v25  ;;  %2783 = vst.msk [vmem:[#allocation8 + $0x518] sm:$0xff] %vm2619_vm2, %v2311_v23  ;;  %v743_v22 = vld [vmem:[%s16457_s26 + $0x700] sm:$0xff] }
 0x385   : > { %v2315_v29 = vpop.f32.mrb[72].mxu0 }
 0x386   : > { %v3966_v30 = vmax.f32 %v3795_v27, %v3892_v28  ;;  %v2316_v31 = vadd.f32 %v17677_v55, %v2315_v29  ;;  %v14423_v32 = vpop.f32.mrb[73].mxu0  ;;  %14581 = vmatmul.mubr.msk.f32.gmra.mrb[178].mxu0 %vm753_vm1, %v736_v26 }
 0x387   : > { %14583 = vmatprep.mubr.msk.f32.mxu0 %vm16302_vm0, %v16303_v4 }
 0x388   : > { %v4137_v35 = vmax.f32 %v3966_v30, %v4063_v33  ;;  %2784 = vst.msk [vmem:[#allocation8 + $0x520] sm:$0xff] %vm2619_vm2, %v2316_v31 }
 0x389   : > { %v2320_v36 = vpop.f32.mrb[74].mxu0 }
 0x38a   : > { %v4194_v37 = vmax.f32 %v4137_v35, 0.0  ;;  %v2321_v38 = vadd.f32 %v17677_v55, %v2320_v36  ;;  %v14426_v39 = vpop.f32.mrb[75].mxu0  ;;  %14584 = vmatmul.mubr.msk.f32.gmra.mrb[180].mxu0 %vm753_vm1, %v737_v34 }
 0x38b   : > { %v2925_v40 = vld [vmem:[#allocation8 + $0x500] ss:$4 sm:$0xff]  ;;  %v3039_v41 = vld [vmem:[#allocation8 + $0x501] ss:$4 sm:$0xff]  ;;  %14586 = vmatprep.mubr.msk.f32.mxu0 %vm16302_vm0, %v16303_v4  ;;  %v3210_v44 = vld [vmem:[#allocation8 + $0x502] ss:$4 sm:$0xff] }
 0x38c   : > { %4310 = vst.msk [vmem:[#allocation2 + $0x13d] sm:$0xff] %vm2619_vm2, %v4194_v37  ;;  %v3112_v43 = vmax.f32 %v2925_v40, %v3039_v41  ;;  %2785 = vst.msk [vmem:[#allocation8 + $0x528] sm:$0xff] %vm2619_vm2, %v2321_v38  ;;  %v3381_v49 = vld [vmem:[#allocation8 + $0x503] ss:$4 sm:$0xff] }
 0x38d   : > { %v2325_v45 = vpop.f32.mrb[76].mxu0 }
 0x38e   : > { %v3283_v46 = vmax.f32 %v3112_v43, %v3210_v44  ;;  %v2326_v47 = vadd.f32 %v17677_v55, %v2325_v45  ;;  %v14429_v48 = vpop.f32.mrb[77].mxu0  ;;  %14587 = vmatmul.mubr.msk.f32.gmra.mrb[182].mxu0 %vm753_vm1, %v738_v42 }
 0x38f   : > { %14589 = vmatprep.mubr.msk.f32.mxu0 %vm16302_vm0, %v16303_v4  ;;  %v3552_v52 = vld [vmem:[#allocation8 + $0x504] ss:$4 sm:$0xff]  ;;  %v3723_v57 = vld [vmem:[#allocation8 + $0x505] ss:$4 sm:$0xff]  ;;  %v3894_v62 = vld [vmem:[#allocation8 + $0x506] ss:$4 sm:$0xff] }
 0x390   : > { %v3454_v51 = vmax.f32 %v3283_v46, %v3381_v49  ;;  %2786 = vst.msk [vmem:[#allocation8 + $0x530] sm:$0xff] %vm2619_vm2, %v2326_v47  ;;  %v4065_v5 = vld [vmem:[#allocation8 + $0x507] ss:$4 sm:$0xff] }
 0x391   : > { %v2330_v53 = vpop.f32.mrb[78].mxu0 }
 0x392   : > { %v3625_v54 = vmax.f32 %v3454_v51, %v3552_v52  ;;  %v2331_v59 = vadd.f32 %v17677_v55, %v2330_v53  ;;  %v14432_v56 = vpop.f32.mrb[79].mxu0  ;;  %14590 = vmatmul.mubr.msk.f32.gmra.mrb[184].mxu0 %vm753_vm1, %v739_v50 }
 0x393   : > { %v4424_v58 = vld [vmem:[#allocation2 + $0x131] ss:$2 sm:$0xff]  ;;  %14592 = vmatprep.mubr.msk.f32.mxu0 %vm16302_vm0, %v16303_v4 }
 0x394   : > { %v3796_v61 = vmax.f32 %v3625_v54, %v3723_v57  ;;  %2787 = vst.msk [vmem:[#allocation8 + $0x538] sm:$0xff] %vm2619_vm2, %v2331_v59  ;;  %14634 = vmatmul.mubr.msk.f32.gmra.mrb[18].mxu1 %vm2619_vm2, %v4424_v58 }
 0x395   : > { %v2335_v63 = vpop.f32.mrb[80].mxu0 }
 0x396   : > { %v3967_v0 = vmax.f32 %v3796_v61, %v3894_v62  ;;  %v2336_v1 = vadd.f32 %v17677_v55, %v2335_v63  ;;  %v14435_v3 = vpop.f32.mrb[81].mxu0  ;;  %14593 = vmatmul.mubr.msk.f32.gmra.mrb[186].mxu0 %vm753_vm1, %v740_v60 }
 0x397   : > { %14595 = vmatprep.mubr.msk.f32.mxu0 %vm16302_vm0, %v16303_v4 }
 0x398   : > { %v4138_v7 = vmax.f32 %v3967_v0, %v4065_v5  ;;  %2788 = vst.msk [vmem:[#allocation8 + $0x540] sm:$0xff] %vm2619_vm2, %v2336_v1 }
 0x399   : > { %v2340_v8 = vpop.f32.mrb[82].mxu0 }
 0x39a   : > { %v4195_v9 = vmax.f32 %v4138_v7, 0.0  ;;  %v2341_v10 = vadd.f32 %v17677_v55, %v2340_v8  ;;  %v14438_v11 = vpop.f32.mrb[83].mxu0  ;;  %14596 = vmatmul.mubr.msk.f32.gmra.mrb[188].mxu0 %vm753_vm1, %v741_v6 }
 0x39b   : > { %v2927_v12 = vld [vmem:[#allocation8 + $0x520] ss:$4 sm:$0xff]  ;;  %v3041_v13 = vld [vmem:[#allocation8 + $0x521] ss:$4 sm:$0xff]  ;;  %14598 = vmatprep.mubr.msk.f32.mxu0 %vm16302_vm0, %v16303_v4  ;;  %v3212_v16 = vld [vmem:[#allocation8 + $0x522] ss:$4 sm:$0xff] }
 0x39c   : > { %4311 = vst.msk [vmem:[#allocation2 + $0x145] sm:$0xff] %vm2619_vm2, %v4195_v9  ;;  %v3113_v15 = vmax.f32 %v2927_v12, %v3041_v13  ;;  %2789 = vst.msk [vmem:[#allocation8 + $0x548] sm:$0xff] %vm2619_vm2, %v2341_v10  ;;  %v3383_v21 = vld [vmem:[#allocation8 + $0x523] ss:$4 sm:$0xff] }
 0x39d   : > { %v2345_v17 = vpop.f32.mrb[84].mxu0 }
 0x39e   : > { %v3284_v18 = vmax.f32 %v3113_v15, %v3212_v16  ;;  %v2346_v19 = vadd.f32 %v17677_v55, %v2345_v17  ;;  %v14441_v20 = vpop.f32.mrb[85].mxu0  ;;  %14599 = vmatmul.mubr.msk.f32.gmra.mrb[190].mxu0 %vm753_vm1, %v742_v14 }
 0x39f   : > { %14601 = vmatprep.mubr.msk.f32.mxu0 %vm16302_vm0, %v16303_v4  ;;  %v3554_v24 = vld [vmem:[#allocation8 + $0x524] ss:$4 sm:$0xff]  ;;  %v3725_v29 = vld [vmem:[#allocation8 + $0x525] ss:$4 sm:$0xff]  ;;  %v3896_v31 = vld [vmem:[#allocation8 + $0x526] ss:$4 sm:$0xff] }
 0x3a0   : > { %v3455_v23 = vmax.f32 %v3284_v18, %v3383_v21  ;;  %2790 = vst.msk [vmem:[#allocation8 + $0x550] sm:$0xff] %vm2619_vm2, %v2346_v19  ;;  %v4067_v36 = vld [vmem:[#allocation8 + $0x527] ss:$4 sm:$0xff] }
 0x3a1   : > { %v2350_v25 = vpop.f32.mrb[86].mxu0 }
 0x3a2   : > { %v3626_v26 = vmax.f32 %v3455_v23, %v3554_v24  ;;  %v2351_v27 = vadd.f32 %v17677_v55, %v2350_v25  ;;  %v14444_v28 = vpop.f32.mrb[87].mxu0  ;;  %14602 = vmatmul.mubr.msk.f32.gmra.mrb[192].mxu0 %vm753_vm1, %v743_v22  ;;  %vm11430_vm1 = vcmask 521216  }
 0x3a3   : > { %11482 = vst.msk [vmem:[#allocation5 + $0x18] sm:$0x3f] %vm11430_vm1, %v16303_v4 }
 0x3a4   : > { %v3797_v30 = vmax.f32 %v3626_v26, %v3725_v29  ;;  %2791 = vst.msk [vmem:[#allocation8 + $0x558] sm:$0xff] %vm2619_vm2, %v2351_v27 }
 0x3a5   : > { %v2355_v32 = vpop.f32.mrb[88].mxu0 }
 0x3a6   : > { %v3968_v33 = vmax.f32 %v3797_v30, %v3896_v31  ;;  %v2356_v34 = vadd.f32 %v17677_v55, %v2355_v32  ;;  %v14447_v35 = vpop.f32.mrb[89].mxu0 }
 0x3a8   : > { %v4139_v37 = vmax.f32 %v3968_v33, %v4067_v36  ;;  %2792 = vst.msk [vmem:[#allocation8 + $0x560] sm:$0xff] %vm2619_vm2, %v2356_v34 }
 0x3a9   : > { %v2360_v38 = vpop.f32.mrb[90].mxu0 }
 0x3aa   : > { %v4196_v39 = vmax.f32 %v4139_v37, 0.0  ;;  %v2361_v40 = vadd.f32 %v17677_v55, %v2360_v38  ;;  %v14450_v41 = vpop.f32.mrb[91].mxu0 }
 0x3ab   : > { %v2929_v42 = vld [vmem:[#allocation8 + $0x540] ss:$4 sm:$0xff]  ;;  %v3043_v43 = vld [vmem:[#allocation8 + $0x541] ss:$4 sm:$0xff]  ;;  %v3214_v45 = vld [vmem:[#allocation8 + $0x542] ss:$4 sm:$0xff] }
 0x3ac   : > { %4312 = vst.msk [vmem:[#allocation2 + $0x14d] sm:$0xff] %vm2619_vm2, %v4196_v39  ;;  %v3114_v44 = vmax.f32 %v2929_v42, %v3043_v43  ;;  %2793 = vst.msk [vmem:[#allocation8 + $0x568] sm:$0xff] %vm2619_vm2, %v2361_v40  ;;  %v3385_v50 = vld [vmem:[#allocation8 + $0x543] ss:$4 sm:$0xff] }
 0x3ad   : > { %v2365_v46 = vpop.f32.mrb[92].mxu0 }
 0x3ae   : > { %v3285_v47 = vmax.f32 %v3114_v44, %v3214_v45  ;;  %v2366_v48 = vadd.f32 %v17677_v55, %v2365_v46  ;;  %v14453_v49 = vpop.f32.mrb[93].mxu0 }
 0x3af   : > { %v3556_v52 = vld [vmem:[#allocation8 + $0x544] ss:$4 sm:$0xff]  ;;  %v3727_v57 = vld [vmem:[#allocation8 + $0x545] ss:$4 sm:$0xff]  ;;  %v3898_v61 = vld [vmem:[#allocation8 + $0x546] ss:$4 sm:$0xff] }
 0x3b0   : > { %v3456_v51 = vmax.f32 %v3285_v47, %v3385_v50  ;;  %2794 = vst.msk [vmem:[#allocation8 + $0x570] sm:$0xff] %vm2619_vm2, %v2366_v48  ;;  %v4069_v3 = vld [vmem:[#allocation8 + $0x547] ss:$4 sm:$0xff] }
 0x3b1   : > { %v2370_v53 = vpop.f32.mrb[94].mxu0 }
 0x3b2   : > { %v3627_v54 = vmax.f32 %v3456_v51, %v3556_v52  ;;  %v2371_v59 = vadd.f32 %v17677_v55, %v2370_v53  ;;  %v14456_v56 = vpop.f32.mrb[95].mxu0 }
 0x3b3   : > { %v4426_v58 = vld [vmem:[#allocation2 + $0x141] ss:$2 sm:$0xff] }
 0x3b4   : > { %v3798_v60 = vmax.f32 %v3627_v54, %v3727_v57  ;;  %2795 = vst.msk [vmem:[#allocation8 + $0x578] sm:$0xff] %vm2619_vm2, %v2371_v59  ;;  %14636 = vmatprep.mubr.msk.f32.mxu1 %vm2619_vm2, %v4426_v58 }
 0x3b5   : > { %v2375_v62 = vpop.f32.mrb[96].mxu0 }
 0x3b6   : > { %v3969_v63 = vmax.f32 %v3798_v60, %v3898_v61  ;;  %v2376_v0 = vadd.f32 %v17677_v55, %v2375_v62  ;;  %v14459_v1 = vpop.f32.mrb[97].mxu0 }
 0x3b8   : > { %v4140_v5 = vmax.f32 %v3969_v63, %v4069_v3  ;;  %2796 = vst.msk [vmem:[#allocation8 + $0x580] sm:$0xff] %vm2619_vm2, %v2376_v0 }
 0x3b9   : > { %v2380_v6 = vpop.f32.mrb[98].mxu0 }
 0x3ba   : > { %v4197_v7 = vmax.f32 %v4140_v5, 0.0  ;;  %v2381_v8 = vadd.f32 %v17677_v55, %v2380_v6  ;;  %v14462_v9 = vpop.f32.mrb[99].mxu0 }
 0x3bb   : > { %v2931_v10 = vld [vmem:[#allocation8 + $0x560] ss:$4 sm:$0xff]  ;;  %v3045_v11 = vld [vmem:[#allocation8 + $0x561] ss:$4 sm:$0xff]  ;;  %v3216_v13 = vld [vmem:[#allocation8 + $0x562] ss:$4 sm:$0xff] }
 0x3bc   : > { %4313 = vst.msk [vmem:[#allocation2 + $0x155] sm:$0xff] %vm2619_vm2, %v4197_v7  ;;  %v3115_v12 = vmax.f32 %v2931_v10, %v3045_v11  ;;  %2797 = vst.msk [vmem:[#allocation8 + $0x588] sm:$0xff] %vm2619_vm2, %v2381_v8  ;;  %v3387_v18 = vld [vmem:[#allocation8 + $0x563] ss:$4 sm:$0xff] }
 0x3bd   : > { %v2385_v14 = vpop.f32.mrb[100].mxu0 }
 0x3be   : > { %v3286_v15 = vmax.f32 %v3115_v12, %v3216_v13  ;;  %v2386_v16 = vadd.f32 %v17677_v55, %v2385_v14  ;;  %v14465_v17 = vpop.f32.mrb[101].mxu0  ;;  %v17936_v12 = vld [vmem:[%s19530_s2] ss:$0 sm:$0xff]  ;;  %s16306_s2 = smov 32  }
 0x3bf   : > { %v3558_v20 = vld [vmem:[#allocation8 + $0x564] ss:$4 sm:$0xff]  ;;  %v3729_v25 = vld [vmem:[#allocation8 + $0x565] ss:$4 sm:$0xff]  ;;  %v3900_v27 = vld [vmem:[#allocation8 + $0x566] ss:$4 sm:$0xff] }
 0x3c0   : > { %v3457_v19 = vmax.f32 %v3286_v15, %v3387_v18  ;;  %2798 = vst.msk [vmem:[#allocation8 + $0x590] sm:$0xff] %vm2619_vm2, %v2386_v16  ;;  %v4071_v32 = vld [vmem:[#allocation8 + $0x567] ss:$4 sm:$0xff] }
 0x3c1   : > { %v2390_v21 = vpop.f32.mrb[102].mxu0 }
 0x3c2   : > { %v3628_v22 = vmax.f32 %v3457_v19, %v3558_v20  ;;  %v2391_v23 = vadd.f32 %v17677_v55, %v2390_v21  ;;  %v14468_v24 = vpop.f32.mrb[103].mxu0 }
 0x3c4   : > { %v3799_v26 = vmax.f32 %v3628_v22, %v3729_v25  ;;  %2799 = vst.msk [vmem:[#allocation8 + $0x598] sm:$0xff] %vm2619_vm2, %v2391_v23 }
 0x3c5   : > { %v2395_v28 = vpop.f32.mrb[104].mxu0 }
 0x3c6   : > { %v3970_v29 = vmax.f32 %v3799_v26, %v3900_v27  ;;  %v2396_v30 = vadd.f32 %v17677_v55, %v2395_v28  ;;  %v14471_v31 = vpop.f32.mrb[105].mxu0 }
 0x3c8   : > { %v4141_v33 = vmax.f32 %v3970_v29, %v4071_v32  ;;  %2800 = vst.msk [vmem:[#allocation8 + $0x5a0] sm:$0xff] %vm2619_vm2, %v2396_v30 }
 0x3c9   : > { %v2400_v34 = vpop.f32.mrb[106].mxu0 }
 0x3ca   : > { %v4198_v35 = vmax.f32 %v4141_v33, 0.0  ;;  %v2401_v36 = vadd.f32 %v17677_v55, %v2400_v34  ;;  %v14474_v37 = vpop.f32.mrb[107].mxu0 }
 0x3cb   : > { %v2933_v38 = vld [vmem:[#allocation8 + $0x580] ss:$4 sm:$0xff]  ;;  %v3047_v39 = vld [vmem:[#allocation8 + $0x581] ss:$4 sm:$0xff]  ;;  %v3218_v41 = vld [vmem:[#allocation8 + $0x582] ss:$4 sm:$0xff] }
 0x3cc   : > { %4314 = vst.msk [vmem:[#allocation2 + $0x15d] sm:$0xff] %vm2619_vm2, %v4198_v35  ;;  %v3116_v40 = vmax.f32 %v2933_v38, %v3047_v39  ;;  %2801 = vst.msk [vmem:[#allocation8 + $0x5a8] sm:$0xff] %vm2619_vm2, %v2401_v36  ;;  %v3389_v46 = vld [vmem:[#allocation8 + $0x583] ss:$4 sm:$0xff] }
 0x3cd   : > { %v2405_v42 = vpop.f32.mrb[108].mxu0  ;;  %v4384_v37 = vld [vmem:[%s19529_s3] sm:$0xff] }
 0x3ce   : > { %v3287_v43 = vmax.f32 %v3116_v40, %v3218_v41  ;;  %v2406_v44 = vadd.f32 %v17677_v55, %v2405_v42  ;;  %v14477_v45 = vpop.f32.mrb[109].mxu0  ;;  %14648 = vmatprep.subr.mxu1 %v4384_v37 }
 0x3cf   : > { %v3560_v48 = vld [vmem:[#allocation8 + $0x584] ss:$4 sm:$0xff]  ;;  %v3731_v53 = vld [vmem:[#allocation8 + $0x585] ss:$4 sm:$0xff]  ;;  %v3902_v56 = vld [vmem:[#allocation8 + $0x586] ss:$4 sm:$0xff]  ;;  %14649 = vmatpush3.msra.mxu1 %v4384_v37 }
 0x3d0   : > { %v3458_v47 = vmax.f32 %v3287_v43, %v3389_v46  ;;  %2802 = vst.msk [vmem:[#allocation8 + $0x5b0] sm:$0xff] %vm2619_vm2, %v2406_v44  ;;  %v4073_v62 = vld [vmem:[#allocation8 + $0x587] ss:$4 sm:$0xff] }
 0x3d1   : > { %v2410_v49 = vpop.f32.mrb[110].mxu0 }
 0x3d2   : > { %v3629_v50 = vmax.f32 %v3458_v47, %v3560_v48  ;;  %v2411_v51 = vadd.f32 %v17677_v55, %v2410_v49  ;;  %v14480_v52 = vpop.f32.mrb[111].mxu0 }
 0x3d3   : > { %v4428_v54 = vld [vmem:[#allocation2 + $0x151] ss:$2 sm:$0xff] }
 0x3d4   : > { %v3800_v59 = vmax.f32 %v3629_v50, %v3731_v53  ;;  %2803 = vst.msk [vmem:[#allocation8 + $0x5b8] sm:$0xff] %vm2619_vm2, %v2411_v51  ;;  %14637 = vmatmul.mubr.msk.f32.gmra.mrb[20].mxu1 %vm2619_vm2, %v4428_v54 }
 0x3d5   : > { %v2415_v57 = vpop.f32.mrb[112].mxu0 }
 0x3d6   : > { %v3971_v58 = vmax.f32 %v3800_v59, %v3902_v56  ;;  %v2416_v60 = vadd.f32 %v17677_v55, %v2415_v57  ;;  %v14483_v61 = vpop.f32.mrb[113].mxu0 }
 0x3d8   : > { %v4142_v63 = vmax.f32 %v3971_v58, %v4073_v62  ;;  %2804 = vst.msk [vmem:[#allocation8 + $0x5c0] sm:$0xff] %vm2619_vm2, %v2416_v60 }
 0x3d9   : > { %v2420_v0 = vpop.f32.mrb[114].mxu0 }
 0x3da   : > { %v4199_v1 = vmax.f32 %v4142_v63, 0.0  ;;  %v2421_v3 = vadd.f32 %v17677_v55, %v2420_v0  ;;  %v14486_v5 = vpop.f32.mrb[115].mxu0 }
 0x3db   : > { %v2935_v6 = vld [vmem:[#allocation8 + $0x5a0] ss:$4 sm:$0xff]  ;;  %v3049_v7 = vld [vmem:[#allocation8 + $0x5a1] ss:$4 sm:$0xff]  ;;  %v3220_v9 = vld [vmem:[#allocation8 + $0x5a2] ss:$4 sm:$0xff] }
 0x3dc   : > { %4315 = vst.msk [vmem:[#allocation2 + $0x165] sm:$0xff] %vm2619_vm2, %v4199_v1  ;;  %v3117_v8 = vmax.f32 %v2935_v6, %v3049_v7  ;;  %2805 = vst.msk [vmem:[#allocation8 + $0x5c8] sm:$0xff] %vm2619_vm2, %v2421_v3  ;;  %v3391_v55 = vld [vmem:[#allocation8 + $0x5a3] ss:$4 sm:$0xff] }
 0x3dd   : > { %v2425_v10 = vpop.f32.mrb[116].mxu0 }
 0x3de   : > { %v3288_v11 = vmax.f32 %v3117_v8, %v3220_v9  ;;  %v2426_v13 = vadd.f32 %v17936_v12, %v2425_v10  ;;  %v14489_v14 = vpop.f32.mrb[117].mxu0 }
 0x3df   : > { %v3562_v16 = vld [vmem:[#allocation8 + $0x5a4] ss:$4 sm:$0xff]  ;;  %v3733_v21 = vld [vmem:[#allocation8 + $0x5a5] ss:$4 sm:$0xff]  ;;  %v3904_v23 = vld [vmem:[#allocation8 + $0x5a6] ss:$4 sm:$0xff] }
 0x3e0   : > { %v3459_v15 = vmax.f32 %v3288_v11, %v3391_v55  ;;  %2806 = vst.msk [vmem:[#allocation8 + $0x5d0] sm:$0xff] %vm2619_vm2, %v2426_v13  ;;  %v4075_v28 = vld [vmem:[#allocation8 + $0x5a7] ss:$4 sm:$0xff] }
 0x3e1   : > { %v2430_v17 = vpop.f32.mrb[118].mxu0 }
 0x3e2   : > { %v3630_v18 = vmax.f32 %v3459_v15, %v3562_v16  ;;  %v2431_v19 = vadd.f32 %v17936_v12, %v2430_v17  ;;  %v14492_v20 = vpop.f32.mrb[119].mxu0 }
 0x3e4   : > { %v3801_v22 = vmax.f32 %v3630_v18, %v3733_v21  ;;  %2807 = vst.msk [vmem:[#allocation8 + $0x5d8] sm:$0xff] %vm2619_vm2, %v2431_v19 }
 0x3e5   : > { %v2435_v24 = vpop.f32.mrb[120].mxu0 }
 0x3e6   : > { %v3972_v25 = vmax.f32 %v3801_v22, %v3904_v23  ;;  %v2436_v26 = vadd.f32 %v17936_v12, %v2435_v24  ;;  %v14495_v27 = vpop.f32.mrb[121].mxu0 }
 0x3e8   : > { %v4143_v29 = vmax.f32 %v3972_v25, %v4075_v28  ;;  %2808 = vst.msk [vmem:[#allocation8 + $0x5e0] sm:$0xff] %vm2619_vm2, %v2436_v26 }
 0x3e9   : > { %v2440_v30 = vpop.f32.mrb[122].mxu0 }
 0x3ea   : > { %v4200_v31 = vmax.f32 %v4143_v29, 0.0  ;;  %v2441_v32 = vadd.f32 %v17936_v12, %v2440_v30  ;;  %v14498_v33 = vpop.f32.mrb[123].mxu0 }
 0x3eb   : > { %v2937_v34 = vld [vmem:[#allocation8 + $0x5c0] ss:$4 sm:$0xff]  ;;  %v3051_v35 = vld [vmem:[#allocation8 + $0x5c1] ss:$4 sm:$0xff]  ;;  %v3222_v38 = vld [vmem:[#allocation8 + $0x5c2] ss:$4 sm:$0xff] }
 0x3ec   : > { %4316 = vst.msk [vmem:[#allocation2 + $0x16d] sm:$0xff] %vm2619_vm2, %v4200_v31  ;;  %v3118_v36 = vmax.f32 %v2937_v34, %v3051_v35  ;;  %2809 = vst.msk [vmem:[#allocation8 + $0x5e8] sm:$0xff] %vm2619_vm2, %v2441_v32  ;;  %v3393_v43 = vld [vmem:[#allocation8 + $0x5c3] ss:$4 sm:$0xff] }
 0x3ed   : > { %v2445_v39 = vpop.f32.mrb[124].mxu0 }
 0x3ee   : > { %v3289_v40 = vmax.f32 %v3118_v36, %v3222_v38  ;;  %v2446_v41 = vadd.f32 %v17936_v12, %v2445_v39  ;;  %v14501_v42 = vpop.f32.mrb[125].mxu0 }
 0x3ef   : > { %v3564_v45 = vld [vmem:[#allocation8 + $0x5c4] ss:$4 sm:$0xff]  ;;  %v3735_v50 = vld [vmem:[#allocation8 + $0x5c5] ss:$4 sm:$0xff]  ;;  %v3906_v53 = vld [vmem:[#allocation8 + $0x5c6] ss:$4 sm:$0xff] }
 0x3f0   : > { %v3460_v44 = vmax.f32 %v3289_v40, %v3393_v43  ;;  %2810 = vst.msk [vmem:[#allocation8 + $0x5f0] sm:$0xff] %vm2619_vm2, %v2446_v41  ;;  %v4077_v58 = vld [vmem:[#allocation8 + $0x5c7] ss:$4 sm:$0xff] }
 0x3f1   : > { %v2450_v46 = vpop.f32.mrb[126].mxu0 }
 0x3f2   : > { %v3631_v47 = vmax.f32 %v3460_v44, %v3564_v45  ;;  %v2451_v48 = vadd.f32 %v17936_v12, %v2450_v46  ;;  %v14504_v49 = vpop.f32.mrb[127].mxu0 }
 0x3f3   : > { %v4430_v51 = vld [vmem:[#allocation2 + $0x161] ss:$2 sm:$0xff] }
 0x3f4   : > { %v3802_v52 = vmax.f32 %v3631_v47, %v3735_v50  ;;  %2811 = vst.msk [vmem:[#allocation8 + $0x5f8] sm:$0xff] %vm2619_vm2, %v2451_v48  ;;  %14639 = vmatprep.mubr.msk.f32.mxu1 %vm2619_vm2, %v4430_v51  ;;  %v17978_v51 = vld [vmem:[%s19529_s3 + $0x10] sm:$0xff] }
 0x3f5   : > { %v2455_v54 = vpop.f32.mrb[128].mxu0  ;;  %14692 = vmatprep.subr.mxu1 %v17978_v51 }
 0x3f6   : > { %v3973_v59 = vmax.f32 %v3802_v52, %v3906_v53  ;;  %v2456_v56 = vadd.f32 %v17936_v12, %v2455_v54  ;;  %v14507_v57 = vpop.f32.mrb[129].mxu0 }
 0x3f8   : > { %v4144_v60 = vmax.f32 %v3973_v59, %v4077_v58  ;;  %2812 = vst.msk [vmem:[#allocation8 + $0x600] sm:$0xff] %vm2619_vm2, %v2456_v56 }
 0x3f9   : > { %v2460_v61 = vpop.f32.mrb[130].mxu0 }
 0x3fa   : > { %v4201_v62 = vmax.f32 %v4144_v60, 0.0  ;;  %v2461_v63 = vadd.f32 %v17936_v12, %v2460_v61  ;;  %v14510_v0 = vpop.f32.mrb[131].mxu0 }
 0x3fb   : > { %v2939_v1 = vld [vmem:[#allocation8 + $0x5e0] ss:$4 sm:$0xff]  ;;  %v3053_v3 = vld [vmem:[#allocation8 + $0x5e1] ss:$4 sm:$0xff]  ;;  %v3224_v6 = vld [vmem:[#allocation8 + $0x5e2] ss:$4 sm:$0xff] }
 0x3fc   : > { %4317 = vst.msk [vmem:[#allocation2 + $0x175] sm:$0xff] %vm2619_vm2, %v4201_v62  ;;  %v3119_v5 = vmax.f32 %v2939_v1, %v3053_v3  ;;  %2813 = vst.msk [vmem:[#allocation8 + $0x608] sm:$0xff] %vm2619_vm2, %v2461_v63  ;;  %v3395_v11 = vld [vmem:[#allocation8 + $0x5e3] ss:$4 sm:$0xff] }
 0x3fd   : > { %v2465_v7 = vpop.f32.mrb[132].mxu0 }
 0x3fe   : > { %v3290_v8 = vmax.f32 %v3119_v5, %v3224_v6  ;;  %v2466_v9 = vadd.f32 %v17936_v12, %v2465_v7  ;;  %v14513_v10 = vpop.f32.mrb[133].mxu0 }
 0x3ff   : > { %v3566_v14 = vld [vmem:[#allocation8 + $0x5e4] ss:$4 sm:$0xff]  ;;  %v3737_v18 = vld [vmem:[#allocation8 + $0x5e5] ss:$4 sm:$0xff]  ;;  %v3908_v20 = vld [vmem:[#allocation8 + $0x5e6] ss:$4 sm:$0xff] }
 0x400   : > { %v3461_v13 = vmax.f32 %v3290_v8, %v3395_v11  ;;  %2814 = vst.msk [vmem:[#allocation8 + $0x610] sm:$0xff] %vm2619_vm2, %v2466_v9  ;;  %v4079_v25 = vld [vmem:[#allocation8 + $0x5e7] ss:$4 sm:$0xff] }
 0x401   : > { %v2470_v55 = vpop.f32.mrb[134].mxu0 }
 0x402   : > { %v3632_v15 = vmax.f32 %v3461_v13, %v3566_v14  ;;  %v2471_v16 = vadd.f32 %v17936_v12, %v2470_v55  ;;  %v14516_v17 = vpop.f32.mrb[135].mxu0 }
 0x404   : > { %v3803_v19 = vmax.f32 %v3632_v15, %v3737_v18  ;;  %2815 = vst.msk [vmem:[#allocation8 + $0x618] sm:$0xff] %vm2619_vm2, %v2471_v16 }
 0x405   : > { %v2475_v21 = vpop.f32.mrb[136].mxu0 }
 0x406   : > { %v3974_v22 = vmax.f32 %v3803_v19, %v3908_v20  ;;  %v2476_v23 = vadd.f32 %v17936_v12, %v2475_v21  ;;  %v14519_v24 = vpop.f32.mrb[137].mxu0 }
 0x408   : > { %v4145_v26 = vmax.f32 %v3974_v22, %v4079_v25  ;;  %2816 = vst.msk [vmem:[#allocation8 + $0x620] sm:$0xff] %vm2619_vm2, %v2476_v23 }
 0x409   : > { %v2480_v27 = vpop.f32.mrb[138].mxu0 }
 0x40a   : > { %v4202_v28 = vmax.f32 %v4145_v26, 0.0  ;;  %v2481_v29 = vadd.f32 %v17936_v12, %v2480_v27  ;;  %v14522_v30 = vpop.f32.mrb[139].mxu0 }
 0x40b   : > { %v2941_v31 = vld [vmem:[#allocation8 + $0x600] ss:$4 sm:$0xff]  ;;  %v3055_v32 = vld [vmem:[#allocation8 + $0x601] ss:$4 sm:$0xff]  ;;  %v3226_v34 = vld [vmem:[#allocation8 + $0x602] ss:$4 sm:$0xff] }
 0x40c   : > { %4318 = vst.msk [vmem:[#allocation2 + $0x17d] sm:$0xff] %vm2619_vm2, %v4202_v28  ;;  %v3120_v33 = vmax.f32 %v2941_v31, %v3055_v32  ;;  %2817 = vst.msk [vmem:[#allocation8 + $0x628] sm:$0xff] %vm2619_vm2, %v2481_v29  ;;  %v3397_v39 = vld [vmem:[#allocation8 + $0x603] ss:$4 sm:$0xff] }
 0x40d   : > { %v2485_v35 = vpop.f32.mrb[140].mxu0 }
 0x40e   : > { %v3291_v36 = vmax.f32 %v3120_v33, %v3226_v34  ;;  %v2486_v37 = vadd.f32 %v17936_v12, %v2485_v35  ;;  %v14525_v38 = vpop.f32.mrb[141].mxu0 }
 0x40f   : > { %v3568_v41 = vld [vmem:[#allocation8 + $0x604] ss:$4 sm:$0xff]  ;;  %v3739_v46 = vld [vmem:[#allocation8 + $0x605] ss:$4 sm:$0xff]  ;;  %v3910_v49 = vld [vmem:[#allocation8 + $0x606] ss:$4 sm:$0xff] }
 0x410   : > { %v3462_v40 = vmax.f32 %v3291_v36, %v3397_v39  ;;  %2818 = vst.msk [vmem:[#allocation8 + $0x630] sm:$0xff] %vm2619_vm2, %v2486_v37  ;;  %v4081_v59 = vld [vmem:[#allocation8 + $0x607] ss:$4 sm:$0xff] }
 0x411   : > { %v2490_v42 = vpop.f32.mrb[142].mxu0 }
 0x412   : > { %v3633_v43 = vmax.f32 %v3462_v40, %v3568_v41  ;;  %v2491_v44 = vadd.f32 %v17936_v12, %v2490_v42  ;;  %v14528_v45 = vpop.f32.mrb[143].mxu0 }
 0x413   : > { %v4432_v47 = vld [vmem:[#allocation2 + $0x171] ss:$2 sm:$0xff] }
 0x414   : > { %v3804_v48 = vmax.f32 %v3633_v43, %v3739_v46  ;;  %2819 = vst.msk [vmem:[#allocation8 + $0x638] sm:$0xff] %vm2619_vm2, %v2491_v44  ;;  %14640 = vmatmul.mubr.msk.f32.gmra.mrb[22].mxu1 %vm2619_vm2, %v4432_v47 }
 0x415   : > { %v2495_v50 = vpop.f32.mrb[144].mxu0 }
 0x416   : > { %v3975_v52 = vmax.f32 %v3804_v48, %v3910_v49  ;;  %v2496_v53 = vadd.f32 %v17936_v12, %v2495_v50  ;;  %v14531_v54 = vpop.f32.mrb[145].mxu0 }
 0x418   : > { %v4146_v56 = vmax.f32 %v3975_v52, %v4081_v59  ;;  %2820 = vst.msk [vmem:[#allocation8 + $0x640] sm:$0xff] %vm2619_vm2, %v2496_v53 }
 0x419   : > { %v2500_v57 = vpop.f32.mrb[146].mxu0 }
 0x41a   : > { %v4203_v58 = vmax.f32 %v4146_v56, 0.0  ;;  %v2501_v60 = vadd.f32 %v17936_v12, %v2500_v57  ;;  %v14534_v61 = vpop.f32.mrb[147].mxu0 }
 0x41b   : > { %v2943_v62 = vld [vmem:[#allocation8 + $0x620] ss:$4 sm:$0xff]  ;;  %v3057_v63 = vld [vmem:[#allocation8 + $0x621] ss:$4 sm:$0xff]  ;;  %v3228_v1 = vld [vmem:[#allocation8 + $0x622] ss:$4 sm:$0xff] }
 0x41c   : > { %4319 = vst.msk [vmem:[#allocation2 + $0x185] sm:$0xff] %vm2619_vm2, %v4203_v58  ;;  %v3121_v0 = vmax.f32 %v2943_v62, %v3057_v63  ;;  %2821 = vst.msk [vmem:[#allocation8 + $0x648] sm:$0xff] %vm2619_vm2, %v2501_v60  ;;  %v3399_v8 = vld [vmem:[#allocation8 + $0x623] ss:$4 sm:$0xff] }
 0x41d   : > { %v2505_v3 = vpop.f32.mrb[148].mxu0 }
 0x41e   : > { %v3292_v5 = vmax.f32 %v3121_v0, %v3228_v1  ;;  %v2506_v6 = vadd.f32 %v17936_v12, %v2505_v3  ;;  %v14537_v7 = vpop.f32.mrb[149].mxu0 }
 0x41f   : > { %v3570_v10 = vld [vmem:[#allocation8 + $0x624] ss:$4 sm:$0xff]  ;;  %v3741_v15 = vld [vmem:[#allocation8 + $0x625] ss:$4 sm:$0xff]  ;;  %v3912_v17 = vld [vmem:[#allocation8 + $0x626] ss:$4 sm:$0xff] }
 0x420   : > { %v3463_v9 = vmax.f32 %v3292_v5, %v3399_v8  ;;  %2822 = vst.msk [vmem:[#allocation8 + $0x650] sm:$0xff] %vm2619_vm2, %v2506_v6  ;;  %v4083_v22 = vld [vmem:[#allocation8 + $0x627] ss:$4 sm:$0xff] }
 0x421   : > { %v2510_v11 = vpop.f32.mrb[150].mxu0 }
 0x422   : > { %v3634_v13 = vmax.f32 %v3463_v9, %v3570_v10  ;;  %v2511_v14 = vadd.f32 %v17936_v12, %v2510_v11  ;;  %v14540_v55 = vpop.f32.mrb[151].mxu0 }
 0x424   : > { %v3805_v16 = vmax.f32 %v3634_v13, %v3741_v15  ;;  %2823 = vst.msk [vmem:[#allocation8 + $0x658] sm:$0xff] %vm2619_vm2, %v2511_v14 }
 0x425   : > { %v2515_v18 = vpop.f32.mrb[152].mxu0 }
 0x426   : > { %v3976_v19 = vmax.f32 %v3805_v16, %v3912_v17  ;;  %v2516_v20 = vadd.f32 %v17936_v12, %v2515_v18  ;;  %v14543_v21 = vpop.f32.mrb[153].mxu0 }
 0x428   : > { %v4147_v23 = vmax.f32 %v3976_v19, %v4083_v22  ;;  %2824 = vst.msk [vmem:[#allocation8 + $0x660] sm:$0xff] %vm2619_vm2, %v2516_v20 }
 0x429   : > { %v2520_v24 = vpop.f32.mrb[154].mxu0 }
 0x42a   : > { %v4204_v25 = vmax.f32 %v4147_v23, 0.0  ;;  %v2521_v26 = vadd.f32 %v17936_v12, %v2520_v24  ;;  %v14546_v27 = vpop.f32.mrb[155].mxu0 }
 0x42b   : > { %v2945_v28 = vld [vmem:[#allocation8 + $0x640] ss:$4 sm:$0xff]  ;;  %v3059_v29 = vld [vmem:[#allocation8 + $0x641] ss:$4 sm:$0xff]  ;;  %v3230_v31 = vld [vmem:[#allocation8 + $0x642] ss:$4 sm:$0xff] }
 0x42c   : > { %4320 = vst.msk [vmem:[#allocation2 + $0x18d] sm:$0xff] %vm2619_vm2, %v4204_v25  ;;  %v3122_v30 = vmax.f32 %v2945_v28, %v3059_v29  ;;  %2825 = vst.msk [vmem:[#allocation8 + $0x668] sm:$0xff] %vm2619_vm2, %v2521_v26  ;;  %v3401_v36 = vld [vmem:[#allocation8 + $0x643] ss:$4 sm:$0xff] }
 0x42d   : > { %v2525_v32 = vpop.f32.mrb[156].mxu0 }
 0x42e   : > { %v3293_v33 = vmax.f32 %v3122_v30, %v3230_v31  ;;  %v2526_v34 = vadd.f32 %v17936_v12, %v2525_v32  ;;  %v14549_v35 = vpop.f32.mrb[157].mxu0 }
 0x42f   : > { %v3572_v38 = vld [vmem:[#allocation8 + $0x644] ss:$4 sm:$0xff]  ;;  %v3743_v43 = vld [vmem:[#allocation8 + $0x645] ss:$4 sm:$0xff]  ;;  %v3914_v46 = vld [vmem:[#allocation8 + $0x646] ss:$4 sm:$0xff] }
 0x430   : > { %v3464_v37 = vmax.f32 %v3293_v33, %v3401_v36  ;;  %2826 = vst.msk [vmem:[#allocation8 + $0x670] sm:$0xff] %vm2619_vm2, %v2526_v34  ;;  %v4085_v52 = vld [vmem:[#allocation8 + $0x647] ss:$4 sm:$0xff] }
 0x431   : > { %v2530_v39 = vpop.f32.mrb[158].mxu0 }
 0x432   : > { %v3635_v40 = vmax.f32 %v3464_v37, %v3572_v38  ;;  %v2531_v41 = vadd.f32 %v17936_v12, %v2530_v39  ;;  %v14552_v42 = vpop.f32.mrb[159].mxu0 }
 0x433   : > { %v4434_v44 = vld [vmem:[#allocation2 + $0x181] ss:$2 sm:$0xff] }
 0x434   : > { %v3806_v45 = vmax.f32 %v3635_v40, %v3743_v43  ;;  %2827 = vst.msk [vmem:[#allocation8 + $0x678] sm:$0xff] %vm2619_vm2, %v2531_v41  ;;  %14642 = vmatprep.mubr.msk.f32.mxu1 %vm2619_vm2, %v4434_v44 }
 0x435   : > { %v2535_v47 = vpop.f32.mrb[160].mxu0 }
 0x436   : > { %v3977_v48 = vmax.f32 %v3806_v45, %v3914_v46  ;;  %v2536_v49 = vadd.f32 %v17936_v12, %v2535_v47  ;;  %v14555_v50 = vpop.f32.mrb[161].mxu0 }
 0x438   : > { %v4148_v53 = vmax.f32 %v3977_v48, %v4085_v52  ;;  %2828 = vst.msk [vmem:[#allocation8 + $0x680] sm:$0xff] %vm2619_vm2, %v2536_v49 }
 0x439   : > { %v2540_v54 = vpop.f32.mrb[162].mxu0 }
 0x43a   : > { %v4205_v59 = vmax.f32 %v4148_v53, 0.0  ;;  %v2541_v56 = vadd.f32 %v17936_v12, %v2540_v54  ;;  %v14558_v57 = vpop.f32.mrb[163].mxu0 }
 0x43b   : > { %v2947_v58 = vld [vmem:[#allocation8 + $0x660] ss:$4 sm:$0xff]  ;;  %v3061_v60 = vld [vmem:[#allocation8 + $0x661] ss:$4 sm:$0xff]  ;;  %v3232_v62 = vld [vmem:[#allocation8 + $0x662] ss:$4 sm:$0xff] }
 0x43c   : > { %4321 = vst.msk [vmem:[#allocation2 + $0x195] sm:$0xff] %vm2619_vm2, %v4205_v59  ;;  %v3123_v61 = vmax.f32 %v2947_v58, %v3061_v60  ;;  %2829 = vst.msk [vmem:[#allocation8 + $0x688] sm:$0xff] %vm2619_vm2, %v2541_v56  ;;  %v3403_v5 = vld [vmem:[#allocation8 + $0x663] ss:$4 sm:$0xff] }
 0x43d   : > { %v2545_v63 = vpop.f32.mrb[164].mxu0 }
 0x43e   : > { %v3294_v0 = vmax.f32 %v3123_v61, %v3232_v62  ;;  %v2546_v1 = vadd.f32 %v17936_v12, %v2545_v63  ;;  %v14561_v3 = vpop.f32.mrb[165].mxu0 }
 0x43f   : > { %v3574_v7 = vld [vmem:[#allocation8 + $0x664] ss:$4 sm:$0xff]  ;;  %v3745_v13 = vld [vmem:[#allocation8 + $0x665] ss:$4 sm:$0xff]  ;;  %v3916_v55 = vld [vmem:[#allocation8 + $0x666] ss:$4 sm:$0xff] }
 0x440   : > { %v3465_v6 = vmax.f32 %v3294_v0, %v3403_v5  ;;  %2830 = vst.msk [vmem:[#allocation8 + $0x690] sm:$0xff] %vm2619_vm2, %v2546_v1  ;;  %v4087_v19 = vld [vmem:[#allocation8 + $0x667] ss:$4 sm:$0xff] }
 0x441   : > { %v2550_v8 = vpop.f32.mrb[166].mxu0 }
 0x442   : > { %v3636_v9 = vmax.f32 %v3465_v6, %v3574_v7  ;;  %v2551_v10 = vadd.f32 %v17936_v12, %v2550_v8  ;;  %v14564_v11 = vpop.f32.mrb[167].mxu0 }
 0x444   : > { %v3807_v14 = vmax.f32 %v3636_v9, %v3745_v13  ;;  %2831 = vst.msk [vmem:[#allocation8 + $0x698] sm:$0xff] %vm2619_vm2, %v2551_v10 }
 0x445   : > { %v2555_v15 = vpop.f32.mrb[168].mxu0 }
 0x446   : > { %v3978_v16 = vmax.f32 %v3807_v14, %v3916_v55  ;;  %v2556_v17 = vadd.f32 %v17936_v12, %v2555_v15  ;;  %v14567_v18 = vpop.f32.mrb[169].mxu0 }
 0x448   : > { %v4149_v20 = vmax.f32 %v3978_v16, %v4087_v19  ;;  %2832 = vst.msk [vmem:[#allocation8 + $0x6a0] sm:$0xff] %vm2619_vm2, %v2556_v17 }
 0x449   : > { %v2560_v21 = vpop.f32.mrb[170].mxu0 }
 0x44a   : > { %v4206_v22 = vmax.f32 %v4149_v20, 0.0  ;;  %v2561_v23 = vadd.f32 %v17936_v12, %v2560_v21  ;;  %v14570_v24 = vpop.f32.mrb[171].mxu0 }
 0x44b   : > { %v2949_v25 = vld [vmem:[#allocation8 + $0x680] ss:$4 sm:$0xff]  ;;  %v3063_v26 = vld [vmem:[#allocation8 + $0x681] ss:$4 sm:$0xff]  ;;  %v3234_v28 = vld [vmem:[#allocation8 + $0x682] ss:$4 sm:$0xff] }
 0x44c   : > { %4322 = vst.msk [vmem:[#allocation2 + $0x19d] sm:$0xff] %vm2619_vm2, %v4206_v22  ;;  %v3124_v27 = vmax.f32 %v2949_v25, %v3063_v26  ;;  %2833 = vst.msk [vmem:[#allocation8 + $0x6a8] sm:$0xff] %vm2619_vm2, %v2561_v23  ;;  %v3405_v33 = vld [vmem:[#allocation8 + $0x683] ss:$4 sm:$0xff] }
 0x44d   : > { %v2565_v29 = vpop.f32.mrb[172].mxu0 }
 0x44e   : > { %v3295_v30 = vmax.f32 %v3124_v27, %v3234_v28  ;;  %v2566_v31 = vadd.f32 %v17936_v12, %v2565_v29  ;;  %v14573_v32 = vpop.f32.mrb[173].mxu0 }
 0x44f   : > { %v3576_v35 = vld [vmem:[#allocation8 + $0x684] ss:$4 sm:$0xff]  ;;  %v3747_v40 = vld [vmem:[#allocation8 + $0x685] ss:$4 sm:$0xff]  ;;  %v3918_v43 = vld [vmem:[#allocation8 + $0x686] ss:$4 sm:$0xff] }
 0x450   : > { %v3466_v34 = vmax.f32 %v3295_v30, %v3405_v33  ;;  %2834 = vst.msk [vmem:[#allocation8 + $0x6b0] sm:$0xff] %vm2619_vm2, %v2566_v31  ;;  %v4089_v48 = vld [vmem:[#allocation8 + $0x687] ss:$4 sm:$0xff] }
 0x451   : > { %v2570_v36 = vpop.f32.mrb[174].mxu0 }
 0x452   : > { %v3637_v37 = vmax.f32 %v3466_v34, %v3576_v35  ;;  %v2571_v38 = vadd.f32 %v17936_v12, %v2570_v36  ;;  %v14576_v39 = vpop.f32.mrb[175].mxu0 }
 0x453   : > { %v4436_v41 = vld [vmem:[#allocation2 + $0x191] ss:$2 sm:$0xff] }
 0x454   : > { %v3808_v42 = vmax.f32 %v3637_v37, %v3747_v40  ;;  %2835 = vst.msk [vmem:[#allocation8 + $0x6b8] sm:$0xff] %vm2619_vm2, %v2571_v38  ;;  %14643 = vmatmul.mubr.msk.f32.gmra.mrb[24].mxu1 %vm2619_vm2, %v4436_v41 }
 0x455   : > { %v2575_v44 = vpop.f32.mrb[176].mxu0 }
 0x456   : > { %v3979_v45 = vmax.f32 %v3808_v42, %v3918_v43  ;;  %v2576_v46 = vadd.f32 %v17936_v12, %v2575_v44  ;;  %v14579_v47 = vpop.f32.mrb[177].mxu0 }
 0x458   : > { %v4150_v49 = vmax.f32 %v3979_v45, %v4089_v48  ;;  %2836 = vst.msk [vmem:[#allocation8 + $0x6c0] sm:$0xff] %vm2619_vm2, %v2576_v46 }
 0x459   : > { %v2580_v50 = vpop.f32.mrb[178].mxu0 }
 0x45a   : > { %v4207_v52 = vmax.f32 %v4150_v49, 0.0  ;;  %v2581_v53 = vadd.f32 %v17936_v12, %v2580_v50  ;;  %v14582_v54 = vpop.f32.mrb[179].mxu0 }
 0x45b   : > { %v2951_v59 = vld [vmem:[#allocation8 + $0x6a0] ss:$4 sm:$0xff]  ;;  %v3065_v56 = vld [vmem:[#allocation8 + $0x6a1] ss:$4 sm:$0xff]  ;;  %v3236_v58 = vld [vmem:[#allocation8 + $0x6a2] ss:$4 sm:$0xff] }
 0x45c   : > { %4323 = vst.msk [vmem:[#allocation2 + $0x1a5] sm:$0xff] %vm2619_vm2, %v4207_v52  ;;  %v3125_v57 = vmax.f32 %v2951_v59, %v3065_v56  ;;  %2837 = vst.msk [vmem:[#allocation8 + $0x6c8] sm:$0xff] %vm2619_vm2, %v2581_v53  ;;  %v3407_v0 = vld [vmem:[#allocation8 + $0x6a3] ss:$4 sm:$0xff] }
 0x45d   : > { %v2585_v60 = vpop.f32.mrb[180].mxu0 }
 0x45e   : > { %v3296_v61 = vmax.f32 %v3125_v57, %v3236_v58  ;;  %v2586_v62 = vadd.f32 %v17936_v12, %v2585_v60  ;;  %v14585_v63 = vpop.f32.mrb[181].mxu0 }
 0x45f   : > { %v3578_v3 = vld [vmem:[#allocation8 + $0x6a4] ss:$4 sm:$0xff]  ;;  %v3749_v9 = vld [vmem:[#allocation8 + $0x6a5] ss:$4 sm:$0xff]  ;;  %v3920_v11 = vld [vmem:[#allocation8 + $0x6a6] ss:$4 sm:$0xff] }
 0x460   : > { %v3467_v1 = vmax.f32 %v3296_v61, %v3407_v0  ;;  %2838 = vst.msk [vmem:[#allocation8 + $0x6d0] sm:$0xff] %vm2619_vm2, %v2586_v62  ;;  %v4091_v16 = vld [vmem:[#allocation8 + $0x6a7] ss:$4 sm:$0xff] }
 0x461   : > { %v2590_v5 = vpop.f32.mrb[182].mxu0 }
 0x462   : > { %v3638_v6 = vmax.f32 %v3467_v1, %v3578_v3  ;;  %v2591_v7 = vadd.f32 %v17936_v12, %v2590_v5  ;;  %v14588_v8 = vpop.f32.mrb[183].mxu0 }
 0x464   : > { %v3809_v10 = vmax.f32 %v3638_v6, %v3749_v9  ;;  %2839 = vst.msk [vmem:[#allocation8 + $0x6d8] sm:$0xff] %vm2619_vm2, %v2591_v7 }
 0x465   : > { %v2595_v13 = vpop.f32.mrb[184].mxu0 }
 0x466   : > { %v3980_v14 = vmax.f32 %v3809_v10, %v3920_v11  ;;  %v2596_v55 = vadd.f32 %v17936_v12, %v2595_v13  ;;  %v14591_v15 = vpop.f32.mrb[185].mxu0 }
 0x468   : > { %v4151_v17 = vmax.f32 %v3980_v14, %v4091_v16  ;;  %2840 = vst.msk [vmem:[#allocation8 + $0x6e0] sm:$0xff] %vm2619_vm2, %v2596_v55 }
 0x469   : > { %v2600_v18 = vpop.f32.mrb[186].mxu0 }
 0x46a   : > { %v4208_v19 = vmax.f32 %v4151_v17, 0.0  ;;  %v2601_v20 = vadd.f32 %v17936_v12, %v2600_v18  ;;  %v14594_v21 = vpop.f32.mrb[187].mxu0 }
 0x46b   : > { %v2953_v22 = vld [vmem:[#allocation8 + $0x6c0] ss:$4 sm:$0xff]  ;;  %v3067_v23 = vld [vmem:[#allocation8 + $0x6c1] ss:$4 sm:$0xff]  ;;  %v3238_v25 = vld [vmem:[#allocation8 + $0x6c2] ss:$4 sm:$0xff] }
 0x46c   : > { %4324 = vst.msk [vmem:[#allocation2 + $0x1ad] sm:$0xff] %vm2619_vm2, %v4208_v19  ;;  %v3126_v24 = vmax.f32 %v2953_v22, %v3067_v23  ;;  %2841 = vst.msk [vmem:[#allocation8 + $0x6e8] sm:$0xff] %vm2619_vm2, %v2601_v20  ;;  %v3409_v30 = vld [vmem:[#allocation8 + $0x6c3] ss:$4 sm:$0xff]  ;;  %v4329_v20 = vld [vmem:[#allocation2] ss:$2 sm:$0xff] }
 0x46d   : > { %v2605_v26 = vpop.f32.mrb[188].mxu0  ;;  %v4331_v21 = vld [vmem:[#allocation2 + $0x10] ss:$2 sm:$0xff]  ;;  %v4333_v23 = vld [vmem:[#allocation2 + $0x20] ss:$2 sm:$0xff] }
 0x46e   : > { %v3297_v27 = vmax.f32 %v3126_v24, %v3238_v25  ;;  %v2606_v28 = vadd.f32 %v17936_v12, %v2605_v26  ;;  %v14597_v29 = vpop.f32.mrb[189].mxu0  ;;  %v5450_v22 = vld [vmem:[%s19529_s3 + $0x18] sm:$0xff]  ;;  %v4337_v25 = vld [vmem:[#allocation2 + $0x40] ss:$2 sm:$0xff] }
 0x46f   : > { %v3580_v32 = vld [vmem:[#allocation8 + $0x6c4] ss:$4 sm:$0xff]  ;;  %v3751_v37 = vld [vmem:[#allocation8 + $0x6c5] ss:$4 sm:$0xff]  ;;  %v3922_v40 = vld [vmem:[#allocation8 + $0x6c6] ss:$4 sm:$0xff] }
 0x470   : > { %v3468_v31 = vmax.f32 %v3297_v27, %v3409_v30  ;;  %2842 = vst.msk [vmem:[#allocation8 + $0x6f0] sm:$0xff] %vm2619_vm2, %v2606_v28  ;;  %v4093_v45 = vld [vmem:[#allocation8 + $0x6c7] ss:$4 sm:$0xff]  ;;  %v4335_v24 = vld [vmem:[#allocation2 + $0x30] ss:$2 sm:$0xff] }
 0x471   : > { %v2610_v33 = vpop.f32.mrb[190].mxu0  ;;  %v4339_v26 = vld [vmem:[#allocation2 + $0x50] ss:$2 sm:$0xff]  ;;  %v4341_v27 = vld [vmem:[#allocation2 + $0x60] ss:$2 sm:$0xff] }
 0x472   : > { %v3639_v34 = vmax.f32 %v3468_v31, %v3580_v32  ;;  %v2611_v35 = vadd.f32 %v17936_v12, %v2610_v33  ;;  %v14600_v36 = vpop.f32.mrb[191].mxu0  ;;  %v4343_v28 = vld [vmem:[#allocation2 + $0x70] ss:$2 sm:$0xff]  ;;  %v4345_v29 = vld [vmem:[#allocation2 + $0x80] ss:$2 sm:$0xff] }
 0x473   : > { %v4438_v38 = vld [vmem:[#allocation2 + $0x1a1] ss:$2 sm:$0xff]  ;;  %v4349_v30 = vld [vmem:[#allocation2 + $0xa0] ss:$2 sm:$0xff]  ;;  %v4351_v31 = vld [vmem:[#allocation2 + $0xb0] ss:$2 sm:$0xff] }
 0x474   : > { %v3810_v39 = vmax.f32 %v3639_v34, %v3751_v37  ;;  %2843 = vst.msk [vmem:[#allocation8 + $0x6f8] sm:$0xff] %vm2619_vm2, %v2611_v35  ;;  %14645 = vmatprep.mubr.msk.f32.mxu1 %vm2619_vm2, %v4438_v38  ;;  %v4353_v32 = vld [vmem:[#allocation2 + $0xc0] ss:$2 sm:$0xff]  ;;  %v4355_v33 = vld [vmem:[#allocation2 + $0xd0] ss:$2 sm:$0xff] }
 0x475   : > { %v2615_v41 = vpop.f32.mrb[192].mxu0  ;;  %v4357_v34 = vld [vmem:[#allocation2 + $0xe0] ss:$2 sm:$0xff]  ;;  %v4359_v35 = vld [vmem:[#allocation2 + $0xf0] ss:$2 sm:$0xff] }
 0x476   : > { %v3981_v42 = vmax.f32 %v3810_v39, %v3922_v40  ;;  %v2616_v43 = vadd.f32 %v17936_v12, %v2615_v41  ;;  %v14603_v44 = vpop.f32.mrb[193].mxu0  ;;  %v4361_v36 = vld [vmem:[#allocation2 + $0x100] ss:$2 sm:$0xff]  ;;  %v4363_v37 = vld [vmem:[#allocation2 + $0x110] ss:$2 sm:$0xff] }
 0x477   : > { %v4365_v38 = vld [vmem:[#allocation2 + $0x120] ss:$2 sm:$0xff]  ;;  %v4367_v39 = vld [vmem:[#allocation2 + $0x130] ss:$2 sm:$0xff] }
 0x478   : > { %v4152_v46 = vmax.f32 %v3981_v42, %v4093_v45  ;;  %2844 = vst.msk [vmem:[#allocation8 + $0x700] sm:$0xff] %vm2619_vm2, %v2616_v43  ;;  %v4369_v40 = vld [vmem:[#allocation2 + $0x140] ss:$2 sm:$0xff]  ;;  %v4371_v41 = vld [vmem:[#allocation2 + $0x150] ss:$2 sm:$0xff] }
 0x479   : > { %v4373_v42 = vld [vmem:[#allocation2 + $0x160] ss:$2 sm:$0xff]  ;;  %v4375_v43 = vld [vmem:[#allocation2 + $0x170] ss:$2 sm:$0xff] }
 0x47a   : > { %v4209_v47 = vmax.f32 %v4152_v46, 0.0  ;;  %v4377_v44 = vld [vmem:[#allocation2 + $0x180] ss:$2 sm:$0xff]  ;;  %v4379_v45 = vld [vmem:[#allocation2 + $0x190] ss:$2 sm:$0xff] }
 0x47b   : > { %v2955_v48 = vld [vmem:[#allocation8 + $0x6e0] ss:$4 sm:$0xff]  ;;  %v3069_v49 = vld [vmem:[#allocation8 + $0x6e1] ss:$4 sm:$0xff]  ;;  %v3240_v52 = vld [vmem:[#allocation8 + $0x6e2] ss:$4 sm:$0xff] }
 0x47c   : > { %4325 = vst.msk [vmem:[#allocation2 + $0x1b5] sm:$0xff] %vm2619_vm2, %v4209_v47  ;;  %v3127_v50 = vmax.f32 %v2955_v48, %v3069_v49  ;;  %v3411_v54 = vld [vmem:[#allocation8 + $0x6e3] ss:$4 sm:$0xff]  ;;  %v4381_v46 = vld [vmem:[#allocation2 + $0x1a0] ss:$2 sm:$0xff] }
 0x47d   : > { %v5021_v48 = vld [vmem:[#allocation2 + $0x2] ss:$2 sm:$0xff]  ;;  %v5023_v49 = vld [vmem:[#allocation2 + $0x12] ss:$2 sm:$0xff] }
 0x47e   : > { %v3298_v53 = vmax.f32 %v3127_v50, %v3240_v52  ;;  %v5824_v50 = vld [vmem:[%s19529_s3 + $0x20] sm:$0xff] }
 0x47f   : > { %v2957_v59 = vld [vmem:[#allocation8 + $0x700] ss:$4 sm:$0x1]  ;;  %v3071_v56 = vld [vmem:[#allocation8 + $0x701] ss:$4 sm:$0x1] }
 0x480   : > { %v3469_v57 = vmax.f32 %v3298_v53, %v3411_v54  ;;  %v3128_v58 = vmax.f32 %v2957_v59, %v3071_v56  ;;  %v3242_v60 = vld [vmem:[#allocation8 + $0x702] ss:$4 sm:$0x1]  ;;  %v3582_v12 = vld [vmem:[#allocation8 + $0x6e4] ss:$4 sm:$0xff] }
 0x481   : > { %v3413_v63 = vld [vmem:[#allocation8 + $0x703] ss:$4 sm:$0x1]  ;;  %v3753_v0 = vld [vmem:[#allocation8 + $0x6e5] ss:$4 sm:$0xff] }
 0x482   : > { %v3299_v61 = vmax.f32 %v3128_v58, %v3242_v60  ;;  %v3640_v62 = vmax.f32 %v3469_v57, %v3582_v12  ;;  %v3584_v5 = vld [vmem:[#allocation8 + $0x704] ss:$4 sm:$0x1]  ;;  %v3924_v6 = vld [vmem:[#allocation8 + $0x6e6] ss:$4 sm:$0xff] }
 0x483   : > { %v3755_v9 = vld [vmem:[#allocation8 + $0x705] ss:$4 sm:$0x1]  ;;  %v4095_v10 = vld [vmem:[#allocation8 + $0x6e7] ss:$4 sm:$0xff] }
 0x484   : > { %v3470_v1 = vmax.f32 %v3299_v61, %v3413_v63  ;;  %v3811_v3 = vmax.f32 %v3640_v62, %v3753_v0  ;;  %v3926_v14 = vld [vmem:[#allocation8 + $0x706] ss:$4 sm:$0x1]  ;;  %v4097_v16 = vld [vmem:[#allocation8 + $0x707] ss:$4 sm:$0x1] }
 0x485   : > { %v5025_v52 = vld [vmem:[#allocation2 + $0x22] ss:$2 sm:$0xff]  ;;  %v5027_v53 = vld [vmem:[#allocation2 + $0x32] ss:$2 sm:$0xff] }
 0x486   : > { %v3641_v7 = vmax.f32 %v3470_v1, %v3584_v5  ;;  %v3982_v8 = vmax.f32 %v3811_v3, %v3924_v6  ;;  %v5029_v54 = vld [vmem:[#allocation2 + $0x42] ss:$2 sm:$0xff]  ;;  %v5031_v59 = vld [vmem:[#allocation2 + $0x52] ss:$2 sm:$0xff] }
 0x487   : > { %v5033_v56 = vld [vmem:[#allocation2 + $0x62] ss:$2 sm:$0xff]  ;;  %v5035_v57 = vld [vmem:[#allocation2 + $0x72] ss:$2 sm:$0xff] }
 0x488   : > { %v3812_v11 = vmax.f32 %v3641_v7, %v3755_v9  ;;  %v4153_v13 = vmax.f32 %v3982_v8, %v4095_v10  ;;  %v5037_v58 = vld [vmem:[#allocation2 + $0x82] ss:$2 sm:$0xff]  ;;  %v5039_v60 = vld [vmem:[#allocation2 + $0x92] ss:$2 sm:$0xff] }
 0x489   : > { %v5041_v12 = vld [vmem:[#allocation2 + $0xa2] ss:$2 sm:$0xff]  ;;  %v5043_v61 = vld [vmem:[#allocation2 + $0xb2] ss:$2 sm:$0xff] }
 0x48a   : > { %v3983_v55 = vmax.f32 %v3812_v11, %v3926_v14  ;;  %v4210_v15 = vmax.f32 %v4153_v13, 0.0  ;;  %v5045_v62 = vld [vmem:[#allocation2 + $0xc2] ss:$2 sm:$0xff]  ;;  %v5047_v63 = vld [vmem:[#allocation2 + $0xd2] ss:$2 sm:$0xff] }
 0x48b   : > { %v5049_v0 = vld [vmem:[#allocation2 + $0xe2] ss:$2 sm:$0xff]  ;;  %v5051_v1 = vld [vmem:[#allocation2 + $0xf2] ss:$2 sm:$0xff] }
 0x48c   : > { %v4154_v17 = vmax.f32 %v3983_v55, %v4097_v16  ;;  %4326 = vst.msk [vmem:[#allocation2 + $0x1bd] sm:$0xff] %vm2619_vm2, %v4210_v15  ;;  %v5053_v3 = vld [vmem:[#allocation2 + $0x102] ss:$2 sm:$0xff]  ;;  %v5055_v5 = vld [vmem:[#allocation2 + $0x112] ss:$2 sm:$0xff] }
 0x48d   : > { %v5057_v6 = vld [vmem:[#allocation2 + $0x122] ss:$2 sm:$0xff]  ;;  %v5059_v7 = vld [vmem:[#allocation2 + $0x132] ss:$2 sm:$0xff]  ;;  %v5395_v16 = vld [vmem:[#allocation2 + $0x3] ss:$2 sm:$0xff] }
 0x48e   : > { %v4211_v18 = vmax.f32 %v4154_v17, 0.0  ;;  %v5061_v8 = vld [vmem:[#allocation2 + $0x142] ss:$2 sm:$0xff]  ;;  %v5063_v9 = vld [vmem:[#allocation2 + $0x152] ss:$2 sm:$0xff] }
 0x48f   : > { %v5065_v10 = vld [vmem:[#allocation2 + $0x162] ss:$2 sm:$0xff]  ;;  %v5067_v11 = vld [vmem:[#allocation2 + $0x172] ss:$2 sm:$0xff]  ;;  %v5397_v17 = vld [vmem:[#allocation2 + $0x13] ss:$2 sm:$0xff] }
 0x490   : > { %4328 = vst.msk [vmem:[#allocation2 + $0x1c5] sm:$0x1] %vm4327_vm4, %v4211_v18  ;;  %v5069_v13 = vld [vmem:[#allocation2 + $0x182] ss:$2 sm:$0xff]  ;;  %v5071_v14 = vld [vmem:[#allocation2 + $0x192] ss:$2 sm:$0xff] }
 0x491   : > { %v5073_v55 = vld [vmem:[#allocation2 + $0x1a2] ss:$2 sm:$0xff]  ;;  %vm11796_vm4 = vcmask 520192  }
 0x492   : > { %v6198_v18 = vld [vmem:[%s19529_s3 + $0x28] sm:$0xff] }
 0x493   : > { %v4440_v19 = vld [vmem:[#allocation2 + $0x1b1] ss:$2 sm:$0xff]  ;;  %v4383_v47 = vld [vmem:[#allocation2 + $0x1b0] ss:$2 sm:$0xff] }
 0x494   : > { %14646 = vmatmul.mubr.msk.f32.gmra.mrb[26].mxu1 %vm2619_vm2, %v4440_v19  ;;  %v5075_v15 = vld [vmem:[#allocation2 + $0x1b2] ss:$2 sm:$0xff]  ;;  %v5399_v19 = vld [vmem:[#allocation2 + $0x23] ss:$2 sm:$0xff] }
 0x495   : > { %14650 = vmatprep.mubr.msk.f32.mxu1 %vm2619_vm2, %v4329_v20  ;;  %v5401_v20 = vld [vmem:[#allocation2 + $0x33] ss:$2 sm:$0xff] }
 0x498   : > { %14651 = vmatmul.mubr.msk.f32.vlgmr.msra.gmra.mrb[0].mxu1 %vm2619_vm2, %v4331_v21  ;;  %v5403_v21 = vld [vmem:[#allocation2 + $0x43] ss:$2 sm:$0xff] }
 0x499   : > { %14693 = vmatpush3.msra.mxu1 %v17978_v51  ;;  %14653 = vmatprep.mubr.msk.f32.mxu1 %vm2619_vm2, %v4333_v23  ;;  %v4347_v51 = vld [vmem:[#allocation2 + $0x90] ss:$2 sm:$0xff]  ;;  %v5407_v23 = vld [vmem:[#allocation2 + $0x63] ss:$2 sm:$0xff] }
 0x49a   : > { %14736 = vmatprep.subr.mxu1 %v5450_v22 }
 0x49c   : > { %14654 = vmatmul.mubr.msk.f32.gmra.mrb[2].mxu1 %vm2619_vm2, %v4335_v24  ;;  %v5409_v24 = vld [vmem:[#allocation2 + $0x73] ss:$2 sm:$0xff] }
 0x49d   : > { %14656 = vmatprep.mubr.msk.f32.mxu1 %vm2619_vm2, %v4337_v25  ;;  %v5411_v25 = vld [vmem:[#allocation2 + $0x83] ss:$2 sm:$0xff] }
 0x4a0   : > { %14657 = vmatmul.mubr.msk.f32.gmra.mrb[4].mxu1 %vm2619_vm2, %v4339_v26  ;;  %v5413_v26 = vld [vmem:[#allocation2 + $0x93] ss:$2 sm:$0xff] }
 0x4a1   : > { %14659 = vmatprep.mubr.msk.f32.mxu1 %vm2619_vm2, %v4341_v27  ;;  %v5415_v27 = vld [vmem:[#allocation2 + $0xa3] ss:$2 sm:$0xff] }
 0x4a4   : > { %14660 = vmatmul.mubr.msk.f32.gmra.mrb[6].mxu1 %vm2619_vm2, %v4343_v28  ;;  %v5417_v28 = vld [vmem:[#allocation2 + $0xb3] ss:$2 sm:$0xff] }
 0x4a5   : > { %14662 = vmatprep.mubr.msk.f32.mxu1 %vm2619_vm2, %v4345_v29  ;;  %v5419_v29 = vld [vmem:[#allocation2 + $0xc3] ss:$2 sm:$0xff] }
 0x4a8   : > { %14663 = vmatmul.mubr.msk.f32.gmra.mrb[8].mxu1 %vm2619_vm2, %v4347_v51  ;;  %v5421_v51 = vld [vmem:[#allocation2 + $0xd3] ss:$2 sm:$0xff] }
 0x4a9   : > { %14665 = vmatprep.mubr.msk.f32.mxu1 %vm2619_vm2, %v4349_v30  ;;  %v5423_v30 = vld [vmem:[#allocation2 + $0xe3] ss:$2 sm:$0xff] }
 0x4ac   : > { %14666 = vmatmul.mubr.msk.f32.gmra.mrb[10].mxu1 %vm2619_vm2, %v4351_v31  ;;  %v5425_v31 = vld [vmem:[#allocation2 + $0xf3] ss:$2 sm:$0xff] }
 0x4ad   : > { %14668 = vmatprep.mubr.msk.f32.mxu1 %vm2619_vm2, %v4353_v32  ;;  %v5427_v32 = vld [vmem:[#allocation2 + $0x103] ss:$2 sm:$0xff] }
 0x4b0   : > { %14669 = vmatmul.mubr.msk.f32.gmra.mrb[12].mxu1 %vm2619_vm2, %v4355_v33  ;;  %v5429_v33 = vld [vmem:[#allocation2 + $0x113] ss:$2 sm:$0xff] }
 0x4b1   : > { %14671 = vmatprep.mubr.msk.f32.mxu1 %vm2619_vm2, %v4357_v34  ;;  %v5431_v34 = vld [vmem:[#allocation2 + $0x123] ss:$2 sm:$0xff] }
 0x4b4   : > { %14672 = vmatmul.mubr.msk.f32.gmra.mrb[14].mxu1 %vm2619_vm2, %v4359_v35  ;;  %v5433_v35 = vld [vmem:[#allocation2 + $0x133] ss:$2 sm:$0xff] }
 0x4b5   : > { %14674 = vmatprep.mubr.msk.f32.mxu1 %vm2619_vm2, %v4361_v36  ;;  %v5435_v36 = vld [vmem:[#allocation2 + $0x143] ss:$2 sm:$0xff] }
 0x4b8   : > { %14675 = vmatmul.mubr.msk.f32.gmra.mrb[16].mxu1 %vm2619_vm2, %v4363_v37  ;;  %v5437_v37 = vld [vmem:[#allocation2 + $0x153] ss:$2 sm:$0xff] }
 0x4b9   : > { %14677 = vmatprep.mubr.msk.f32.mxu1 %vm2619_vm2, %v4365_v38  ;;  %v5439_v38 = vld [vmem:[#allocation2 + $0x163] ss:$2 sm:$0xff] }
 0x4bc   : > { %14678 = vmatmul.mubr.msk.f32.gmra.mrb[18].mxu1 %vm2619_vm2, %v4367_v39  ;;  %v5441_v39 = vld [vmem:[#allocation2 + $0x173] ss:$2 sm:$0xff] }
 0x4bd   : > { %14680 = vmatprep.mubr.msk.f32.mxu1 %vm2619_vm2, %v4369_v40  ;;  %v5443_v40 = vld [vmem:[#allocation2 + $0x183] ss:$2 sm:$0xff] }
 0x4c0   : > { %14681 = vmatmul.mubr.msk.f32.gmra.mrb[20].mxu1 %vm2619_vm2, %v4371_v41  ;;  %v5445_v41 = vld [vmem:[#allocation2 + $0x193] ss:$2 sm:$0xff] }
 0x4c1   : > { %14683 = vmatprep.mubr.msk.f32.mxu1 %vm2619_vm2, %v4373_v42  ;;  %v5447_v42 = vld [vmem:[#allocation2 + $0x1a3] ss:$2 sm:$0xff] }
 0x4c4   : > { %14684 = vmatmul.mubr.msk.f32.gmra.mrb[22].mxu1 %vm2619_vm2, %v4375_v43  ;;  %v5449_v43 = vld [vmem:[#allocation2 + $0x1b3] ss:$2 sm:$0xff] }
 0x4c5   : > { %14686 = vmatprep.mubr.msk.f32.mxu1 %vm2619_vm2, %v4377_v44  ;;  %v5769_v44 = vld [vmem:[#allocation2 + $0x4] ss:$2 sm:$0xff] }
 0x4c8   : > { %14687 = vmatmul.mubr.msk.f32.gmra.mrb[24].mxu1 %vm2619_vm2, %v4379_v45  ;;  %v5771_v45 = vld [vmem:[#allocation2 + $0x14] ss:$2 sm:$0xff] }
 0x4c9   : > { %14689 = vmatprep.mubr.msk.f32.mxu1 %vm2619_vm2, %v4381_v46  ;;  %v6572_v46 = vld [vmem:[%s19529_s3 + $0x30] sm:$0xff] }
 0x4cc   : > { %14690 = vmatmul.mubr.msk.f32.gmra.mrb[26].mxu1 %vm2619_vm2, %v4383_v47  ;;  %v5773_v47 = vld [vmem:[#allocation2 + $0x24] ss:$2 sm:$0xff] }
 0x4cd   : > { %14694 = vmatprep.mubr.msk.f32.mxu1 %vm2619_vm2, %v5021_v48  ;;  %v5775_v48 = vld [vmem:[#allocation2 + $0x34] ss:$2 sm:$0xff] }
 0x4d0   : > { %14695 = vmatmul.mubr.msk.f32.vlgmr.msra.gmra.mrb[0].mxu1 %vm2619_vm2, %v5023_v49  ;;  %v5777_v49 = vld [vmem:[#allocation2 + $0x44] ss:$2 sm:$0xff] }
 0x4d1   : > { %14737 = vmatpush3.msra.mxu1 %v5450_v22  ;;  %14697 = vmatprep.mubr.msk.f32.mxu1 %vm2619_vm2, %v5025_v52  ;;  %v5405_v22 = vld [vmem:[#allocation2 + $0x53] ss:$2 sm:$0xff]  ;;  %v5781_v52 = vld [vmem:[#allocation2 + $0x64] ss:$2 sm:$0xff] }
 0x4d2   : > { %14780 = vmatprep.subr.mxu1 %v5824_v50 }
 0x4d4   : > { %14698 = vmatmul.mubr.msk.f32.gmra.mrb[2].mxu1 %vm2619_vm2, %v5027_v53  ;;  %v5783_v53 = vld [vmem:[#allocation2 + $0x74] ss:$2 sm:$0xff] }
 0x4d5   : > { %14700 = vmatprep.mubr.msk.f32.mxu1 %vm2619_vm2, %v5029_v54  ;;  %v5785_v54 = vld [vmem:[#allocation2 + $0x84] ss:$2 sm:$0xff] }
 0x4d8   : > { %14701 = vmatmul.mubr.msk.f32.gmra.mrb[4].mxu1 %vm2619_vm2, %v5031_v59  ;;  %v5787_v59 = vld [vmem:[#allocation2 + $0x94] ss:$2 sm:$0xff] }
 0x4d9   : > { %14703 = vmatprep.mubr.msk.f32.mxu1 %vm2619_vm2, %v5033_v56  ;;  %v5789_v56 = vld [vmem:[#allocation2 + $0xa4] ss:$2 sm:$0xff] }
 0x4dc   : > { %14704 = vmatmul.mubr.msk.f32.gmra.mrb[6].mxu1 %vm2619_vm2, %v5035_v57  ;;  %v5791_v57 = vld [vmem:[#allocation2 + $0xb4] ss:$2 sm:$0xff] }
 0x4dd   : > { %14706 = vmatprep.mubr.msk.f32.mxu1 %vm2619_vm2, %v5037_v58  ;;  %v5793_v58 = vld [vmem:[#allocation2 + $0xc4] ss:$2 sm:$0xff] }
 0x4e0   : > { %14707 = vmatmul.mubr.msk.f32.gmra.mrb[8].mxu1 %vm2619_vm2, %v5039_v60  ;;  %v5795_v60 = vld [vmem:[#allocation2 + $0xd4] ss:$2 sm:$0xff] }
 0x4e1   : > { %14709 = vmatprep.mubr.msk.f32.mxu1 %vm2619_vm2, %v5041_v12  ;;  %v5797_v12 = vld [vmem:[#allocation2 + $0xe4] ss:$2 sm:$0xff] }
 0x4e4   : > { %14710 = vmatmul.mubr.msk.f32.gmra.mrb[10].mxu1 %vm2619_vm2, %v5043_v61  ;;  %v5799_v61 = vld [vmem:[#allocation2 + $0xf4] ss:$2 sm:$0xff] }
 0x4e5   : > { %14712 = vmatprep.mubr.msk.f32.mxu1 %vm2619_vm2, %v5045_v62  ;;  %v5801_v62 = vld [vmem:[#allocation2 + $0x104] ss:$2 sm:$0xff] }
 0x4e8   : > { %14713 = vmatmul.mubr.msk.f32.gmra.mrb[12].mxu1 %vm2619_vm2, %v5047_v63  ;;  %v5803_v63 = vld [vmem:[#allocation2 + $0x114] ss:$2 sm:$0xff] }
 0x4e9   : > { %14715 = vmatprep.mubr.msk.f32.mxu1 %vm2619_vm2, %v5049_v0  ;;  %v5805_v0 = vld [vmem:[#allocation2 + $0x124] ss:$2 sm:$0xff] }
 0x4ec   : > { %14716 = vmatmul.mubr.msk.f32.gmra.mrb[14].mxu1 %vm2619_vm2, %v5051_v1  ;;  %v5807_v1 = vld [vmem:[#allocation2 + $0x134] ss:$2 sm:$0xff] }
 0x4ed   : > { %14718 = vmatprep.mubr.msk.f32.mxu1 %vm2619_vm2, %v5053_v3  ;;  %v5809_v3 = vld [vmem:[#allocation2 + $0x144] ss:$2 sm:$0xff] }
 0x4f0   : > { %14719 = vmatmul.mubr.msk.f32.gmra.mrb[16].mxu1 %vm2619_vm2, %v5055_v5  ;;  %v5811_v5 = vld [vmem:[#allocation2 + $0x154] ss:$2 sm:$0xff] }
 0x4f1   : > { %14721 = vmatprep.mubr.msk.f32.mxu1 %vm2619_vm2, %v5057_v6  ;;  %v5813_v6 = vld [vmem:[#allocation2 + $0x164] ss:$2 sm:$0xff] }
 0x4f4   : > { %14722 = vmatmul.mubr.msk.f32.gmra.mrb[18].mxu1 %vm2619_vm2, %v5059_v7  ;;  %v5815_v7 = vld [vmem:[#allocation2 + $0x174] ss:$2 sm:$0xff] }
 0x4f5   : > { %14724 = vmatprep.mubr.msk.f32.mxu1 %vm2619_vm2, %v5061_v8  ;;  %v5817_v8 = vld [vmem:[#allocation2 + $0x184] ss:$2 sm:$0xff] }
 0x4f8   : > { %14725 = vmatmul.mubr.msk.f32.gmra.mrb[20].mxu1 %vm2619_vm2, %v5063_v9  ;;  %v5819_v9 = vld [vmem:[#allocation2 + $0x194] ss:$2 sm:$0xff] }
 0x4f9   : > { %14727 = vmatprep.mubr.msk.f32.mxu1 %vm2619_vm2, %v5065_v10  ;;  %v5821_v10 = vld [vmem:[#allocation2 + $0x1a4] ss:$2 sm:$0xff] }
 0x4fc   : > { %14728 = vmatmul.mubr.msk.f32.gmra.mrb[22].mxu1 %vm2619_vm2, %v5067_v11  ;;  %v5823_v11 = vld [vmem:[#allocation2 + $0x1b4] ss:$2 sm:$0xff] }
 0x4fd   : > { %14730 = vmatprep.mubr.msk.f32.mxu1 %vm2619_vm2, %v5069_v13  ;;  %v6143_v13 = vld [vmem:[#allocation2 + $0x5] ss:$2 sm:$0xff] }
 0x500   : > { %14731 = vmatmul.mubr.msk.f32.gmra.mrb[24].mxu1 %vm2619_vm2, %v5071_v14  ;;  %v6145_v14 = vld [vmem:[#allocation2 + $0x15] ss:$2 sm:$0xff] }
 0x501   : > { %14733 = vmatprep.mubr.msk.f32.mxu1 %vm2619_vm2, %v5073_v55  ;;  %v6946_v55 = vld [vmem:[%s19529_s3 + $0x38] sm:$0xff] }
 0x504   : > { %14734 = vmatmul.mubr.msk.f32.gmra.mrb[26].mxu1 %vm2619_vm2, %v5075_v15  ;;  %v6147_v15 = vld [vmem:[#allocation2 + $0x25] ss:$2 sm:$0xff] }
 0x505   : > { %14738 = vmatprep.mubr.msk.f32.mxu1 %vm2619_vm2, %v5395_v16  ;;  %v6149_v16 = vld [vmem:[#allocation2 + $0x35] ss:$2 sm:$0xff] }
 0x508   : > { %14739 = vmatmul.mubr.msk.f32.vlgmr.msra.gmra.mrb[0].mxu1 %vm2619_vm2, %v5397_v17  ;;  %v6151_v17 = vld [vmem:[#allocation2 + $0x45] ss:$2 sm:$0xff] }
 0x509   : > { %14781 = vmatpush3.msra.mxu1 %v5824_v50  ;;  %14741 = vmatprep.mubr.msk.f32.mxu1 %vm2619_vm2, %v5399_v19  ;;  %v5779_v50 = vld [vmem:[#allocation2 + $0x54] ss:$2 sm:$0xff]  ;;  %v6155_v19 = vld [vmem:[#allocation2 + $0x65] ss:$2 sm:$0xff] }
 0x50a   : > { %14824 = vmatprep.subr.mxu1 %v6198_v18 }
 0x50c   : > { %14742 = vmatmul.mubr.msk.f32.gmra.mrb[2].mxu1 %vm2619_vm2, %v5401_v20  ;;  %v6157_v20 = vld [vmem:[#allocation2 + $0x75] ss:$2 sm:$0xff] }
 0x50d   : > { %14744 = vmatprep.mubr.msk.f32.mxu1 %vm2619_vm2, %v5403_v21  ;;  %v6159_v21 = vld [vmem:[#allocation2 + $0x85] ss:$2 sm:$0xff] }
 0x510   : > { %14745 = vmatmul.mubr.msk.f32.gmra.mrb[4].mxu1 %vm2619_vm2, %v5405_v22  ;;  %v6161_v22 = vld [vmem:[#allocation2 + $0x95] ss:$2 sm:$0xff] }
 0x511   : > { %14747 = vmatprep.mubr.msk.f32.mxu1 %vm2619_vm2, %v5407_v23  ;;  %v6163_v23 = vld [vmem:[#allocation2 + $0xa5] ss:$2 sm:$0xff] }
 0x514   : > { %14748 = vmatmul.mubr.msk.f32.gmra.mrb[6].mxu1 %vm2619_vm2, %v5409_v24  ;;  %v6165_v24 = vld [vmem:[#allocation2 + $0xb5] ss:$2 sm:$0xff] }
 0x515   : > { %14750 = vmatprep.mubr.msk.f32.mxu1 %vm2619_vm2, %v5411_v25  ;;  %v6167_v25 = vld [vmem:[#allocation2 + $0xc5] ss:$2 sm:$0xff] }
 0x518   : > { %14751 = vmatmul.mubr.msk.f32.gmra.mrb[8].mxu1 %vm2619_vm2, %v5413_v26  ;;  %v6169_v26 = vld [vmem:[#allocation2 + $0xd5] ss:$2 sm:$0xff] }
 0x519   : > { %14753 = vmatprep.mubr.msk.f32.mxu1 %vm2619_vm2, %v5415_v27  ;;  %v6171_v27 = vld [vmem:[#allocation2 + $0xe5] ss:$2 sm:$0xff] }
 0x51c   : > { %14754 = vmatmul.mubr.msk.f32.gmra.mrb[10].mxu1 %vm2619_vm2, %v5417_v28  ;;  %v6173_v28 = vld [vmem:[#allocation2 + $0xf5] ss:$2 sm:$0xff] }
 0x51d   : > { %14756 = vmatprep.mubr.msk.f32.mxu1 %vm2619_vm2, %v5419_v29  ;;  %v6175_v29 = vld [vmem:[#allocation2 + $0x105] ss:$2 sm:$0xff] }
 0x520   : > { %14757 = vmatmul.mubr.msk.f32.gmra.mrb[12].mxu1 %vm2619_vm2, %v5421_v51  ;;  %v6177_v51 = vld [vmem:[#allocation2 + $0x115] ss:$2 sm:$0xff] }
 0x521   : > { %14759 = vmatprep.mubr.msk.f32.mxu1 %vm2619_vm2, %v5423_v30  ;;  %v6179_v30 = vld [vmem:[#allocation2 + $0x125] ss:$2 sm:$0xff] }
 0x524   : > { %14760 = vmatmul.mubr.msk.f32.gmra.mrb[14].mxu1 %vm2619_vm2, %v5425_v31  ;;  %v6181_v31 = vld [vmem:[#allocation2 + $0x135] ss:$2 sm:$0xff] }
 0x525   : > { %14762 = vmatprep.mubr.msk.f32.mxu1 %vm2619_vm2, %v5427_v32  ;;  %v6183_v32 = vld [vmem:[#allocation2 + $0x145] ss:$2 sm:$0xff] }
 0x528   : > { %14763 = vmatmul.mubr.msk.f32.gmra.mrb[16].mxu1 %vm2619_vm2, %v5429_v33  ;;  %v6185_v33 = vld [vmem:[#allocation2 + $0x155] ss:$2 sm:$0xff] }
 0x529   : > { %14765 = vmatprep.mubr.msk.f32.mxu1 %vm2619_vm2, %v5431_v34  ;;  %v6187_v34 = vld [vmem:[#allocation2 + $0x165] ss:$2 sm:$0xff] }
 0x52c   : > { %14766 = vmatmul.mubr.msk.f32.gmra.mrb[18].mxu1 %vm2619_vm2, %v5433_v35  ;;  %v6189_v35 = vld [vmem:[#allocation2 + $0x175] ss:$2 sm:$0xff] }
 0x52d   : > { %14768 = vmatprep.mubr.msk.f32.mxu1 %vm2619_vm2, %v5435_v36  ;;  %v6191_v36 = vld [vmem:[#allocation2 + $0x185] ss:$2 sm:$0xff] }
 0x530   : > { %14769 = vmatmul.mubr.msk.f32.gmra.mrb[20].mxu1 %vm2619_vm2, %v5437_v37  ;;  %v6193_v37 = vld [vmem:[#allocation2 + $0x195] ss:$2 sm:$0xff] }
 0x531   : > { %14771 = vmatprep.mubr.msk.f32.mxu1 %vm2619_vm2, %v5439_v38  ;;  %v6195_v38 = vld [vmem:[#allocation2 + $0x1a5] ss:$2 sm:$0xff] }
 0x534   : > { %14772 = vmatmul.mubr.msk.f32.gmra.mrb[22].mxu1 %vm2619_vm2, %v5441_v39  ;;  %v6197_v39 = vld [vmem:[#allocation2 + $0x1b5] ss:$2 sm:$0xff] }
 0x535   : > { %14774 = vmatprep.mubr.msk.f32.mxu1 %vm2619_vm2, %v5443_v40  ;;  %v6517_v40 = vld [vmem:[#allocation2 + $0x6] ss:$2 sm:$0xff] }
 0x538   : > { %14775 = vmatmul.mubr.msk.f32.gmra.mrb[24].mxu1 %vm2619_vm2, %v5445_v41  ;;  %v6519_v41 = vld [vmem:[#allocation2 + $0x16] ss:$2 sm:$0xff] }
 0x539   : > { %14777 = vmatprep.mubr.msk.f32.mxu1 %vm2619_vm2, %v5447_v42  ;;  %v7320_v42 = vld [vmem:[%s19529_s3 + $0x40] sm:$0xff] }
 0x53c   : > { %14778 = vmatmul.mubr.msk.f32.gmra.mrb[26].mxu1 %vm2619_vm2, %v5449_v43  ;;  %v6521_v43 = vld [vmem:[#allocation2 + $0x26] ss:$2 sm:$0xff] }
 0x53d   : > { %14782 = vmatprep.mubr.msk.f32.mxu1 %vm2619_vm2, %v5769_v44  ;;  %v6523_v44 = vld [vmem:[#allocation2 + $0x36] ss:$2 sm:$0xff] }
 0x540   : > { %14783 = vmatmul.mubr.msk.f32.vlgmr.msra.gmra.mrb[0].mxu1 %vm2619_vm2, %v5771_v45  ;;  %v6525_v45 = vld [vmem:[#allocation2 + $0x46] ss:$2 sm:$0xff] }
 0x541   : > { %14825 = vmatpush3.msra.mxu1 %v6198_v18  ;;  %14785 = vmatprep.mubr.msk.f32.mxu1 %vm2619_vm2, %v5773_v47  ;;  %v6153_v18 = vld [vmem:[#allocation2 + $0x55] ss:$2 sm:$0xff]  ;;  %v6529_v47 = vld [vmem:[#allocation2 + $0x66] ss:$2 sm:$0xff] }
 0x542   : > { %14868 = vmatprep.subr.mxu1 %v6572_v46 }
 0x544   : > { %14786 = vmatmul.mubr.msk.f32.gmra.mrb[2].mxu1 %vm2619_vm2, %v5775_v48  ;;  %v6531_v48 = vld [vmem:[#allocation2 + $0x76] ss:$2 sm:$0xff] }
 0x545   : > { %14788 = vmatprep.mubr.msk.f32.mxu1 %vm2619_vm2, %v5777_v49  ;;  %v6533_v49 = vld [vmem:[#allocation2 + $0x86] ss:$2 sm:$0xff] }
 0x548   : > { %14789 = vmatmul.mubr.msk.f32.gmra.mrb[4].mxu1 %vm2619_vm2, %v5779_v50  ;;  %v6535_v50 = vld [vmem:[#allocation2 + $0x96] ss:$2 sm:$0xff] }
 0x549   : > { %14791 = vmatprep.mubr.msk.f32.mxu1 %vm2619_vm2, %v5781_v52  ;;  %v6537_v52 = vld [vmem:[#allocation2 + $0xa6] ss:$2 sm:$0xff] }
 0x54c   : > { %14792 = vmatmul.mubr.msk.f32.gmra.mrb[6].mxu1 %vm2619_vm2, %v5783_v53  ;;  %v6539_v53 = vld [vmem:[#allocation2 + $0xb6] ss:$2 sm:$0xff] }
 0x54d   : > { %14794 = vmatprep.mubr.msk.f32.mxu1 %vm2619_vm2, %v5785_v54  ;;  %v6541_v54 = vld [vmem:[#allocation2 + $0xc6] ss:$2 sm:$0xff] }
 0x550   : > { %14795 = vmatmul.mubr.msk.f32.gmra.mrb[8].mxu1 %vm2619_vm2, %v5787_v59  ;;  %v6543_v59 = vld [vmem:[#allocation2 + $0xd6] ss:$2 sm:$0xff] }
 0x551   : > { %14797 = vmatprep.mubr.msk.f32.mxu1 %vm2619_vm2, %v5789_v56  ;;  %v6545_v56 = vld [vmem:[#allocation2 + $0xe6] ss:$2 sm:$0xff] }
 0x554   : > { %14798 = vmatmul.mubr.msk.f32.gmra.mrb[10].mxu1 %vm2619_vm2, %v5791_v57  ;;  %v6547_v57 = vld [vmem:[#allocation2 + $0xf6] ss:$2 sm:$0xff] }
 0x555   : > { %14800 = vmatprep.mubr.msk.f32.mxu1 %vm2619_vm2, %v5793_v58  ;;  %v6549_v58 = vld [vmem:[#allocation2 + $0x106] ss:$2 sm:$0xff] }
 0x558   : > { %14801 = vmatmul.mubr.msk.f32.gmra.mrb[12].mxu1 %vm2619_vm2, %v5795_v60  ;;  %v6551_v60 = vld [vmem:[#allocation2 + $0x116] ss:$2 sm:$0xff] }
 0x559   : > { %14803 = vmatprep.mubr.msk.f32.mxu1 %vm2619_vm2, %v5797_v12  ;;  %v6553_v12 = vld [vmem:[#allocation2 + $0x126] ss:$2 sm:$0xff] }
 0x55c   : > { %14804 = vmatmul.mubr.msk.f32.gmra.mrb[14].mxu1 %vm2619_vm2, %v5799_v61  ;;  %v6555_v61 = vld [vmem:[#allocation2 + $0x136] ss:$2 sm:$0xff] }
 0x55d   : > { %14806 = vmatprep.mubr.msk.f32.mxu1 %vm2619_vm2, %v5801_v62  ;;  %v6557_v62 = vld [vmem:[#allocation2 + $0x146] ss:$2 sm:$0xff] }
 0x560   : > { %14807 = vmatmul.mubr.msk.f32.gmra.mrb[16].mxu1 %vm2619_vm2, %v5803_v63  ;;  %v6559_v63 = vld [vmem:[#allocation2 + $0x156] ss:$2 sm:$0xff] }
 0x561   : > { %14809 = vmatprep.mubr.msk.f32.mxu1 %vm2619_vm2, %v5805_v0  ;;  %v6561_v0 = vld [vmem:[#allocation2 + $0x166] ss:$2 sm:$0xff] }
 0x564   : > { %14810 = vmatmul.mubr.msk.f32.gmra.mrb[18].mxu1 %vm2619_vm2, %v5807_v1  ;;  %v6563_v1 = vld [vmem:[#allocation2 + $0x176] ss:$2 sm:$0xff] }
 0x565   : > { %14812 = vmatprep.mubr.msk.f32.mxu1 %vm2619_vm2, %v5809_v3  ;;  %v6565_v3 = vld [vmem:[#allocation2 + $0x186] ss:$2 sm:$0xff] }
 0x568   : > { %14813 = vmatmul.mubr.msk.f32.gmra.mrb[20].mxu1 %vm2619_vm2, %v5811_v5  ;;  %v6567_v5 = vld [vmem:[#allocation2 + $0x196] ss:$2 sm:$0xff] }
 0x569   : > { %14815 = vmatprep.mubr.msk.f32.mxu1 %vm2619_vm2, %v5813_v6  ;;  %v6569_v6 = vld [vmem:[#allocation2 + $0x1a6] ss:$2 sm:$0xff] }
 0x56c   : > { %14816 = vmatmul.mubr.msk.f32.gmra.mrb[22].mxu1 %vm2619_vm2, %v5815_v7  ;;  %v6571_v7 = vld [vmem:[#allocation2 + $0x1b6] ss:$2 sm:$0xff] }
 0x56d   : > { %14818 = vmatprep.mubr.msk.f32.mxu1 %vm2619_vm2, %v5817_v8  ;;  %v6891_v8 = vld [vmem:[#allocation2 + $0x7] ss:$2 sm:$0xff] }
 0x570   : > { %14819 = vmatmul.mubr.msk.f32.gmra.mrb[24].mxu1 %vm2619_vm2, %v5819_v9  ;;  %v6893_v9 = vld [vmem:[#allocation2 + $0x17] ss:$2 sm:$0xff] }
 0x571   : > { %14821 = vmatprep.mubr.msk.f32.mxu1 %vm2619_vm2, %v5821_v10  ;;  %v7694_v10 = vld [vmem:[%s19529_s3 + $0x48] sm:$0xff] }
 0x574   : > { %14822 = vmatmul.mubr.msk.f32.gmra.mrb[26].mxu1 %vm2619_vm2, %v5823_v11  ;;  %v6895_v11 = vld [vmem:[#allocation2 + $0x27] ss:$2 sm:$0xff] }
 0x575   : > { %14826 = vmatprep.mubr.msk.f32.mxu1 %vm2619_vm2, %v6143_v13  ;;  %v6897_v13 = vld [vmem:[#allocation2 + $0x37] ss:$2 sm:$0xff] }
 0x578   : > { %14827 = vmatmul.mubr.msk.f32.vlgmr.msra.gmra.mrb[0].mxu1 %vm2619_vm2, %v6145_v14  ;;  %v6899_v14 = vld [vmem:[#allocation2 + $0x47] ss:$2 sm:$0xff] }
 0x579   : > { %14869 = vmatpush3.msra.mxu1 %v6572_v46  ;;  %14829 = vmatprep.mubr.msk.f32.mxu1 %vm2619_vm2, %v6147_v15  ;;  %v6527_v46 = vld [vmem:[#allocation2 + $0x56] ss:$2 sm:$0xff]  ;;  %v6903_v15 = vld [vmem:[#allocation2 + $0x67] ss:$2 sm:$0xff] }
 0x57a   : > { %14912 = vmatprep.subr.mxu1 %v6946_v55 }
 0x57c   : > { %14830 = vmatmul.mubr.msk.f32.gmra.mrb[2].mxu1 %vm2619_vm2, %v6149_v16  ;;  %v6905_v16 = vld [vmem:[#allocation2 + $0x77] ss:$2 sm:$0xff] }
 0x57d   : > { %14832 = vmatprep.mubr.msk.f32.mxu1 %vm2619_vm2, %v6151_v17  ;;  %v6907_v17 = vld [vmem:[#allocation2 + $0x87] ss:$2 sm:$0xff] }
 0x580   : > { %14833 = vmatmul.mubr.msk.f32.gmra.mrb[4].mxu1 %vm2619_vm2, %v6153_v18  ;;  %v6909_v18 = vld [vmem:[#allocation2 + $0x97] ss:$2 sm:$0xff] }
 0x581   : > { %14835 = vmatprep.mubr.msk.f32.mxu1 %vm2619_vm2, %v6155_v19  ;;  %v6911_v19 = vld [vmem:[#allocation2 + $0xa7] ss:$2 sm:$0xff] }
 0x584   : > { %14836 = vmatmul.mubr.msk.f32.gmra.mrb[6].mxu1 %vm2619_vm2, %v6157_v20  ;;  %v6913_v20 = vld [vmem:[#allocation2 + $0xb7] ss:$2 sm:$0xff] }
 0x585   : > { %14838 = vmatprep.mubr.msk.f32.mxu1 %vm2619_vm2, %v6159_v21  ;;  %v6915_v21 = vld [vmem:[#allocation2 + $0xc7] ss:$2 sm:$0xff] }
 0x588   : > { %14839 = vmatmul.mubr.msk.f32.gmra.mrb[8].mxu1 %vm2619_vm2, %v6161_v22  ;;  %v6917_v22 = vld [vmem:[#allocation2 + $0xd7] ss:$2 sm:$0xff] }
 0x589   : > { %14841 = vmatprep.mubr.msk.f32.mxu1 %vm2619_vm2, %v6163_v23  ;;  %v6919_v23 = vld [vmem:[#allocation2 + $0xe7] ss:$2 sm:$0xff] }
 0x58c   : > { %14842 = vmatmul.mubr.msk.f32.gmra.mrb[10].mxu1 %vm2619_vm2, %v6165_v24  ;;  %v6921_v24 = vld [vmem:[#allocation2 + $0xf7] ss:$2 sm:$0xff] }
 0x58d   : > { %14844 = vmatprep.mubr.msk.f32.mxu1 %vm2619_vm2, %v6167_v25  ;;  %v6923_v25 = vld [vmem:[#allocation2 + $0x107] ss:$2 sm:$0xff] }
 0x590   : > { %14845 = vmatmul.mubr.msk.f32.gmra.mrb[12].mxu1 %vm2619_vm2, %v6169_v26  ;;  %v6925_v26 = vld [vmem:[#allocation2 + $0x117] ss:$2 sm:$0xff] }
 0x591   : > { %14847 = vmatprep.mubr.msk.f32.mxu1 %vm2619_vm2, %v6171_v27  ;;  %v6927_v27 = vld [vmem:[#allocation2 + $0x127] ss:$2 sm:$0xff] }
 0x594   : > { %14848 = vmatmul.mubr.msk.f32.gmra.mrb[14].mxu1 %vm2619_vm2, %v6173_v28  ;;  %v6929_v28 = vld [vmem:[#allocation2 + $0x137] ss:$2 sm:$0xff] }
 0x595   : > { %14850 = vmatprep.mubr.msk.f32.mxu1 %vm2619_vm2, %v6175_v29  ;;  %v6931_v29 = vld [vmem:[#allocation2 + $0x147] ss:$2 sm:$0xff] }
 0x598   : > { %14851 = vmatmul.mubr.msk.f32.gmra.mrb[16].mxu1 %vm2619_vm2, %v6177_v51  ;;  %v6933_v51 = vld [vmem:[#allocation2 + $0x157] ss:$2 sm:$0xff] }
 0x599   : > { %14853 = vmatprep.mubr.msk.f32.mxu1 %vm2619_vm2, %v6179_v30  ;;  %v6935_v30 = vld [vmem:[#allocation2 + $0x167] ss:$2 sm:$0xff] }
 0x59c   : > { %14854 = vmatmul.mubr.msk.f32.gmra.mrb[18].mxu1 %vm2619_vm2, %v6181_v31  ;;  %v6937_v31 = vld [vmem:[#allocation2 + $0x177] ss:$2 sm:$0xff] }
 0x59d   : > { %14856 = vmatprep.mubr.msk.f32.mxu1 %vm2619_vm2, %v6183_v32  ;;  %v6939_v32 = vld [vmem:[#allocation2 + $0x187] ss:$2 sm:$0xff] }
 0x5a0   : > { %14857 = vmatmul.mubr.msk.f32.gmra.mrb[20].mxu1 %vm2619_vm2, %v6185_v33  ;;  %v6941_v33 = vld [vmem:[#allocation2 + $0x197] ss:$2 sm:$0xff] }
 0x5a1   : > { %14859 = vmatprep.mubr.msk.f32.mxu1 %vm2619_vm2, %v6187_v34  ;;  %v6943_v34 = vld [vmem:[#allocation2 + $0x1a7] ss:$2 sm:$0xff] }
 0x5a4   : > { %14860 = vmatmul.mubr.msk.f32.gmra.mrb[22].mxu1 %vm2619_vm2, %v6189_v35  ;;  %v6945_v35 = vld [vmem:[#allocation2 + $0x1b7] ss:$2 sm:$0xff] }
 0x5a5   : > { %14862 = vmatprep.mubr.msk.f32.mxu1 %vm2619_vm2, %v6191_v36  ;;  %v7265_v36 = vld [vmem:[#allocation2 + $0x8] ss:$2 sm:$0xff] }
 0x5a8   : > { %14863 = vmatmul.mubr.msk.f32.gmra.mrb[24].mxu1 %vm2619_vm2, %v6193_v37  ;;  %v7267_v37 = vld [vmem:[#allocation2 + $0x18] ss:$2 sm:$0xff] }
 0x5a9   : > { %14865 = vmatprep.mubr.msk.f32.mxu1 %vm2619_vm2, %v6195_v38  ;;  %v18265_v38 = vld [vmem:[%s19529_s3 + $0x50] sm:$0xff] }
 0x5ac   : > { %14866 = vmatmul.mubr.msk.f32.gmra.mrb[26].mxu1 %vm2619_vm2, %v6197_v39  ;;  %v7269_v39 = vld [vmem:[#allocation2 + $0x28] ss:$2 sm:$0xff] }
 0x5ad   : > { %14870 = vmatprep.mubr.msk.f32.mxu1 %vm2619_vm2, %v6517_v40  ;;  %v7271_v40 = vld [vmem:[#allocation2 + $0x38] ss:$2 sm:$0xff] }
 0x5b0   : > { %14871 = vmatmul.mubr.msk.f32.vlgmr.msra.gmra.mrb[0].mxu1 %vm2619_vm2, %v6519_v41  ;;  %v7273_v41 = vld [vmem:[#allocation2 + $0x48] ss:$2 sm:$0xff] }
 0x5b1   : > { %14913 = vmatpush3.msra.mxu1 %v6946_v55  ;;  %14873 = vmatprep.mubr.msk.f32.mxu1 %vm2619_vm2, %v6521_v43  ;;  %v6901_v55 = vld [vmem:[#allocation2 + $0x57] ss:$2 sm:$0xff]  ;;  %v7277_v43 = vld [vmem:[#allocation2 + $0x68] ss:$2 sm:$0xff] }
 0x5b2   : > { %14956 = vmatprep.subr.mxu1 %v7320_v42 }
 0x5b4   : > { %14874 = vmatmul.mubr.msk.f32.gmra.mrb[2].mxu1 %vm2619_vm2, %v6523_v44  ;;  %v7279_v44 = vld [vmem:[#allocation2 + $0x78] ss:$2 sm:$0xff] }
 0x5b5   : > { %14876 = vmatprep.mubr.msk.f32.mxu1 %vm2619_vm2, %v6525_v45  ;;  %v7281_v45 = vld [vmem:[#allocation2 + $0x88] ss:$2 sm:$0xff] }
 0x5b8   : > { %14877 = vmatmul.mubr.msk.f32.gmra.mrb[4].mxu1 %vm2619_vm2, %v6527_v46  ;;  %v7283_v46 = vld [vmem:[#allocation2 + $0x98] ss:$2 sm:$0xff] }
 0x5b9   : > { %14879 = vmatprep.mubr.msk.f32.mxu1 %vm2619_vm2, %v6529_v47  ;;  %v7285_v47 = vld [vmem:[#allocation2 + $0xa8] ss:$2 sm:$0xff] }
 0x5bc   : > { %14880 = vmatmul.mubr.msk.f32.gmra.mrb[6].mxu1 %vm2619_vm2, %v6531_v48  ;;  %v7287_v48 = vld [vmem:[#allocation2 + $0xb8] ss:$2 sm:$0xff] }
 0x5bd   : > { %14882 = vmatprep.mubr.msk.f32.mxu1 %vm2619_vm2, %v6533_v49  ;;  %v7289_v49 = vld [vmem:[#allocation2 + $0xc8] ss:$2 sm:$0xff] }
 0x5c0   : > { %14883 = vmatmul.mubr.msk.f32.gmra.mrb[8].mxu1 %vm2619_vm2, %v6535_v50  ;;  %v11268_v50 = vld [vmem:[%s19507_s7] sm:$0xff] }
 0x5c1   : > { %14885 = vmatprep.mubr.msk.f32.mxu1 %vm2619_vm2, %v6537_v52  ;;  %v11269_v52 = vld [vmem:[%s19507_s7 + $0x8] sm:$0xff] }
 0x5c4   : > { %14886 = vmatmul.mubr.msk.f32.gmra.mrb[10].mxu1 %vm2619_vm2, %v6539_v53  ;;  %v15500_v53 = vpack.c.bf16 %v11269_v52, %v11268_v50  ;;  %v8017_v50 = vld [vmem:[#allocation2 + $0x2a] ss:$2 sm:$0xff]  ;;  %v8019_v52 = vld [vmem:[#allocation2 + $0x3a] ss:$2 sm:$0xff] }
 0x5c5   : > { %14888 = vmatprep.mubr.msk.f32.mxu1 %vm2619_vm2, %v6541_v54  ;;  %v7291_v54 = vld [vmem:[#allocation2 + $0xd8] ss:$2 sm:$0xff] }
 0x5c6   : > { %15501 = vmatpush1.bf16.msra.mxu0 %v15500_v53  ;;  %v8021_v53 = vld [vmem:[#allocation2 + $0x4a] ss:$2 sm:$0xff] }
 0x5c7   : > { %15502 = vmatprep.subr.bf16.mxu0 %v16301_v2 }
 0x5c8   : > { %14889 = vmatmul.mubr.msk.f32.gmra.mrb[12].mxu1 %vm2619_vm2, %v6543_v59  ;;  %v7293_v59 = vld [vmem:[#allocation2 + $0xe8] ss:$2 sm:$0xff] }
 0x5c9   : > { %14891 = vmatprep.mubr.msk.f32.mxu1 %vm2619_vm2, %v6545_v56  ;;  %v7295_v56 = vld [vmem:[#allocation2 + $0xf8] ss:$2 sm:$0xff] }
 0x5cc   : > { %14892 = vmatmul.mubr.msk.f32.gmra.mrb[14].mxu1 %vm2619_vm2, %v6547_v57  ;;  %v7297_v57 = vld [vmem:[#allocation2 + $0x108] ss:$2 sm:$0xff] }
 0x5cd   : > { %14894 = vmatprep.mubr.msk.f32.mxu1 %vm2619_vm2, %v6549_v58  ;;  %v7299_v58 = vld [vmem:[#allocation2 + $0x118] ss:$2 sm:$0xff] }
 0x5d0   : > { %14895 = vmatmul.mubr.msk.f32.gmra.mrb[16].mxu1 %vm2619_vm2, %v6551_v60  ;;  %v7301_v60 = vld [vmem:[#allocation2 + $0x128] ss:$2 sm:$0xff] }
 0x5d1   : > { %14897 = vmatprep.mubr.msk.f32.mxu1 %vm2619_vm2, %v6553_v12  ;;  %v7303_v12 = vld [vmem:[#allocation2 + $0x138] ss:$2 sm:$0xff] }
 0x5d4   : > { %14898 = vmatmul.mubr.msk.f32.gmra.mrb[18].mxu1 %vm2619_vm2, %v6555_v61  ;;  %v7305_v61 = vld [vmem:[#allocation2 + $0x148] ss:$2 sm:$0xff] }
 0x5d5   : > { %14900 = vmatprep.mubr.msk.f32.mxu1 %vm2619_vm2, %v6557_v62  ;;  %v7307_v62 = vld [vmem:[#allocation2 + $0x158] ss:$2 sm:$0xff] }
 0x5d8   : > { %14901 = vmatmul.mubr.msk.f32.gmra.mrb[20].mxu1 %vm2619_vm2, %v6559_v63  ;;  %v7309_v63 = vld [vmem:[#allocation2 + $0x168] ss:$2 sm:$0xff] }
 0x5d9   : > { %14903 = vmatprep.mubr.msk.f32.mxu1 %vm2619_vm2, %v6561_v0  ;;  %v7311_v0 = vld [vmem:[#allocation2 + $0x178] ss:$2 sm:$0xff] }
 0x5dc   : > { %14904 = vmatmul.mubr.msk.f32.gmra.mrb[22].mxu1 %vm2619_vm2, %v6563_v1  ;;  %v7313_v1 = vld [vmem:[#allocation2 + $0x188] ss:$2 sm:$0xff] }
 0x5dd   : > { %14906 = vmatprep.mubr.msk.f32.mxu1 %vm2619_vm2, %v6565_v3  ;;  %v7315_v3 = vld [vmem:[#allocation2 + $0x198] ss:$2 sm:$0xff] }
 0x5e0   : > { %14907 = vmatmul.mubr.msk.f32.gmra.mrb[24].mxu1 %vm2619_vm2, %v6567_v5  ;;  %v7317_v5 = vld [vmem:[#allocation2 + $0x1a8] ss:$2 sm:$0xff] }
 0x5e1   : > { %14909 = vmatprep.mubr.msk.f32.mxu1 %vm2619_vm2, %v6569_v6  ;;  %v7319_v6 = vld [vmem:[#allocation2 + $0x1b8] ss:$2 sm:$0xff] }
 0x5e4   : > { %14910 = vmatmul.mubr.msk.f32.gmra.mrb[26].mxu1 %vm2619_vm2, %v6571_v7  ;;  %v7639_v7 = vld [vmem:[#allocation2 + $0x9] ss:$2 sm:$0xff] }
 0x5e5   : > { %14914 = vmatprep.mubr.msk.f32.mxu1 %vm2619_vm2, %v6891_v8  ;;  %v7641_v8 = vld [vmem:[#allocation2 + $0x19] ss:$2 sm:$0xff] }
 0x5e8   : > { %14915 = vmatmul.mubr.msk.f32.vlgmr.msra.gmra.mrb[0].mxu1 %vm2619_vm2, %v6893_v9  ;;  %v18306_v9 = vld [vmem:[%s19529_s3 + $0x58] sm:$0xff] }
 0x5e9   : > { %14957 = vmatpush3.msra.mxu1 %v7320_v42  ;;  %14917 = vmatprep.mubr.msk.f32.mxu1 %vm2619_vm2, %v6895_v11  ;;  %v7275_v42 = vld [vmem:[#allocation2 + $0x58] ss:$2 sm:$0xff]  ;;  %v7645_v11 = vld [vmem:[#allocation2 + $0x39] ss:$2 sm:$0xff] }
 0x5ea   : > { %15000 = vmatprep.subr.mxu1 %v7694_v10 }
 0x5ec   : > { %14918 = vmatmul.mubr.msk.f32.gmra.mrb[2].mxu1 %vm2619_vm2, %v6897_v13  ;;  %v7647_v13 = vld [vmem:[#allocation2 + $0x49] ss:$2 sm:$0xff] }
 0x5ed   : > { %14920 = vmatprep.mubr.msk.f32.mxu1 %vm2619_vm2, %v6899_v14  ;;  %v7649_v14 = vld [vmem:[#allocation2 + $0x59] ss:$2 sm:$0xff] }
 0x5f0   : > { %14921 = vmatmul.mubr.msk.f32.gmra.mrb[4].mxu1 %vm2619_vm2, %v6901_v55  ;;  %v7651_v55 = vld [vmem:[#allocation2 + $0x69] ss:$2 sm:$0xff] }
 0x5f1   : > { %14923 = vmatprep.mubr.msk.f32.mxu1 %vm2619_vm2, %v6903_v15  ;;  %v7653_v15 = vld [vmem:[#allocation2 + $0x79] ss:$2 sm:$0xff] }
 0x5f4   : > { %14924 = vmatmul.mubr.msk.f32.gmra.mrb[6].mxu1 %vm2619_vm2, %v6905_v16  ;;  %v7655_v16 = vld [vmem:[#allocation2 + $0x89] ss:$2 sm:$0xff] }
 0x5f5   : > { %14926 = vmatprep.mubr.msk.f32.mxu1 %vm2619_vm2, %v6907_v17  ;;  %v7657_v17 = vld [vmem:[#allocation2 + $0x99] ss:$2 sm:$0xff] }
 0x5f8   : > { %14927 = vmatmul.mubr.msk.f32.gmra.mrb[8].mxu1 %vm2619_vm2, %v6909_v18  ;;  %v7659_v18 = vld [vmem:[#allocation2 + $0xa9] ss:$2 sm:$0xff] }
 0x5f9   : > { %14929 = vmatprep.mubr.msk.f32.mxu1 %vm2619_vm2, %v6911_v19  ;;  %v7661_v19 = vld [vmem:[#allocation2 + $0xb9] ss:$2 sm:$0xff] }
 0x5fc   : > { %14930 = vmatmul.mubr.msk.f32.gmra.mrb[10].mxu1 %vm2619_vm2, %v6913_v20  ;;  %v7663_v20 = vld [vmem:[#allocation2 + $0xc9] ss:$2 sm:$0xff] }
 0x5fd   : > { %14932 = vmatprep.mubr.msk.f32.mxu1 %vm2619_vm2, %v6915_v21  ;;  %v7665_v21 = vld [vmem:[#allocation2 + $0xd9] ss:$2 sm:$0xff] }
 0x600   : > { %14933 = vmatmul.mubr.msk.f32.gmra.mrb[12].mxu1 %vm2619_vm2, %v6917_v22  ;;  %v7667_v22 = vld [vmem:[#allocation2 + $0xe9] ss:$2 sm:$0xff] }
 0x601   : > { %14935 = vmatprep.mubr.msk.f32.mxu1 %vm2619_vm2, %v6919_v23  ;;  %v7669_v23 = vld [vmem:[#allocation2 + $0xf9] ss:$2 sm:$0xff] }
 0x604   : > { %14936 = vmatmul.mubr.msk.f32.gmra.mrb[14].mxu1 %vm2619_vm2, %v6921_v24  ;;  %v7671_v24 = vld [vmem:[#allocation2 + $0x109] ss:$2 sm:$0xff] }
 0x605   : > { %14938 = vmatprep.mubr.msk.f32.mxu1 %vm2619_vm2, %v6923_v25  ;;  %v11270_v25 = vld [vmem:[%s19507_s7 + $0x10] sm:$0xff] }
 0x608   : > { %14939 = vmatmul.mubr.msk.f32.gmra.mrb[16].mxu1 %vm2619_vm2, %v6925_v26  ;;  %v11271_v26 = vld [vmem:[%s19507_s7 + $0x18] sm:$0xff] }
 0x609   : > { %14941 = vmatprep.mubr.msk.f32.mxu1 %vm2619_vm2, %v6927_v27  ;;  %v15503_v27 = vpack.c.bf16 %v11271_v26, %v11270_v25  ;;  %v8407_v25 = vld [vmem:[#allocation2 + $0xab] ss:$2 sm:$0xff]  ;;  %v8409_v26 = vld [vmem:[#allocation2 + $0xbb] ss:$2 sm:$0xff] }
 0x60b   : > { %15504 = vmatpush1.bf16.msra.mxu0 %v15503_v27  ;;  %v8411_v27 = vld [vmem:[#allocation2 + $0xcb] ss:$2 sm:$0xff] }
 0x60c   : > { %14942 = vmatmul.mubr.msk.f32.gmra.mrb[18].mxu1 %vm2619_vm2, %v6929_v28  ;;  %v7673_v28 = vld [vmem:[#allocation2 + $0x119] ss:$2 sm:$0xff]  ;;  %15505 = vmatprep.subr.bf16.mxu0 %v16301_v2 }
 0x60d   : > { %14944 = vmatprep.mubr.msk.f32.mxu1 %vm2619_vm2, %v6931_v29  ;;  %v7675_v29 = vld [vmem:[#allocation2 + $0x129] ss:$2 sm:$0xff] }
 0x610   : > { %14945 = vmatmul.mubr.msk.f32.gmra.mrb[20].mxu1 %vm2619_vm2, %v6933_v51  ;;  %v7677_v51 = vld [vmem:[#allocation2 + $0x139] ss:$2 sm:$0xff] }
 0x611   : > { %14947 = vmatprep.mubr.msk.f32.mxu1 %vm2619_vm2, %v6935_v30  ;;  %v7679_v30 = vld [vmem:[#allocation2 + $0x149] ss:$2 sm:$0xff] }
 0x614   : > { %14948 = vmatmul.mubr.msk.f32.gmra.mrb[22].mxu1 %vm2619_vm2, %v6937_v31  ;;  %v11272_v31 = vld [vmem:[%s19507_s7 + $0x20] sm:$0xff] }
 0x615   : > { %14950 = vmatprep.mubr.msk.f32.mxu1 %vm2619_vm2, %v6939_v32  ;;  %v11273_v32 = vld [vmem:[%s19507_s7 + $0x28] sm:$0xff] }
 0x618   : > { %14951 = vmatmul.mubr.msk.f32.gmra.mrb[24].mxu1 %vm2619_vm2, %v6941_v33  ;;  %v11274_v33 = vld [vmem:[%s19507_s7 + $0x30] sm:$0xff] }
 0x619   : > { %14953 = vmatprep.mubr.msk.f32.mxu1 %vm2619_vm2, %v6943_v34  ;;  %v15506_v34 = vpack.c.bf16 %v11273_v32, %v11272_v31  ;;  %v8421_v31 = vld [vmem:[#allocation2 + $0x11b] ss:$2 sm:$0xff]  ;;  %v8423_v32 = vld [vmem:[#allocation2 + $0x12b] ss:$2 sm:$0xff] }
 0x61b   : > { %15507 = vmatpush1.bf16.msra.mxu0 %v15506_v34  ;;  %v8427_v34 = vld [vmem:[#allocation2 + $0x14b] ss:$2 sm:$0xff] }
 0x61c   : > { %14954 = vmatmul.mubr.msk.f32.gmra.mrb[26].mxu1 %vm2619_vm2, %v6945_v35  ;;  %v11275_v35 = vld [vmem:[%s19507_s7 + $0x38] sm:$0xff]  ;;  %15508 = vmatprep.subr.bf16.mxu0 %v16301_v2 }
 0x61d   : > { %14958 = vmatprep.mubr.msk.f32.mxu1 %vm2619_vm2, %v7265_v36  ;;  %v7681_v36 = vld [vmem:[#allocation2 + $0x159] ss:$2 sm:$0xff] }
 0x620   : > { %14959 = vmatmul.mubr.msk.f32.vlgmr.msra.gmra.mrb[0].mxu1 %vm2619_vm2, %v7267_v37  ;;  %v15509_v37 = vpack.c.bf16 %v11275_v35, %v11274_v33  ;;  %v8425_v33 = vld [vmem:[#allocation2 + $0x13b] ss:$2 sm:$0xff] }
 0x621   : > { %15001 = vmatpush3.msra.mxu1 %v7694_v10  ;;  %14961 = vmatprep.mubr.msk.f32.mxu1 %vm2619_vm2, %v7269_v39  ;;  %v7643_v10 = vld [vmem:[#allocation2 + $0x29] ss:$2 sm:$0xff]  ;;  %v7685_v39 = vld [vmem:[#allocation2 + $0x179] ss:$2 sm:$0xff] }
 0x622   : > { %15044 = vmatprep.subr.mxu1 %v18265_v38  ;;  %15510 = vmatpush1.bf16.msra.mxu0 %v15509_v37  ;;  %v8429_v35 = vld [vmem:[#allocation2 + $0x15b] ss:$2 sm:$0xff] }
 0x623   : > { %15511 = vmatprep.subr.bf16.mxu0 %v16301_v2  ;;  %v8433_v37 = vld [vmem:[#allocation2 + $0x17b] ss:$2 sm:$0xff] }
 0x624   : > { %14962 = vmatmul.mubr.msk.f32.gmra.mrb[2].mxu1 %vm2619_vm2, %v7271_v40  ;;  %v7687_v40 = vld [vmem:[#allocation2 + $0x189] ss:$2 sm:$0xff] }
 0x625   : > { %14964 = vmatprep.mubr.msk.f32.mxu1 %vm2619_vm2, %v7273_v41  ;;  %v7689_v41 = vld [vmem:[#allocation2 + $0x199] ss:$2 sm:$0xff] }
 0x628   : > { %14965 = vmatmul.mubr.msk.f32.gmra.mrb[4].mxu1 %vm2619_vm2, %v7275_v42  ;;  %v7691_v42 = vld [vmem:[#allocation2 + $0x1a9] ss:$2 sm:$0xff] }
 0x629   : > { %14967 = vmatprep.mubr.msk.f32.mxu1 %vm2619_vm2, %v7277_v43  ;;  %v7693_v43 = vld [vmem:[#allocation2 + $0x1b9] ss:$2 sm:$0xff] }
 0x62c   : > { %14968 = vmatmul.mubr.msk.f32.gmra.mrb[6].mxu1 %vm2619_vm2, %v7279_v44  ;;  %v9051_v44 = vld [vmem:[%s19531_s5 + $0xc] sm:$0xff] }
 0x62d   : > { %14970 = vmatprep.mubr.msk.f32.mxu1 %vm2619_vm2, %v7281_v45  ;;  %v9052_v45 = vld [vmem:[%s19531_s5 + $0x14] sm:$0xf] }
 0x630   : > { %14971 = vmatmul.mubr.msk.f32.gmra.mrb[8].mxu1 %vm2619_vm2, %v7283_v46  ;;  %v8013_v46 = vld [vmem:[#allocation2 + $0xa] ss:$2 sm:$0xff] }
 0x631   : > { %14973 = vmatprep.mubr.msk.f32.mxu1 %vm2619_vm2, %v7285_v47  ;;  %v18365_v47 = vpack.c.bf16 %v9052_v45, %v9051_v44  ;;  %v9035_v45 = vld [vmem:[%s19531_s5] sm:$0xff] }
 0x634   : > { %14974 = vmatmul.mubr.msk.f32.gmra.mrb[10].mxu1 %vm2619_vm2, %v7287_v48  ;;  %v8015_v48 = vld [vmem:[#allocation2 + $0x1a] ss:$2 sm:$0xff] }
 0x635   : > { %14976 = vmatprep.mubr.msk.f32.mxu1 %vm2619_vm2, %v7289_v49 }
 0x638   : > { %14977 = vmatmul.mubr.msk.f32.gmra.mrb[12].mxu1 %vm2619_vm2, %v7291_v54  ;;  %v8023_v54 = vld [vmem:[#allocation2 + $0x5a] ss:$2 sm:$0xff] }
 0x639   : > { %14979 = vmatprep.mubr.msk.f32.mxu1 %vm2619_vm2, %v7293_v59  ;;  %v8025_v59 = vld [vmem:[#allocation2 + $0x6a] ss:$2 sm:$0xff] }
 0x63c   : > { %14980 = vmatmul.mubr.msk.f32.gmra.mrb[14].mxu1 %vm2619_vm2, %v7295_v56  ;;  %v8027_v56 = vld [vmem:[#allocation2 + $0x7a] ss:$2 sm:$0xff] }
 0x63d   : > { %14982 = vmatprep.mubr.msk.f32.mxu1 %vm2619_vm2, %v7297_v57  ;;  %v8029_v57 = vld [vmem:[#allocation2 + $0x8a] ss:$2 sm:$0xff] }
 0x640   : > { %14983 = vmatmul.mubr.msk.f32.gmra.mrb[16].mxu1 %vm2619_vm2, %v7299_v58  ;;  %v8031_v58 = vld [vmem:[#allocation2 + $0x9a] ss:$2 sm:$0xff] }
 0x641   : > { %14985 = vmatprep.mubr.msk.f32.mxu1 %vm2619_vm2, %v7301_v60  ;;  %v8033_v60 = vld [vmem:[#allocation2 + $0xaa] ss:$2 sm:$0xff] }
 0x644   : > { %14986 = vmatmul.mubr.msk.f32.gmra.mrb[18].mxu1 %vm2619_vm2, %v7303_v12  ;;  %v8035_v12 = vld [vmem:[#allocation2 + $0xba] ss:$2 sm:$0xff] }
 0x645   : > { %14988 = vmatprep.mubr.msk.f32.mxu1 %vm2619_vm2, %v7305_v61  ;;  %v8037_v61 = vld [vmem:[#allocation2 + $0xca] ss:$2 sm:$0xff] }
 0x648   : > { %14989 = vmatmul.mubr.msk.f32.gmra.mrb[20].mxu1 %vm2619_vm2, %v7307_v62  ;;  %v8039_v62 = vld [vmem:[#allocation2 + $0xda] ss:$2 sm:$0xff] }
 0x649   : > { %14991 = vmatprep.mubr.msk.f32.mxu1 %vm2619_vm2, %v7309_v63  ;;  %v8041_v63 = vld [vmem:[#allocation2 + $0xea] ss:$2 sm:$0xff] }
 0x64c   : > { %14992 = vmatmul.mubr.msk.f32.gmra.mrb[22].mxu1 %vm2619_vm2, %v7311_v0  ;;  %v8043_v0 = vld [vmem:[#allocation2 + $0xfa] ss:$2 sm:$0xff] }
 0x64d   : > { %14994 = vmatprep.mubr.msk.f32.mxu1 %vm2619_vm2, %v7313_v1  ;;  %v8045_v1 = vld [vmem:[#allocation2 + $0x10a] ss:$2 sm:$0xff] }
 0x650   : > { %14995 = vmatmul.mubr.msk.f32.gmra.mrb[24].mxu1 %vm2619_vm2, %v7315_v3  ;;  %v8047_v3 = vld [vmem:[#allocation2 + $0x11a] ss:$2 sm:$0xff] }
 0x651   : > { %14997 = vmatprep.mubr.msk.f32.mxu1 %vm2619_vm2, %v7317_v5  ;;  %v8049_v5 = vld [vmem:[#allocation2 + $0x12a] ss:$2 sm:$0xff] }
 0x654   : > { %14998 = vmatmul.mubr.msk.f32.gmra.mrb[26].mxu1 %vm2619_vm2, %v7319_v6  ;;  %v8051_v6 = vld [vmem:[#allocation2 + $0x13a] ss:$2 sm:$0xff] }
 0x655   : > { %15002 = vmatprep.mubr.msk.f32.mxu1 %vm2619_vm2, %v7639_v7  ;;  %v8053_v7 = vld [vmem:[#allocation2 + $0x14a] ss:$2 sm:$0xff] }
 0x658   : > { %15003 = vmatmul.mubr.msk.f32.vlgmr.msra.gmra.mrb[0].mxu1 %vm2619_vm2, %v7641_v8  ;;  %v8055_v8 = vld [vmem:[#allocation2 + $0x15a] ss:$2 sm:$0xff] }
 0x659   : > { %15045 = vmatpush3.msra.mxu1 %v18265_v38  ;;  %15005 = vmatprep.mubr.msk.f32.mxu1 %vm2619_vm2, %v7643_v10  ;;  %v7683_v38 = vld [vmem:[#allocation2 + $0x169] ss:$2 sm:$0xff]  ;;  %v8059_v10 = vld [vmem:[#allocation2 + $0x17a] ss:$2 sm:$0xff] }
 0x65a   : > { %15088 = vmatprep.subr.mxu1 %v18306_v9 }
 0x65c   : > { %15006 = vmatmul.mubr.msk.f32.gmra.mrb[2].mxu1 %vm2619_vm2, %v7645_v11  ;;  %v8061_v11 = vld [vmem:[#allocation2 + $0x18a] ss:$2 sm:$0xff] }
 0x65d   : > { %15008 = vmatprep.mubr.msk.f32.mxu1 %vm2619_vm2, %v7647_v13  ;;  %v8063_v13 = vld [vmem:[#allocation2 + $0x19a] ss:$2 sm:$0xff] }
 0x660   : > { %15009 = vmatmul.mubr.msk.f32.gmra.mrb[4].mxu1 %vm2619_vm2, %v7649_v14  ;;  %v8065_v14 = vld [vmem:[#allocation2 + $0x1aa] ss:$2 sm:$0xff] }
 0x661   : > { %15011 = vmatprep.mubr.msk.f32.mxu1 %vm2619_vm2, %v7651_v55  ;;  %v8067_v55 = vld [vmem:[#allocation2 + $0x1ba] ss:$2 sm:$0xff] }
 0x664   : > { %15012 = vmatmul.mubr.msk.f32.gmra.mrb[6].mxu1 %vm2619_vm2, %v7653_v15  ;;  %v8387_v15 = vld [vmem:[#allocation2 + $0xb] ss:$2 sm:$0xff] }
 0x665   : > { %15014 = vmatprep.mubr.msk.f32.mxu1 %vm2619_vm2, %v7655_v16  ;;  %v8389_v16 = vld [vmem:[#allocation2 + $0x1b] ss:$2 sm:$0xff] }
 0x668   : > { %15015 = vmatmul.mubr.msk.f32.gmra.mrb[8].mxu1 %vm2619_vm2, %v7657_v17  ;;  %v8391_v17 = vld [vmem:[#allocation2 + $0x2b] ss:$2 sm:$0xff] }
 0x669   : > { %15017 = vmatprep.mubr.msk.f32.mxu1 %vm2619_vm2, %v7659_v18  ;;  %v8393_v18 = vld [vmem:[#allocation2 + $0x3b] ss:$2 sm:$0xff] }
 0x66c   : > { %15018 = vmatmul.mubr.msk.f32.gmra.mrb[10].mxu1 %vm2619_vm2, %v7661_v19  ;;  %v8395_v19 = vld [vmem:[#allocation2 + $0x4b] ss:$2 sm:$0xff] }
 0x66d   : > { %15020 = vmatprep.mubr.msk.f32.mxu1 %vm2619_vm2, %v7663_v20  ;;  %v8397_v20 = vld [vmem:[#allocation2 + $0x5b] ss:$2 sm:$0xff] }
 0x670   : > { %15021 = vmatmul.mubr.msk.f32.gmra.mrb[12].mxu1 %vm2619_vm2, %v7665_v21  ;;  %v8399_v21 = vld [vmem:[#allocation2 + $0x6b] ss:$2 sm:$0xff] }
 0x671   : > { %15023 = vmatprep.mubr.msk.f32.mxu1 %vm2619_vm2, %v7667_v22  ;;  %v8401_v22 = vld [vmem:[#allocation2 + $0x7b] ss:$2 sm:$0xff] }
 0x674   : > { %15024 = vmatmul.mubr.msk.f32.gmra.mrb[14].mxu1 %vm2619_vm2, %v7669_v23  ;;  %v8403_v23 = vld [vmem:[#allocation2 + $0x8b] ss:$2 sm:$0xff] }
 0x675   : > { %15026 = vmatprep.mubr.msk.f32.mxu1 %vm2619_vm2, %v7671_v24  ;;  %v8405_v24 = vld [vmem:[#allocation2 + $0x9b] ss:$2 sm:$0xff] }
 0x678   : > { %15027 = vmatmul.mubr.msk.f32.gmra.mrb[16].mxu1 %vm2619_vm2, %v7673_v28  ;;  %v8413_v28 = vld [vmem:[#allocation2 + $0xdb] ss:$2 sm:$0xff] }
 0x679   : > { %15029 = vmatprep.mubr.msk.f32.mxu1 %vm2619_vm2, %v7675_v29  ;;  %v8415_v29 = vld [vmem:[#allocation2 + $0xeb] ss:$2 sm:$0xff] }
 0x67c   : > { %15030 = vmatmul.mubr.msk.f32.gmra.mrb[18].mxu1 %vm2619_vm2, %v7677_v51  ;;  %v8417_v51 = vld [vmem:[#allocation2 + $0xfb] ss:$2 sm:$0xff] }
 0x67d   : > { %15032 = vmatprep.mubr.msk.f32.mxu1 %vm2619_vm2, %v7679_v30  ;;  %v8419_v30 = vld [vmem:[#allocation2 + $0x10b] ss:$2 sm:$0xff] }
 0x680   : > { %15033 = vmatmul.mubr.msk.f32.gmra.mrb[20].mxu1 %vm2619_vm2, %v7681_v36  ;;  %v8431_v36 = vld [vmem:[#allocation2 + $0x16b] ss:$2 sm:$0xff] }
 0x681   : > { %15035 = vmatprep.mubr.msk.f32.mxu1 %vm2619_vm2, %v7683_v38  ;;  %v8435_v38 = vld [vmem:[#allocation2 + $0x18b] ss:$2 sm:$0xff] }
 0x684   : > { %15036 = vmatmul.mubr.msk.f32.gmra.mrb[22].mxu1 %vm2619_vm2, %v7685_v39  ;;  %v8437_v39 = vld [vmem:[#allocation2 + $0x19b] ss:$2 sm:$0xff] }
 0x685   : > { %15038 = vmatprep.mubr.msk.f32.mxu1 %vm2619_vm2, %v7687_v40  ;;  %v8439_v40 = vld [vmem:[#allocation2 + $0x1ab] ss:$2 sm:$0xff] }
 0x688   : > { %15039 = vmatmul.mubr.msk.f32.gmra.mrb[24].mxu1 %vm2619_vm2, %v7689_v41  ;;  %v8441_v41 = vld [vmem:[#allocation2 + $0x1bb] ss:$2 sm:$0xff] }
 0x689   : > { %15041 = vmatprep.mubr.msk.f32.mxu1 %vm2619_vm2, %v7691_v42  ;;  %v11276_v42 = vld [vmem:[%s19507_s7 + $0x40] sm:$0xff] }
 0x68c   : > { %15042 = vmatmul.mubr.msk.f32.gmra.mrb[26].mxu1 %vm2619_vm2, %v7693_v43  ;;  %v11277_v43 = vld [vmem:[%s19507_s7 + $0x48] sm:$0xff] }
 0x68d   : > { %15046 = vmatprep.mubr.msk.f32.mxu1 %vm2619_vm2, %v8013_v46  ;;  %v15512_v44 = vpack.c.bf16 %v11277_v43, %v11276_v42  ;;  %v9036_v46 = vld [vmem:[%s19531_s5 + $0x8] sm:$0xf] }
 0x68f   : > { %15513 = vmatpush1.bf16.msra.mxu0 %v15512_v44 }
 0x690   : > { %15047 = vmatmul.mubr.msk.f32.vlgmr.msra.gmra.mrb[0].mxu1 %vm2619_vm2, %v8015_v48  ;;  %15514 = vmatprep.subr.bf16.mxu0 %v16301_v2  ;;  %v11278_v48 = vld [vmem:[%s19507_s7 + $0x50] sm:$0xff] }
 0x691   : > { %15089 = vmatpush3.msra.mxu1 %v18306_v9  ;;  %15049 = vmatprep.mubr.msk.f32.mxu1 %vm2619_vm2, %v8017_v50  ;;  %v8057_v9 = vld [vmem:[#allocation2 + $0x16a] ss:$2 sm:$0xff] }
 0x692   : > { %15447 = vmatprep.subr.msk.bf16.mxu1 %vm18367_vm7, %v18365_v47  ;;  %v11279_v50 = vld [vmem:[%s19507_s7 + $0x58] sm:$0xff] }
 0x694   : > { %15050 = vmatmul.mubr.msk.f32.gmra.mrb[2].mxu1 %vm2619_vm2, %v8019_v52  ;;  %v15515_v52 = vpack.c.bf16 %v11279_v50, %v11278_v48 }
 0x695   : > { %15052 = vmatprep.mubr.msk.f32.mxu1 %vm2619_vm2, %v8021_v53  ;;  %v18491_v53 = vld [vmem:[%s19534_s4] ss:$0 sm:$0xff]  ;;  %s512_s4 = sand.u32 1, %s16291_s22  }
 0x696   : > { %15516 = vmatpush1.bf16.msra.mxu0 %v15515_v52 }
 0x697   : > { %15517 = vmatprep.subr.bf16.mxu0 %v16301_v2 }
 0x698   : > { %15053 = vmatmul.mubr.msk.f32.gmra.mrb[4].mxu1 %vm2619_vm2, %v8023_v54 }
 0x699   : > { %15055 = vmatprep.mubr.msk.f32.mxu1 %vm2619_vm2, %v8025_v59 }
 0x69c   : > { %15056 = vmatmul.mubr.msk.f32.gmra.mrb[6].mxu1 %vm2619_vm2, %v8027_v56 }
 0x69d   : > { %15058 = vmatprep.mubr.msk.f32.mxu1 %vm2619_vm2, %v8029_v57 }
 0x6a0   : > { %15059 = vmatmul.mubr.msk.f32.gmra.mrb[8].mxu1 %vm2619_vm2, %v8031_v58 }
 0x6a1   : > { %15061 = vmatprep.mubr.msk.f32.mxu1 %vm2619_vm2, %v8033_v60 }
 0x6a4   : > { %15062 = vmatmul.mubr.msk.f32.gmra.mrb[10].mxu1 %vm2619_vm2, %v8035_v12 }
 0x6a5   : > { %15064 = vmatprep.mubr.msk.f32.mxu1 %vm2619_vm2, %v8037_v61 }
 0x6a8   : > { %15065 = vmatmul.mubr.msk.f32.gmra.mrb[12].mxu1 %vm2619_vm2, %v8039_v62 }
 0x6a9   : > { %15067 = vmatprep.mubr.msk.f32.mxu1 %vm2619_vm2, %v8041_v63 }
 0x6ac   : > { %15068 = vmatmul.mubr.msk.f32.gmra.mrb[14].mxu1 %vm2619_vm2, %v8043_v0 }
 0x6ad   : > { %15070 = vmatprep.mubr.msk.f32.mxu1 %vm2619_vm2, %v8045_v1 }
 0x6b0   : > { %15071 = vmatmul.mubr.msk.f32.gmra.mrb[16].mxu1 %vm2619_vm2, %v8047_v3 }
 0x6b1   : > { %15073 = vmatprep.mubr.msk.f32.mxu1 %vm2619_vm2, %v8049_v5 }
 0x6b4   : > { %15074 = vmatmul.mubr.msk.f32.gmra.mrb[18].mxu1 %vm2619_vm2, %v8051_v6 }
 0x6b5   : > { %15076 = vmatprep.mubr.msk.f32.mxu1 %vm2619_vm2, %v8053_v7 }
 0x6b8   : > { %15077 = vmatmul.mubr.msk.f32.gmra.mrb[20].mxu1 %vm2619_vm2, %v8055_v8 }
 0x6b9   : > { %15079 = vmatprep.mubr.msk.f32.mxu1 %vm2619_vm2, %v8057_v9 }
 0x6bc   : > { %15080 = vmatmul.mubr.msk.f32.gmra.mrb[22].mxu1 %vm2619_vm2, %v8059_v10 }
 0x6bd   : > { %15082 = vmatprep.mubr.msk.f32.mxu1 %vm2619_vm2, %v8061_v11 }
 0x6c0   : > { %15083 = vmatmul.mubr.msk.f32.gmra.mrb[24].mxu1 %vm2619_vm2, %v8063_v13 }
 0x6c1   : > { %15085 = vmatprep.mubr.msk.f32.mxu1 %vm2619_vm2, %v8065_v14 }
 0x6c4   : > { %15086 = vmatmul.mubr.msk.f32.gmra.mrb[26].mxu1 %vm2619_vm2, %v8067_v55 }
 0x6c5   : > { %15090 = vmatprep.mubr.msk.f32.mxu1 %vm2619_vm2, %v8387_v15 }
 0x6c8   : > { %15091 = vmatmul.mubr.msk.f32.vlgmr.msra.gmra.mrb[0].mxu1 %vm2619_vm2, %v8389_v16 }
 0x6c9   : > { %15093 = vmatprep.mubr.msk.f32.mxu1 %vm2619_vm2, %v8391_v17  ;;  %15450 = vmatpush3.bf16.msk.msra.mxu1 %vm18367_vm7, %v18365_v47  ;;  %v18474_v47 = vpack.c.bf16 %v9036_v46, %v9035_v45 }
 0x6cb   : > { %15453 = vmatprep.subr.msk.bf16.mxu1 %vm18367_vm7, %v18474_v47 }
 0x6cc   : > { %15094 = vmatmul.mubr.msk.f32.gmra.mrb[2].mxu1 %vm2619_vm2, %v8393_v18 }
 0x6cd   : > { %15096 = vmatprep.mubr.msk.f32.mxu1 %vm2619_vm2, %v8395_v19 }
 0x6d0   : > { %15097 = vmatmul.mubr.msk.f32.gmra.mrb[4].mxu1 %vm2619_vm2, %v8397_v20 }
 0x6d1   : > { %15099 = vmatprep.mubr.msk.f32.mxu1 %vm2619_vm2, %v8399_v21 }
 0x6d4   : > { %15100 = vmatmul.mubr.msk.f32.gmra.mrb[6].mxu1 %vm2619_vm2, %v8401_v22 }
 0x6d5   : > { %15102 = vmatprep.mubr.msk.f32.mxu1 %vm2619_vm2, %v8403_v23 }
 0x6d8   : > { %15103 = vmatmul.mubr.msk.f32.gmra.mrb[8].mxu1 %vm2619_vm2, %v8405_v24 }
 0x6d9   : > { %15105 = vmatprep.mubr.msk.f32.mxu1 %vm2619_vm2, %v8407_v25 }
 0x6dc   : > { %15106 = vmatmul.mubr.msk.f32.gmra.mrb[10].mxu1 %vm2619_vm2, %v8409_v26 }
 0x6dd   : > { %15108 = vmatprep.mubr.msk.f32.mxu1 %vm2619_vm2, %v8411_v27 }
 0x6e0   : > { %15109 = vmatmul.mubr.msk.f32.gmra.mrb[12].mxu1 %vm2619_vm2, %v8413_v28 }
 0x6e1   : > { %15111 = vmatprep.mubr.msk.f32.mxu1 %vm2619_vm2, %v8415_v29 }
 0x6e4   : > { %15112 = vmatmul.mubr.msk.f32.gmra.mrb[14].mxu1 %vm2619_vm2, %v8417_v51 }
 0x6e5   : > { %15114 = vmatprep.mubr.msk.f32.mxu1 %vm2619_vm2, %v8419_v30 }
 0x6e8   : > { %15115 = vmatmul.mubr.msk.f32.gmra.mrb[16].mxu1 %vm2619_vm2, %v8421_v31 }
 0x6e9   : > { %15117 = vmatprep.mubr.msk.f32.mxu1 %vm2619_vm2, %v8423_v32 }
 0x6ec   : > { %15118 = vmatmul.mubr.msk.f32.gmra.mrb[18].mxu1 %vm2619_vm2, %v8425_v33 }
 0x6ed   : > { %15120 = vmatprep.mubr.msk.f32.mxu1 %vm2619_vm2, %v8427_v34 }
 0x6f0   : > { %15121 = vmatmul.mubr.msk.f32.gmra.mrb[20].mxu1 %vm2619_vm2, %v8429_v35 }
 0x6f1   : > { %15123 = vmatprep.mubr.msk.f32.mxu1 %vm2619_vm2, %v8431_v36 }
 0x6f4   : > { %15124 = vmatmul.mubr.msk.f32.gmra.mrb[22].mxu1 %vm2619_vm2, %v8433_v37 }
 0x6f5   : > { %15126 = vmatprep.mubr.msk.f32.mxu1 %vm2619_vm2, %v8435_v38 }
 0x6f8   : > { %15127 = vmatmul.mubr.msk.f32.gmra.mrb[24].mxu1 %vm2619_vm2, %v8437_v39 }
 0x6f9   : > { %15129 = vmatprep.mubr.msk.f32.mxu1 %vm2619_vm2, %v8439_v40 }
 0x6fc   : > { %15130 = vmatmul.mubr.msk.f32.gmra.mrb[26].mxu1 %vm2619_vm2, %v8441_v41  ;;  %vm11486_vm2 = vcmask 517120  }
 0x79b   : > { %v15092_v54 = vpop.f32.mrb[0].mxu1 }
 0x79c   : > { %v8768_v59 = vadd.f32 %v15092_v54, %v18491_v53  ;;  %v8593_v56 = vpop.f32.mrb[1].mxu1 }
 0x79d   : > { %v8767_v57 = vadd.f32 %v18491_v53, %v8593_v56  ;;  %v11280_v56 = vld [vmem:[%s19507_s7 + $0x60] sm:$0xff] }
 0x79e   : > { %8797 = vst.msk [vmem:[#allocation9 + $0x8] sm:$0xff] %vm8795_vm8, %v8768_v59  ;;  %v9428_v59 = vld [vmem:[%s19531_s5 + $0x18] sm:$0xff] }
 0x79f   : > { %8796 = vst.msk [vmem:[#allocation9] sm:$0xff] %vm8795_vm8, %v8767_v57  ;;  %v15095_v58 = vpop.f32.mrb[2].mxu1  ;;  %v11281_v57 = vld [vmem:[%s19507_s7 + $0x68] sm:$0xff] }
 0x7a0   : > { %v8770_v60 = vadd.f32 %v15095_v58, %v18491_v53  ;;  %v8603_v12 = vpop.f32.mrb[3].mxu1 }
 0x7a1   : > { %v8769_v61 = vadd.f32 %v18491_v53, %v8603_v12 }
 0x7a2   : > { %8799 = vst.msk [vmem:[#allocation9 + $0x18] sm:$0xff] %vm8795_vm8, %v8770_v60 }
 0x7a3   : > { %8798 = vst.msk [vmem:[#allocation9 + $0x10] sm:$0xff] %vm8795_vm8, %v8769_v61  ;;  %v15098_v62 = vpop.f32.mrb[4].mxu1 }
 0x7a4   : > { %v8772_v63 = vadd.f32 %v15098_v62, %v18491_v53  ;;  %v8613_v0 = vpop.f32.mrb[5].mxu1  ;;  %v9429_v62 = vld [vmem:[%s19531_s5 + $0x20] sm:$0xf] }
 0x7a5   : > { %v8771_v1 = vadd.f32 %v18491_v53, %v8613_v0 }
 0x7a6   : > { %v8824_v3 = vld [vmem:[#allocation9] ss:$2 sm:$0xff]  ;;  %v8852_v5 = vld [vmem:[#allocation9 + $0x1] ss:$2 sm:$0xff]  ;;  %8801 = vst.msk [vmem:[#allocation9 + $0x28] sm:$0xff] %vm8795_vm8, %v8772_v63  ;;  %v15518_v63 = vpack.c.bf16 %v11281_v57, %v11280_v56 }
 0x7a7   : > { %8800 = vst.msk [vmem:[#allocation9 + $0x20] sm:$0xff] %vm8795_vm8, %v8771_v1  ;;  %v15101_v6 = vpop.f32.mrb[6].mxu1  ;;  %v8879_v9 = vmax.f32 %v8824_v3, %v8852_v5 }
 0x7a8   : > { %v8774_v7 = vadd.f32 %v15101_v6, %v18491_v53  ;;  %v8623_v8 = vpop.f32.mrb[7].mxu1  ;;  %15519 = vmatpush1.bf16.msra.mxu0 %v15518_v63 }
 0x7a9   : > { %v8773_v10 = vadd.f32 %v18491_v53, %v8623_v8  ;;  %15520 = vmatprep.subr.bf16.mxu0 %v16301_v2 }
 0x7aa   : > { %v8826_v11 = vld [vmem:[#allocation9 + $0x10] ss:$2 sm:$0xff]  ;;  %v8854_v13 = vld [vmem:[#allocation9 + $0x11] ss:$2 sm:$0xff]  ;;  %8803 = vst.msk [vmem:[#allocation9 + $0x38] sm:$0xff] %vm8795_vm8, %v8774_v7 }
 0x7ab   : > { %v8894_v14 = vld [vmem:[#allocation9 + $0x2] ss:$2 sm:$0xff]  ;;  %8802 = vst.msk [vmem:[#allocation9 + $0x30] sm:$0xff] %vm8795_vm8, %v8773_v10  ;;  %v15104_v15 = vpop.f32.mrb[8].mxu1  ;;  %v8936_v16 = vld [vmem:[#allocation9 + $0x3] ss:$2 sm:$0xff]  ;;  %v8880_v19 = vmax.f32 %v8826_v11, %v8854_v13  ;;  %v18541_v11 = vpack.c.bf16 %v9429_v62, %v9428_v59 }
 0x7ac   : > { %v8921_v55 = vmax.f32 %v8879_v9, %v8894_v14  ;;  %v8776_v17 = vadd.f32 %v15104_v15, %v18491_v53  ;;  %v8633_v18 = vpop.f32.mrb[9].mxu1 }
 0x7ad   : > { %v8775_v21 = vadd.f32 %v18491_v53, %v8633_v18 }
 0x7ae   : > { %v8963_v20 = vmax.f32 %v8921_v55, %v8936_v16  ;;  %v8828_v22 = vld [vmem:[#allocation9 + $0x20] ss:$2 sm:$0xff]  ;;  %v8856_v23 = vld [vmem:[#allocation9 + $0x21] ss:$2 sm:$0xff]  ;;  %8805 = vst.msk [vmem:[#allocation9 + $0x48] sm:$0xff] %vm8795_vm8, %v8776_v17 }
 0x7af   : > { %v8896_v24 = vld [vmem:[#allocation9 + $0x12] ss:$2 sm:$0xff]  ;;  %8804 = vst.msk [vmem:[#allocation9 + $0x40] sm:$0xff] %vm8795_vm8, %v8775_v21  ;;  %v15107_v27 = vpop.f32.mrb[10].mxu1  ;;  %v8938_v28 = vld [vmem:[#allocation9 + $0x13] ss:$2 sm:$0xff]  ;;  %v8881_v30 = vmax.f32 %v8828_v22, %v8856_v23 }
 0x7b0   : > { %v8977_v25 = vmax.f32 %v8963_v20, 0.0  ;;  %v8922_v26 = vmax.f32 %v8880_v19, %v8896_v24  ;;  %v8778_v29 = vadd.f32 %v15107_v27, %v18491_v53  ;;  %v8643_v51 = vpop.f32.mrb[11].mxu1 }
 0x7b1   : > { %v8777_v32 = vadd.f32 %v18491_v53, %v8643_v51 }
 0x7b2   : > { %9007 = vst.msk [vmem:[#allocation3 + $0x4] sm:$0xff] %vm8795_vm8, %v8977_v25  ;;  %v8964_v31 = vmax.f32 %v8922_v26, %v8938_v28  ;;  %v8830_v33 = vld [vmem:[#allocation9 + $0x30] ss:$2 sm:$0xff]  ;;  %v8858_v34 = vld [vmem:[#allocation9 + $0x31] ss:$2 sm:$0xff]  ;;  %8807 = vst.msk [vmem:[#allocation9 + $0x58] sm:$0xff] %vm8795_vm8, %v8778_v29 }
 0x7b3   : > { %v8898_v35 = vld [vmem:[#allocation9 + $0x22] ss:$2 sm:$0xff]  ;;  %8806 = vst.msk [vmem:[#allocation9 + $0x50] sm:$0xff] %vm8795_vm8, %v8777_v32  ;;  %v15110_v38 = vpop.f32.mrb[12].mxu1  ;;  %v8940_v39 = vld [vmem:[#allocation9 + $0x23] ss:$2 sm:$0xff]  ;;  %v8882_v42 = vmax.f32 %v8830_v33, %v8858_v34 }
 0x7b4   : > { %v8978_v36 = vmax.f32 %v8964_v31, 0.0  ;;  %v8923_v37 = vmax.f32 %v8881_v30, %v8898_v35  ;;  %v8780_v40 = vadd.f32 %v15110_v38, %v18491_v53  ;;  %v8653_v41 = vpop.f32.mrb[13].mxu1 }
 0x7b5   : > { %v8779_v44 = vadd.f32 %v18491_v53, %v8653_v41 }
 0x7b6   : > { %9008 = vst.msk [vmem:[#allocation3 + $0xc] sm:$0xff] %vm8795_vm8, %v8978_v36  ;;  %v8965_v43 = vmax.f32 %v8923_v37, %v8940_v39  ;;  %v8832_v45 = vld [vmem:[#allocation9 + $0x40] ss:$2 sm:$0xff]  ;;  %v8860_v46 = vld [vmem:[#allocation9 + $0x41] ss:$2 sm:$0xff]  ;;  %8809 = vst.msk [vmem:[#allocation9 + $0x68] sm:$0xff] %vm8795_vm8, %v8780_v40 }
 0x7b7   : > { %v8900_v48 = vld [vmem:[#allocation9 + $0x32] ss:$2 sm:$0xff]  ;;  %8808 = vst.msk [vmem:[#allocation9 + $0x60] sm:$0xff] %vm8795_vm8, %v8779_v44  ;;  %v15113_v54 = vpop.f32.mrb[14].mxu1  ;;  %v8942_v58 = vld [vmem:[#allocation9 + $0x33] ss:$2 sm:$0xff]  ;;  %v8883_v0 = vmax.f32 %v8832_v45, %v8860_v46 }
 0x7b8   : > { %v8979_v50 = vmax.f32 %v8965_v43, 0.0  ;;  %v8924_v52 = vmax.f32 %v8882_v42, %v8900_v48  ;;  %v8782_v60 = vadd.f32 %v15113_v54, %v18491_v53  ;;  %v8663_v12 = vpop.f32.mrb[15].mxu1 }
 0x7b9   : > { %v9037_v61 = vld [vmem:[#allocation3 + $0x1] sm:$0xff]  ;;  %v8781_v3 = vadd.f32 %v18491_v53, %v8663_v12 }
 0x7ba   : > { %9009 = vst.msk [vmem:[#allocation3 + $0x14] sm:$0xff] %vm8795_vm8, %v8979_v50  ;;  %v8966_v1 = vmax.f32 %v8924_v52, %v8942_v58  ;;  %15136 = vmatprep.mubr.msk.f32.mxu1 %vm8795_vm8, %v9037_v61  ;;  %v8834_v5 = vld [vmem:[#allocation9 + $0x50] ss:$2 sm:$0xff]  ;;  %v8862_v6 = vld [vmem:[#allocation9 + $0x51] ss:$2 sm:$0xff]  ;;  %8811 = vst.msk [vmem:[#allocation9 + $0x78] sm:$0xff] %vm8795_vm8, %v8782_v60 }
 0x7bb   : > { %v8902_v7 = vld [vmem:[#allocation9 + $0x42] ss:$2 sm:$0xff]  ;;  %8810 = vst.msk [vmem:[#allocation9 + $0x70] sm:$0xff] %vm8795_vm8, %v8781_v3  ;;  %v15116_v10 = vpop.f32.mrb[16].mxu1  ;;  %v8944_v13 = vld [vmem:[#allocation9 + $0x43] ss:$2 sm:$0xff]  ;;  %v8884_v16 = vmax.f32 %v8834_v5, %v8862_v6 }
 0x7bc   : > { %v8980_v8 = vmax.f32 %v8966_v1, 0.0  ;;  %v8925_v9 = vmax.f32 %v8883_v0, %v8902_v7  ;;  %v8784_v14 = vadd.f32 %v15116_v10, %v18491_v53  ;;  %v8673_v55 = vpop.f32.mrb[17].mxu1 }
 0x7bd   : > { %v9038_v15 = vld [vmem:[#allocation3 + $0x9] sm:$0xff]  ;;  %v8783_v18 = vadd.f32 %v18491_v53, %v8673_v55 }
 0x7be   : > { %9010 = vst.msk [vmem:[#allocation3 + $0x1c] sm:$0xff] %vm8795_vm8, %v8980_v8  ;;  %v8967_v17 = vmax.f32 %v8925_v9, %v8944_v13  ;;  %15137 = vmatmul.mubr.msk.f32.vlgmr.msra.gmra.mrb[28].mxu1 %vm8795_vm8, %v9038_v15  ;;  %v8836_v19 = vld [vmem:[#allocation9 + $0x60] ss:$2 sm:$0xff]  ;;  %v8864_v20 = vld [vmem:[#allocation9 + $0x61] ss:$2 sm:$0xff]  ;;  %8813 = vst.msk [vmem:[#allocation9 + $0x88] sm:$0xff] %vm8795_vm8, %v8784_v14 }
 0x7bf   : > { %v8904_v21 = vld [vmem:[#allocation9 + $0x52] ss:$2 sm:$0xff]  ;;  %15456 = vmatpush3.bf16.msk.msra.mxu1 %vm18367_vm7, %v18474_v47  ;;  %8812 = vst.msk [vmem:[#allocation9 + $0x80] sm:$0xff] %vm8795_vm8, %v8783_v18  ;;  %v15119_v24 = vpop.f32.mrb[18].mxu1  ;;  %v8946_v25 = vld [vmem:[#allocation9 + $0x53] ss:$2 sm:$0xff]  ;;  %v8885_v29 = vmax.f32 %v8836_v19, %v8864_v20 }
 0x7c0   : > { %v8981_v22 = vmax.f32 %v8967_v17, 0.0  ;;  %v8926_v23 = vmax.f32 %v8884_v16, %v8904_v21  ;;  %15459 = vmatprep.subr.msk.bf16.mxu1 %vm18367_vm7, %v18541_v11  ;;  %v8786_v26 = vadd.f32 %v15119_v24, %v18491_v53  ;;  %v8683_v27 = vpop.f32.mrb[19].mxu1 }
 0x7c1   : > { %v9039_v28 = vld [vmem:[#allocation3 + $0x11] sm:$0xff]  ;;  %v8785_v47 = vadd.f32 %v18491_v53, %v8683_v27 }
 0x7c2   : > { %9011 = vst.msk [vmem:[#allocation3 + $0x24] sm:$0xff] %vm8795_vm8, %v8981_v22  ;;  %v8968_v51 = vmax.f32 %v8926_v23, %v8946_v25  ;;  %15139 = vmatprep.mubr.msk.f32.mxu1 %vm8795_vm8, %v9039_v28  ;;  %v8838_v30 = vld [vmem:[#allocation9 + $0x70] ss:$2 sm:$0xff]  ;;  %v8866_v31 = vld [vmem:[#allocation9 + $0x71] ss:$2 sm:$0xff]  ;;  %8815 = vst.msk [vmem:[#allocation9 + $0x98] sm:$0xff] %vm8795_vm8, %v8786_v26 }
 0x7c3   : > { %v8906_v32 = vld [vmem:[#allocation9 + $0x62] ss:$2 sm:$0xff]  ;;  %8814 = vst.msk [vmem:[#allocation9 + $0x90] sm:$0xff] %vm8795_vm8, %v8785_v47  ;;  %v15122_v35 = vpop.f32.mrb[20].mxu1  ;;  %v8948_v36 = vld [vmem:[#allocation9 + $0x63] ss:$2 sm:$0xff]  ;;  %v8886_v40 = vmax.f32 %v8838_v30, %v8866_v31 }
 0x7c4   : > { %v8982_v33 = vmax.f32 %v8968_v51, 0.0  ;;  %v8927_v34 = vmax.f32 %v8885_v29, %v8906_v32  ;;  %v8788_v37 = vadd.f32 %v15122_v35, %v18491_v53  ;;  %v8693_v38 = vpop.f32.mrb[21].mxu1 }
 0x7c5   : > { %v9040_v39 = vld [vmem:[#allocation3 + $0x19] sm:$0xff]  ;;  %v8787_v42 = vadd.f32 %v18491_v53, %v8693_v38 }
 0x7c6   : > { %9012 = vst.msk [vmem:[#allocation3 + $0x2c] sm:$0xff] %vm8795_vm8, %v8982_v33  ;;  %v8969_v41 = vmax.f32 %v8927_v34, %v8948_v36  ;;  %15140 = vmatmul.mubr.msk.f32.gmra.mrb[30].mxu1 %vm8795_vm8, %v9040_v39  ;;  %v8840_v43 = vld [vmem:[#allocation9 + $0x80] ss:$2 sm:$0xff]  ;;  %v8868_v44 = vld [vmem:[#allocation9 + $0x81] ss:$2 sm:$0xff]  ;;  %8817 = vst.msk [vmem:[#allocation9 + $0xa8] sm:$0xff] %vm8795_vm8, %v8788_v37 }
 0x7c7   : > { %v8908_v45 = vld [vmem:[#allocation9 + $0x72] ss:$2 sm:$0xff]  ;;  %8816 = vst.msk [vmem:[#allocation9 + $0xa0] sm:$0xff] %vm8795_vm8, %v8787_v42  ;;  %v15125_v50 = vpop.f32.mrb[22].mxu1  ;;  %v8950_v52 = vld [vmem:[#allocation9 + $0x73] ss:$2 sm:$0xff]  ;;  %v8887_v57 = vmax.f32 %v8840_v43, %v8868_v44 }
 0x7c8   : > { %v8983_v46 = vmax.f32 %v8969_v41, 0.0  ;;  %v8928_v48 = vmax.f32 %v8886_v40, %v8908_v45  ;;  %v8790_v54 = vadd.f32 %v15125_v50, %v18491_v53  ;;  %v8703_v59 = vpop.f32.mrb[23].mxu1 }
 0x7c9   : > { %v9041_v56 = vld [vmem:[#allocation3 + $0x21] sm:$0xff]  ;;  %v8789_v60 = vadd.f32 %v18491_v53, %v8703_v59 }
 0x7ca   : > { %9013 = vst.msk [vmem:[#allocation3 + $0x34] sm:$0xff] %vm8795_vm8, %v8983_v46  ;;  %v8970_v58 = vmax.f32 %v8928_v48, %v8950_v52  ;;  %15142 = vmatprep.mubr.msk.f32.mxu1 %vm8795_vm8, %v9041_v56  ;;  %v8842_v12 = vld [vmem:[#allocation9 + $0x90] ss:$2 sm:$0xff]  ;;  %v8870_v61 = vld [vmem:[#allocation9 + $0x91] ss:$2 sm:$0xff]  ;;  %8819 = vst.msk [vmem:[#allocation9 + $0xb8] sm:$0xff] %vm8795_vm8, %v8790_v54 }
 0x7cb   : > { %v8910_v62 = vld [vmem:[#allocation9 + $0x82] ss:$2 sm:$0xff]  ;;  %8818 = vst.msk [vmem:[#allocation9 + $0xb0] sm:$0xff] %vm8795_vm8, %v8789_v60  ;;  %v15128_v1 = vpop.f32.mrb[24].mxu1  ;;  %v8952_v3 = vld [vmem:[#allocation9 + $0x83] ss:$2 sm:$0xff]  ;;  %v8888_v8 = vmax.f32 %v8842_v12, %v8870_v61 }
 0x7cc   : > { %v8984_v63 = vmax.f32 %v8970_v58, 0.0  ;;  %v8929_v0 = vmax.f32 %v8887_v57, %v8910_v62  ;;  %v8792_v5 = vadd.f32 %v15128_v1, %v18491_v53  ;;  %v8713_v6 = vpop.f32.mrb[25].mxu1  ;;  %v9021_v1 = vld [vmem:[#allocation3] sm:$0xff] }
 0x7cd   : > { %v9042_v7 = vld [vmem:[#allocation3 + $0x29] sm:$0xff]  ;;  %v8791_v10 = vadd.f32 %v18491_v53, %v8713_v6 }
 0x7ce   : > { %9014 = vst.msk [vmem:[#allocation3 + $0x3c] sm:$0xff] %vm8795_vm8, %v8984_v63  ;;  %v8971_v9 = vmax.f32 %v8929_v0, %v8952_v3  ;;  %15143 = vmatmul.mubr.msk.f32.gmra.mrb[32].mxu1 %vm8795_vm8, %v9042_v7  ;;  %v8844_v13 = vld [vmem:[#allocation9 + $0xa0] ss:$2 sm:$0xff]  ;;  %v8872_v14 = vld [vmem:[#allocation9 + $0xa1] ss:$2 sm:$0xff]  ;;  %8821 = vst.msk [vmem:[#allocation9 + $0xc8] sm:$0xff] %vm8795_vm8, %v8792_v5 }
 0x7cf   : > { %v8912_v55 = vld [vmem:[#allocation9 + $0x92] ss:$2 sm:$0xff]  ;;  %8820 = vst.msk [vmem:[#allocation9 + $0xc0] sm:$0xff] %vm8795_vm8, %v8791_v10  ;;  %v15131_v17 = vpop.f32.mrb[26].mxu1  ;;  %v8954_v18 = vld [vmem:[#allocation9 + $0x93] ss:$2 sm:$0xff]  ;;  %v8889_v22 = vmax.f32 %v8844_v13, %v8872_v14 }
 0x7d0   : > { %v8985_v15 = vmax.f32 %v8971_v9, 0.0  ;;  %v8930_v16 = vmax.f32 %v8888_v8, %v8912_v55  ;;  %v8794_v19 = vadd.f32 %v15131_v17, %v18491_v53  ;;  %v8723_v20 = vpop.f32.mrb[27].mxu1  ;;  %v9638_v63 = vld [vmem:[%s19531_s5 + $0x24] sm:$0xff]  ;;  %v9639_v0 = vld [vmem:[%s19531_s5 + $0x2c] sm:$0xf]  ;;  %v18605_v5 = vld [vmem:[#allocation3 + $0x8] sm:$0xff] }
 0x7d1   : > { %v9043_v21 = vld [vmem:[#allocation3 + $0x31] sm:$0xff]  ;;  %v8793_v24 = vadd.f32 %v18491_v53, %v8723_v20  ;;  %v15463_v3 = vpack.c.bf16 %v9639_v0, %v9638_v63  ;;  %v18622_v8 = vld [vmem:[#allocation3 + $0x20] sm:$0xff]  ;;  %v18626_v9 = vld [vmem:[#allocation3 + $0x28] sm:$0xff] }
 0x7d2   : > { %9015 = vst.msk [vmem:[#allocation3 + $0x44] sm:$0xff] %vm8795_vm8, %v8985_v15  ;;  %v8972_v23 = vmax.f32 %v8930_v16, %v8954_v18  ;;  %15145 = vmatprep.mubr.msk.f32.mxu1 %vm8795_vm8, %v9043_v21  ;;  %v8846_v25 = vld [vmem:[#allocation9 + $0xb0] ss:$2 sm:$0xff]  ;;  %v8874_v26 = vld [vmem:[#allocation9 + $0xb1] ss:$2 sm:$0xff]  ;;  %8823 = vst.msk [vmem:[#allocation9 + $0xd8] sm:$0xff] %vm8795_vm8, %v8794_v19 }
 0x7d3   : > { %v8914_v27 = vld [vmem:[#allocation9 + $0xa2] ss:$2 sm:$0xff]  ;;  %8822 = vst.msk [vmem:[#allocation9 + $0xd0] sm:$0xff] %vm8795_vm8, %v8793_v24  ;;  %v8956_v51 = vld [vmem:[#allocation9 + $0xa3] ss:$2 sm:$0xff]  ;;  %v8890_v30 = vmax.f32 %v8846_v25, %v8874_v26  ;;  %v18609_v6 = vld [vmem:[#allocation3 + $0x10] sm:$0xff] }
 0x7d4   : > { %v8986_v28 = vmax.f32 %v8972_v23, 0.0  ;;  %v8931_v29 = vmax.f32 %v8889_v22, %v8914_v27  ;;  %v18618_v7 = vld [vmem:[#allocation3 + $0x18] sm:$0xff]  ;;  %v11282_v10 = vld [vmem:[%s19507_s7 + $0x70] sm:$0xff]  ;;  %v11283_v13 = vld [vmem:[%s19507_s7 + $0x78] sm:$0xff] }
 0x7d5   : > { %v9044_v47 = vld [vmem:[#allocation3 + $0x39] sm:$0xff]  ;;  %v15521_v14 = vpack.c.bf16 %v11283_v13, %v11282_v10  ;;  %v9849_v22 = vld [vmem:[%s19531_s5 + $0x38] sm:$0xf]  ;;  %v9835_v63 = vld [vmem:[#allocation3 + $0xc] sm:$0xff] }
 0x7d6   : > { %9016 = vst.msk [vmem:[#allocation3 + $0x4c] sm:$0xff] %vm8795_vm8, %v8986_v28  ;;  %v8973_v31 = vmax.f32 %v8931_v29, %v8956_v51  ;;  %15146 = vmatmul.mubr.msk.f32.gmra.mrb[34].mxu1 %vm8795_vm8, %v9044_v47  ;;  %v8916_v53 = vld [vmem:[#allocation9 + $0xb2] ss:$2 sm:$0xff]  ;;  %v8876_v34 = vld [vmem:[#allocation9 + $0xc1] ss:$2 sm:$0xff] }
 0x7d7   : > { %v8848_v33 = vld [vmem:[#allocation9 + $0xc0] ss:$2 sm:$0xff]  ;;  %v8932_v35 = vmax.f32 %v8890_v30, %v8916_v53  ;;  %v8958_v36 = vld [vmem:[#allocation9 + $0xb3] ss:$2 sm:$0xff]  ;;  %15522 = vmatpush1.bf16.msra.mxu0 %v15521_v14 }
 0x7d8   : > { %v8987_v32 = vmax.f32 %v8973_v31, 0.0  ;;  %v8891_v39 = vmax.f32 %v8848_v33, %v8876_v34  ;;  %v18640_v55 = vld [vmem:[#allocation3 + $0x38] sm:$0xff]  ;;  %15523 = vmatprep.subr.bf16.mxu0 %v16301_v2  ;;  %v9848_v21 = vld [vmem:[%s19531_s5 + $0x30] sm:$0xff]  ;;  %v9415_v25 = vld [vmem:[#allocation3 + $0xa] sm:$0xff] }
 0x7d9   : > { %v9045_v37 = vld [vmem:[#allocation3 + $0x41] sm:$0xff]  ;;  %v8974_v38 = vmax.f32 %v8932_v35, %v8958_v36  ;;  %v15469_v24 = vpack.c.bf16 %v9849_v22, %v9848_v21  ;;  %v9416_v26 = vld [vmem:[#allocation3 + $0x12] sm:$0xff]  ;;  %v9419_v29 = vld [vmem:[#allocation3 + $0x2a] sm:$0xff] }
 0x7da   : > { %9017 = vst.msk [vmem:[#allocation3 + $0x54] sm:$0xff] %vm8795_vm8, %v8987_v32  ;;  %15148 = vmatprep.mubr.msk.f32.mxu1 %vm8795_vm8, %v9045_v37  ;;  %v8850_v40 = vld [vmem:[#allocation9 + $0xd0] ss:$2 sm:$0x7f]  ;;  %v8960_v52 = vld [vmem:[#allocation9 + $0xc3] ss:$2 sm:$0xff] }
 0x7db   : > { %v8878_v41 = vld [vmem:[#allocation9 + $0xd1] ss:$2 sm:$0x7f]  ;;  %v8988_v42 = vmax.f32 %v8974_v38, 0.0  ;;  %v8918_v44 = vld [vmem:[#allocation9 + $0xc2] ss:$2 sm:$0xff] }
 0x7dc   : > { %v8892_v43 = vmax.f32 %v8850_v40, %v8878_v41  ;;  %v8920_v45 = vld [vmem:[#allocation9 + $0xd2] ss:$2 sm:$0x7f]  ;;  %v8933_v46 = vmax.f32 %v8891_v39, %v8918_v44  ;;  %v8962_v54 = vld [vmem:[#allocation9 + $0xd3] ss:$2 sm:$0x7f] }
 0x7dd   : > { %v9046_v48 = vld [vmem:[#allocation3 + $0x49] sm:$0xff]  ;;  %9018 = vst.msk [vmem:[#allocation3 + $0x5c] sm:$0xff] %vm8795_vm8, %v8988_v42  ;;  %v18644_v15 = vld [vmem:[#allocation3 + $0x40] sm:$0xff]  ;;  %v9420_v51 = vld [vmem:[#allocation3 + $0x32] sm:$0xff] }
 0x7de   : > { %v8934_v50 = vmax.f32 %v8892_v43, %v8920_v45  ;;  %15149 = vmatmul.mubr.msk.f32.gmra.mrb[36].mxu1 %vm8795_vm8, %v9046_v48  ;;  %v8975_v59 = vmax.f32 %v8933_v46, %v8960_v52  ;;  %v18649_v16 = vld [vmem:[#allocation3 + $0x48] sm:$0xff]  ;;  %v9417_v27 = vld [vmem:[#allocation3 + $0x1a] sm:$0xff]  ;;  %v10059_v36 = vld [vmem:[%s19531_s5 + $0x44] sm:$0xf] }
 0x7df   : > { %v9414_v23 = vld [vmem:[#allocation3 + $0x2] sm:$0xff]  ;;  %v9421_v47 = vld [vmem:[#allocation3 + $0x3a] sm:$0xff]  ;;  %v9423_v31 = vld [vmem:[#allocation3 + $0x4a] sm:$0xff] }
 0x7e0   : > { %v8976_v56 = vmax.f32 %v8934_v50, %v8962_v54  ;;  %v8989_v57 = vmax.f32 %v8975_v59, 0.0  ;;  %v9418_v28 = vld [vmem:[#allocation3 + $0x22] sm:$0xff]  ;;  %v10058_v35 = vld [vmem:[%s19531_s5 + $0x3c] sm:$0xff]  ;;  %v11285_v54 = vld [vmem:[%s19507_s7 + $0x88] sm:$0xff] }
 0x7e1   : > { %v9047_v58 = vld [vmem:[#allocation3 + $0x51] sm:$0xff]  ;;  %v9422_v30 = vld [vmem:[#allocation3 + $0x42] sm:$0xff]  ;;  %v15475_v38 = vpack.c.bf16 %v10059_v36, %v10058_v35 }
 0x7e2   : > { %v8990_v60 = vmax.f32 %v8976_v56, 0.0  ;;  %15151 = vmatprep.mubr.msk.f32.mxu1 %vm8795_vm8, %v9047_v58  ;;  %9019 = vst.msk [vmem:[#allocation3 + $0x64] sm:$0xff] %vm8795_vm8, %v8989_v57  ;;  %v18653_v17 = vld [vmem:[#allocation3 + $0x50] sm:$0xff]  ;;  %v9624_v37 = vld [vmem:[#allocation3 + $0x3] sm:$0xff]  ;;  %v9627_v41 = vld [vmem:[#allocation3 + $0x1b] sm:$0xff] }
 0x7e3   : > { %v9424_v53 = vld [vmem:[#allocation3 + $0x52] sm:$0xff]  ;;  %v9628_v42 = vld [vmem:[#allocation3 + $0x23] sm:$0xff]  ;;  %v9631_v45 = vld [vmem:[#allocation3 + $0x3b] sm:$0xff] }
 0x7e4   : > { %9020 = vst.msk [vmem:[#allocation3 + $0x6c] sm:$0x7f] %vm9005_vm9, %v8990_v60  ;;  %v9048_v12 = vld [vmem:[#allocation3 + $0x59] sm:$0xff]  ;;  %v9625_v39 = vld [vmem:[#allocation3 + $0xb] sm:$0xff]  ;;  %v9632_v46 = vld [vmem:[#allocation3 + $0x43] sm:$0xff] }
 0x7e5   : > { %15152 = vmatmul.mubr.msk.f32.gmra.mrb[38].mxu1 %vm8795_vm8, %v9048_v12  ;;  %v18657_v18 = vld [vmem:[#allocation3 + $0x58] sm:$0xff]  ;;  %v9629_v43 = vld [vmem:[#allocation3 + $0x2b] sm:$0xff]  ;;  %v10269_v12 = vld [vmem:[%s19531_s5 + $0x50] sm:$0xf] }
 0x7e6   : > { %v9425_v32 = vld [vmem:[#allocation3 + $0x5a] sm:$0xff]  ;;  %v9633_v48 = vld [vmem:[#allocation3 + $0x4b] sm:$0xff] }
 0x7e7   : > { %v9626_v40 = vld [vmem:[#allocation3 + $0x13] sm:$0xff]  ;;  %v9635_v56 = vld [vmem:[#allocation3 + $0x5b] sm:$0xff]  ;;  %v10472_v49 = vld [vmem:[#allocation3 + $0x47] sm:$0xff] }
 0x7e8   : > { %v9630_v44 = vld [vmem:[#allocation3 + $0x33] sm:$0xff]  ;;  %v11286_v14 = vld [vmem:[%s19507_s7 + $0x90] sm:$0xff] }
 0x7e9   : > { %v9049_v61 = vld [vmem:[#allocation3 + $0x61] sm:$0xff]  ;;  %v9634_v50 = vld [vmem:[#allocation3 + $0x53] sm:$0xff] }
 0x7ea   : > { %15154 = vmatprep.mubr.msk.f32.mxu1 %vm8795_vm8, %v9049_v61  ;;  %v18661_v19 = vld [vmem:[#allocation3 + $0x60] sm:$0xff]  ;;  %v11284_v52 = vld [vmem:[%s19507_s7 + $0x80] sm:$0xff]  ;;  %v10268_v60 = vld [vmem:[%s19531_s5 + $0x48] sm:$0xff] }
 0x7eb   : > { %v9050_v62 = vld [vmem:[#allocation3 + $0x69] sm:$0x7f]  ;;  %v15524_v59 = vpack.c.bf16 %v11285_v54, %v11284_v52  ;;  %v9836_v0 = vld [vmem:[#allocation3 + $0x14] sm:$0xff] }
 0x7ec   : > { %15155 = vmatmul.mubr.msk.f32.gmra.mrb[40].mxu1 %vm8795_vm8, %v9050_v62  ;;  %v9034_v20 = vld [vmem:[#allocation3 + $0x68] sm:$0x7f]  ;;  %v15481_v62 = vpack.c.bf16 %v10269_v12, %v10268_v60  ;;  %v9840_v13 = vld [vmem:[#allocation3 + $0x34] sm:$0xff]  ;;  %v10257_v60 = vld [vmem:[#allocation3 + $0x1e] sm:$0xff] }
 0x7ed   : > { %15161 = vmatprep.mubr.msk.f32.mxu1 %vm8795_vm8, %v9021_v1  ;;  %v9426_v33 = vld [vmem:[#allocation3 + $0x62] sm:$0xff]  ;;  %v9427_v34 = vld [vmem:[#allocation3 + $0x6a] sm:$0x7f]  ;;  %15525 = vmatpush1.bf16.msra.mxu0 %v15524_v59  ;;  %v10689_v54 = vld [vmem:[%s19531_s5 + $0x68] sm:$0xf] }
 0x7ee   : > { %v9636_v57 = vld [vmem:[#allocation3 + $0x63] sm:$0xff]  ;;  %15526 = vmatprep.subr.bf16.mxu0 %v16301_v2  ;;  %v9637_v58 = vld [vmem:[#allocation3 + $0x6b] sm:$0x7f] }
 0x7ef   : > { %v9834_v61 = vld [vmem:[#allocation3 + $0x4] sm:$0xff]  ;;  %v9837_v1 = vld [vmem:[#allocation3 + $0x1c] sm:$0xff]  ;;  %v9839_v10 = vld [vmem:[#allocation3 + $0x2c] sm:$0xff] }
 0x7f0   : > { %15162 = vmatmul.mubr.msk.f32.vlgmr.msra.gmra.mrb[28].mxu1 %vm8795_vm8, %v18605_v5  ;;  %v11288_v21 = vld [vmem:[%s19507_s7 + $0xa0] sm:$0xff]  ;;  %v10254_v59 = vld [vmem:[#allocation3 + $0x6] sm:$0xff] }
 0x7f1   : > { %15462 = vmatpush3.bf16.msk.msra.mxu1 %vm18367_vm7, %v18541_v11  ;;  %15164 = vmatprep.mubr.msk.f32.mxu1 %vm8795_vm8, %v18609_v6  ;;  %v18630_v11 = vld [vmem:[#allocation3 + $0x30] sm:$0xff]  ;;  %v10258_v12 = vld [vmem:[#allocation3 + $0x26] sm:$0xff] }
 0x7f2   : > { %15465 = vmatprep.subr.msk.bf16.mxu1 %vm18367_vm7, %v15463_v3  ;;  %v10045_v36 = vld [vmem:[#allocation3 + $0xd] sm:$0xff] }
 0x7f3   : > { %v10688_v52 = vld [vmem:[%s19531_s5 + $0x60] sm:$0xff] }
 0x7f4   : > { %15165 = vmatmul.mubr.msk.f32.gmra.mrb[30].mxu1 %vm8795_vm8, %v18618_v7 }
 0x7f5   : > { %15167 = vmatprep.mubr.msk.f32.mxu1 %vm8795_vm8, %v18622_v8 }
 0x7f8   : > { %15168 = vmatmul.mubr.msk.f32.gmra.mrb[32].mxu1 %vm8795_vm8, %v18626_v9 }
 0x7f9   : > { %15170 = vmatprep.mubr.msk.f32.mxu1 %vm8795_vm8, %v18630_v11 }
 0x7fc   : > { %15171 = vmatmul.mubr.msk.f32.gmra.mrb[34].mxu1 %vm8795_vm8, %v18640_v55 }
 0x7fd   : > { %15173 = vmatprep.mubr.msk.f32.mxu1 %vm8795_vm8, %v18644_v15 }
 0x800   : > { %15174 = vmatmul.mubr.msk.f32.gmra.mrb[36].mxu1 %vm8795_vm8, %v18649_v16 }
 0x801   : > { %15176 = vmatprep.mubr.msk.f32.mxu1 %vm8795_vm8, %v18653_v17 }
 0x804   : > { %15177 = vmatmul.mubr.msk.f32.gmra.mrb[38].mxu1 %vm8795_vm8, %v18657_v18 }
 0x805   : > { %15179 = vmatprep.mubr.msk.f32.mxu1 %vm8795_vm8, %v18661_v19 }
 0x808   : > { %15180 = vmatmul.mubr.msk.f32.gmra.mrb[40].mxu1 %vm8795_vm8, %v9034_v20  ;;  %v11287_v20 = vld [vmem:[%s19507_s7 + $0x98] sm:$0xff] }
 0x809   : > { %15186 = vmatprep.mubr.msk.f32.mxu1 %vm8795_vm8, %v9414_v23  ;;  %v15527_v22 = vpack.c.bf16 %v11287_v20, %v11286_v14  ;;  %v11289_v23 = vld [vmem:[%s19507_s7 + $0xa8] sm:$0xff]  ;;  %v10267_v14 = vld [vmem:[#allocation3 + $0x6e] sm:$0x7f] }
 0x80a   : > { %v10464_v20 = vld [vmem:[#allocation3 + $0x7] sm:$0xff] }
 0x80b   : > { %15528 = vmatpush1.bf16.msra.mxu0 %v15527_v22  ;;  %v10466_v22 = vld [vmem:[#allocation3 + $0x17] sm:$0xff] }
 0x80c   : > { %15187 = vmatmul.mubr.msk.f32.vlgmr.msra.gmra.mrb[28].mxu1 %vm8795_vm8, %v9415_v25  ;;  %v15530_v25 = vpack.c.bf16 %v11289_v23, %v11288_v21  ;;  %15529 = vmatprep.subr.bf16.mxu0 %v16301_v2  ;;  %v10465_v21 = vld [vmem:[#allocation3 + $0xf] sm:$0xff]  ;;  %v10467_v23 = vld [vmem:[#allocation3 + $0x1f] sm:$0xff] }
 0x80d   : > { %15468 = vmatpush3.bf16.msk.msra.mxu1 %vm18367_vm7, %v15463_v3  ;;  %15189 = vmatprep.mubr.msk.f32.mxu1 %vm8795_vm8, %v9416_v26  ;;  %v9838_v3 = vld [vmem:[#allocation3 + $0x24] sm:$0xff] }
 0x80e   : > { %15471 = vmatprep.subr.msk.bf16.mxu1 %vm18367_vm7, %v15469_v24  ;;  %v9842_v26 = vld [vmem:[#allocation3 + $0x44] sm:$0xff] }
 0x80f   : > { %15531 = vmatpush1.bf16.msra.mxu0 %v15530_v25  ;;  %v10469_v25 = vld [vmem:[#allocation3 + $0x2f] sm:$0xff] }
 0x810   : > { %15190 = vmatmul.mubr.msk.f32.gmra.mrb[30].mxu1 %vm8795_vm8, %v9417_v27  ;;  %v11290_v27 = vld [vmem:[%s19507_s7 + $0xb0] sm:$0xff]  ;;  %15532 = vmatprep.subr.bf16.mxu0 %v16301_v2 }
 0x811   : > { %15192 = vmatprep.mubr.msk.f32.mxu1 %vm8795_vm8, %v9418_v28  ;;  %v11291_v28 = vld [vmem:[%s19507_s7 + $0xb8] sm:$0xff] }
 0x814   : > { %15193 = vmatmul.mubr.msk.f32.gmra.mrb[32].mxu1 %vm8795_vm8, %v9419_v29  ;;  %v9843_v29 = vld [vmem:[#allocation3 + $0x4c] sm:$0xff] }
 0x815   : > { %15195 = vmatprep.mubr.msk.f32.mxu1 %vm8795_vm8, %v9420_v51  ;;  %v15533_v51 = vpack.c.bf16 %v11291_v28, %v11290_v27  ;;  %v10471_v27 = vld [vmem:[#allocation3 + $0x3f] sm:$0xff]  ;;  %v10473_v28 = vld [vmem:[#allocation3 + $0x4f] sm:$0xff] }
 0x817   : > { %15534 = vmatpush1.bf16.msra.mxu0 %v15533_v51  ;;  %v10475_v51 = vld [vmem:[#allocation3 + $0x5f] sm:$0xff] }
 0x818   : > { %15196 = vmatmul.mubr.msk.f32.gmra.mrb[34].mxu1 %vm8795_vm8, %v9421_v47  ;;  %v9844_v47 = vld [vmem:[#allocation3 + $0x54] sm:$0xff]  ;;  %15535 = vmatprep.subr.bf16.mxu0 %v16301_v2 }
 0x819   : > { %15198 = vmatprep.mubr.msk.f32.mxu1 %vm8795_vm8, %v9422_v30  ;;  %v9845_v30 = vld [vmem:[#allocation3 + $0x5c] sm:$0xff] }
 0x81c   : > { %15199 = vmatmul.mubr.msk.f32.gmra.mrb[36].mxu1 %vm8795_vm8, %v9423_v31  ;;  %v9846_v31 = vld [vmem:[#allocation3 + $0x64] sm:$0xff] }
 0x81d   : > { %15201 = vmatprep.mubr.msk.f32.mxu1 %vm8795_vm8, %v9424_v53  ;;  %v9847_v53 = vld [vmem:[#allocation3 + $0x6c] sm:$0x7f] }
 0x820   : > { %15202 = vmatmul.mubr.msk.f32.gmra.mrb[38].mxu1 %vm8795_vm8, %v9425_v32  ;;  %v10478_v32 = vld [vmem:[%s19531_s5 + $0x54] sm:$0xff] }
 0x821   : > { %15204 = vmatprep.mubr.msk.f32.mxu1 %vm8795_vm8, %v9426_v33  ;;  %v10479_v33 = vld [vmem:[%s19531_s5 + $0x5c] sm:$0xf]  ;;  %s13117_s5 = sshll.u32 %s16415_s25, 4  ;;  %s16308_s25 = smov [#allocation15]  }
 0x822   : > { %v15487_v35 = vpack.c.bf16 %v10479_v33, %v10478_v32  ;;  %s19458_s26 = scalar_lea.hbm %s19516_s16, %s13117_s5  ;;  %s16241_s3 = sshll.u32 %s16308_s25, 4  ;;  %s16242_s3 = int_to_ptr.vmem [resolvable:$false] %s16241_s3 }
 0x824   : > { %15205 = vmatmul.mubr.msk.f32.gmra.mrb[40].mxu1 %vm8795_vm8, %v9427_v34  ;;  %v10044_v34 = vld [vmem:[#allocation3 + $0x5] sm:$0xff] }
 0x825   : > { %15211 = vmatprep.mubr.msk.f32.mxu1 %vm8795_vm8, %v9624_v37  ;;  %v10046_v37 = vld [vmem:[#allocation3 + $0x15] sm:$0xff] }
 0x828   : > { %15212 = vmatmul.mubr.msk.f32.vlgmr.msra.gmra.mrb[28].mxu1 %vm8795_vm8, %v9625_v39  ;;  %v10048_v39 = vld [vmem:[#allocation3 + $0x25] sm:$0xff] }
 0x829   : > { %15474 = vmatpush3.bf16.msk.msra.mxu1 %vm18367_vm7, %v15469_v24  ;;  %15214 = vmatprep.mubr.msk.f32.mxu1 %vm8795_vm8, %v9626_v40  ;;  %v9841_v24 = vld [vmem:[#allocation3 + $0x3c] sm:$0xff]  ;;  %v10049_v40 = vld [vmem:[#allocation3 + $0x2d] sm:$0xff] }
 0x82a   : > { %15477 = vmatprep.subr.msk.bf16.mxu1 %vm18367_vm7, %v15475_v38 }
 0x82c   : > { %15215 = vmatmul.mubr.msk.f32.gmra.mrb[30].mxu1 %vm8795_vm8, %v9627_v41  ;;  %v10050_v41 = vld [vmem:[#allocation3 + $0x35] sm:$0xff] }
 0x82d   : > { %15217 = vmatprep.mubr.msk.f32.mxu1 %vm8795_vm8, %v9628_v42  ;;  %v10051_v42 = vld [vmem:[#allocation3 + $0x3d] sm:$0xff] }
 0x830   : > { %15218 = vmatmul.mubr.msk.f32.gmra.mrb[32].mxu1 %vm8795_vm8, %v9629_v43  ;;  %v10052_v43 = vld [vmem:[#allocation3 + $0x45] sm:$0xff] }
 0x831   : > { %15220 = vmatprep.mubr.msk.f32.mxu1 %vm8795_vm8, %v9630_v44  ;;  %v10053_v44 = vld [vmem:[#allocation3 + $0x4d] sm:$0xff] }
 0x834   : > { %15221 = vmatmul.mubr.msk.f32.gmra.mrb[34].mxu1 %vm8795_vm8, %v9631_v45  ;;  %v10054_v45 = vld [vmem:[#allocation3 + $0x55] sm:$0xff] }
 0x835   : > { %15223 = vmatprep.mubr.msk.f32.mxu1 %vm8795_vm8, %v9632_v46  ;;  %v10055_v46 = vld [vmem:[#allocation3 + $0x5d] sm:$0xff] }
 0x838   : > { %15224 = vmatmul.mubr.msk.f32.gmra.mrb[36].mxu1 %vm8795_vm8, %v9633_v48  ;;  %v10056_v48 = vld [vmem:[#allocation3 + $0x65] sm:$0xff] }
 0x839   : > { %15226 = vmatprep.mubr.msk.f32.mxu1 %vm8795_vm8, %v9634_v50  ;;  %v10057_v50 = vld [vmem:[#allocation3 + $0x6d] sm:$0x7f] }
 0x83c   : > { %15227 = vmatmul.mubr.msk.f32.gmra.mrb[38].mxu1 %vm8795_vm8, %v9635_v56  ;;  %v15493_v56 = vpack.c.bf16 %v10689_v54, %v10688_v52 }
 0x83d   : > { %15229 = vmatprep.mubr.msk.f32.mxu1 %vm8795_vm8, %v9636_v57  ;;  %v10255_v57 = vld [vmem:[#allocation3 + $0xe] sm:$0xff] }
 0x840   : > { %15230 = vmatmul.mubr.msk.f32.gmra.mrb[40].mxu1 %vm8795_vm8, %v9637_v58  ;;  %v10256_v58 = vld [vmem:[#allocation3 + $0x16] sm:$0xff] }
 0x841   : > { %15236 = vmatprep.mubr.msk.f32.mxu1 %vm8795_vm8, %v9834_v61  ;;  %v10259_v61 = vld [vmem:[#allocation3 + $0x2e] sm:$0xff] }
 0x844   : > { %15237 = vmatmul.mubr.msk.f32.vlgmr.msra.gmra.mrb[28].mxu1 %vm8795_vm8, %v9835_v63  ;;  %v10261_v63 = vld [vmem:[#allocation3 + $0x3e] sm:$0xff] }
 0x845   : > { %15480 = vmatpush3.bf16.msk.msra.mxu1 %vm18367_vm7, %v15475_v38  ;;  %15239 = vmatprep.mubr.msk.f32.mxu1 %vm8795_vm8, %v9836_v0  ;;  %v10047_v38 = vld [vmem:[#allocation3 + $0x1d] sm:$0xff]  ;;  %v10262_v0 = vld [vmem:[#allocation3 + $0x46] sm:$0xff] }
 0x846   : > { %15483 = vmatprep.subr.msk.bf16.mxu1 %vm18367_vm7, %v15481_v62 }
 0x848   : > { %15240 = vmatmul.mubr.msk.f32.gmra.mrb[30].mxu1 %vm8795_vm8, %v9837_v1  ;;  %v10263_v1 = vld [vmem:[#allocation3 + $0x4e] sm:$0xff] }
 0x849   : > { %15242 = vmatprep.mubr.msk.f32.mxu1 %vm8795_vm8, %v9838_v3  ;;  %v10264_v3 = vld [vmem:[#allocation3 + $0x56] sm:$0xff] }
 0x84c   : > { %15243 = vmatmul.mubr.msk.f32.gmra.mrb[32].mxu1 %vm8795_vm8, %v9839_v10  ;;  %v10265_v10 = vld [vmem:[#allocation3 + $0x5e] sm:$0xff] }
 0x84d   : > { %15245 = vmatprep.mubr.msk.f32.mxu1 %vm8795_vm8, %v9840_v13  ;;  %v10266_v13 = vld [vmem:[#allocation3 + $0x66] sm:$0xff] }
 0x850   : > { %15246 = vmatmul.mubr.msk.f32.gmra.mrb[34].mxu1 %vm8795_vm8, %v9841_v24  ;;  %v10468_v24 = vld [vmem:[#allocation3 + $0x27] sm:$0xff] }
 0x851   : > { %15248 = vmatprep.mubr.msk.f32.mxu1 %vm8795_vm8, %v9842_v26  ;;  %v10470_v26 = vld [vmem:[#allocation3 + $0x37] sm:$0xff] }
 0x854   : > { %15249 = vmatmul.mubr.msk.f32.gmra.mrb[36].mxu1 %vm8795_vm8, %v9843_v29  ;;  %v10474_v29 = vld [vmem:[#allocation3 + $0x57] sm:$0xff] }
 0x855   : > { %15251 = vmatprep.mubr.msk.f32.mxu1 %vm8795_vm8, %v9844_v47  ;;  %v10476_v47 = vld [vmem:[#allocation3 + $0x67] sm:$0xff] }
 0x858   : > { %15252 = vmatmul.mubr.msk.f32.gmra.mrb[38].mxu1 %vm8795_vm8, %v9845_v30  ;;  %v10477_v30 = vld [vmem:[#allocation3 + $0x6f] sm:$0x7f] }
 0x859   : > { %15254 = vmatprep.mubr.msk.f32.mxu1 %vm8795_vm8, %v9846_v31 }
 0x85c   : > { %15255 = vmatmul.mubr.msk.f32.gmra.mrb[40].mxu1 %vm8795_vm8, %v9847_v53 }
 0x85d   : > { %15261 = vmatprep.mubr.msk.f32.mxu1 %vm8795_vm8, %v10044_v34 }
 0x860   : > { %15262 = vmatmul.mubr.msk.f32.vlgmr.msra.gmra.mrb[28].mxu1 %vm8795_vm8, %v10045_v36 }
 0x861   : > { %15486 = vmatpush3.bf16.msk.msra.mxu1 %vm18367_vm7, %v15481_v62  ;;  %15264 = vmatprep.mubr.msk.f32.mxu1 %vm8795_vm8, %v10046_v37  ;;  %v10260_v62 = vld [vmem:[#allocation3 + $0x36] sm:$0xff] }
 0x862   : > { %15489 = vmatprep.subr.msk.bf16.mxu1 %vm18367_vm7, %v15487_v35 }
 0x864   : > { %15265 = vmatmul.mubr.msk.f32.gmra.mrb[30].mxu1 %vm8795_vm8, %v10047_v38 }
 0x865   : > { %15267 = vmatprep.mubr.msk.f32.mxu1 %vm8795_vm8, %v10048_v39 }
 0x868   : > { %15268 = vmatmul.mubr.msk.f32.gmra.mrb[32].mxu1 %vm8795_vm8, %v10049_v40 }
 0x869   : > { %15270 = vmatprep.mubr.msk.f32.mxu1 %vm8795_vm8, %v10050_v41 }
 0x86c   : > { %15271 = vmatmul.mubr.msk.f32.gmra.mrb[34].mxu1 %vm8795_vm8, %v10051_v42 }
 0x86d   : > { %15273 = vmatprep.mubr.msk.f32.mxu1 %vm8795_vm8, %v10052_v43 }
 0x870   : > { %15274 = vmatmul.mubr.msk.f32.gmra.mrb[36].mxu1 %vm8795_vm8, %v10053_v44 }
 0x871   : > { %15276 = vmatprep.mubr.msk.f32.mxu1 %vm8795_vm8, %v10054_v45 }
 0x874   : > { %15277 = vmatmul.mubr.msk.f32.gmra.mrb[38].mxu1 %vm8795_vm8, %v10055_v46 }
 0x875   : > { %15279 = vmatprep.mubr.msk.f32.mxu1 %vm8795_vm8, %v10056_v48 }
 0x878   : > { %15280 = vmatmul.mubr.msk.f32.gmra.mrb[40].mxu1 %vm8795_vm8, %v10057_v50 }
 0x879   : > { %15286 = vmatprep.mubr.msk.f32.mxu1 %vm8795_vm8, %v10254_v59 }
 0x87c   : > { %15287 = vmatmul.mubr.msk.f32.vlgmr.msra.gmra.mrb[28].mxu1 %vm8795_vm8, %v10255_v57 }
 0x87d   : > { %15492 = vmatpush3.bf16.msk.msra.mxu1 %vm18367_vm7, %v15487_v35  ;;  %15289 = vmatprep.mubr.msk.f32.mxu1 %vm8795_vm8, %v10256_v58 }
 0x87e   : > { %15495 = vmatprep.subr.msk.bf16.mxu1 %vm18367_vm7, %v15493_v56 }
 0x880   : > { %15290 = vmatmul.mubr.msk.f32.gmra.mrb[30].mxu1 %vm8795_vm8, %v10257_v60 }
 0x881   : > { %15292 = vmatprep.mubr.msk.f32.mxu1 %vm8795_vm8, %v10258_v12 }
 0x884   : > { %15293 = vmatmul.mubr.msk.f32.gmra.mrb[32].mxu1 %vm8795_vm8, %v10259_v61 }
 0x885   : > { %15295 = vmatprep.mubr.msk.f32.mxu1 %vm8795_vm8, %v10260_v62 }
 0x888   : > { %15296 = vmatmul.mubr.msk.f32.gmra.mrb[34].mxu1 %vm8795_vm8, %v10261_v63 }
 0x889   : > { %15298 = vmatprep.mubr.msk.f32.mxu1 %vm8795_vm8, %v10262_v0 }
 0x88c   : > { %15299 = vmatmul.mubr.msk.f32.gmra.mrb[36].mxu1 %vm8795_vm8, %v10263_v1 }
 0x88d   : > { %15301 = vmatprep.mubr.msk.f32.mxu1 %vm8795_vm8, %v10264_v3 }
 0x890   : > { %15302 = vmatmul.mubr.msk.f32.gmra.mrb[38].mxu1 %vm8795_vm8, %v10265_v10 }
 0x891   : > { %15304 = vmatprep.mubr.msk.f32.mxu1 %vm8795_vm8, %v10266_v13 }
 0x894   : > { %15305 = vmatmul.mubr.msk.f32.gmra.mrb[40].mxu1 %vm8795_vm8, %v10267_v14 }
 0x895   : > { %15311 = vmatprep.mubr.msk.f32.mxu1 %vm8795_vm8, %v10464_v20 }
 0x898   : > { %15312 = vmatmul.mubr.msk.f32.vlgmr.msra.gmra.mrb[28].mxu1 %vm8795_vm8, %v10465_v21 }
 0x899   : > { %15498 = vmatpush3.bf16.msk.msra.mxu1 %vm18367_vm7, %v15493_v56  ;;  %15314 = vmatprep.mubr.msk.f32.mxu1 %vm8795_vm8, %v10466_v22 }
 0x89a   : > { %15589 = vmatprep.subr.bf16.mxu1 %v16301_v2 }
 0x89c   : > { %15315 = vmatmul.mubr.msk.f32.gmra.mrb[30].mxu1 %vm8795_vm8, %v10467_v23 }
 0x89d   : > { %15317 = vmatprep.mubr.msk.f32.mxu1 %vm8795_vm8, %v10468_v24 }
 0x8a0   : > { %15318 = vmatmul.mubr.msk.f32.gmra.mrb[32].mxu1 %vm8795_vm8, %v10469_v25 }
 0x8a1   : > { %15320 = vmatprep.mubr.msk.f32.mxu1 %vm8795_vm8, %v10470_v26 }
 0x8a4   : > { %15321 = vmatmul.mubr.msk.f32.gmra.mrb[34].mxu1 %vm8795_vm8, %v10471_v27 }
 0x8a5   : > { %15323 = vmatprep.mubr.msk.f32.mxu1 %vm8795_vm8, %v10472_v49 }
 0x8a8   : > { %15324 = vmatmul.mubr.msk.f32.gmra.mrb[36].mxu1 %vm8795_vm8, %v10473_v28 }
 0x8a9   : > { %15326 = vmatprep.mubr.msk.f32.mxu1 %vm8795_vm8, %v10474_v29 }
 0x8ac   : > { %15327 = vmatmul.mubr.msk.f32.gmra.mrb[38].mxu1 %vm8795_vm8, %v10475_v51 }
 0x8ad   : > { %15329 = vmatprep.mubr.msk.f32.mxu1 %vm8795_vm8, %v10476_v47 }
 0x8b0   : > { %15330 = vmatmul.mubr.msk.f32.gmra.mrb[40].mxu1 %vm8795_vm8, %v10477_v30 }
 0x8b1   : > { %15336 = vmatprep.mubr.msk.f32.mxu1 %vm8795_vm8, %v18605_v5  ;;  %v10686_v5 = vld [vmem:[#allocation3 + $0x68] sm:$0xff] }
 0x8b4   : > { %15337 = vmatmul.mubr.msk.f32.vlgmr.msra.gmra.mrb[28].mxu1 %vm8795_vm8, %v18609_v6  ;;  %v10687_v6 = vld [vmem:[#allocation3 + $0x70] sm:$0x7f] }
 0x8b5   : > { %15339 = vmatprep.mubr.msk.f32.mxu1 %vm8795_vm8, %v18618_v7  ;;  %v11292_v7 = vld [vmem:[%s19507_s7 + $0xc0] sm:$0xff] }
 0x8b8   : > { %15340 = vmatmul.mubr.msk.f32.gmra.mrb[30].mxu1 %vm8795_vm8, %v18622_v8  ;;  %v11293_v8 = vld [vmem:[%s19507_s7 + $0xc8] sm:$0xff] }
 0x8b9   : > { %15342 = vmatprep.mubr.msk.f32.mxu1 %vm8795_vm8, %v18626_v9  ;;  %v15536_v9 = vpack.c.bf16 %v11293_v8, %v11292_v7 }
 0x8bb   : > { %15537 = vmatpush1.bf16.msra.mxu0 %v15536_v9 }
 0x8bc   : > { %15343 = vmatmul.mubr.msk.f32.gmra.mrb[32].mxu1 %vm8795_vm8, %v18630_v11  ;;  %15538 = vmatprep.subr.bf16.mxu0 %v16301_v2  ;;  %v11294_v11 = vld [vmem:[%s19507_s7 + $0xd0] sm:$0xff] }
 0x8bd   : > { %15345 = vmatprep.mubr.msk.f32.mxu1 %vm8795_vm8, %v18640_v55  ;;  %v11295_v55 = vld [vmem:[%s19507_s7 + $0xd8] sm:$0xff] }
 0x8c0   : > { %15346 = vmatmul.mubr.msk.f32.gmra.mrb[34].mxu1 %vm8795_vm8, %v18644_v15  ;;  %v15539_v15 = vpack.c.bf16 %v11295_v55, %v11294_v11 }
 0x8c1   : > { %15348 = vmatprep.mubr.msk.f32.mxu1 %vm8795_vm8, %v18649_v16  ;;  %v18888_v16 = vld [vmem:[%s19506_s6] ss:$0 sm:$0xff] }
 0x8c2   : > { %15540 = vmatpush1.bf16.msra.mxu0 %v15539_v15 }
 0x8c4   : > { %15349 = vmatmul.mubr.msk.f32.gmra.mrb[36].mxu1 %vm8795_vm8, %v18653_v17 }
 0x8c5   : > { %15351 = vmatprep.mubr.msk.f32.mxu1 %vm8795_vm8, %v18657_v18 }
 0x8c8   : > { %15352 = vmatmul.mubr.msk.f32.gmra.mrb[38].mxu1 %vm8795_vm8, %v18661_v19 }
 0x8c9   : > { %15354 = vmatprep.mubr.msk.f32.mxu1 %vm8795_vm8, %v10686_v5 }
 0x8cc   : > { %15355 = vmatmul.mubr.msk.f32.gmra.mrb[40].mxu1 %vm8795_vm8, %v10687_v6 }
 0x987   : > { %v15338_v17 = vpop.f32.mrb[28].mxu1 }
 0x988   : > { %v10892_v18 = vadd.f32 %v15338_v17, %v18888_v16  ;;  %v10801_v19 = vpop.f32.mrb[29].mxu1 }
 0x989   : > { %v10891_v31 = vadd.f32 %v18888_v16, %v10801_v19 }
 0x98a   : > { %10907 = vst.msk [vmem:[#allocation10 + $0x8] sm:$0xff] %vm10905_vm10, %v10892_v18 }
 0x98b   : > { %10906 = vst.msk [vmem:[#allocation10] sm:$0xff] %vm10905_vm10, %v10891_v31  ;;  %v15341_v53 = vpop.f32.mrb[30].mxu1 }
 0x98c   : > { %v10894_v32 = vadd.f32 %v15341_v53, %v18888_v16  ;;  %v10811_v33 = vpop.f32.mrb[31].mxu1 }
 0x98d   : > { %v10893_v34 = vadd.f32 %v18888_v16, %v10811_v33 }
 0x98e   : > { %10909 = vst.msk [vmem:[#allocation10 + $0x18] sm:$0xff] %vm10905_vm10, %v10894_v32 }
 0x98f   : > { %10908 = vst.msk [vmem:[#allocation10 + $0x10] sm:$0xff] %vm10905_vm10, %v10893_v34  ;;  %v15344_v35 = vpop.f32.mrb[32].mxu1 }
 0x990   : > { %v10896_v36 = vadd.f32 %v15344_v35, %v18888_v16  ;;  %v10821_v37 = vpop.f32.mrb[33].mxu1 }
 0x991   : > { %v10895_v38 = vadd.f32 %v18888_v16, %v10821_v37 }
 0x992   : > { %v10921_v39 = vld [vmem:[#allocation10] ss:$2 sm:$0xff]  ;;  %v10935_v40 = vld [vmem:[#allocation10 + $0x1] ss:$2 sm:$0xff]  ;;  %10911 = vst.msk [vmem:[#allocation10 + $0x28] sm:$0xff] %vm10905_vm10, %v10896_v36 }
 0x993   : > { %10910 = vst.msk [vmem:[#allocation10 + $0x20] sm:$0xff] %vm10905_vm10, %v10895_v38  ;;  %v15347_v41 = vpop.f32.mrb[34].mxu1  ;;  %v10948_v44 = vmax.f32 %v10921_v39, %v10935_v40 }
 0x994   : > { %v10898_v42 = vadd.f32 %v15347_v41, %v18888_v16  ;;  %v10831_v43 = vpop.f32.mrb[35].mxu1 }
 0x995   : > { %v10897_v45 = vadd.f32 %v18888_v16, %v10831_v43 }
 0x996   : > { %v10923_v46 = vld [vmem:[#allocation10 + $0x10] ss:$2 sm:$0xff]  ;;  %v10937_v48 = vld [vmem:[#allocation10 + $0x11] ss:$2 sm:$0xff]  ;;  %10913 = vst.msk [vmem:[#allocation10 + $0x38] sm:$0xff] %vm10905_vm10, %v10898_v42 }
 0x997   : > { %v10956_v50 = vld [vmem:[#allocation10 + $0x2] ss:$2 sm:$0xff]  ;;  %10912 = vst.msk [vmem:[#allocation10 + $0x30] sm:$0xff] %vm10905_vm10, %v10897_v45  ;;  %v15350_v54 = vpop.f32.mrb[36].mxu1  ;;  %v10977_v59 = vld [vmem:[#allocation10 + $0x3] ss:$2 sm:$0xff]  ;;  %v10949_v58 = vmax.f32 %v10923_v46, %v10937_v48 }
 0x998   : > { %v10969_v52 = vmax.f32 %v10948_v44, %v10956_v50  ;;  %v10900_v56 = vadd.f32 %v15350_v54, %v18888_v16  ;;  %v10841_v57 = vpop.f32.mrb[37].mxu1  ;;  %v10998_v12 = vld [vmem:[#allocation10 + $0x4] ss:$2 sm:$0xff] }
 0x999   : > { %v10899_v61 = vadd.f32 %v18888_v16, %v10841_v57 }
 0x99a   : > { %v10990_v60 = vmax.f32 %v10969_v52, %v10977_v59  ;;  %v10925_v62 = vld [vmem:[#allocation10 + $0x20] ss:$2 sm:$0xff]  ;;  %v10939_v63 = vld [vmem:[#allocation10 + $0x21] ss:$2 sm:$0xff]  ;;  %10915 = vst.msk [vmem:[#allocation10 + $0x48] sm:$0xff] %vm10905_vm10, %v10900_v56 }
 0x99b   : > { %v10958_v0 = vld [vmem:[#allocation10 + $0x12] ss:$2 sm:$0xff]  ;;  %10914 = vst.msk [vmem:[#allocation10 + $0x40] sm:$0xff] %vm10905_vm10, %v10899_v61  ;;  %v15353_v10 = vpop.f32.mrb[38].mxu1  ;;  %v10979_v13 = vld [vmem:[#allocation10 + $0x13] ss:$2 sm:$0xff]  ;;  %v10950_v22 = vmax.f32 %v10925_v62, %v10939_v63 }
 0x99c   : > { %v11011_v1 = vmax.f32 %v10990_v60, %v10998_v12  ;;  %v10970_v3 = vmax.f32 %v10949_v58, %v10958_v0  ;;  %v10902_v14 = vadd.f32 %v15353_v10, %v18888_v16  ;;  %v10851_v20 = vpop.f32.mrb[39].mxu1  ;;  %v11000_v24 = vld [vmem:[#allocation10 + $0x14] ss:$2 sm:$0xff] }
 0x99d   : > { %v10901_v25 = vadd.f32 %v18888_v16, %v10851_v20 }
 0x99e   : > { %v11018_v21 = vmax.f32 %v11011_v1, 0.0  ;;  %v10991_v23 = vmax.f32 %v10970_v3, %v10979_v13  ;;  %v10927_v26 = vld [vmem:[#allocation10 + $0x30] ss:$2 sm:$0xff]  ;;  %v10941_v27 = vld [vmem:[#allocation10 + $0x31] ss:$2 sm:$0xff]  ;;  %10917 = vst.msk [vmem:[#allocation10 + $0x58] sm:$0xff] %vm10905_vm10, %v10902_v14 }
 0x99f   : > { %v10960_v49 = vld [vmem:[#allocation10 + $0x22] ss:$2 sm:$0xff]  ;;  %10916 = vst.msk [vmem:[#allocation10 + $0x50] sm:$0xff] %vm10905_vm10, %v10901_v25  ;;  %v15356_v51 = vpop.f32.mrb[40].mxu1  ;;  %v10981_v47 = vld [vmem:[#allocation10 + $0x23] ss:$2 sm:$0xff]  ;;  %v10951_v7 = vmax.f32 %v10927_v26, %v10941_v27 }
 0x9a0   : > { %11034 = vst.msk [vmem:[#allocation4 + $0x3] sm:$0xff] %vm10905_vm10, %v11018_v21  ;;  %v11012_v28 = vmax.f32 %v10991_v23, %v11000_v24  ;;  %v10971_v29 = vmax.f32 %v10950_v22, %v10960_v49  ;;  %v10904_v30 = vadd.f32 %v15356_v51, %v18888_v16  ;;  %v10861_v5 = vpop.f32.mrb[41].mxu1  ;;  %v11002_v9 = vld [vmem:[#allocation10 + $0x24] ss:$2 sm:$0xff] }
 0x9a1   : > { %v10903_v11 = vadd.f32 %v18888_v16, %v10861_v5 }
 0x9a2   : > { %v11019_v6 = vmax.f32 %v11012_v28, 0.0  ;;  %v10992_v8 = vmax.f32 %v10971_v29, %v10981_v47  ;;  %v10929_v55 = vld [vmem:[#allocation10 + $0x40] ss:$2 sm:$0xff]  ;;  %v10943_v15 = vld [vmem:[#allocation10 + $0x41] ss:$2 sm:$0xff] }
 0x9a3   : > { %v10962_v17 = vld [vmem:[#allocation10 + $0x32] ss:$2 sm:$0xff]  ;;  %10920 = vst.msk [vmem:[#allocation10 + $0x68] sm:$0x7f] %vm10919_vm12, %v10904_v30  ;;  %v10983_v31 = vld [vmem:[#allocation10 + $0x33] ss:$2 sm:$0xff]  ;;  %v10952_v32 = vmax.f32 %v10929_v55, %v10943_v15 }
 0x9a4   : > { %11035 = vst.msk [vmem:[#allocation4 + $0xb] sm:$0xff] %vm10905_vm10, %v11019_v6  ;;  %v11013_v18 = vmax.f32 %v10992_v8, %v11002_v9  ;;  %v10972_v19 = vmax.f32 %v10951_v7, %v10962_v17  ;;  %10918 = vst.msk [vmem:[#allocation10 + $0x60] sm:$0xff] %vm10905_vm10, %v10903_v11  ;;  %v11004_v34 = vld [vmem:[#allocation10 + $0x34] ss:$2 sm:$0xff] }
 0x9a6   : > { %v11020_v53 = vmax.f32 %v11013_v18, 0.0  ;;  %v10993_v33 = vmax.f32 %v10972_v19, %v10983_v31  ;;  %v10964_v35 = vld [vmem:[#allocation10 + $0x42] ss:$2 sm:$0xff]  ;;  %v10945_v37 = vld [vmem:[#allocation10 + $0x51] ss:$2 sm:$0xff] }
 0x9a7   : > { %v10931_v16 = vld [vmem:[#allocation10 + $0x50] ss:$2 sm:$0xff]  ;;  %v10973_v38 = vmax.f32 %v10952_v32, %v10964_v35  ;;  %v10985_v39 = vld [vmem:[#allocation10 + $0x43] ss:$2 sm:$0xff] }
 0x9a8   : > { %11036 = vst.msk [vmem:[#allocation4 + $0x13] sm:$0xff] %vm10905_vm10, %v11020_v53  ;;  %v11014_v36 = vmax.f32 %v10993_v33, %v11004_v34  ;;  %v11006_v42 = vld [vmem:[#allocation10 + $0x44] ss:$2 sm:$0xff]  ;;  %v10953_v43 = vmax.f32 %v10931_v16, %v10945_v37 }
 0x9a9   : > { %v10994_v41 = vmax.f32 %v10973_v38, %v10985_v39  ;;  %v11056_v52 = vld [vmem:[#allocation4 + $0x2] sm:$0xff] }
 0x9aa   : > { %v11021_v40 = vmax.f32 %v11014_v36, 0.0  ;;  %v11049_v58 = vld [vmem:[#allocation4 + $0x1] sm:$0xff] }
 0x9ab   : > { %v10933_v44 = vld [vmem:[#allocation10 + $0x60] ss:$2 sm:$0x3f]  ;;  %v10947_v45 = vld [vmem:[#allocation10 + $0x61] ss:$2 sm:$0x3f]  ;;  %v11015_v46 = vmax.f32 %v10994_v41, %v11006_v42 }
 0x9ac   : > { %11037 = vst.msk [vmem:[#allocation4 + $0x1b] sm:$0xff] %vm10905_vm10, %v11021_v40  ;;  %v10954_v48 = vmax.f32 %v10933_v44, %v10947_v45  ;;  %v10966_v50 = vld [vmem:[#allocation10 + $0x52] ss:$2 sm:$0xff]  ;;  %v11057_v54 = vld [vmem:[#allocation4 + $0xa] sm:$0xff]  ;;  %v10987_v62 = vld [vmem:[#allocation10 + $0x53] ss:$2 sm:$0xff] }
 0x9ad   : > { %v10968_v59 = vld [vmem:[#allocation10 + $0x62] ss:$2 sm:$0x3f]  ;;  %v10974_v56 = vmax.f32 %v10953_v43, %v10966_v50  ;;  %v16173_v57 = vpack.i.bf16 %v11057_v54, %v11056_v52  ;;  %v11022_v12 = vmax.f32 %v11015_v46, 0.0 }
 0x9ae   : > { %v11050_v60 = vld [vmem:[#allocation4 + $0x9] sm:$0xff]  ;;  %v10975_v61 = vmax.f32 %v10954_v48, %v10968_v59  ;;  %v11008_v10 = vld [vmem:[#allocation10 + $0x54] ss:$2 sm:$0xff] }
 0x9af   : > { %v16168_v63 = vpack.i.bf16 %v11050_v60, %v11049_v58  ;;  %v10989_v0 = vld [vmem:[#allocation10 + $0x63] ss:$2 sm:$0x3f]  ;;  %v10995_v1 = vmax.f32 %v10974_v56, %v10987_v62  ;;  %16174 = vrot.lane.b32.xlu1 %v16173_v57, %s19517_s1  ;;  %11038 = vst.msk [vmem:[#allocation4 + $0x23] sm:$0xff] %vm10905_vm10, %v11022_v12  ;;  %v11051_v29 = vld [vmem:[#allocation4 + $0x11] sm:$0xff] }
 0x9b0   : > { %v10996_v3 = vmax.f32 %v10975_v61, %v10989_v0  ;;  %v11010_v13 = vld [vmem:[#allocation10 + $0x64] ss:$2 sm:$0x3f]  ;;  %v11058_v5 = vld [vmem:[#allocation4 + $0x12] sm:$0xff] }
 0x9b1   : > { %16169 = vrot.lane.b32.xlu0 %v16168_v63, %s16306_s2  ;;  %v11016_v14 = vmax.f32 %v10995_v1, %v11008_v10  ;;  %v11084_v21 = vld [vmem:[#allocation4 + $0x6] sm:$0xff]  ;;  %v11085_v30 = vld [vmem:[#allocation4 + $0xe] sm:$0xff] }
 0x9b2   : > { %v11017_v20 = vmax.f32 %v10996_v3, %v11010_v13  ;;  %v11077_v23 = vld [vmem:[#allocation4 + $0x5] sm:$0xff]  ;;  %v11078_v49 = vld [vmem:[#allocation4 + $0xd] sm:$0xff] }
 0x9b3   : > { %v11023_v22 = vmax.f32 %v11016_v14, 0.0  ;;  %11210 = vrot.lane.b32.xlu1 %v11084_v21, %s19517_s1  ;;  %v11064_v24 = vld [vmem:[#allocation4 + $0xb] sm:$0xff]  ;;  %v11063_v26 = vld [vmem:[#allocation4 + $0x3] sm:$0xff]  ;;  %v11052_v28 = vld [vmem:[#allocation4 + $0x19] sm:$0xff] }
 0x9b4   : > { %v11024_v25 = vmax.f32 %v11017_v20, 0.0  ;;  %v16178_v27 = vpack.i.bf16 %v11064_v24, %v11063_v26  ;;  %v16183_v51 = vpack.i.bf16 %v11052_v28, %v11051_v29  ;;  %v11059_v47 = vld [vmem:[#allocation4 + $0x1a] sm:$0xff]  ;;  %v11070_v52 = vld [vmem:[#allocation4 + $0x4] sm:$0xff]  ;;  %v11071_v20 = vld [vmem:[#allocation4 + $0xc] sm:$0xff] }
 0x9b5   : > { %11182 = vrot.lane.b32.xlu0 %v11077_v23, %s16306_s2  ;;  %11039 = vst.msk [vmem:[#allocation4 + $0x2b] sm:$0xff] %vm10905_vm10, %v11023_v22  ;;  %v16188_v6 = vpack.i.bf16 %v11059_v47, %v11058_v5  ;;  %v11066_v7 = vld [vmem:[#allocation4 + $0x1b] sm:$0xff]  ;;  %v11065_v9 = vld [vmem:[#allocation4 + $0x13] sm:$0xff]  ;;  %v11043_v1 = vld [vmem:[#allocation4 + $0x8] sm:$0xff] }
 0x9b6   : > { %11041 = vst.msk [vmem:[#allocation4 + $0x33] sm:$0x3f] %vm11040_vm14, %v11024_v25  ;;  %v11079_v8 = vld [vmem:[#allocation4 + $0x15] sm:$0xff]  ;;  %v16193_v11 = vpack.i.bf16 %v11066_v7, %v11065_v9  ;;  %v11087_v15 = vld [vmem:[#allocation4 + $0x1e] sm:$0xff] }
 0x9b7   : > { %11184 = vrot.lane.b32.xlu1 %v11078_v49, %s16306_s2  ;;  %v11086_v55 = vld [vmem:[#allocation4 + $0x16] sm:$0xff]  ;;  %v11053_v19 = vld [vmem:[#allocation4 + $0x21] sm:$0xff] }
 0x9b8   : > { %v11080_v17 = vld [vmem:[#allocation4 + $0x1d] sm:$0xff]  ;;  %v11072_v47 = vld [vmem:[#allocation4 + $0x14] sm:$0xff] }
 0x9b9   : > { %16179 = vrot.lane.b32.xlu0 %v16178_v27, %s16307_s29  ;;  %v11060_v33 = vld [vmem:[#allocation4 + $0x22] sm:$0xff] }
 0x9ba   : > { %v11067_v16 = vld [vmem:[#allocation4 + $0x23] sm:$0xff] }
 0x9bb   : > { %16184 = vrot.lane.b32.xlu1 %v16183_v51, %s16306_s2  ;;  %v11042_v57 = vld [vmem:[#allocation4] sm:$0xff]  ;;  %v11044_v51 = vld [vmem:[#allocation4 + $0x10] sm:$0xff] }
 0x9bc   : > { %v11054_v18 = vld [vmem:[#allocation4 + $0x29] sm:$0xff] }
 0x9bd   : > { %11212 = vrot.lane.b32.xlu0 %v11085_v30, %s19517_s1  ;;  %v11081_v31 = vld [vmem:[#allocation4 + $0x25] sm:$0xff]  ;;  %v16198_v53 = vpack.i.bf16 %v11054_v18, %v11053_v19  ;;  %v11082_v38 = vld [vmem:[#allocation4 + $0x2d] sm:$0xff]  ;;  %v11083_v42 = vld [vmem:[#allocation4 + $0x35] sm:$0x3f] }
 0x9be   : > { %v11061_v32 = vld [vmem:[#allocation4 + $0x2a] sm:$0xff]  ;;  %v11062_v41 = vld [vmem:[#allocation4 + $0x32] sm:$0x3f] }
 0x9bf   : > { %16189 = vrot.lane.b32.xlu1 %v16188_v6, %s19517_s1  ;;  %v11088_v34 = vld [vmem:[#allocation4 + $0x26] sm:$0xff]  ;;  %v16203_v35 = vpack.i.bf16 %v11061_v32, %v11060_v33  ;;  %v11055_v39 = vld [vmem:[#allocation4 + $0x31] sm:$0x3f]  ;;  %v11073_v32 = vld [vmem:[#allocation4 + $0x1c] sm:$0xff] }
 0x9c0   : > { %v11068_v36 = vld [vmem:[#allocation4 + $0x2b] sm:$0xff]  ;;  %v11069_v43 = vld [vmem:[#allocation4 + $0x33] sm:$0x3f] }
 0x9c1   : > { %11186 = vrot.lane.b32.xlu0 %v11079_v8, %s16306_s2  ;;  %v16208_v37 = vpack.i.bf16 %v11068_v36, %v11067_v16  ;;  %v11089_v40 = vld [vmem:[#allocation4 + $0x2e] sm:$0xff]  ;;  %v11090_v44 = vld [vmem:[#allocation4 + $0x36] sm:$0x3f] }
 0x9c3   : > { %16194 = vrot.lane.b32.xlu1 %v16193_v11, %s16307_s29 }
 0x9c5   : > { %11214 = vrot.lane.b32.xlu0 %v11086_v55, %s19517_s1 }
 0x9c7   : > { %11216 = vrot.lane.b32.xlu1 %v11087_v15, %s19517_s1 }
 0x9c9   : > { %11188 = vrot.lane.b32.xlu0 %v11080_v17, %s16306_s2 }
 0x9cb   : > { %11190 = vrot.lane.b32.xlu1 %v11081_v31, %s16306_s2  ;;  %v11045_v31 = vld [vmem:[#allocation4 + $0x18] sm:$0xff] }
 0x9cd   : > { %16199 = vrot.lane.b32.xlu0 %v16198_v53, %s16306_s2 }
 0x9cf   : > { %11218 = vrot.lane.b32.xlu1 %v11088_v34, %s19517_s1 }
 0x9d1   : > { %16204 = vrot.lane.b32.xlu0 %v16203_v35, %s19517_s1 }
 0x9d3   : > { %11192 = vrot.lane.b32.xlu1 %v11082_v38, %s16306_s2 }
 0x9d5   : > { %16209 = vrot.lane.b32.xlu0 %v16208_v37, %s16307_s29 }
 0x9d7   : > { %11110 = vrot.lane.b32.xlu1 %v11055_v39, %s16306_s2  ;;  %v11074_v39 = vld [vmem:[#allocation4 + $0x24] sm:$0xff] }
 0x9d9   : > { %11220 = vrot.lane.b32.xlu0 %v11089_v40, %s19517_s1 }
 0x9db   : > { %11138 = vrot.lane.b32.xlu1 %v11062_v41, %s19517_s1 }
 0x9dd   : > { %11194 = vrot.lane.b32.xlu0 %v11083_v42, %s16306_s2 }
 0x9df   : > { %11166 = vrot.lane.b32.xlu1 %v11069_v43, %s16307_s29  ;;  %s513_s29 = scalar_lea.vmem [#allocation15], %s512_s4 }
 0x9e0   : > { %s12319_s18 = sshll.u32 %s513_s29, 4  ;;  %s19460_s18 = int_to_ptr.vmem [resolvable:$true] %s12319_s18 }
 0x9e1   : > { %11222 = vrot.lane.b32.xlu0 %v11090_v44, %s19517_s1  ;;  %s12307_s1 = scalar_lea.sflag [#allocation16], %s512_s4  ;;  %s16237_s2 = scalar_lea.vmem %s19460_s18, 16 }
 0x9e2   : > { %p16238_p11 = scmp.ne.s32.totalorder %s19460_s18, %s16237_s2  ;;  %p16244_p0 = scmp.lt.s32.totalorder %s19460_s18, %s16242_s3 }
 0x9e4   : > { %p16239_p12 = pnand %p16238_p11, %p16432_p5 }
 0x9e6   : > { %p16240_p13 = pneg %p16239_p12 }
 0xa21   : > { %v16175_v45 = vpop.permute.xlu1 %16174 }
 0xa22   : > { %v16176_v56 = vunpack.i.l.bf16 %v16175_v45  ;;  %v16177_v0 = vunpack.i.h.bf16 %v16175_v45 }
 0xa23   : > { %v16170_v46 = vpop.permute.xlu0 %16169 }
 0xa24   : > { %v16171_v48 = vunpack.i.l.bf16 %v16170_v46  ;;  %v16172_v60 = vunpack.i.h.bf16 %v16170_v46 }
 0xa25   : > { %v11211_v50 = vpop.permute.xlu1 %11210 }
 0xa26   : > { %v11231_v12 = vsel %vm10905_vm10, %v11042_v57, %v16171_v48  ;;  %v11232_v10 = vsel %vm10905_vm10, %v11043_v1, %v16172_v60  ;;  %v11046_v48 = vld [vmem:[#allocation4 + $0x20] sm:$0xff]  ;;  %v11075_v60 = vld [vmem:[#allocation4 + $0x2c] sm:$0xff] }
 0xa27   : > { %v11183_v54 = vpop.permute.xlu0 %11182  ;;  %v11239_v3 = vsel %vm11238_vm13, %v11231_v12, %v16176_v56  ;;  %v11240_v25 = vsel %vm11238_vm13, %v11232_v10, %v16177_v0 }
 0xa28   : > { %v11254_v59 = vsel %vm10905_vm10, %v11070_v52, %v11183_v54 }
 0xa29   : > { %v11261_v58 = vsel %vm11238_vm13, %v11254_v59, %v11211_v50  ;;  %v11185_v61 = vpop.permute.xlu1 %11184 }
 0xa2a   : > { %13079 = vmatprep.mubr.msk.f32.mxu0 %vm11246_vm15, %v11261_v58  ;;  %v11255_v22 = vsel %vm10905_vm10, %v11071_v20, %v11185_v61 }
 0xa2b   : > { %v16180_v62 = vpop.permute.xlu0 %16179 }
 0xa2c   : > { %v16181_v63 = vunpack.i.l.bf16 %v16180_v62  ;;  %v16182_v13 = vunpack.i.h.bf16 %v16180_v62  ;;  %v11047_v62 = vld [vmem:[#allocation4 + $0x28] sm:$0xff] }
 0xa2d   : > { %v16185_v21 = vpop.permute.xlu1 %16184 }
 0xa2e   : > { %v11247_v14 = vsel %vm11246_vm15, %v11239_v3, %v16181_v63  ;;  %v11248_v26 = vsel %vm11246_vm15, %v11240_v25, %v16182_v13  ;;  %v16186_v49 = vunpack.i.l.bf16 %v16185_v21  ;;  %v16187_v9 = vunpack.i.h.bf16 %v16185_v21  ;;  %v11048_v21 = vld [vmem:[#allocation4 + $0x30] sm:$0x3f] }
 0xa2f   : > { %11389 = vmatmul.mubr.f32.vlgmr.msra.gmra.mrb[194].mxu0 %v11247_v14  ;;  %v11213_v23 = vpop.permute.xlu0 %11212 }
 0xa30   : > { %v11262_v24 = vsel %vm11238_vm13, %v11255_v22, %v11213_v23  ;;  %v11233_v5 = vsel %vm10905_vm10, %v11044_v51, %v16186_v49  ;;  %v11234_v33 = vsel %vm10905_vm10, %v11045_v31, %v16187_v9  ;;  %v11076_v23 = vld [vmem:[#allocation4 + $0x34] sm:$0x3f]  ;;  %v11565_v51 = vld [vmem:[%s19509_s9 + $0x88] sm:$0xff] }
 0xa31   : > { %13080 = vmatprep.mubr.msk.f32.mxu0 %vm11246_vm15, %v11262_v24  ;;  %v16190_v27 = vpop.permute.xlu1 %16189  ;;  %v11552_v31 = vld [vmem:[%s19509_s9 + $0x20] sm:$0xff] }
 0xa32   : > { %v16191_v29 = vunpack.i.l.bf16 %v16190_v27  ;;  %v16192_v15 = vunpack.i.h.bf16 %v16190_v27 }
 0xa33   : > { %11394 = vmatmul.mubr.f32.gmra.mrb[196].mxu0 %v11248_v26  ;;  %v11187_v28 = vpop.permute.xlu0 %11186 }
 0xa34   : > { %v11256_v6 = vsel %vm10905_vm10, %v11072_v47, %v11187_v28  ;;  %v11241_v11 = vsel %vm11238_vm13, %v11233_v5, %v16191_v29  ;;  %v11242_v35 = vsel %vm11238_vm13, %v11234_v33, %v16192_v15  ;;  %v11564_v29 = vld [vmem:[%s19509_s9 + $0x80] sm:$0xff]  ;;  %v11549_v5 = vld [vmem:[%s19509_s9 + $0x8] sm:$0xff]  ;;  %v11571_v33 = vld [vmem:[%s19509_s9 + $0xb8] sm:$0xff] }
 0xa35   : > { %v16195_v30 = vpop.permute.xlu1 %16194  ;;  %v11548_v47 = vld [vmem:[%s19509_s9] sm:$0xff] }
 0xa36   : > { %v16196_v8 = vunpack.i.l.bf16 %v16195_v30  ;;  %v16197_v18 = vunpack.i.h.bf16 %v16195_v30  ;;  %v15541_v30 = vpack.c.bf16 %v11565_v51, %v11564_v29  ;;  %v11568_v15 = vld [vmem:[%s19509_s9 + $0xa0] sm:$0xff] }
 0xa37   : > { %v11215_v7 = vpop.permute.xlu0 %11214 }
 0xa38   : > { %v11263_v55 = vsel %vm11238_vm13, %v11256_v6, %v11215_v7  ;;  %v11249_v17 = vsel %vm11246_vm15, %v11241_v11, %v16196_v8  ;;  %v11250_v16 = vsel %vm11246_vm15, %v11242_v35, %v16197_v18  ;;  %v11566_v6 = vld [vmem:[%s19509_s9 + $0x90] sm:$0xff]  ;;  %v11567_v7 = vld [vmem:[%s19509_s9 + $0x98] sm:$0xff]  ;;  %v15543_v8 = vpack.c.bf16 %v11549_v5, %v11548_v47  ;;  %15542 = vmatprep.subr.bf16.mxu0 %v15541_v30 }
 0xa39   : > { %13081 = vmatprep.mubr.msk.f32.mxu0 %vm11246_vm15, %v11263_v55  ;;  %v11217_v19 = vpop.permute.xlu1 %11216  ;;  %v15545_v9 = vpack.c.bf16 %v11567_v7, %v11566_v6  ;;  %v11550_v11 = vld [vmem:[%s19509_s9 + $0x10] sm:$0xff]  ;;  %v11551_v55 = vld [vmem:[%s19509_s9 + $0x18] sm:$0xff] }
 0xa3a   : > { %11399 = vmatmul.mubr.f32.gmra.mrb[198].mxu0 %v11249_v17  ;;  %v11569_v17 = vld [vmem:[%s19509_s9 + $0xa8] sm:$0xff]  ;;  %v15547_v18 = vpack.c.bf16 %v11551_v55, %v11550_v11 }
 0xa3b   : > { %v11189_v53 = vpop.permute.xlu0 %11188  ;;  %15544 = vmatpush3.bf16.msra.mxu0 %v15543_v8 }
 0xa3c   : > { %v11257_v34 = vsel %vm10905_vm10, %v11073_v32, %v11189_v53  ;;  %15546 = vmatprep.subr.bf16.mxu0 %v15545_v9  ;;  %v11553_v53 = vld [vmem:[%s19509_s9 + $0x28] sm:$0xff]  ;;  %v11570_v32 = vld [vmem:[%s19509_s9 + $0xb0] sm:$0xff] }
 0xa3d   : > { %v11264_v36 = vsel %vm11238_vm13, %v11257_v34, %v11217_v19  ;;  %v11191_v37 = vpop.permute.xlu1 %11190  ;;  %v15549_v19 = vpack.c.bf16 %v11569_v17, %v11568_v15  ;;  %v15551_v34 = vpack.c.bf16 %v11553_v53, %v11552_v31  ;;  %v15553_v35 = vpack.c.bf16 %v11571_v33, %v11570_v32  ;;  %v11578_v33 = vld [vmem:[%s19509_s9 + $0xf0] sm:$0xff] }
 0xa3e   : > { %13082 = vmatprep.mubr.msk.f32.mxu0 %vm11246_vm15, %v11264_v36  ;;  %v11258_v40 = vsel %vm10905_vm10, %v11074_v39, %v11191_v37  ;;  %v11554_v36 = vld [vmem:[%s19509_s9 + $0x30] sm:$0xff]  ;;  %v11572_v37 = vld [vmem:[%s19509_s9 + $0xc0] sm:$0xff] }
 0xa3f   : > { %11404 = vmatmul.mubr.f32.gmra.mrb[200].mxu0 %v11250_v16  ;;  %v16200_v38 = vpop.permute.xlu0 %16199  ;;  %v11555_v16 = vld [vmem:[%s19509_s9 + $0x38] sm:$0xff] }
 0xa40   : > { %v16201_v44 = vunpack.i.l.bf16 %v16200_v38  ;;  %v16202_v52 = vunpack.i.h.bf16 %v16200_v38  ;;  %15548 = vmatpush3.bf16.msra.mxu0 %v15547_v18  ;;  %v11573_v38 = vld [vmem:[%s19509_s9 + $0xc8] sm:$0xff]  ;;  %v15555_v39 = vpack.c.bf16 %v11555_v16, %v11554_v36 }
 0xa41   : > { %v11219_v41 = vpop.permute.xlu1 %11218  ;;  %15550 = vmatprep.subr.bf16.mxu0 %v15549_v19 }
 0xa42   : > { %v11265_v42 = vsel %vm11238_vm13, %v11258_v40, %v11219_v41  ;;  %v11235_v54 = vsel %vm10905_vm10, %v11046_v48, %v16201_v44  ;;  %v11236_v1 = vsel %vm10905_vm10, %v11047_v62, %v16202_v52  ;;  %v15557_v40 = vpack.c.bf16 %v11573_v38, %v11572_v37  ;;  %v11556_v41 = vld [vmem:[%s19509_s9 + $0x40] sm:$0xff]  ;;  %v11575_v44 = vld [vmem:[%s19509_s9 + $0xd8] sm:$0xff]  ;;  %v11558_v48 = vld [vmem:[%s19509_s9 + $0x50] sm:$0xff] }
 0xa43   : > { %v16205_v43 = vpop.permute.xlu0 %16204  ;;  %13083 = vmatprep.mubr.msk.f32.mxu0 %vm11246_vm15, %v11265_v42  ;;  %v11557_v42 = vld [vmem:[%s19509_s9 + $0x48] sm:$0xff]  ;;  %v11576_v52 = vld [vmem:[%s19509_s9 + $0xe0] sm:$0xff]  ;;  %v11563_v37 = vld [vmem:[%s19509_s9 + $0x78] sm:$0xff] }
 0xa44   : > { %v16206_v45 = vunpack.i.l.bf16 %v16205_v43  ;;  %v16207_v56 = vunpack.i.h.bf16 %v16205_v43  ;;  %15552 = vmatpush3.bf16.msra.mxu0 %v15551_v34  ;;  %v11574_v43 = vld [vmem:[%s19509_s9 + $0xd0] sm:$0xff]  ;;  %v11579_v34 = vld [vmem:[%s19509_s9 + $0xf8] sm:$0xff] }
 0xa45   : > { %v11193_v46 = vpop.permute.xlu1 %11192  ;;  %15554 = vmatprep.subr.bf16.mxu0 %v15553_v35  ;;  %v11562_v35 = vld [vmem:[%s19509_s9 + $0x70] sm:$0xff]  ;;  %v15569_v16 = vpack.c.bf16 %v11579_v34, %v11578_v33 }
 0xa46   : > { %v11243_v57 = vsel %vm11238_vm13, %v11235_v54, %v16206_v45  ;;  %v11259_v63 = vsel %vm10905_vm10, %v11075_v60, %v11193_v46  ;;  %v11244_v10 = vsel %vm11238_vm13, %v11236_v1, %v16207_v56  ;;  %v15559_v45 = vpack.c.bf16 %v11557_v42, %v11556_v41  ;;  %v11577_v54 = vld [vmem:[%s19509_s9 + $0xe8] sm:$0xff] }
 0xa47   : > { %v16210_v50 = vpop.permute.xlu0 %16209  ;;  %v15561_v46 = vpack.c.bf16 %v11575_v44, %v11574_v43  ;;  %v15565_v56 = vpack.c.bf16 %v11577_v54, %v11576_v52  ;;  %v11581_v41 = vld [vmem:[%s19509_s9 + $0x108] sm:$0xff] }
 0xa48   : > { %v16211_v59 = vunpack.i.l.bf16 %v16210_v50  ;;  %v16212_v58 = vunpack.i.h.bf16 %v16210_v50  ;;  %15556 = vmatpush3.bf16.msra.mxu0 %v15555_v39  ;;  %v11559_v50 = vld [vmem:[%s19509_s9 + $0x58] sm:$0xff]  ;;  %v15571_v39 = vpack.c.bf16 %v11563_v37, %v11562_v35 }
 0xa49   : > { %v11111_v61 = vpop.permute.xlu1 %11110  ;;  %15558 = vmatprep.subr.bf16.mxu0 %v15557_v40  ;;  %v11580_v40 = vld [vmem:[%s19509_s9 + $0x100] sm:$0xff] }
 0xa4a   : > { %v11251_v12 = vsel %vm11246_vm15, %v11243_v57, %v16211_v59  ;;  %v11252_v13 = vsel %vm11246_vm15, %v11244_v10, %v16212_v58  ;;  %v11237_v22 = vsel %vm10905_vm10, %v11048_v21, %v11111_v61  ;;  %v15563_v59 = vpack.c.bf16 %v11559_v50, %v11558_v48  ;;  %v11560_v57 = vld [vmem:[%s19509_s9 + $0x60] sm:$0xff]  ;;  %v11561_v58 = vld [vmem:[%s19509_s9 + $0x68] sm:$0xff] }
 0xa4b   : > { %11409 = vmatmul.mubr.f32.gmra.mrb[202].mxu0 %v11251_v12  ;;  %v11221_v0 = vpop.permute.xlu0 %11220  ;;  %v15567_v60 = vpack.c.bf16 %v11561_v58, %v11560_v57  ;;  %v13078_v12 = vld [vmem:[%s19508_s8] ss:$0 sm:$0xff]  ;;  %v15573_v42 = vpack.c.bf16 %v11581_v41, %v11580_v40 }
 0xa4c   : > { %v11266_v3 = vsel %vm11238_vm13, %v11259_v63, %v11221_v0  ;;  %15560 = vmatpush3.bf16.msra.mxu0 %v15559_v45 }
 0xa4d   : > { %13084 = vmatprep.mubr.msk.f32.mxu0 %vm11246_vm15, %v11266_v3  ;;  %v11139_v14 = vpop.permute.xlu1 %11138  ;;  %15562 = vmatprep.subr.bf16.mxu0 %v15561_v46 }
 0xa4e   : > { %v11245_v24 = vsel %vm11238_vm13, %v11237_v22, %v11139_v14 }
 0xa4f   : > { %v11195_v20 = vpop.permute.xlu0 %11194  ;;  %11414 = vmatmul.mubr.f32.gmra.mrb[204].mxu0 %v11252_v13 }
 0xa50   : > { %v11260_v26 = vsel %vm10905_vm10, %v11076_v23, %v11195_v20  ;;  %15564 = vmatpush3.bf16.msra.mxu0 %v15563_v59 }
 0xa51   : > { %v11167_v25 = vpop.permute.xlu1 %11166  ;;  %15566 = vmatprep.subr.bf16.mxu0 %v15565_v56 }
 0xa52   : > { %v11253_v49 = vsel %vm11246_vm15, %v11245_v24, %v11167_v25 }
 0xa53   : > { %v11223_v27 = vpop.permute.xlu0 %11222 }
 0xa54   : > { %v11267_v28 = vsel %vm11238_vm13, %v11260_v26, %v11223_v27  ;;  %15568 = vmatpush3.bf16.msra.mxu0 %v15567_v60 }
 0xa55   : > { %13085 = vmatprep.mubr.msk.f32.mxu0 %vm11246_vm15, %v11267_v28  ;;  %15570 = vmatprep.subr.bf16.mxu0 %v15569_v16 }
 0xa56   : > { %11419 = vmatmul.mubr.f32.gmra.mrb[206].mxu0 %v11253_v49 }
 0xa58   : > { %15572 = vmatpush3.bf16.msra.mxu0 %v15571_v39 }
 0xa59   : > { %15574 = vmatprep.subr.bf16.mxu0 %v15573_v42 }
 0xb02   : > { %v11390_v61 = vpop.f32.mrb[194].mxu0 }
 0xb03   : > { %v11391_v62 = vadd.f32 %v13078_v12, %v11390_v61  ;;  %v11392_v63 = vpop.f32.mrb[195].mxu0 }
 0xb05   : > { %11424 = vst.msk [vmem:[#allocation11] sm:$0xff] %vm11238_vm13, %v11391_v62 }
 0xb06   : > { %v11395_v0 = vpop.f32.mrb[196].mxu0 }
 0xb07   : > { %v11396_v1 = vadd.f32 %v13078_v12, %v11395_v0  ;;  %v11397_v3 = vpop.f32.mrb[197].mxu0 }
 0xb09   : > { %11425 = vst.msk [vmem:[#allocation11 + $0x8] sm:$0xff] %vm11238_vm13, %v11396_v1 }
 0xb0d   : > { %v11400_v10 = vpop.f32.mrb[198].mxu0 }
 0xb0e   : > { %v11401_v13 = vadd.f32 %v13078_v12, %v11400_v10  ;;  %v11402_v14 = vpop.f32.mrb[199].mxu0 }
 0xb10   : > { %11426 = vst.msk [vmem:[#allocation11 + $0x10] sm:$0xff] %vm11238_vm13, %v11401_v13  ;;  %v11432_v21 = vld [vmem:[#allocation11] ss:$2 sm:$0xff]  ;;  %v11440_v22 = vld [vmem:[#allocation11 + $0x1] ss:$2 sm:$0xff] }
 0xb11   : > { %v11447_v25 = vmax.f32 %v11432_v21, %v11440_v22 }
 0xb12   : > { %v11405_v20 = vpop.f32.mrb[200].mxu0 }
 0xb13   : > { %v11406_v23 = vadd.f32 %v13078_v12, %v11405_v20  ;;  %v11407_v24 = vpop.f32.mrb[201].mxu0 }
 0xb14   : > { %v11582_v24 = vld [vmem:[%s19509_s9 + $0x110] sm:$0xff] }
 0xb15   : > { %11427 = vst.msk [vmem:[#allocation11 + $0x18] sm:$0xff] %vm11238_vm13, %v11406_v23 }
 0xb17   : > { %v11452_v26 = vld [vmem:[#allocation11 + $0x2] ss:$2 sm:$0xff]  ;;  %v11464_v49 = vld [vmem:[#allocation11 + $0x3] ss:$2 sm:$0xff] }
 0xb18   : > { %v11459_v27 = vmax.f32 %v11447_v25, %v11452_v26  ;;  %v11583_v25 = vld [vmem:[%s19509_s9 + $0x118] sm:$0xff] }
 0xb1a   : > { %v11471_v28 = vmax.f32 %v11459_v27, %v11464_v49 }
 0xb1c   : > { %v11475_v29 = vmax.f32 %v11471_v28, 0.0  ;;  %v11434_v8 = vld [vmem:[#allocation11 + $0x10] ss:$2 sm:$0xff]  ;;  %v11442_v9 = vld [vmem:[#allocation11 + $0x11] ss:$2 sm:$0xff] }
 0xb1d   : > { %v11448_v11 = vmax.f32 %v11434_v8, %v11442_v9  ;;  %v11587_v8 = vld [vmem:[%s19509_s9 + $0x138] sm:$0xff] }
 0xb1e   : > { %v11410_v51 = vpop.f32.mrb[202].mxu0  ;;  %11483 = vst.msk [vmem:[#allocation5 + $0x2] sm:$0xff] %vm11238_vm13, %v11475_v29 }
 0xb1f   : > { %v11411_v47 = vadd.f32 %v13078_v12, %v11410_v51  ;;  %v11412_v30 = vpop.f32.mrb[203].mxu0 }
 0xb20   : > { %v11584_v30 = vld [vmem:[%s19509_s9 + $0x120] sm:$0xff] }
 0xb21   : > { %11428 = vst.msk [vmem:[#allocation11 + $0x20] sm:$0xff] %vm11238_vm13, %v11411_v47  ;;  %v15577_v47 = vpack.c.bf16 %v11583_v25, %v11582_v24  ;;  %v11829_v24 = vld [vmem:[%s19511_s11 + $0x78] sm:$0xff] }
 0xb22   : > { %v11415_v5 = vpop.f32.mrb[204].mxu0 }
 0xb23   : > { %v11416_v6 = vadd.f32 %v13078_v12, %v11415_v5  ;;  %v11417_v7 = vpop.f32.mrb[205].mxu0  ;;  %v11585_v5 = vld [vmem:[%s19509_s9 + $0x128] sm:$0xff] }
 0xb24   : > { %v11586_v7 = vld [vmem:[%s19509_s9 + $0x130] sm:$0xff] }
 0xb25   : > { %11429 = vst.msk [vmem:[#allocation11 + $0x28] sm:$0xff] %vm11238_vm13, %v11416_v6  ;;  %v11492_v56 = vld [vmem:[#allocation5 + $0x1] sm:$0xff]  ;;  %v15581_v6 = vpack.c.bf16 %v11585_v5, %v11584_v30  ;;  %v15585_v9 = vpack.c.bf16 %v11587_v8, %v11586_v7  ;;  %v11837_v7 = vld [vmem:[%s19511_s11 + $0xb8] sm:$0xff] }
 0xb26   : > { %v11488_v49 = vld [vmem:[#allocation5] sm:$0xff] }
 0xb27   : > { %v11496_v28 = vld [vmem:[#allocation5 + $0x2] sm:$0xff] }
 0xb28   : > { %v11454_v55 = vld [vmem:[#allocation11 + $0x12] ss:$2 sm:$0xff]  ;;  %v11466_v19 = vld [vmem:[#allocation11 + $0x13] ss:$2 sm:$0xff] }
 0xb29   : > { %v11420_v15 = vpop.f32.mrb[206].mxu0  ;;  %v11460_v17 = vmax.f32 %v11448_v11, %v11454_v55  ;;  %v11835_v30 = vld [vmem:[%s19511_s11 + $0xa8] sm:$0xff] }
 0xb2a   : > { %v11421_v18 = vadd.f32 %v13078_v12, %v11420_v15  ;;  %v11422_v31 = vpop.f32.mrb[207].mxu0 }
 0xb2b   : > { %v11472_v53 = vmax.f32 %v11460_v17, %v11466_v19 }
 0xb2c   : > { %11431 = vst.msk [vmem:[#allocation11 + $0x30] sm:$0x3f] %vm11430_vm1, %v11421_v18  ;;  %v11436_v36 = vld [vmem:[#allocation11 + $0x20] ss:$2 sm:$0xff]  ;;  %v11444_v38 = vld [vmem:[#allocation11 + $0x21] ss:$2 sm:$0xff] }
 0xb2d   : > { %v11476_v32 = vmax.f32 %v11472_v53, 0.0  ;;  %v11449_v45 = vmax.f32 %v11436_v36, %v11444_v38 }
 0xb2f   : > { %11484 = vst.msk [vmem:[#allocation5 + $0xa] sm:$0xff] %vm11238_vm13, %v11476_v32 }
 0xb33   : > { %v11438_v43 = vld [vmem:[#allocation11 + $0x30] ss:$2 sm:$0x3]  ;;  %v11446_v44 = vld [vmem:[#allocation11 + $0x31] ss:$2 sm:$0x3] }
 0xb34   : > { %v11450_v46 = vmax.f32 %v11438_v43, %v11446_v44  ;;  %v11456_v48 = vld [vmem:[#allocation11 + $0x22] ss:$2 sm:$0xff]  ;;  %v11458_v50 = vld [vmem:[#allocation11 + $0x32] ss:$2 sm:$0x3] }
 0xb35   : > { %v11461_v52 = vmax.f32 %v11449_v45, %v11456_v48  ;;  %v11468_v59 = vld [vmem:[#allocation11 + $0x23] ss:$2 sm:$0xff]  ;;  %v11470_v58 = vld [vmem:[#allocation11 + $0x33] ss:$2 sm:$0x3] }
 0xb36   : > { %v11462_v54 = vmax.f32 %v11450_v46, %v11458_v50  ;;  %v11500_v57 = vld [vmem:[#allocation5 + $0x3] sm:$0xff]  ;;  %v11507_v48 = vld [vmem:[#allocation5 + $0x1c] sm:$0x3] }
 0xb37   : > { %v11473_v60 = vmax.f32 %v11461_v52, %v11468_v59  ;;  %v16213_v12 = vpack.i.bf16 %v11492_v56, %v11500_v57  ;;  %v11493_v0 = vld [vmem:[#allocation5 + $0x9] sm:$0xff]  ;;  %v11814_v50 = vld [vmem:[%s19511_s11] sm:$0xff]  ;;  %v11815_v52 = vld [vmem:[%s19511_s11 + $0x8] sm:$0xff] }
 0xb38   : > { %v11474_v61 = vmax.f32 %v11462_v54, %v11470_v58  ;;  %v11497_v19 = vld [vmem:[#allocation5 + $0xa] sm:$0xff]  ;;  %v15590_v59 = vpack.c.bf16 %v11815_v52, %v11814_v50  ;;  %v11818_v58 = vld [vmem:[%s19511_s11 + $0x20] sm:$0xff] }
 0xb39   : > { %v11477_v62 = vmax.f32 %v11473_v60, 0.0  ;;  %16214 = vrot.lane.b32.xlu0 %v16213_v12, %s19535_s28  ;;  %v11489_v31 = vld [vmem:[#allocation5 + $0x8] sm:$0xff]  ;;  %v11817_v56 = vld [vmem:[%s19511_s11 + $0x18] sm:$0xff]  ;;  %v11819_v60 = vld [vmem:[%s19511_s11 + $0x28] sm:$0xff] }
 0xb3a   : > { %v11478_v63 = vmax.f32 %v11474_v61, 0.0  ;;  %v11504_v44 = vld [vmem:[#allocation5 + $0x4] sm:$0xff]  ;;  %15591 = vmatpush1.bf16.msra.mxu1 %v15590_v59  ;;  %v15596_v12 = vpack.c.bf16 %v11819_v60, %v11818_v58 }
 0xb3b   : > { %11485 = vst.msk [vmem:[#allocation5 + $0x12] sm:$0xff] %vm11238_vm13, %v11477_v62  ;;  %v11816_v54 = vld [vmem:[%s19511_s11 + $0x10] sm:$0xff]  ;;  %15592 = vmatprep.subr.bf16.mxu1 %v16301_v2  ;;  %v11821_v62 = vld [vmem:[%s19511_s11 + $0x38] sm:$0xff] }
 0xb3c   : > { %11487 = vst.msk [vmem:[#allocation5 + $0x1a] sm:$0x3] %vm11486_vm2, %v11478_v63  ;;  %v15593_v57 = vpack.c.bf16 %v11817_v56, %v11816_v54  ;;  %v11820_v61 = vld [vmem:[%s19511_s11 + $0x30] sm:$0xff] }
 0xb3d   : > { %v15599_v63 = vpack.c.bf16 %v11821_v62, %v11820_v61 }
 0xb3e   : > { %15594 = vmatpush1.bf16.msra.mxu1 %v15593_v57 }
 0xb3f   : > { %15595 = vmatprep.subr.bf16.mxu1 %v16301_v2 }
 0xb42   : > { %v11501_v1 = vld [vmem:[#allocation5 + $0xb] sm:$0xff]  ;;  %15597 = vmatpush1.bf16.msra.mxu1 %v15596_v12 }
 0xb43   : > { %v16218_v3 = vpack.i.bf16 %v11493_v0, %v11501_v1  ;;  %v11494_v10 = vld [vmem:[#allocation5 + $0x11] sm:$0xff]  ;;  %v11495_v20 = vld [vmem:[#allocation5 + $0x19] sm:$0x3]  ;;  %v11503_v21 = vld [vmem:[#allocation5 + $0x1b] sm:$0x3]  ;;  %15598 = vmatprep.subr.bf16.mxu1 %v16301_v2 }
 0xb44   : > { %v11502_v13 = vld [vmem:[#allocation5 + $0x13] sm:$0xff]  ;;  %v16228_v22 = vpack.i.bf16 %v11495_v20, %v11503_v21  ;;  %v11823_v1 = vld [vmem:[%s19511_s11 + $0x48] sm:$0xff] }
 0xb45   : > { %v16223_v14 = vpack.i.bf16 %v11494_v10, %v11502_v13  ;;  %16219 = vrot.lane.b32.xlu1 %v16218_v3, %s19535_s28  ;;  %v11498_v33 = vld [vmem:[#allocation5 + $0x12] sm:$0xff]  ;;  %v11499_v40 = vld [vmem:[#allocation5 + $0x1a] sm:$0x3]  ;;  %v11824_v10 = vld [vmem:[%s19511_s11 + $0x50] sm:$0xff] }
 0xb46   : > { %v11490_v37 = vld [vmem:[#allocation5 + $0x10] sm:$0xff]  ;;  %v11822_v0 = vld [vmem:[%s19511_s11 + $0x40] sm:$0xff]  ;;  %15600 = vmatpush1.bf16.msra.mxu1 %v15599_v63  ;;  %v11827_v21 = vld [vmem:[%s19511_s11 + $0x68] sm:$0xff] }
 0xb47   : > { %16224 = vrot.lane.b32.xlu0 %v16223_v14, %s19535_s28  ;;  %v11505_v45 = vld [vmem:[#allocation5 + $0xc] sm:$0xff]  ;;  %v11506_v46 = vld [vmem:[#allocation5 + $0x14] sm:$0xff]  ;;  %v15602_v3 = vpack.c.bf16 %v11823_v1, %v11822_v0  ;;  %15601 = vmatprep.subr.bf16.mxu1 %v16301_v2 }
 0xb48   : > { %v11825_v13 = vld [vmem:[%s19511_s11 + $0x58] sm:$0xff]  ;;  %v11826_v20 = vld [vmem:[%s19511_s11 + $0x60] sm:$0xff] }
 0xb49   : > { %16229 = vrot.lane.b32.xlu1 %v16228_v22, %s19535_s28  ;;  %v15605_v14 = vpack.c.bf16 %v11825_v13, %v11824_v10  ;;  %v15608_v22 = vpack.c.bf16 %v11827_v21, %v11826_v20  ;;  %v11944_v20 = vld [vmem:[%s19513_s13 + $0x8] sm:$0xff]  ;;  %v11945_v21 = vld [vmem:[%s19513_s13 + $0x10] sm:$0xff] }
 0xb4a   : > { %15603 = vmatpush1.bf16.msra.mxu1 %v15602_v3 }
 0xb4b   : > { %15604 = vmatprep.subr.bf16.mxu1 %v16301_v2 }
 0xb4e   : > { %15606 = vmatpush1.bf16.msra.mxu1 %v15605_v14  ;;  %v11943_v14 = vld [vmem:[%s19513_s13] sm:$0xff] }
 0xb4f   : > { %15607 = vmatprep.subr.bf16.mxu1 %v16301_v2 }
 0xb52   : > { %15609 = vmatpush1.bf16.msra.mxu1 %v15608_v22  ;;  %v15626_v22 = vpack.c.bf16 %v11944_v20, %v11943_v14  ;;  %v13103_v14 = vld [vmem:[%s19515_s15 + $0x80] sm:$0xff] }
 0xb53   : > { %15610 = vmatprep.subr.bf16.mxu1 %v16301_v2 }
 0xbab   : > { %v16215_v23 = vpop.permute.xlu0 %16214 }
 0xbac   : > { %v16217_v26 = vunpack.i.h.bf16 %v16215_v23  ;;  %v16216_v27 = vunpack.i.l.bf16 %v16215_v23  ;;  %v11828_v23 = vld [vmem:[%s19511_s11 + $0x70] sm:$0xff] }
 0xbad   : > { %v15611_v25 = vpack.c.bf16 %v11829_v24, %v11828_v23  ;;  %v11946_v23 = vld [vmem:[%s19513_s13 + $0x18] sm:$0xff] }
 0xbae   : > { %v11540_v29 = vsel %vm11238_vm13, %v11488_v49, %v16217_v26  ;;  %v11544_v51 = vsel %vm11238_vm13, %v11496_v28, %v16216_v27  ;;  %v11830_v26 = vld [vmem:[%s19511_s11 + $0x80] sm:$0xff]  ;;  %v11831_v27 = vld [vmem:[%s19511_s11 + $0x88] sm:$0xff]  ;;  %v11832_v28 = vld [vmem:[%s19511_s11 + $0x90] sm:$0xff]  ;;  %v15629_v24 = vpack.c.bf16 %v11946_v23, %v11945_v21 }
 0xbaf   : > { %11671 = vmatprep.mubr.f32.mxu0 %v11544_v51  ;;  %15612 = vmatpush1.bf16.msra.mxu1 %v15611_v25  ;;  %v15614_v49 = vpack.c.bf16 %v11831_v27, %v11830_v26  ;;  %v11947_v25 = vld [vmem:[%s19513_s13 + $0x20] sm:$0xff]  ;;  %v11948_v26 = vld [vmem:[%s19513_s13 + $0x28] sm:$0xff] }
 0xbb0   : > { %11672 = vmatmul.mubr.f32.vlgmr.msra.gmra.mrb[208].mxu0 %v11540_v29  ;;  %15613 = vmatprep.subr.bf16.mxu1 %v16301_v2  ;;  %v11833_v29 = vld [vmem:[%s19511_s11 + $0x98] sm:$0xff]  ;;  %v15632_v27 = vpack.c.bf16 %v11948_v26, %v11947_v25  ;;  %v13104_v21 = vld [vmem:[%s19515_s15 + $0x88] sm:$0xff] }
 0xbb1   : > { %15576 = vmatpush3.bf16.msra.mxu0 %v15573_v42  ;;  %v11491_v42 = vld [vmem:[#allocation5 + $0x18] sm:$0x3]  ;;  %v15617_v51 = vpack.c.bf16 %v11833_v29, %v11832_v28  ;;  %v11950_v28 = vld [vmem:[%s19513_s13 + $0x38] sm:$0xff] }
 0xbb2   : > { %15578 = vmatprep.subr.bf16.mxu0 %v15577_v47 }
 0xbb3   : > { %15615 = vmatpush1.bf16.msra.mxu1 %v15614_v49  ;;  %v11949_v49 = vld [vmem:[%s19513_s13 + $0x30] sm:$0xff] }
 0xbb4   : > { %15616 = vmatprep.subr.bf16.mxu1 %v16301_v2  ;;  %v15635_v29 = vpack.c.bf16 %v11950_v28, %v11949_v49  ;;  %v12054_v28 = vld [vmem:[%s19515_s15] sm:$0xff] }
 0xbb5   : > { %15580 = vmatpush3.bf16.msra.mxu0 %v15577_v47  ;;  %v11834_v47 = vld [vmem:[%s19511_s11 + $0xa0] sm:$0xff] }
 0xbb6   : > { %15582 = vmatprep.subr.bf16.mxu0 %v15581_v6  ;;  %v15620_v5 = vpack.c.bf16 %v11835_v30, %v11834_v47  ;;  %v11952_v47 = vld [vmem:[%s19513_s13 + $0x48] sm:$0xff] }
 0xbb7   : > { %v16220_v11 = vpop.permute.xlu1 %16219  ;;  %15618 = vmatpush1.bf16.msra.mxu1 %v15617_v51  ;;  %v11951_v51 = vld [vmem:[%s19513_s13 + $0x40] sm:$0xff] }
 0xbb8   : > { %v16222_v55 = vunpack.i.h.bf16 %v16220_v11  ;;  %v16221_v15 = vunpack.i.l.bf16 %v16220_v11  ;;  %15619 = vmatprep.subr.bf16.mxu1 %v16301_v2  ;;  %v15638_v30 = vpack.c.bf16 %v11952_v47, %v11951_v51 }
 0xbb9   : > { %v16225_v17 = vpop.permute.xlu0 %16224  ;;  %15584 = vmatpush3.bf16.msra.mxu0 %v15581_v6  ;;  %v11836_v6 = vld [vmem:[%s19511_s11 + $0xb0] sm:$0xff] }
 0xbba   : > { %v16226_v18 = vunpack.i.l.bf16 %v16225_v17  ;;  %v11545_v53 = vsel %vm11238_vm13, %v11497_v19, %v16221_v15  ;;  %v11541_v32 = vsel %vm11238_vm13, %v11489_v31, %v16222_v55  ;;  %15586 = vmatprep.subr.bf16.mxu0 %v15585_v9  ;;  %v16227_v34 = vunpack.i.h.bf16 %v16225_v17 }
 0xbbb   : > { %v16230_v35 = vpop.permute.xlu1 %16229  ;;  %11676 = vmatprep.mubr.f32.mxu0 %v11545_v53  ;;  %15621 = vmatpush1.bf16.msra.mxu1 %v15620_v5  ;;  %v15623_v8 = vpack.c.bf16 %v11837_v7, %v11836_v6  ;;  %v11953_v5 = vld [vmem:[%s19513_s13 + $0x50] sm:$0xff]  ;;  %v11954_v6 = vld [vmem:[%s19513_s13 + $0x58] sm:$0xff] }
 0xbbc   : > { %v11546_v36 = vsel %vm11238_vm13, %v11498_v33, %v16226_v18  ;;  %v16231_v16 = vunpack.i.l.bf16 %v16230_v35  ;;  %11677 = vmatmul.mubr.f32.gmra.mrb[210].mxu0 %v11541_v32  ;;  %v16232_v38 = vunpack.i.h.bf16 %v16230_v35  ;;  %v11542_v39 = vsel %vm11238_vm13, %v11490_v37, %v16227_v34  ;;  %15622 = vmatprep.subr.bf16.mxu1 %v16301_v2  ;;  %v13086_v34 = vld [vmem:[%s19510_s10] ss:$0 sm:$0xff] }
 0xbbd   : > { %11681 = vmatprep.mubr.f32.mxu0 %v11546_v36  ;;  %15588 = vmatpush3.bf16.msra.mxu0 %v15585_v9  ;;  %v15641_v7 = vpack.c.bf16 %v11954_v6, %v11953_v5  ;;  %v12056_v5 = vld [vmem:[%s19515_s15 + $0x10] sm:$0xff]  ;;  %v12057_v6 = vld [vmem:[%s19515_s15 + $0x18] sm:$0xff] }
 0xbbe   : > { %15625 = vmatprep.subr.bf16.mxu0 %v16301_v2  ;;  %v11547_v41 = vsel %vm11238_vm13, %v11499_v40, %v16231_v16  ;;  %v11543_v43 = vsel %vm11238_vm13, %v11491_v42, %v16232_v38 }
 0xbbf   : > { %15624 = vmatpush1.bf16.msra.mxu1 %v15623_v8  ;;  %v11955_v8 = vld [vmem:[%s19513_s13 + $0x60] sm:$0xff] }
 0xbc0   : > { %11682 = vmatmul.mubr.f32.gmra.mrb[212].mxu0 %v11542_v39  ;;  %15661 = vmatprep.subr.bf16.mxu1 %v16301_v2 }
 0xbc1   : > { %11686 = vmatprep.mubr.f32.mxu0 %v11547_v41 }
 0xbc4   : > { %11687 = vmatmul.mubr.f32.gmra.mrb[214].mxu0 %v11543_v43 }
 0xbc5   : > { %15373 = vmatprep.mubr.msk.f32.mxu0 %vm11238_vm13, %v11504_v44 }
 0xbc8   : > { %15374 = vmatmul.mubr.msk.f32.vlgmr.msra.gmra.mrb[216].mxu0 %vm11238_vm13, %v11505_v45 }
 0xbc9   : > { %15376 = vmatprep.mubr.msk.f32.mxu0 %vm11238_vm13, %v11506_v46  ;;  %15627 = vmatpush1.bf16.msra.mxu0 %v15626_v22  ;;  %v13094_v22 = vld [vmem:[%s19514_s14] ss:$0 sm:$0xff] }
 0xbca   : > { %15628 = vmatprep.subr.bf16.mxu0 %v16301_v2 }
 0xbcc   : > { %15377 = vmatmul.mubr.msk.f32.gmra.mrb[218].mxu0 %vm11238_vm13, %v11507_v48 }
 0xbcd   : > { %15630 = vmatpush1.bf16.msra.mxu0 %v15629_v24 }
 0xbce   : > { %15631 = vmatprep.subr.bf16.mxu0 %v16301_v2 }
 0xbd1   : > { %15633 = vmatpush1.bf16.msra.mxu0 %v15632_v27 }
 0xbd2   : > { %15634 = vmatprep.subr.bf16.mxu0 %v16301_v2 }
 0xbd5   : > { %15636 = vmatpush1.bf16.msra.mxu0 %v15635_v29  ;;  %v12055_v29 = vld [vmem:[%s19515_s15 + $0x8] sm:$0xff] }
 0xbd6   : > { %15637 = vmatprep.subr.bf16.mxu0 %v16301_v2  ;;  %v15674_v47 = vpack.c.bf16 %v12055_v29, %v12054_v28 }
 0xbd9   : > { %15639 = vmatpush1.bf16.msra.mxu0 %v15638_v30 }
 0xbda   : > { %15640 = vmatprep.subr.bf16.mxu0 %v16301_v2 }
 0xbdd   : > { %15642 = vmatpush1.bf16.msra.mxu0 %v15641_v7  ;;  %v15677_v7 = vpack.c.bf16 %v12057_v6, %v12056_v5 }
 0xbde   : > { %15643 = vmatprep.subr.bf16.mxu0 %v16301_v2 }
 0xc83   : > { %v13871_v9 = vpop.f32.mrb[208].mxu0 }
 0xc84   : > { %v13872_v11 = vpop.f32.mrb[209].mxu0 }
 0xc85   : > { %v13873_v55 = vadd.f32 %v13872_v11, %v13871_v9  ;;  %v11956_v9 = vld [vmem:[%s19513_s13 + $0x68] sm:$0xff] }
 0xc86   : > { %v15644_v11 = vpack.c.bf16 %v11956_v9, %v11955_v8  ;;  %v12058_v8 = vld [vmem:[%s19515_s15 + $0x20] sm:$0xff]  ;;  %v12059_v9 = vld [vmem:[%s19515_s15 + $0x28] sm:$0xff] }
 0xc87   : > { %v11674_v37 = vadd.f32 %v13873_v55, %v13086_v34  ;;  %v11957_v55 = vld [vmem:[%s19513_s13 + $0x70] sm:$0xff] }
 0xc88   : > { %15645 = vmatpush1.bf16.msra.mxu0 %v15644_v11  ;;  %v15680_v11 = vpack.c.bf16 %v12059_v9, %v12058_v8 }
 0xc89   : > { %15646 = vmatprep.subr.bf16.mxu0 %v16301_v2 }
 0xc8f   : > { %v13874_v15 = vpop.f32.mrb[210].mxu0 }
 0xc90   : > { %v13875_v17 = vpop.f32.mrb[211].mxu0 }
 0xc91   : > { %v13876_v18 = vadd.f32 %v13875_v17, %v13874_v15  ;;  %v11958_v15 = vld [vmem:[%s19513_s13 + $0x78] sm:$0xff] }
 0xc92   : > { %v15647_v17 = vpack.c.bf16 %v11958_v15, %v11957_v55  ;;  %v12060_v55 = vld [vmem:[%s19515_s15 + $0x30] sm:$0xff]  ;;  %v12061_v15 = vld [vmem:[%s19515_s15 + $0x38] sm:$0xff] }
 0xc93   : > { %v13877_v19 = vpop.f32.mrb[212].mxu0  ;;  %v11679_v36 = vadd.f32 %v13876_v18, %v13086_v34  ;;  %v11959_v18 = vld [vmem:[%s19513_s13 + $0x80] sm:$0xff] }
 0xc94   : > { %v13878_v31 = vpop.f32.mrb[213].mxu0  ;;  %15648 = vmatpush1.bf16.msra.mxu0 %v15647_v17  ;;  %v15683_v17 = vpack.c.bf16 %v12061_v15, %v12060_v55 }
 0xc95   : > { %v13879_v53 = vadd.f32 %v13878_v31, %v13877_v19  ;;  %v11960_v19 = vld [vmem:[%s19513_s13 + $0x88] sm:$0xff]  ;;  %15649 = vmatprep.subr.bf16.mxu0 %v16301_v2 }
 0xc96   : > { %v15650_v31 = vpack.c.bf16 %v11960_v19, %v11959_v18  ;;  %v13107_v18 = vld [vmem:[%s19515_s15 + $0x90] sm:$0xff]  ;;  %v13108_v19 = vld [vmem:[%s19515_s15 + $0x98] sm:$0xff] }
 0xc97   : > { %v13880_v32 = vpop.f32.mrb[214].mxu0  ;;  %v11684_v43 = vadd.f32 %v13879_v53, %v13086_v34  ;;  %v11961_v53 = vld [vmem:[%s19513_s13 + $0x90] sm:$0xff] }
 0xc98   : > { %v13881_v33 = vpop.f32.mrb[215].mxu0  ;;  %15651 = vmatpush1.bf16.msra.mxu0 %v15650_v31  ;;  %v12062_v31 = vld [vmem:[%s19515_s15 + $0x40] sm:$0xff] }
 0xc99   : > { %v13882_v35 = vadd.f32 %v13881_v33, %v13880_v32  ;;  %v11962_v32 = vld [vmem:[%s19513_s13 + $0x98] sm:$0xff]  ;;  %15652 = vmatprep.subr.bf16.mxu0 %v16301_v2 }
 0xc9a   : > { %v15653_v33 = vpack.c.bf16 %v11962_v32, %v11961_v53  ;;  %v15686_v53 = vpack.c.bf16 %v13108_v19, %v13107_v18  ;;  %v13109_v32 = vld [vmem:[%s19515_s15 + $0xa0] sm:$0xff] }
 0xc9b   : > { %v15375_v16 = vpop.f32.mrb[216].mxu0  ;;  %v11689_v41 = vadd.f32 %v13882_v35, %v13086_v34  ;;  %v11963_v34 = vld [vmem:[%s19513_s13 + $0xa0] sm:$0xff]  ;;  %v11964_v35 = vld [vmem:[%s19513_s13 + $0xa8] sm:$0xff] }
 0xc9c   : > { %v11764_v38 = vadd.f32 %v15375_v16, %v11679_v36  ;;  %v11758_v39 = vpop.f32.mrb[217].mxu0  ;;  %15654 = vmatpush1.bf16.msra.mxu0 %v15653_v33  ;;  %v15656_v36 = vpack.c.bf16 %v11964_v35, %v11963_v34  ;;  %v11965_v16 = vld [vmem:[%s19513_s13 + $0xb0] sm:$0xff]  ;;  %v13110_v33 = vld [vmem:[%s19515_s15 + $0xa8] sm:$0xff] }
 0xc9d   : > { %v11759_v40 = vadd.f32 %v11758_v39, %v11674_v37  ;;  %15655 = vmatprep.subr.bf16.mxu0 %v16301_v2  ;;  %v11966_v37 = vld [vmem:[%s19513_s13 + $0xb8] sm:$0xff]  ;;  %v13091_v39 = vld [vmem:[%s19512_s12] ss:$0 sm:$0xff]  ;;  %v15689_v34 = vpack.c.bf16 %v13110_v33, %v13109_v32  ;;  %v13111_v35 = vld [vmem:[%s19515_s15 + $0xb0] sm:$0xff] }
 0xc9e   : > { %11778 = vst.msk [vmem:[#allocation12 + $0x8] sm:$0xff] %vm11238_vm13, %v11764_v38  ;;  %v15659_v38 = vpack.c.bf16 %v11966_v37, %v11965_v16  ;;  %v13113_v37 = vld [vmem:[%s19515_s15 + $0xc0] sm:$0xff] }
 0xc9f   : > { %11777 = vst.msk [vmem:[#allocation12] sm:$0xff] %vm11238_vm13, %v11759_v40  ;;  %v15378_v42 = vpop.f32.mrb[218].mxu0 }
 0xca0   : > { %v11774_v44 = vadd.f32 %v15378_v42, %v11689_v41  ;;  %v11768_v45 = vpop.f32.mrb[219].mxu0  ;;  %15657 = vmatpush1.bf16.msra.mxu0 %v15656_v36  ;;  %v13112_v36 = vld [vmem:[%s19515_s15 + $0xb8] sm:$0xff] }
 0xca1   : > { %v11769_v46 = vadd.f32 %v11768_v45, %v11684_v43  ;;  %15658 = vmatprep.subr.bf16.mxu0 %v16301_v2  ;;  %v15692_v16 = vpack.c.bf16 %v13112_v36, %v13111_v35 }
 0xca2   : > { %11780 = vst.msk [vmem:[#allocation12 + $0x18] sm:$0x3] %vm11486_vm2, %v11774_v44 }
 0xca3   : > { %11779 = vst.msk [vmem:[#allocation12 + $0x10] sm:$0xff] %vm11238_vm13, %v11769_v46 }
 0xca4   : > { %15660 = vmatpush1.bf16.msra.mxu0 %v15659_v38  ;;  %v13114_v38 = vld [vmem:[%s19515_s15 + $0xc8] sm:$0xff] }
 0xca6   : > { %v11781_v48 = vld [vmem:[#allocation12] ss:$2 sm:$0xff]  ;;  %v11785_v50 = vld [vmem:[#allocation12 + $0x1] ss:$2 sm:$0xff] }
 0xca7   : > { %v11788_v52 = vmax.f32 %v11781_v48, %v11785_v50 }
 0xca9   : > { %v11790_v54 = vmax.f32 %v11788_v52, 0.0  ;;  %v13096_v52 = vld [vmem:[%s19515_s15 + $0x48] sm:$0xff] }
 0xcaa   : > { %v11783_v59 = vld [vmem:[#allocation12 + $0x10] ss:$2 sm:$0x1f]  ;;  %v11787_v56 = vld [vmem:[#allocation12 + $0x11] ss:$2 sm:$0x1f] }
 0xcab   : > { %v11789_v57 = vmax.f32 %v11783_v59, %v11787_v56  ;;  %11795 = vst.msk [vmem:[#allocation6 + $0x1] sm:$0xff] %vm11238_vm13, %v11790_v54  ;;  %v13097_v54 = vld [vmem:[%s19515_s15 + $0x50] sm:$0xff] }
 0xcac   : > { %v15662_v59 = vpack.c.bf16 %v13097_v54, %v13096_v52 }
 0xcad   : > { %v11791_v58 = vmax.f32 %v11789_v57, 0.0 }
 0xcaf   : > { %11797 = vst.msk [vmem:[#allocation6 + $0x9] sm:$0x1f] %vm11796_vm4, %v11791_v58 }
 0xcb2   : > { %v11800_v60 = vld [vmem:[#allocation6 + $0x1] sm:$0xff] }
 0xcb3   : > { %11806 = vrot.lane.b32.xlu0 %v11800_v60, %s19535_s28  ;;  %v11798_v63 = vld [vmem:[#allocation6] sm:$0xff] }
 0xcb6   : > { %v11801_v12 = vld [vmem:[#allocation6 + $0x9] sm:$0x1f] }
 0xcb7   : > { %v11802_v61 = vld [vmem:[#allocation6 + $0x2] sm:$0xff]  ;;  %11808 = vrot.lane.b32.xlu1 %v11801_v12, %s19535_s28  ;;  %v11803_v1 = vld [vmem:[#allocation6 + $0xa] sm:$0x1f] }
 0xcb8   : > { %13092 = vmatprep.mubr.msk.f32.mxu1 %vm11238_vm13, %v11802_v61  ;;  %v11799_v10 = vld [vmem:[#allocation6 + $0x8] sm:$0x1f] }
 0xd25   : > { %v11807_v62 = vpop.permute.xlu0 %11806 }
 0xd26   : > { %v11812_v0 = vsel %vm11238_vm13, %v11798_v63, %v11807_v62  ;;  %v13098_v62 = vld [vmem:[%s19515_s15 + $0x58] sm:$0xff]  ;;  %v13099_v63 = vld [vmem:[%s19515_s15 + $0x60] sm:$0xff] }
 0xd27   : > { %11916 = vmatmul.mubr.f32.vlgmr.msra.gmra.mrb[42].mxu1 %v11812_v0  ;;  %v13100_v0 = vld [vmem:[%s19515_s15 + $0x68] sm:$0xff] }
 0xd28   : > { %13093 = vmatprep.mubr.msk.f32.mxu1 %vm11238_vm13, %v11803_v1  ;;  %15663 = vmatpush3.bf16.msra.mxu1 %v15662_v59  ;;  %v15665_v1 = vpack.c.bf16 %v13099_v63, %v13098_v62 }
 0xd29   : > { %v11809_v3 = vpop.permute.xlu1 %11808  ;;  %15664 = vmatprep.subr.bf16.mxu1 %v16301_v2 }
 0xd2a   : > { %v11813_v13 = vsel %vm11238_vm13, %v11799_v10, %v11809_v3  ;;  %v13101_v3 = vld [vmem:[%s19515_s15 + $0x70] sm:$0xff] }
 0xd2b   : > { %11921 = vmatmul.mubr.f32.gmra.mrb[44].mxu1 %v11813_v13  ;;  %v15668_v10 = vpack.c.bf16 %v13101_v3, %v13100_v0  ;;  %v13102_v13 = vld [vmem:[%s19515_s15 + $0x78] sm:$0xff] }
 0xd2c   : > { %15397 = vmatprep.mubr.msk.f32.mxu1 %vm16302_vm0, %v16303_v4  ;;  %15666 = vmatpush3.bf16.msra.mxu1 %v15665_v1  ;;  %v15671_v20 = vpack.c.bf16 %v13103_v14, %v13102_v13 }
 0xd2d   : > { %15667 = vmatprep.subr.bf16.mxu1 %v16301_v2 }
 0xd30   : > { %15669 = vmatpush3.bf16.msra.mxu1 %v15668_v10 }
 0xd31   : > { %15670 = vmatprep.subr.bf16.mxu1 %v16301_v2 }
 0xd34   : > { %15672 = vmatpush3.bf16.msra.mxu1 %v15671_v20 }
 0xd35   : > { %15395 = vmatprep.subr.mxu1 %v16303_v4 }
 0xd38   : > { %15396 = vmatpush3.msra.mxu1 %v13104_v21 }
 0xd39   : > { %15673 = vmatprep.subr.bf16.mxu1 %v16301_v2 }
 0xdfa   : > { %v11917_v40 = vpop.f32.mrb[42].mxu1 }
 0xdfb   : > { %v11918_v41 = vadd.f32 %v13091_v39, %v11917_v40  ;;  %v11919_v42 = vpop.f32.mrb[43].mxu1  ;;  %v13115_v40 = vld [vmem:[%s19515_s15 + $0xd0] sm:$0xff] }
 0xdfd   : > { %11926 = vst.msk [vmem:[#allocation13] sm:$0xff] %vm11238_vm13, %v11918_v41 }
 0xdfe   : > { %v11922_v43 = vpop.f32.mrb[44].mxu1 }
 0xdff   : > { %v11923_v44 = vadd.f32 %v13091_v39, %v11922_v43  ;;  %v11924_v45 = vpop.f32.mrb[45].mxu1  ;;  %v15695_v39 = vpack.c.bf16 %v13114_v38, %v13113_v37 }
 0xe01   : > { %11927 = vst.msk [vmem:[#allocation13 + $0x8] sm:$0x1f] %vm11796_vm4, %v11923_v44 }
 0xe08   : > { %v11928_v46 = vld [vmem:[#allocation13] ss:$2 sm:$0x3f]  ;;  %v11930_v48 = vld [vmem:[#allocation13 + $0x1] ss:$2 sm:$0x3f] }
 0xe09   : > { %v11931_v50 = vmax.f32 %v11928_v46, %v11930_v48 }
 0xe0b   : > { %v11932_v56 = vmax.f32 %v11931_v50, 0.0 }
 0xe0d   : > { %11934 = vst.msk [vmem:[#allocation7 + $0x1] sm:$0x3f] %vm11430_vm1, %v11932_v56 }
 0xe14   : > { %v11937_v57 = vld [vmem:[#allocation7 + $0x2] sm:$0x3f] }
 0xe15   : > { %v11936_v58 = vld [vmem:[#allocation7 + $0x1] sm:$0x3f]  ;;  %13095 = vmatprep.mubr.msk.f32.mxu0 %vm11238_vm13, %v11937_v57 }
 0xe16   : > { %11939 = vrot.lane.b32.xlu0 %v11936_v58, %s19535_s28  ;;  %v11935_v12 = vld [vmem:[#allocation7] sm:$0x3f]  ;;  %s16243_s28 = scalar_lea.vmem %s16242_s3, 32 }
 0xe17   : > { %p16245_p1 = scmp.lt.s32.totalorder %s16243_s28, %s16237_s2 }
 0xe19   : > { %p16246_p2 = por %p16245_p1, %p16244_p0 }
 0xe1b   : > { %p16247_p3 = pnand %p16246_p2, %p16240_p13 }
 0xe88   : > { %v11940_v60 = vpop.permute.xlu0 %11939 }
 0xe89   : > { %v11942_v61 = vsel %vm11238_vm13, %v11935_v12, %v11940_v60 }
 0xe8a   : > { %12042 = vmatmul.mubr.f32.vlgmr.msra.gmra.mrb[220].mxu0 %v11942_v61 }
 0xf5d   : > { %v12043_v23 = vpop.f32.mrb[220].mxu0 }
 0xf5e   : > { %v12044_v24 = vadd.f32 %v13094_v22, %v12043_v23  ;;  %v12045_v25 = vpop.f32.mrb[221].mxu0 }
 0xf60   : > { %12048 = vst.msk [vmem:[#allocation14] sm:$0x3f] %vm12047_vm5, %v12044_v24 }
 0xf67   : > { %v12049_v26 = vld [vmem:[#allocation14] ss:$2 sm:$0x7]  ;;  %v12051_v27 = vld [vmem:[#allocation14 + $0x1] ss:$2 sm:$0x7] }
 0xf68   : > { %v12052_v49 = vmax.f32 %v12049_v26, %v12051_v27 }
 0xf6a   : > { %v12053_v51 = vmax.f32 %v12052_v49, 0.0 }
 0xf6c   : > { %v12074_v30 = vrot.slane %v12053_v51, 1  ;;  %v12230_v41 = vrot.slane %v12053_v51, 2 }
 0xf6e   : > { %15398 = vmatmul.mubr.msk.f32.vlgmr.msra.gmra.mrb[46].mxu1 %vm12075_vm6, %v12074_v30 }
 0xf6f   : > { %15675 = vmatpush3.bf16.msra.mxu1 %v15674_v47  ;;  %15418 = vmatprep.mubr.msk.f32.mxu1 %vm16302_vm0, %v16303_v4 }
 0xf70   : > { %15676 = vmatprep.subr.bf16.mxu1 %v16301_v2 }
 0xf73   : > { %15678 = vmatpush3.bf16.msra.mxu1 %v15677_v7 }
 0xf74   : > { %15679 = vmatprep.subr.bf16.mxu1 %v16301_v2 }
 0xf77   : > { %15681 = vmatpush3.bf16.msra.mxu1 %v15680_v11 }
 0xf78   : > { %15682 = vmatprep.subr.bf16.mxu1 %v16301_v2 }
 0xf7b   : > { %15684 = vmatpush3.bf16.msra.mxu1 %v15683_v17 }
 0xf7c   : > { %15416 = vmatprep.subr.mxu1 %v16303_v4 }
 0xf7f   : > { %15417 = vmatpush3.msra.mxu1 %v12062_v31 }
 0xf80   : > { %15419 = vmatmul.mubr.msk.f32.vlgmr.msra.gmra.mrb[46].mxu1 %vm12075_vm6, %v12053_v51  ;;  %15685 = vmatprep.subr.bf16.mxu1 %v16301_v2 }
 0xf81   : > { %15687 = vmatpush3.bf16.msra.mxu1 %v15686_v53  ;;  %15439 = vmatprep.mubr.msk.f32.mxu1 %vm16302_vm0, %v16303_v4  ;;  %vm12304_vm0 = vcmask 32768  }
 0xf82   : > { %15688 = vmatprep.subr.bf16.mxu1 %v16301_v2 }
 0xf85   : > { %15690 = vmatpush3.bf16.msra.mxu1 %v15689_v34 }
 0xf86   : > { %15691 = vmatprep.subr.bf16.mxu1 %v16301_v2 }
 0xf89   : > { %15693 = vmatpush3.bf16.msra.mxu1 %v15692_v16 }
 0xf8a   : > { %15694 = vmatprep.subr.bf16.mxu1 %v16301_v2 }
 0xf8d   : > { %15696 = vmatpush3.bf16.msra.mxu1 %v15695_v39 }
 0xf8e   : > { %15437 = vmatprep.subr.mxu1 %v16303_v4 }
 0xf91   : > { %15438 = vmatpush3.msra.mxu1 %v13115_v40 }
 0xf92   : > { %15440 = vmatmul.mubr.msk.f32.vlgmr.msra.gmra.mrb[46].mxu1 %vm12075_vm6, %v12230_v41 }
0x1065   : > { %v12299_v2 = vpop.f32.mrb[46].mxu1 }
0x1066   : > { %12305 = vst.msk [vmem:[%s513_s29] sm:$0x1] %vm12304_vm0, %v12299_v2  ;;  %v15441_v4 = vpop.f32.mrb[47].mxu1 }
0x1067   : > { %16250 = shalt.err (!%p16247_p3)
}
0x1068   : > { %s16251_s4 = scalar_lea.hbm %s19458_s26, 16  ;;  %s16255_s19 = scalar_lea.hbm %s19516_s16, 32 }
0x1069   : > { %p16252_p4 = scmp.ne.s32.totalorder %s19458_s26, %s16251_s4  ;;  %p16256_p9 = scmp.lt.u32.totalorder %s19458_s26, %s19516_s16 }
0x106a   : > { %p16257_p10 = scmp.lt.u32.totalorder %s16255_s19, %s16251_s4  ;;  %p16259_p12 = scmp.lt.u32.totalorder %s16251_s4, %s19458_s26 }
0x106b   : > { %p16253_p7 = pnand %p16252_p4, %p16432_p5 }
0x106c   : > { %p16258_p11 = por %p16257_p10, %p16256_p9 }
0x106d   : > { %p16254_p8 = pneg %p16253_p7 }
0x106e   : > { %p16260_p13 = por %p16259_p12, %p16258_p11 }
0x1070   : > { %p16261_p0 = pnand %p16260_p13, %p16254_p8 }
0x1072   : > { %16264 = shalt.err (!%p16261_p0)
}
0x1073   : > { %16122 = dma.vmem_to_hbm [thread:$0]  (%p16432_p5), %s19460_s18, 16, %s19458_s26, %s12307_s1  }
0x1074 PF: > { %p16128_p1 = scmp.ge.s32.totalorder %s16299_s24, 2  ;;  %s12331_s2 = sand.u32 1, %s16287_s21  }
0x1075   : > { %s12332_s3 = scalar_lea.sflag [#allocation16], %s12331_s2 }
0x1076   : > { %p16125_p2 = pnand %p16128_p1, %p16436_p6 }
0x1078   : > { %16282 = dma.done.wait (!%p16125_p2), %s12332_s3, 16  }
0x1079   : > { %16284 = vsyncadd (!%p16125_p2), %s12332_s3, 4294967280  ;;  %p26_p3 = scmp.ge.s32.totalorder %s16419_s27, 4   ;;  %s19536_s21 = smov %s16291_s22 }
0x107a   : > { %s19537_s22 = smov %s16295_s23  ;;  %s19538_s23 = smov %s16430_s30 }
0x107b   : > { %s19539_s24 = smov %s16419_s27  ;;  %28 = sbr.rel (!%p26_p3) target bundleno = 10 (0xa), region = 1020 }
0x1082   :  { %12336 = vsyncpa [#allocation16], 1 }
0x1083   :  { %12338 = vsyncpa [#allocation16 + $0x1], 1 }

</bundles_post_ra>
